<compile_context>
chip_gen: v6e
topology: v6e:2x2x1
jax: 0.10.0
libtpu: 0.0.40
codegen_flags: <defaults>
</compile_context>

<pallas_src>
import functools

import numpy as np
import jax
import jax.numpy as jnp
from jax import lax
from jax.experimental import pallas as pl
from jax.experimental.pallas import tpu as pltpu


# ----------------------------------------------------------------------------
# Spherical sampling grid (equirectangular tangent-plane 3x3 kernel), numpy,
# computed once per (H, W, stride) at trace time.
# ----------------------------------------------------------------------------
def gen_sphere_sampling_grid(h, w, stride=1):
    pi = np.pi
    ii = np.arange(0, h, stride, dtype=np.float64)
    jj = np.arange(0, w, stride, dtype=np.float64)
    Hp, Wp = ii.shape[0], jj.shape[0]

    phi = -((ii + 0.5) / h * pi - pi / 2)          # (Hp,)
    theta = (jj + 0.5) / w * 2 * pi - pi           # (Wp,)
    delta_phi = pi / h
    delta_theta = 2 * pi / w
    tx = np.tan(delta_theta)
    ty = np.tan(delta_phi)
    x = np.array([[-tx, 0.0, tx]] * 3)                               # (3, 3)
    y = np.array([[ty] * 3, [0.0] * 3, [-ty] * 3])                   # (3, 3)

    phi_b = phi[:, None, None, None]
    theta_b = theta[None, :, None, None]
    xb = x[None, None]
    yb = y[None, None]

    with np.errstate(invalid="ignore", divide="ignore"):
        rho = np.sqrt(xb ** 2 + yb ** 2)
        v = np.arctan(rho)
        new_phi = np.arcsin(np.cos(v) * np.sin(phi_b)
                            + yb * np.sin(v) * np.cos(phi_b) / rho)
        new_theta = theta_b + np.arctan(
            xb * np.sin(v)
            / (rho * np.cos(phi_b) * np.cos(v) - yb * np.sin(phi_b) * np.sin(v)))

    new_r = (-new_phi + pi / 2) * h / pi - 0.5
    new_c = (new_theta + pi) * w / (2 * pi) - 0.5
    new_r = np.broadcast_to(new_r, (Hp, Wp, 3, 3)).copy()
    new_c = np.broadcast_to(new_c, (Hp, Wp, 3, 3)).copy()
    # kernel centre samples the anchor pixel itself (overwrites the 0/0 NaN).
    new_r[:, :, 1, 1] = ii[:, None]
    new_c[:, :, 1, 1] = jj[None, :]
    return new_r.astype(np.float32), new_c.astype(np.float32)


# ----------------------------------------------------------------------------
# Compile-time bilinear index / weight tables.
# tap_major=False -> index order (pixel, tap)  : used by conv (K = 9*Cin)
# tap_major=True  -> index order (tap, pixel)  : used by pool (reduce over taps)
# TODO(synk): PyTorch grid_sample(padding_mode='zeros') zeroes OOB taps; here
#             OOB taps are border-clamped (same approximation as before).
# TODO(synk): new_theta is not wrapped mod 2*pi, so the equirect seam clamps
#             instead of wrapping (matches the previous implementation).
# ----------------------------------------------------------------------------
@functools.lru_cache(maxsize=None)
def _sphere_bilinear_tables(h, w, stride, tap_major):
    rows, cols = gen_sphere_sampling_grid(h, w, stride)    # (Hp, Wp, 3, 3) f32
    Hp, Wp = rows.shape[:2]
    if tap_major:
        rows = np.transpose(rows, (2, 3, 0, 1))            # (3, 3, Hp, Wp)
        cols = np.transpose(cols, (2, 3, 0, 1))
    rows = rows.reshape(-1).astype(np.float64)
    cols = cols.reshape(-1).astype(np.float64)

    r0 = np.floor(rows)
    c0 = np.floor(cols)
    dr = (rows - r0).astype(np.float32)
    dc = (cols - c0).astype(np.float32)
    r0 = r0.astype(np.int64)
    c0 = c0.astype(np.int64)

    def flat(r, c):
        r = np.clip(r, 0, h - 1)
        c = np.clip(c, 0, w - 1)
        return (r * w + c).astype(np.int32)

    idx = np.stack([flat(r0, c0), flat(r0, c0 + 1),
                    flat(r0 + 1, c0), flat(r0 + 1, c0 + 1)])            # (4, M) int32
    wts = np.stack([(1.0 - dr) * (1.0 - dc), (1.0 - dr) * dc,
                    dr * (1.0 - dc), dr * dc]).astype(np.float32)        # (4, M) f32
    return idx, wts, (Hp, Wp)


# ----------------------------------------------------------------------------
# Tile-size pickers (exact divisors -> no padding, no masked partial blocks).
# ----------------------------------------------------------------------------
def _pick_row_tile(n, cap=1536):
    """Largest divisor of n that is a multiple of 8, <= cap, leaving >= 2 blocks."""
    for d in range(min(cap, n), 7, -1):
        if n % d == 0 and d % 8 == 0 and n // d >= 2:
            return d
    return n          # fall back to a single full-extent block (valid BlockSpec)


def _pick_lane_tile(length, cap=16384):
    """Largest multiple of 128 that divides `length` and is <= cap, else full length."""
    for m in range(cap // 128, 0, -1):
        t = m * 128
        if length % t == 0:
            return t
    return length     # full-extent block is always a valid BlockSpec


# ----------------------------------------------------------------------------
# Pallas kernels
# ----------------------------------------------------------------------------
def _linear_kernel(x_ref, w_ref, b_ref, o_ref):
    # x: (tm, K), w: (Cout, K)  (PyTorch Linear layout) -> contract last dims on MXU.
    acc = lax.dot_general(
        x_ref[...], w_ref[...],
        dimension_numbers=(((1,), (1,)), ((), ())),
        preferred_element_type=jnp.float32)
    o_ref[...] = acc + b_ref[...]


def _pool_relu_kernel(x_ref, o_ref):
    # x: (1, 9, Lt) -> unrolled max over the 9 taps + ReLU, lane-dense store (1, 1, Lt).
    m = x_ref[:, 0, :]
    for t in range(1, 9):
        m = jnp.maximum(m, x_ref[:, t, :])
    o_ref[:, 0, :] = jnp.maximum(m, 0.0)


def pallas_linear(x, w, b):
    """x: (N, K) f32, w: (Cout, K) f32, b: (Cout,) f32 -> (N, Cout) f32."""
    N, K = x.shape
    Cout = w.shape[0]
    tm = _pick_row_tile(N)
    return pl.pallas_call(
        _linear_kernel,
        out_shape=jax.ShapeDtypeStruct((N, Cout), jnp.float32),
        grid=(N // tm,),
        in_specs=[
            pl.BlockSpec((tm, K), lambda i: (i, 0)),
            pl.BlockSpec((Cout, K), lambda i: (0, 0)),
            pl.BlockSpec((1, Cout), lambda i: (0, 0)),
        ],
        out_specs=pl.BlockSpec((tm, Cout), lambda i: (i, 0)),
        compiler_params=pltpu.CompilerParams(dimension_semantics=("parallel",)),
    )(x, w, b.reshape(1, Cout))


def pallas_maxpool_relu(taps):
    """taps: (B, 9, L) f32 -> (B, 1, L) f32 : max over the 9 sphere taps + ReLU."""
    B, T, L = taps.shape
    lt = _pick_lane_tile(L)
    return pl.pallas_call(
        _pool_relu_kernel,
        out_shape=jax.ShapeDtypeStruct((B, 1, L), jnp.float32),
        grid=(B, L // lt),
        in_specs=[pl.BlockSpec((1, T, lt), lambda b, l: (b, 0, l))],
        out_specs=pl.BlockSpec((1, 1, lt), lambda b, l: (b, 0, l)),
        compiler_params=pltpu.CompilerParams(
            dimension_semantics=("parallel", "parallel")),
    )(taps)


# ----------------------------------------------------------------------------
# Sphere layers (gather glue in XLA, reductions/matmuls in Pallas).
# ----------------------------------------------------------------------------
def sphere_conv2d(x_nhwc, wmat, bias, stride=1):
    """x: (B, H, W, Cin); wmat: (Cout, 9*Cin) with K ordered (ki, kj, cin)."""
    B, H, W, C = x_nhwc.shape
    Cout = wmat.shape[0]
    idx, wts, (Hp, Wp) = _sphere_bilinear_tables(H, W, stride, False)   # pixel-major

    if C == 1:
        # avoid a trailing size-1 minor dim in the gathered intermediates
        xf = x_nhwc.reshape(B, H * W)
        taps = None
        for k in range(4):
            term = (jnp.take(xf, jnp.asarray(idx[k]), axis=1, mode="clip")
                    * jnp.asarray(wts[k])[None, :])
            taps = term if taps is None else taps + term                # (B, Hp*Wp*9)
        patches = taps.reshape(B * Hp * Wp, 9)
    else:
        xf = x_nhwc.reshape(B, H * W, C)
        taps = None
        for k in range(4):
            term = (jnp.take(xf, jnp.asarray(idx[k]), axis=1, mode="clip")
                    * jnp.asarray(wts[k])[None, :, None])
            taps = term if taps is None else taps + term                # (B, Hp*Wp*9, C)
        patches = taps.reshape(B * Hp * Wp, 9 * C)                      # K = (ki,kj,cin)

    out = pallas_linear(patches, wmat, bias)                            # (N, Cout)
    return out.reshape(B, Hp, Wp, Cout)


def sphere_maxpool2d_relu(x_nhwc, stride=2):
    B, H, W, C = x_nhwc.shape
    idx, wts, (Hp, Wp) = _sphere_bilinear_tables(H, W, stride, True)    # tap-major

    xf = x_nhwc.reshape(B, H * W, C)
    taps = None
    for k in range(4):
        term = (jnp.take(xf, jnp.asarray(idx[k]), axis=1, mode="clip")
                * jnp.asarray(wts[k])[None, :, None])
        taps = term if taps is None else taps + term                    # (B, 9*Hp*Wp, C)
    taps = taps.reshape(B, 9, Hp * Wp * C)                              # lane-dense L last

    out = pallas_maxpool_relu(taps)                                     # (B, 1, L)
    return out.reshape(B, Hp, Wp, C)


# ----------------------------------------------------------------------------
# SphereNet params + forward
# ----------------------------------------------------------------------------
def init_spherenet_params(key):
    ks = jax.random.split(key, 6)

    def kaiming(k, shape, fan_in):
        return (jax.random.normal(k, shape, jnp.float32)
                * np.sqrt(2.0 / fan_in)).astype(jnp.float32)

    def ubias(k, n, fan_in):
        bound = 1.0 / np.sqrt(fan_in)
        return jax.random.uniform(k, (n,), jnp.float32, -bound, bound)

    # Conv weights are generated in the PyTorch (Cout, Cin, 3, 3) layout and
    # reordered ONCE here to (Cout, 9*Cin) with K ordered (ki, kj, cin) so the
    # forward only does free reshapes on activations.
    conv1_w = kaiming(ks[0], (32, 1, 3, 3), 1 * 9)
    conv2_w = kaiming(ks[2], (64, 32, 3, 3), 32 * 9)
    return {
        "conv1_w": conv1_w.transpose(0, 2, 3, 1).reshape(32, 9),
        "conv1_b": ubias(ks[1], 32, 1 * 9),
        "conv2_w": conv2_w.transpose(0, 2, 3, 1).reshape(64, 32 * 9),
        "conv2_b": ubias(ks[3], 64, 32 * 9),
        # fc weight kept in PyTorch nn.Linear layout (out_features, in_features);
        # its in_features axis is ordered for the NHWC (h, w, c) flatten used here
        # (equivalent to permuting the columns of a (c, h, w)-ordered weight once
        # at load time), so no runtime activation transpose is needed before fc.
        "fc_w": kaiming(ks[4], (10, 14400), 14400),
        "fc_b": ubias(ks[5], 10, 14400),
    }


def spherenet_forward(params, x_nchw):
    # x: (B, 1, 60, 60) NCHW, matching the PyTorch interface.
    x = jnp.transpose(x_nchw, (0, 2, 3, 1)).astype(jnp.float32)            # -> NHWC (tiny)
    x = sphere_conv2d(x, params["conv1_w"], params["conv1_b"], stride=1)   # (B,60,60,32)
    x = sphere_maxpool2d_relu(x, stride=2)                                 # (B,30,30,32)
    x = sphere_conv2d(x, params["conv2_w"], params["conv2_b"], stride=1)   # (B,30,30,64)
    x = sphere_maxpool2d_relu(x, stride=2)                                 # (B,15,15,64)
    B = x.shape[0]
    feats = x.reshape(B, 15 * 15 * 64)        # NHWC flatten; fc_w columns match this order
    logits = pallas_linear(feats, params["fc_w"], params["fc_b"])          # (B, 10)
    return logits


if __name__ == "__main__":
    key = jax.random.PRNGKey(0)
    kp, kx = jax.random.split(key)
    params = init_spherenet_params(kp)
    # 60x60 single-channel input is required so the flatten yields 14400 features.
    x = jax.random.normal(kx, (2, 1, 60, 60), dtype=jnp.float32)

    fwd = jax.jit(spherenet_forward)
    logits = fwd(params, x)
    logits = jax.block_until_ready(logits)

    assert logits.shape == (2, 10), logits.shape
    assert bool(jnp.all(jnp.isfinite(logits))), "non-finite output"
    print("KERNEL_OK")
</pallas_src>

<mosaic_0001>
module attributes {stable_mosaic.version = 11 : i64} {
  func.func @_linear_kernel(%arg0: i32, %arg1: memref<1440x9xf32, #tpu.memory_space<vmem>>, %arg2: memref<32x9xf32, #tpu.memory_space<vmem>>, %arg3: memref<1x32xf32, #tpu.memory_space<vmem>>, %arg4: memref<1440x32xf32, #tpu.memory_space<vmem>>) attributes {dimension_semantics = [#tpu.dimension_semantics<parallel>], iteration_bounds = array<i64: 5>, scalar_prefetch = 0 : i64, scratch_operands = 0 : i64, tpu.core_type = #tpu.core_type<tc>, window_params = [{transform_indices = @transform_0, window_bounds = array<i64: 1440, 9>}, {pipeline_mode = #tpu.pipeline_mode<synchronous>, transform_indices = @transform_1, window_bounds = array<i64: 32, 9>}, {pipeline_mode = #tpu.pipeline_mode<synchronous>, transform_indices = @transform_2, window_bounds = array<i64: 1, 32>}, {transform_indices = @transform_3, window_bounds = array<i64: 1440, 32>}]} {
    %c0 = arith.constant 0 : index
    %c0_0 = arith.constant 0 : index
    %0 = vector.load %arg1[%c0, %c0_0] : memref<1440x9xf32, #tpu.memory_space<vmem>>, vector<1440x9xf32>
    %c0_1 = arith.constant 0 : index
    %c0_2 = arith.constant 0 : index
    %1 = vector.load %arg2[%c0_1, %c0_2] : memref<32x9xf32, #tpu.memory_space<vmem>>, vector<32x9xf32>
    %cst = arith.constant dense<0.000000e+00> : vector<1440x32xf32>
    %2 = tpu.matmul %0, %1, %cst {dimension_numbers = #tpu.dot_dimension_numbers<[1], [1], [0], [0], [0, 0, 1, 0], [], []>} : vector<1440x9xf32>, vector<32x9xf32>, vector<1440x32xf32> -> vector<1440x32xf32>
    %c0_3 = arith.constant 0 : index
    %c0_4 = arith.constant 0 : index
    %3 = vector.load %arg3[%c0_3, %c0_4] : memref<1x32xf32, #tpu.memory_space<vmem>>, vector<1x32xf32>
    %4 = vector.broadcast %3 : vector<1x32xf32> to vector<1440x32xf32>
    %5 = arith.addf %2, %4 : vector<1440x32xf32>
    %c0_5 = arith.constant 0 : index
    %c0_6 = arith.constant 0 : index
    %6 = vector.load %arg4[%c0_5, %c0_6] : memref<1440x32xf32, #tpu.memory_space<vmem>>, vector<1440x32xf32>
    tpu.vector_store %arg4[%c0_5, %c0_6], %5 {strides = array<i32>} : memref<1440x32xf32, #tpu.memory_space<vmem>>, vector<1440x32xf32>,
    return
  }
  func.func @transform_0(%arg0: i32) -> (i32, i32) {
    %c0_i32 = arith.constant 0 : i32
    %c0_i32_0 = arith.constant 0 : i32
    return %arg0, %c0_i32 : i32, i32
  }
  func.func @transform_1(%arg0: i32) -> (i32, i32) {
    %c0_i32 = arith.constant 0 : i32
    %c0_i32_0 = arith.constant 0 : i32
    %c0_i32_1 = arith.constant 0 : i32
    return %c0_i32, %c0_i32_0 : i32, i32
  }
  func.func @transform_2(%arg0: i32) -> (i32, i32) {
    %c0_i32 = arith.constant 0 : i32
    %c0_i32_0 = arith.constant 0 : i32
    %c0_i32_1 = arith.constant 0 : i32
    return %c0_i32, %c0_i32_0 : i32, i32
  }
  func.func @transform_3(%arg0: i32) -> (i32, i32) {
    %c0_i32 = arith.constant 0 : i32
    %c0_i32_0 = arith.constant 0 : i32
    return %arg0, %c0_i32 : i32, i32
  }
}

module attributes {stable_mosaic.version = 11 : i64} {
  func.func @_pool_relu_kernel(%arg0: i32, %arg1: i32, %arg2: memref<1x9x9600xf32, #tpu.memory_space<vmem>>, %arg3: memref<1x1x9600xf32, #tpu.memory_space<vmem>>) attributes {dimension_semantics = [#tpu.dimension_semantics<parallel>, #tpu.dimension_semantics<parallel>], iteration_bounds = array<i64: 2, 3>, scalar_prefetch = 0 : i64, scratch_operands = 0 : i64, tpu.core_type = #tpu.core_type<tc>, window_params = [{transform_indices = @transform_0, window_bounds = array<i64: 1, 9, 9600>}, {transform_indices = @transform_1, window_bounds = array<i64: 1, 1, 9600>}]} {
    %c0 = arith.constant 0 : index
    %c0_0 = arith.constant 0 : index
    %c0_1 = arith.constant 0 : index
    %0 = vector.load %arg2[%c0, %c0_0, %c0_1] : memref<1x9x9600xf32, #tpu.memory_space<vmem>>, vector<1x1x9600xf32>
    %1 = vector.shape_cast %0 : vector<1x1x9600xf32> to vector<1x9600xf32>
    %c0_2 = arith.constant 0 : index
    %c1 = arith.constant 1 : index
    %c0_3 = arith.constant 0 : index
    %2 = vector.load %arg2[%c0_2, %c1, %c0_3] : memref<1x9x9600xf32, #tpu.memory_space<vmem>>, vector<1x1x9600xf32>
    %3 = vector.shape_cast %2 : vector<1x1x9600xf32> to vector<1x9600xf32>
    %4 = arith.maximumf %1, %3 : vector<1x9600xf32>
    %c0_4 = arith.constant 0 : index
    %c2 = arith.constant 2 : index
    %c0_5 = arith.constant 0 : index
    %5 = vector.load %arg2[%c0_4, %c2, %c0_5] : memref<1x9x9600xf32, #tpu.memory_space<vmem>>, vector<1x1x9600xf32>
    %6 = vector.shape_cast %5 : vector<1x1x9600xf32> to vector<1x9600xf32>
    %7 = arith.maximumf %4, %6 : vector<1x9600xf32>
    %c0_6 = arith.constant 0 : index
    %c3 = arith.constant 3 : index
    %c0_7 = arith.constant 0 : index
    %8 = vector.load %arg2[%c0_6, %c3, %c0_7] : memref<1x9x9600xf32, #tpu.memory_space<vmem>>, vector<1x1x9600xf32>
    %9 = vector.shape_cast %8 : vector<1x1x9600xf32> to vector<1x9600xf32>
    %10 = arith.maximumf %7, %9 : vector<1x9600xf32>
    %c0_8 = arith.constant 0 : index
    %c4 = arith.constant 4 : index
    %c0_9 = arith.constant 0 : index
    %11 = vector.load %arg2[%c0_8, %c4, %c0_9] : memref<1x9x9600xf32, #tpu.memory_space<vmem>>, vector<1x1x9600xf32>
    %12 = vector.shape_cast %11 : vector<1x1x9600xf32> to vector<1x9600xf32>
    %13 = arith.maximumf %10, %12 : vector<1x9600xf32>
    %c0_10 = arith.constant 0 : index
    %c5 = arith.constant 5 : index
    %c0_11 = arith.constant 0 : index
    %14 = vector.load %arg2[%c0_10, %c5, %c0_11] : memref<1x9x9600xf32, #tpu.memory_space<vmem>>, vector<1x1x9600xf32>
    %15 = vector.shape_cast %14 : vector<1x1x9600xf32> to vector<1x9600xf32>
    %16 = arith.maximumf %13, %15 : vector<1x9600xf32>
    %c0_12 = arith.constant 0 : index
    %c6 = arith.constant 6 : index
    %c0_13 = arith.constant 0 : index
    %17 = vector.load %arg2[%c0_12, %c6, %c0_13] : memref<1x9x9600xf32, #tpu.memory_space<vmem>>, vector<1x1x9600xf32>
    %18 = vector.shape_cast %17 : vector<1x1x9600xf32> to vector<1x9600xf32>
    %19 = arith.maximumf %16, %18 : vector<1x9600xf32>
    %c0_14 = arith.constant 0 : index
    %c7 = arith.constant 7 : index
    %c0_15 = arith.constant 0 : index
    %20 = vector.load %arg2[%c0_14, %c7, %c0_15] : memref<1x9x9600xf32, #tpu.memory_space<vmem>>, vector<1x1x9600xf32>
    %21 = vector.shape_cast %20 : vector<1x1x9600xf32> to vector<1x9600xf32>
    %22 = arith.maximumf %19, %21 : vector<1x9600xf32>
    %c0_16 = arith.constant 0 : index
    %c8 = arith.constant 8 : index
    %c0_17 = arith.constant 0 : index
    %23 = vector.load %arg2[%c0_16, %c8, %c0_17] : memref<1x9x9600xf32, #tpu.memory_space<vmem>>, vector<1x1x9600xf32>
    %24 = vector.shape_cast %23 : vector<1x1x9600xf32> to vector<1x9600xf32>
    %25 = arith.maximumf %22, %24 : vector<1x9600xf32>
    %cst = arith.constant 0.000000e+00 : f32
    %26 = vector.broadcast %cst : f32 to vector<1x9600xf32>
    %27 = arith.maximumf %25, %26 : vector<1x9600xf32>
    %c0_18 = arith.constant 0 : index
    %c0_19 = arith.constant 0 : index
    %c0_20 = arith.constant 0 : index
    %28 = vector.load %arg3[%c0_18, %c0_19, %c0_20] : memref<1x1x9600xf32, #tpu.memory_space<vmem>>, vector<1x1x9600xf32>
    %29 = vector.shape_cast %28 : vector<1x1x9600xf32> to vector<1x9600xf32>
    %30 = vector.shape_cast %27 : vector<1x9600xf32> to vector<1x1x9600xf32>
    tpu.vector_store %arg3[%c0_18, %c0_19, %c0_20], %30 {strides = array<i32>} : memref<1x1x9600xf32, #tpu.memory_space<vmem>>, vector<1x1x9600xf32>,
    return
  }
  func.func @transform_0(%arg0: i32, %arg1: i32) -> (i32, i32, i32) {
    %c0_i32 = arith.constant 0 : i32
    %c0_i32_0 = arith.constant 0 : i32
    return %arg0, %c0_i32, %arg1 : i32, i32, i32
  }
  func.func @transform_1(%arg0: i32, %arg1: i32) -> (i32, i32, i32) {
    %c0_i32 = arith.constant 0 : i32
    %c0_i32_0 = arith.constant 0 : i32
    return %arg0, %c0_i32, %arg1 : i32, i32, i32
  }
}

module attributes {stable_mosaic.version = 11 : i64} {
  func.func @_linear_kernel(%arg0: i32, %arg1: memref<600x288xf32, #tpu.memory_space<vmem>>, %arg2: memref<64x288xf32, #tpu.memory_space<vmem>>, %arg3: memref<1x64xf32, #tpu.memory_space<vmem>>, %arg4: memref<600x64xf32, #tpu.memory_space<vmem>>) attributes {dimension_semantics = [#tpu.dimension_semantics<parallel>], iteration_bounds = array<i64: 3>, scalar_prefetch = 0 : i64, scratch_operands = 0 : i64, tpu.core_type = #tpu.core_type<tc>, window_params = [{transform_indices = @transform_0, window_bounds = array<i64: 600, 288>}, {pipeline_mode = #tpu.pipeline_mode<synchronous>, transform_indices = @transform_1, window_bounds = array<i64: 64, 288>}, {pipeline_mode = #tpu.pipeline_mode<synchronous>, transform_indices = @transform_2, window_bounds = array<i64: 1, 64>}, {transform_indices = @transform_3, window_bounds = array<i64: 600, 64>}]} {
    %c0 = arith.constant 0 : index
    %c0_0 = arith.constant 0 : index
    %0 = vector.load %arg1[%c0, %c0_0] : memref<600x288xf32, #tpu.memory_space<vmem>>, vector<600x288xf32>
    %c0_1 = arith.constant 0 : index
    %c0_2 = arith.constant 0 : index
    %1 = vector.load %arg2[%c0_1, %c0_2] : memref<64x288xf32, #tpu.memory_space<vmem>>, vector<64x288xf32>
    %cst = arith.constant dense<0.000000e+00> : vector<600x64xf32>
    %2 = tpu.matmul %0, %1, %cst {dimension_numbers = #tpu.dot_dimension_numbers<[1], [1], [0], [0], [0, 0, 1, 0], [], []>} : vector<600x288xf32>, vector<64x288xf32>, vector<600x64xf32> -> vector<600x64xf32>
    %c0_3 = arith.constant 0 : index
    %c0_4 = arith.constant 0 : index
    %3 = vector.load %arg3[%c0_3, %c0_4] : memref<1x64xf32, #tpu.memory_space<vmem>>, vector<1x64xf32>
    %4 = vector.broadcast %3 : vector<1x64xf32> to vector<600x64xf32>
    %5 = arith.addf %2, %4 : vector<600x64xf32>
    %c0_5 = arith.constant 0 : index
    %c0_6 = arith.constant 0 : index
    %6 = vector.load %arg4[%c0_5, %c0_6] : memref<600x64xf32, #tpu.memory_space<vmem>>, vector<600x64xf32>
    tpu.vector_store %arg4[%c0_5, %c0_6], %5 {strides = array<i32>} : memref<600x64xf32, #tpu.memory_space<vmem>>, vector<600x64xf32>,
    return
  }
  func.func @transform_0(%arg0: i32) -> (i32, i32) {
    %c0_i32 = arith.constant 0 : i32
    %c0_i32_0 = arith.constant 0 : i32
    return %arg0, %c0_i32 : i32, i32
  }
  func.func @transform_1(%arg0: i32) -> (i32, i32) {
    %c0_i32 = arith.constant 0 : i32
    %c0_i32_0 = arith.constant 0 : i32
    %c0_i32_1 = arith.constant 0 : i32
    return %c0_i32, %c0_i32_0 : i32, i32
  }
  func.func @transform_2(%arg0: i32) -> (i32, i32) {
    %c0_i32 = arith.constant 0 : i32
    %c0_i32_0 = arith.constant 0 : i32
    %c0_i32_1 = arith.constant 0 : i32
    return %c0_i32, %c0_i32_0 : i32, i32
  }
  func.func @transform_3(%arg0: i32) -> (i32, i32) {
    %c0_i32 = arith.constant 0 : i32
    %c0_i32_0 = arith.constant 0 : i32
    return %arg0, %c0_i32 : i32, i32
  }
}

module attributes {stable_mosaic.version = 11 : i64} {
  func.func @_pool_relu_kernel(%arg0: i32, %arg1: i32, %arg2: memref<1x9x14400xf32, #tpu.memory_space<vmem>>, %arg3: memref<1x1x14400xf32, #tpu.memory_space<vmem>>) attributes {dimension_semantics = [#tpu.dimension_semantics<parallel>, #tpu.dimension_semantics<parallel>], iteration_bounds = array<i64: 2, 1>, scalar_prefetch = 0 : i64, scratch_operands = 0 : i64, tpu.core_type = #tpu.core_type<tc>, window_params = [{transform_indices = @transform_0, window_bounds = array<i64: 1, 9, 14400>}, {transform_indices = @transform_1, window_bounds = array<i64: 1, 1, 14400>}]} {
    %c0 = arith.constant 0 : index
    %c0_0 = arith.constant 0 : index
    %c0_1 = arith.constant 0 : index
    %0 = vector.load %arg2[%c0, %c0_0, %c0_1] : memref<1x9x14400xf32, #tpu.memory_space<vmem>>, vector<1x1x14400xf32>
    %1 = vector.shape_cast %0 : vector<1x1x14400xf32> to vector<1x14400xf32>
    %c0_2 = arith.constant 0 : index
    %c1 = arith.constant 1 : index
    %c0_3 = arith.constant 0 : index
    %2 = vector.load %arg2[%c0_2, %c1, %c0_3] : memref<1x9x14400xf32, #tpu.memory_space<vmem>>, vector<1x1x14400xf32>
    %3 = vector.shape_cast %2 : vector<1x1x14400xf32> to vector<1x14400xf32>
    %4 = arith.maximumf %1, %3 : vector<1x14400xf32>
    %c0_4 = arith.constant 0 : index
    %c2 = arith.constant 2 : index
    %c0_5 = arith.constant 0 : index
    %5 = vector.load %arg2[%c0_4, %c2, %c0_5] : memref<1x9x14400xf32, #tpu.memory_space<vmem>>, vector<1x1x14400xf32>
    %6 = vector.shape_cast %5 : vector<1x1x14400xf32> to vector<1x14400xf32>
    %7 = arith.maximumf %4, %6 : vector<1x14400xf32>
    %c0_6 = arith.constant 0 : index
    %c3 = arith.constant 3 : index
    %c0_7 = arith.constant 0 : index
    %8 = vector.load %arg2[%c0_6, %c3, %c0_7] : memref<1x9x14400xf32, #tpu.memory_space<vmem>>, vector<1x1x14400xf32>
    %9 = vector.shape_cast %8 : vector<1x1x14400xf32> to vector<1x14400xf32>
    %10 = arith.maximumf %7, %9 : vector<1x14400xf32>
    %c0_8 = arith.constant 0 : index
    %c4 = arith.constant 4 : index
    %c0_9 = arith.constant 0 : index
    %11 = vector.load %arg2[%c0_8, %c4, %c0_9] : memref<1x9x14400xf32, #tpu.memory_space<vmem>>, vector<1x1x14400xf32>
    %12 = vector.shape_cast %11 : vector<1x1x14400xf32> to vector<1x14400xf32>
    %13 = arith.maximumf %10, %12 : vector<1x14400xf32>
    %c0_10 = arith.constant 0 : index
    %c5 = arith.constant 5 : index
    %c0_11 = arith.constant 0 : index
    %14 = vector.load %arg2[%c0_10, %c5, %c0_11] : memref<1x9x14400xf32, #tpu.memory_space<vmem>>, vector<1x1x14400xf32>
    %15 = vector.shape_cast %14 : vector<1x1x14400xf32> to vector<1x14400xf32>
    %16 = arith.maximumf %13, %15 : vector<1x14400xf32>
    %c0_12 = arith.constant 0 : index
    %c6 = arith.constant 6 : index
    %c0_13 = arith.constant 0 : index
    %17 = vector.load %arg2[%c0_12, %c6, %c0_13] : memref<1x9x14400xf32, #tpu.memory_space<vmem>>, vector<1x1x14400xf32>
    %18 = vector.shape_cast %17 : vector<1x1x14400xf32> to vector<1x14400xf32>
    %19 = arith.maximumf %16, %18 : vector<1x14400xf32>
    %c0_14 = arith.constant 0 : index
    %c7 = arith.constant 7 : index
    %c0_15 = arith.constant 0 : index
    %20 = vector.load %arg2[%c0_14, %c7, %c0_15] : memref<1x9x14400xf32, #tpu.memory_space<vmem>>, vector<1x1x14400xf32>
    %21 = vector.shape_cast %20 : vector<1x1x14400xf32> to vector<1x14400xf32>
    %22 = arith.maximumf %19, %21 : vector<1x14400xf32>
    %c0_16 = arith.constant 0 : index
    %c8 = arith.constant 8 : index
    %c0_17 = arith.constant 0 : index
    %23 = vector.load %arg2[%c0_16, %c8, %c0_17] : memref<1x9x14400xf32, #tpu.memory_space<vmem>>, vector<1x1x14400xf32>
    %24 = vector.shape_cast %23 : vector<1x1x14400xf32> to vector<1x14400xf32>
    %25 = arith.maximumf %22, %24 : vector<1x14400xf32>
    %cst = arith.constant 0.000000e+00 : f32
    %26 = vector.broadcast %cst : f32 to vector<1x14400xf32>
    %27 = arith.maximumf %25, %26 : vector<1x14400xf32>
    %c0_18 = arith.constant 0 : index
    %c0_19 = arith.constant 0 : index
    %c0_20 = arith.constant 0 : index
    %28 = vector.load %arg3[%c0_18, %c0_19, %c0_20] : memref<1x1x14400xf32, #tpu.memory_space<vmem>>, vector<1x1x14400xf32>
    %29 = vector.shape_cast %28 : vector<1x1x14400xf32> to vector<1x14400xf32>
    %30 = vector.shape_cast %27 : vector<1x14400xf32> to vector<1x1x14400xf32>
    tpu.vector_store %arg3[%c0_18, %c0_19, %c0_20], %30 {strides = array<i32>} : memref<1x1x14400xf32, #tpu.memory_space<vmem>>, vector<1x1x14400xf32>,
    return
  }
  func.func @transform_0(%arg0: i32, %arg1: i32) -> (i32, i32, i32) {
    %c0_i32 = arith.constant 0 : i32
    %c0_i32_0 = arith.constant 0 : i32
    return %arg0, %c0_i32, %arg1 : i32, i32, i32
  }
  func.func @transform_1(%arg0: i32, %arg1: i32) -> (i32, i32, i32) {
    %c0_i32 = arith.constant 0 : i32
    %c0_i32_0 = arith.constant 0 : i32
    return %arg0, %c0_i32, %arg1 : i32, i32, i32
  }
}

module attributes {stable_mosaic.version = 11 : i64} {
  func.func @_linear_kernel(%arg0: i32, %arg1: memref<2x14400xf32, #tpu.memory_space<vmem>>, %arg2: memref<10x14400xf32, #tpu.memory_space<vmem>>, %arg3: memref<1x10xf32, #tpu.memory_space<vmem>>, %arg4: memref<2x10xf32, #tpu.memory_space<vmem>>) attributes {dimension_semantics = [#tpu.dimension_semantics<parallel>], iteration_bounds = array<i64: 1>, scalar_prefetch = 0 : i64, scratch_operands = 0 : i64, tpu.core_type = #tpu.core_type<tc>, window_params = [{transform_indices = @transform_0, window_bounds = array<i64: 2, 14400>}, {pipeline_mode = #tpu.pipeline_mode<synchronous>, transform_indices = @transform_1, window_bounds = array<i64: 10, 14400>}, {pipeline_mode = #tpu.pipeline_mode<synchronous>, transform_indices = @transform_2, window_bounds = array<i64: 1, 10>}, {transform_indices = @transform_3, window_bounds = array<i64: 2, 10>}]} {
    %c0 = arith.constant 0 : index
    %c0_0 = arith.constant 0 : index
    %0 = vector.load %arg1[%c0, %c0_0] : memref<2x14400xf32, #tpu.memory_space<vmem>>, vector<2x14400xf32>
    %c0_1 = arith.constant 0 : index
    %c0_2 = arith.constant 0 : index
    %1 = vector.load %arg2[%c0_1, %c0_2] : memref<10x14400xf32, #tpu.memory_space<vmem>>, vector<10x14400xf32>
    %cst = arith.constant dense<0.000000e+00> : vector<2x10xf32>
    %2 = tpu.matmul %0, %1, %cst {dimension_numbers = #tpu.dot_dimension_numbers<[1], [1], [0], [0], [0, 0, 1, 0], [], []>} : vector<2x14400xf32>, vector<10x14400xf32>, vector<2x10xf32> -> vector<2x10xf32>
    %c0_3 = arith.constant 0 : index
    %c0_4 = arith.constant 0 : index
    %3 = vector.load %arg3[%c0_3, %c0_4] : memref<1x10xf32, #tpu.memory_space<vmem>>, vector<1x10xf32>
    %4 = vector.broadcast %3 : vector<1x10xf32> to vector<2x10xf32>
    %5 = arith.addf %2, %4 : vector<2x10xf32>
    %c0_5 = arith.constant 0 : index
    %c0_6 = arith.constant 0 : index
    %6 = vector.load %arg4[%c0_5, %c0_6] : memref<2x10xf32, #tpu.memory_space<vmem>>, vector<2x10xf32>
    tpu.vector_store %arg4[%c0_5, %c0_6], %5 {strides = array<i32>} : memref<2x10xf32, #tpu.memory_space<vmem>>, vector<2x10xf32>,
    return
  }
  func.func @transform_0(%arg0: i32) -> (i32, i32) {
    %c0_i32 = arith.constant 0 : i32
    %c0_i32_0 = arith.constant 0 : i32
    return %arg0, %c0_i32 : i32, i32
  }
  func.func @transform_1(%arg0: i32) -> (i32, i32) {
    %c0_i32 = arith.constant 0 : i32
    %c0_i32_0 = arith.constant 0 : i32
    %c0_i32_1 = arith.constant 0 : i32
    return %c0_i32, %c0_i32_0 : i32, i32
  }
  func.func @transform_2(%arg0: i32) -> (i32, i32) {
    %c0_i32 = arith.constant 0 : i32
    %c0_i32_0 = arith.constant 0 : i32
    %c0_i32_1 = arith.constant 0 : i32
    return %c0_i32, %c0_i32_0 : i32, i32
  }
  func.func @transform_3(%arg0: i32) -> (i32, i32) {
    %c0_i32 = arith.constant 0 : i32
    %c0_i32_0 = arith.constant 0 : i32
    return %arg0, %c0_i32 : i32, i32
  }
}

</mosaic_0001>

<bundles_post_ra>
// kernel: spherenet_forward.5
= control target key start
LH: loop header
LB: loop body
LE: loop exit
PB: predicated region body
PF: predicated region fallthrough
CT: control target
= control target key end

     0   :  { %s2821_s12 = smov 0   ;;  %s3775_s0 = inlined_call_operand.vmem [shape: f32[7200,9], index: 0, kind: input, shape index: {}]   ;;  %s3776_s1 = inlined_call_operand.vmem [shape: f32[32,9], index: 1, kind: input, shape index: {}]   ;;  %s3777_s2 = inlined_call_operand.vmem [shape: f32[1,32], index: 2, kind: input, shape index: {}]   ;;  %s3778_s3 = inlined_call_operand.vmem [shape: f32[7200,32], index: 3, kind: output, shape index: {}]  }
   0x1 LB: > { %s2120_s13 = sadd.s32 4294967295, %s2799_s12   ;;  %p2124_p0 = scmp.ge.s32.totalorder %s2799_s12, 1  ;;  %s2799_s12 = sphi %s2821_s12, %s13_s12  }
   0x2   : > { %p138_p1 = scmp.lt.s32.totalorder %s2799_s12, 6 }
   0x4   : > { %p139_p2 = pnand %p2124_p0, %p138_p1 }
   0x5   : > { %s162_s18 = smul.u32 (!%p139_p2), 180, %s2120_s13 }
   0x6   : > { %142 = sbr.rel (%p139_p2) target bundleno = 402 (0x192), region = 32 }
   0x7   : > { %p163_p3 = scmp.lt.s32.totalorder (!%p139_p2), %s162_s18, 899 }
   0xb   : > { %v357_v0 = vld [vmem:[%s3776_s1 + $0x18] sm:$0xff]  ;;  %vm365_vm0 = vcmask 72704   ;;  %v356_v1 = vld [vmem:[%s3776_s1 + $0x10] sm:$0xff]  ;;  %v355_v2 = vld [vmem:[%s3776_s1 + $0x8] sm:$0xff]  ;;  %s3780_s18 = smov (!%p163_p3, %s162_s18), 899  ;;  %vm1883_vm1 = vcmask 261120  }
   0xc   : > { %2498 = vmatprep.subr.msk.mxu0 %vm365_vm0, %v357_v0  ;;  %2776 = vmatprep.subr.msk.mxu1 %vm365_vm0, %v357_v0  ;;  %s2125_s21 = sshll.u32 %s3780_s18, 3  ;;  %v354_v3 = vld [vmem:[%s3776_s1] sm:$0xff] }
   0xd   : > { %2499 = vmatpush3.xpose.msk.msra.mxu0 %vm365_vm0, %v357_v0  ;;  %2780 = vmatpush3.xpose.msk.msra.mxu1 %vm365_vm0, %v357_v0  ;;  %s2856_s24 = scalar_lea.vmem %s3775_s0, %s2125_s21  ;;  %s3237_s4 = scalar_lea.vmem %s3778_s3, %s2125_s21 }
   0xe   : > { %2500 = vmatprep.subr.msk.mxu0 %vm365_vm0, %v356_v1  ;;  %2777 = vmatprep.subr.msk.mxu1 %vm365_vm0, %v356_v1  ;;  %v174_v4 = vld [vmem:[%s2856_s24] sm:$0xff]  ;;  %v264_v5 = vld [vmem:[%s2856_s24 + $0x2d0] sm:$0xff]  ;;  %v175_v6 = vld [vmem:[%s2856_s24 + $0x8] sm:$0xff] }
   0xf   : > { %2506 = vmatprep.mubr.msk.f32.mxu0 %vm365_vm0, %v174_v4  ;;  %2641 = vmatprep.mubr.msk.f32.mxu1 %vm365_vm0, %v264_v5  ;;  %v265_v7 = vld [vmem:[%s2856_s24 + $0x2d8] sm:$0xff]  ;;  %v176_v8 = vld [vmem:[%s2856_s24 + $0x10] sm:$0xff]  ;;  %v266_v9 = vld [vmem:[%s2856_s24 + $0x2e0] sm:$0xff] }
  0x10   : > { %v177_v10 = vld [vmem:[%s2856_s24 + $0x18] sm:$0xff]  ;;  %v267_v11 = vld [vmem:[%s2856_s24 + $0x2e8] sm:$0xff]  ;;  %v178_v12 = vld [vmem:[%s2856_s24 + $0x20] sm:$0xff] }
  0x11   : > { %2501 = vmatpush3.xpose.msk.msra.mxu0 %vm365_vm0, %v356_v1  ;;  %2781 = vmatpush3.xpose.msk.msra.mxu1 %vm365_vm0, %v356_v1  ;;  %v268_v13 = vld [vmem:[%s2856_s24 + $0x2f0] sm:$0xff]  ;;  %v179_v14 = vld [vmem:[%s2856_s24 + $0x28] sm:$0xff]  ;;  %v269_v15 = vld [vmem:[%s2856_s24 + $0x2f8] sm:$0xff] }
  0x12   : > { %2502 = vmatprep.subr.msk.mxu0 %vm365_vm0, %v355_v2  ;;  %2778 = vmatprep.subr.msk.mxu1 %vm365_vm0, %v355_v2  ;;  %v180_v16 = vld [vmem:[%s2856_s24 + $0x30] sm:$0xff]  ;;  %v270_v17 = vld [vmem:[%s2856_s24 + $0x300] sm:$0xff]  ;;  %v181_v18 = vld [vmem:[%s2856_s24 + $0x38] sm:$0xff] }
  0x13   : > { %v271_v19 = vld [vmem:[%s2856_s24 + $0x308] sm:$0xff]  ;;  %v182_v20 = vld [vmem:[%s2856_s24 + $0x40] sm:$0xff]  ;;  %v272_v21 = vld [vmem:[%s2856_s24 + $0x310] sm:$0xff] }
  0x14   : > { %v183_v22 = vld [vmem:[%s2856_s24 + $0x48] sm:$0xff]  ;;  %v273_v23 = vld [vmem:[%s2856_s24 + $0x318] sm:$0xff]  ;;  %v184_v24 = vld [vmem:[%s2856_s24 + $0x50] sm:$0xff] }
  0x15   : > { %2503 = vmatpush3.xpose.msk.msra.mxu0 %vm365_vm0, %v355_v2  ;;  %2782 = vmatpush3.xpose.msk.msra.mxu1 %vm365_vm0, %v355_v2  ;;  %v274_v25 = vld [vmem:[%s2856_s24 + $0x320] sm:$0xff]  ;;  %v185_v26 = vld [vmem:[%s2856_s24 + $0x58] sm:$0xff]  ;;  %v275_v27 = vld [vmem:[%s2856_s24 + $0x328] sm:$0xff] }
  0x16   : > { %2504 = vmatprep.subr.msk.mxu0 %vm365_vm0, %v354_v3  ;;  %2779 = vmatprep.subr.msk.mxu1 %vm365_vm0, %v354_v3  ;;  %v186_v28 = vld [vmem:[%s2856_s24 + $0x60] sm:$0xff]  ;;  %v276_v29 = vld [vmem:[%s2856_s24 + $0x330] sm:$0xff]  ;;  %v187_v30 = vld [vmem:[%s2856_s24 + $0x68] sm:$0xff] }
  0x17   : > { %v277_v31 = vld [vmem:[%s2856_s24 + $0x338] sm:$0xff]  ;;  %v188_v32 = vld [vmem:[%s2856_s24 + $0x70] sm:$0xff]  ;;  %v278_v33 = vld [vmem:[%s2856_s24 + $0x340] sm:$0xff] }
  0x18   : > { %v189_v34 = vld [vmem:[%s2856_s24 + $0x78] sm:$0xff]  ;;  %v279_v35 = vld [vmem:[%s2856_s24 + $0x348] sm:$0xff]  ;;  %v190_v36 = vld [vmem:[%s2856_s24 + $0x80] sm:$0xff] }
  0x19   : > { %2505 = vmatpush3.xpose.msk.msra.mxu0 %vm365_vm0, %v354_v3  ;;  %2783 = vmatpush3.xpose.msk.msra.mxu1 %vm365_vm0, %v354_v3  ;;  %v280_v37 = vld [vmem:[%s2856_s24 + $0x350] sm:$0xff]  ;;  %v191_v38 = vld [vmem:[%s2856_s24 + $0x88] sm:$0xff]  ;;  %v281_v39 = vld [vmem:[%s2856_s24 + $0x358] sm:$0xff] }
  0x1a   : > { %v192_v40 = vld [vmem:[%s2856_s24 + $0x90] sm:$0xff]  ;;  %v282_v41 = vld [vmem:[%s2856_s24 + $0x360] sm:$0xff]  ;;  %v193_v42 = vld [vmem:[%s2856_s24 + $0x98] sm:$0xff] }
  0x1b   : > { %v283_v43 = vld [vmem:[%s2856_s24 + $0x368] sm:$0xff]  ;;  %v194_v44 = vld [vmem:[%s2856_s24 + $0xa0] sm:$0xff]  ;;  %v284_v45 = vld [vmem:[%s2856_s24 + $0x370] sm:$0xff] }
  0x1c   : > { %2507 = vmatmul.mubr.msk.f32.vlgmr.msra.gmra.mxu0 %vm365_vm0, %v175_v6  ;;  %2642 = vmatmul.mubr.msk.f32.vlgmr.msra.gmra.mxu1 %vm365_vm0, %v265_v7  ;;  %v195_v46 = vld [vmem:[%s2856_s24 + $0xa8] sm:$0xff]  ;;  %v285_v47 = vld [vmem:[%s2856_s24 + $0x378] sm:$0xff]  ;;  %v196_v48 = vld [vmem:[%s2856_s24 + $0xb0] sm:$0xff] }
  0x1d   : > { %2509 = vmatprep.mubr.msk.f32.mxu0 %vm365_vm0, %v176_v8  ;;  %2644 = vmatprep.mubr.msk.f32.mxu1 %vm365_vm0, %v266_v9  ;;  %v286_v49 = vld [vmem:[%s2856_s24 + $0x380] sm:$0xff]  ;;  %v197_v50 = vld [vmem:[%s2856_s24 + $0xb8] sm:$0xff]  ;;  %v287_v51 = vld [vmem:[%s2856_s24 + $0x388] sm:$0xff] }
  0x1e   : > { %v198_v52 = vld [vmem:[%s2856_s24 + $0xc0] sm:$0xff]  ;;  %v288_v53 = vld [vmem:[%s2856_s24 + $0x390] sm:$0xff]  ;;  %v199_v54 = vld [vmem:[%s2856_s24 + $0xc8] sm:$0xff] }
  0x1f   : > { %v289_v55 = vld [vmem:[%s2856_s24 + $0x398] sm:$0xff]  ;;  %v200_v56 = vld [vmem:[%s2856_s24 + $0xd0] sm:$0xff]  ;;  %v290_v57 = vld [vmem:[%s2856_s24 + $0x3a0] sm:$0xff] }
  0x20   : > { %2510 = vmatmul.mubr.msk.f32.gmra.mxu0 %vm365_vm0, %v177_v10  ;;  %2645 = vmatmul.mubr.msk.f32.gmra.mxu1 %vm365_vm0, %v267_v11  ;;  %v201_v58 = vld [vmem:[%s2856_s24 + $0xd8] sm:$0xff]  ;;  %v291_v59 = vld [vmem:[%s2856_s24 + $0x3a8] sm:$0xff]  ;;  %v202_v60 = vld [vmem:[%s2856_s24 + $0xe0] sm:$0xff] }
  0x21   : > { %2512 = vmatprep.mubr.msk.f32.mxu0 %vm365_vm0, %v178_v12  ;;  %2647 = vmatprep.mubr.msk.f32.mxu1 %vm365_vm0, %v268_v13  ;;  %v292_v61 = vld [vmem:[%s2856_s24 + $0x3b0] sm:$0xff]  ;;  %v203_v62 = vld [vmem:[%s2856_s24 + $0xe8] sm:$0xff]  ;;  %v293_v63 = vld [vmem:[%s2856_s24 + $0x3b8] sm:$0xff] }
  0x22   : > { %v204_v0 = vld [vmem:[%s2856_s24 + $0xf0] sm:$0xff]  ;;  %v294_v1 = vld [vmem:[%s2856_s24 + $0x3c0] sm:$0xff]  ;;  %v205_v2 = vld [vmem:[%s2856_s24 + $0xf8] sm:$0xff] }
  0x23   : > { %v295_v3 = vld [vmem:[%s2856_s24 + $0x3c8] sm:$0xff]  ;;  %v206_v4 = vld [vmem:[%s2856_s24 + $0x100] sm:$0xff]  ;;  %v296_v5 = vld [vmem:[%s2856_s24 + $0x3d0] sm:$0xff] }
  0x24   : > { %2513 = vmatmul.mubr.msk.f32.gmra.mxu0 %vm365_vm0, %v179_v14  ;;  %2648 = vmatmul.mubr.msk.f32.gmra.mxu1 %vm365_vm0, %v269_v15  ;;  %v207_v6 = vld [vmem:[%s2856_s24 + $0x108] sm:$0xff]  ;;  %v297_v7 = vld [vmem:[%s2856_s24 + $0x3d8] sm:$0xff]  ;;  %v208_v8 = vld [vmem:[%s2856_s24 + $0x110] sm:$0xff] }
  0x25   : > { %2515 = vmatprep.mubr.msk.f32.mxu0 %vm365_vm0, %v180_v16  ;;  %2650 = vmatprep.mubr.msk.f32.mxu1 %vm365_vm0, %v270_v17  ;;  %v298_v9 = vld [vmem:[%s2856_s24 + $0x3e0] sm:$0xff]  ;;  %v209_v10 = vld [vmem:[%s2856_s24 + $0x118] sm:$0xff]  ;;  %v299_v11 = vld [vmem:[%s2856_s24 + $0x3e8] sm:$0xff] }
  0x26   : > { %v210_v12 = vld [vmem:[%s2856_s24 + $0x120] sm:$0xff]  ;;  %v300_v13 = vld [vmem:[%s2856_s24 + $0x3f0] sm:$0xff]  ;;  %v211_v14 = vld [vmem:[%s2856_s24 + $0x128] sm:$0xff] }
  0x27   : > { %v301_v15 = vld [vmem:[%s2856_s24 + $0x3f8] sm:$0xff]  ;;  %v212_v16 = vld [vmem:[%s2856_s24 + $0x130] sm:$0xff]  ;;  %v302_v17 = vld [vmem:[%s2856_s24 + $0x400] sm:$0xff] }
  0x28   : > { %2516 = vmatmul.mubr.msk.f32.gmra.mxu0 %vm365_vm0, %v181_v18  ;;  %2651 = vmatmul.mubr.msk.f32.gmra.mxu1 %vm365_vm0, %v271_v19  ;;  %v213_v18 = vld [vmem:[%s2856_s24 + $0x138] sm:$0xff]  ;;  %v303_v19 = vld [vmem:[%s2856_s24 + $0x408] sm:$0xff] }
  0x29   : > { %2518 = vmatprep.mubr.msk.f32.mxu0 %vm365_vm0, %v182_v20  ;;  %2653 = vmatprep.mubr.msk.f32.mxu1 %vm365_vm0, %v272_v21  ;;  %v214_v20 = vld [vmem:[%s2856_s24 + $0x140] sm:$0xff]  ;;  %v304_v21 = vld [vmem:[%s2856_s24 + $0x410] sm:$0xff] }
  0x2c   : > { %2519 = vmatmul.mubr.msk.f32.gmra.mxu0 %vm365_vm0, %v183_v22  ;;  %2654 = vmatmul.mubr.msk.f32.gmra.mxu1 %vm365_vm0, %v273_v23  ;;  %v215_v22 = vld [vmem:[%s2856_s24 + $0x148] sm:$0xff]  ;;  %v305_v23 = vld [vmem:[%s2856_s24 + $0x418] sm:$0xff] }
  0x2d   : > { %2521 = vmatprep.mubr.msk.f32.mxu0 %vm365_vm0, %v184_v24  ;;  %2656 = vmatprep.mubr.msk.f32.mxu1 %vm365_vm0, %v274_v25  ;;  %v216_v24 = vld [vmem:[%s2856_s24 + $0x150] sm:$0xff]  ;;  %v306_v25 = vld [vmem:[%s2856_s24 + $0x420] sm:$0xff] }
  0x30   : > { %2522 = vmatmul.mubr.msk.f32.gmra.mxu0 %vm365_vm0, %v185_v26  ;;  %2657 = vmatmul.mubr.msk.f32.gmra.mxu1 %vm365_vm0, %v275_v27  ;;  %v217_v26 = vld [vmem:[%s2856_s24 + $0x158] sm:$0xff]  ;;  %v307_v27 = vld [vmem:[%s2856_s24 + $0x428] sm:$0xff] }
  0x31   : > { %2524 = vmatprep.mubr.msk.f32.mxu0 %vm365_vm0, %v186_v28  ;;  %2659 = vmatprep.mubr.msk.f32.mxu1 %vm365_vm0, %v276_v29  ;;  %v218_v28 = vld [vmem:[%s2856_s24 + $0x160] sm:$0xff]  ;;  %v308_v29 = vld [vmem:[%s2856_s24 + $0x430] sm:$0xff] }
  0x34   : > { %2525 = vmatmul.mubr.msk.f32.gmra.mxu0 %vm365_vm0, %v187_v30  ;;  %2660 = vmatmul.mubr.msk.f32.gmra.mxu1 %vm365_vm0, %v277_v31  ;;  %v219_v30 = vld [vmem:[%s2856_s24 + $0x168] sm:$0xff]  ;;  %v309_v31 = vld [vmem:[%s2856_s24 + $0x438] sm:$0xff] }
  0x35   : > { %2527 = vmatprep.mubr.msk.f32.mxu0 %vm365_vm0, %v188_v32  ;;  %2662 = vmatprep.mubr.msk.f32.mxu1 %vm365_vm0, %v278_v33  ;;  %v220_v32 = vld [vmem:[%s2856_s24 + $0x170] sm:$0xff]  ;;  %v310_v33 = vld [vmem:[%s2856_s24 + $0x440] sm:$0xff] }
  0x38   : > { %2528 = vmatmul.mubr.msk.f32.gmra.mxu0 %vm365_vm0, %v189_v34  ;;  %2663 = vmatmul.mubr.msk.f32.gmra.mxu1 %vm365_vm0, %v279_v35  ;;  %v221_v34 = vld [vmem:[%s2856_s24 + $0x178] sm:$0xff]  ;;  %v311_v35 = vld [vmem:[%s2856_s24 + $0x448] sm:$0xff] }
  0x39   : > { %2530 = vmatprep.mubr.msk.f32.mxu0 %vm365_vm0, %v190_v36  ;;  %2665 = vmatprep.mubr.msk.f32.mxu1 %vm365_vm0, %v280_v37  ;;  %v222_v36 = vld [vmem:[%s2856_s24 + $0x180] sm:$0xff]  ;;  %v312_v37 = vld [vmem:[%s2856_s24 + $0x450] sm:$0xff] }
  0x3c   : > { %2531 = vmatmul.mubr.msk.f32.gmra.mxu0 %vm365_vm0, %v191_v38  ;;  %2666 = vmatmul.mubr.msk.f32.gmra.mxu1 %vm365_vm0, %v281_v39  ;;  %v223_v38 = vld [vmem:[%s2856_s24 + $0x188] sm:$0xff]  ;;  %v313_v39 = vld [vmem:[%s2856_s24 + $0x458] sm:$0xff] }
  0x3d   : > { %2533 = vmatprep.mubr.msk.f32.mxu0 %vm365_vm0, %v192_v40  ;;  %2668 = vmatprep.mubr.msk.f32.mxu1 %vm365_vm0, %v282_v41  ;;  %v224_v40 = vld [vmem:[%s2856_s24 + $0x190] sm:$0xff]  ;;  %v314_v41 = vld [vmem:[%s2856_s24 + $0x460] sm:$0xff] }
  0x40   : > { %2534 = vmatmul.mubr.msk.f32.gmra.mxu0 %vm365_vm0, %v193_v42  ;;  %2669 = vmatmul.mubr.msk.f32.gmra.mxu1 %vm365_vm0, %v283_v43  ;;  %v225_v42 = vld [vmem:[%s2856_s24 + $0x198] sm:$0xff]  ;;  %v315_v43 = vld [vmem:[%s2856_s24 + $0x468] sm:$0xff] }
  0x41   : > { %2536 = vmatprep.mubr.msk.f32.mxu0 %vm365_vm0, %v194_v44  ;;  %2671 = vmatprep.mubr.msk.f32.mxu1 %vm365_vm0, %v284_v45  ;;  %v226_v44 = vld [vmem:[%s2856_s24 + $0x1a0] sm:$0xff]  ;;  %v316_v45 = vld [vmem:[%s2856_s24 + $0x470] sm:$0xff] }
  0x44   : > { %2537 = vmatmul.mubr.msk.f32.gmra.mxu0 %vm365_vm0, %v195_v46  ;;  %2672 = vmatmul.mubr.msk.f32.gmra.mxu1 %vm365_vm0, %v285_v47  ;;  %v227_v46 = vld [vmem:[%s2856_s24 + $0x1a8] sm:$0xff]  ;;  %v317_v47 = vld [vmem:[%s2856_s24 + $0x478] sm:$0xff] }
  0x45   : > { %2539 = vmatprep.mubr.msk.f32.mxu0 %vm365_vm0, %v196_v48  ;;  %2674 = vmatprep.mubr.msk.f32.mxu1 %vm365_vm0, %v286_v49  ;;  %v228_v48 = vld [vmem:[%s2856_s24 + $0x1b0] sm:$0xff]  ;;  %v318_v49 = vld [vmem:[%s2856_s24 + $0x480] sm:$0xff] }
  0x48   : > { %2540 = vmatmul.mubr.msk.f32.gmra.mxu0 %vm365_vm0, %v197_v50  ;;  %2675 = vmatmul.mubr.msk.f32.gmra.mxu1 %vm365_vm0, %v287_v51  ;;  %v229_v50 = vld [vmem:[%s2856_s24 + $0x1b8] sm:$0xff]  ;;  %v319_v51 = vld [vmem:[%s2856_s24 + $0x488] sm:$0xff] }
  0x49   : > { %2542 = vmatprep.mubr.msk.f32.mxu0 %vm365_vm0, %v198_v52  ;;  %2677 = vmatprep.mubr.msk.f32.mxu1 %vm365_vm0, %v288_v53  ;;  %v230_v52 = vld [vmem:[%s2856_s24 + $0x1c0] sm:$0xff]  ;;  %v320_v53 = vld [vmem:[%s2856_s24 + $0x490] sm:$0xff] }
  0x4c   : > { %2543 = vmatmul.mubr.msk.f32.gmra.mxu0 %vm365_vm0, %v199_v54  ;;  %2678 = vmatmul.mubr.msk.f32.gmra.mxu1 %vm365_vm0, %v289_v55  ;;  %v231_v54 = vld [vmem:[%s2856_s24 + $0x1c8] sm:$0xff]  ;;  %v321_v55 = vld [vmem:[%s2856_s24 + $0x498] sm:$0xff] }
  0x4d   : > { %2545 = vmatprep.mubr.msk.f32.mxu0 %vm365_vm0, %v200_v56  ;;  %2680 = vmatprep.mubr.msk.f32.mxu1 %vm365_vm0, %v290_v57  ;;  %v232_v56 = vld [vmem:[%s2856_s24 + $0x1d0] sm:$0xff]  ;;  %v322_v57 = vld [vmem:[%s2856_s24 + $0x4a0] sm:$0xff] }
  0x50   : > { %2546 = vmatmul.mubr.msk.f32.gmra.mxu0 %vm365_vm0, %v201_v58  ;;  %2681 = vmatmul.mubr.msk.f32.gmra.mxu1 %vm365_vm0, %v291_v59  ;;  %v233_v58 = vld [vmem:[%s2856_s24 + $0x1d8] sm:$0xff]  ;;  %v323_v59 = vld [vmem:[%s2856_s24 + $0x4a8] sm:$0xff] }
  0x51   : > { %2548 = vmatprep.mubr.msk.f32.mxu0 %vm365_vm0, %v202_v60  ;;  %2683 = vmatprep.mubr.msk.f32.mxu1 %vm365_vm0, %v292_v61  ;;  %v234_v60 = vld [vmem:[%s2856_s24 + $0x1e0] sm:$0xff]  ;;  %v324_v61 = vld [vmem:[%s2856_s24 + $0x4b0] sm:$0xff] }
  0x54   : > { %2549 = vmatmul.mubr.msk.f32.gmra.mxu0 %vm365_vm0, %v203_v62  ;;  %2684 = vmatmul.mubr.msk.f32.gmra.mxu1 %vm365_vm0, %v293_v63  ;;  %v235_v62 = vld [vmem:[%s2856_s24 + $0x1e8] sm:$0xff]  ;;  %v325_v63 = vld [vmem:[%s2856_s24 + $0x4b8] sm:$0xff] }
  0x55   : > { %2551 = vmatprep.mubr.msk.f32.mxu0 %vm365_vm0, %v204_v0  ;;  %2686 = vmatprep.mubr.msk.f32.mxu1 %vm365_vm0, %v294_v1  ;;  %v236_v0 = vld [vmem:[%s2856_s24 + $0x1f0] sm:$0xff]  ;;  %v326_v1 = vld [vmem:[%s2856_s24 + $0x4c0] sm:$0xff] }
  0x58   : > { %2552 = vmatmul.mubr.msk.f32.gmra.mxu0 %vm365_vm0, %v205_v2  ;;  %2687 = vmatmul.mubr.msk.f32.gmra.mxu1 %vm365_vm0, %v295_v3  ;;  %v237_v2 = vld [vmem:[%s2856_s24 + $0x1f8] sm:$0xff]  ;;  %v327_v3 = vld [vmem:[%s2856_s24 + $0x4c8] sm:$0xff] }
  0x59   : > { %2554 = vmatprep.mubr.msk.f32.mxu0 %vm365_vm0, %v206_v4  ;;  %2689 = vmatprep.mubr.msk.f32.mxu1 %vm365_vm0, %v296_v5  ;;  %v238_v4 = vld [vmem:[%s2856_s24 + $0x200] sm:$0xff]  ;;  %v328_v5 = vld [vmem:[%s2856_s24 + $0x4d0] sm:$0xff] }
  0x5c   : > { %2555 = vmatmul.mubr.msk.f32.gmra.mxu0 %vm365_vm0, %v207_v6  ;;  %2690 = vmatmul.mubr.msk.f32.gmra.mxu1 %vm365_vm0, %v297_v7  ;;  %v239_v6 = vld [vmem:[%s2856_s24 + $0x208] sm:$0xff]  ;;  %v329_v7 = vld [vmem:[%s2856_s24 + $0x4d8] sm:$0xff] }
  0x5d   : > { %2557 = vmatprep.mubr.msk.f32.mxu0 %vm365_vm0, %v208_v8  ;;  %2692 = vmatprep.mubr.msk.f32.mxu1 %vm365_vm0, %v298_v9  ;;  %v240_v8 = vld [vmem:[%s2856_s24 + $0x210] sm:$0xff]  ;;  %v330_v9 = vld [vmem:[%s2856_s24 + $0x4e0] sm:$0xff] }
  0x60   : > { %2558 = vmatmul.mubr.msk.f32.gmra.mxu0 %vm365_vm0, %v209_v10  ;;  %2693 = vmatmul.mubr.msk.f32.gmra.mxu1 %vm365_vm0, %v299_v11  ;;  %v241_v10 = vld [vmem:[%s2856_s24 + $0x218] sm:$0xff]  ;;  %v331_v11 = vld [vmem:[%s2856_s24 + $0x4e8] sm:$0xff] }
  0x61   : > { %2560 = vmatprep.mubr.msk.f32.mxu0 %vm365_vm0, %v210_v12  ;;  %2695 = vmatprep.mubr.msk.f32.mxu1 %vm365_vm0, %v300_v13  ;;  %v242_v12 = vld [vmem:[%s2856_s24 + $0x220] sm:$0xff]  ;;  %v332_v13 = vld [vmem:[%s2856_s24 + $0x4f0] sm:$0xff] }
  0x64   : > { %2561 = vmatmul.mubr.msk.f32.gmra.mxu0 %vm365_vm0, %v211_v14  ;;  %2696 = vmatmul.mubr.msk.f32.gmra.mxu1 %vm365_vm0, %v301_v15  ;;  %v243_v14 = vld [vmem:[%s2856_s24 + $0x228] sm:$0xff]  ;;  %v333_v15 = vld [vmem:[%s2856_s24 + $0x4f8] sm:$0xff] }
  0x65   : > { %2563 = vmatprep.mubr.msk.f32.mxu0 %vm365_vm0, %v212_v16  ;;  %2698 = vmatprep.mubr.msk.f32.mxu1 %vm365_vm0, %v302_v17  ;;  %v244_v16 = vld [vmem:[%s2856_s24 + $0x230] sm:$0xff]  ;;  %v334_v17 = vld [vmem:[%s2856_s24 + $0x500] sm:$0xff] }
  0x68   : > { %2564 = vmatmul.mubr.msk.f32.gmra.mxu0 %vm365_vm0, %v213_v18  ;;  %2699 = vmatmul.mubr.msk.f32.gmra.mxu1 %vm365_vm0, %v303_v19  ;;  %v245_v18 = vld [vmem:[%s2856_s24 + $0x238] sm:$0xff]  ;;  %v335_v19 = vld [vmem:[%s2856_s24 + $0x508] sm:$0xff] }
  0x69   : > { %2566 = vmatprep.mubr.msk.f32.mxu0 %vm365_vm0, %v214_v20  ;;  %2701 = vmatprep.mubr.msk.f32.mxu1 %vm365_vm0, %v304_v21  ;;  %v246_v20 = vld [vmem:[%s2856_s24 + $0x240] sm:$0xff]  ;;  %v336_v21 = vld [vmem:[%s2856_s24 + $0x510] sm:$0xff] }
  0x6c   : > { %2567 = vmatmul.mubr.msk.f32.gmra.mxu0 %vm365_vm0, %v215_v22  ;;  %2702 = vmatmul.mubr.msk.f32.gmra.mxu1 %vm365_vm0, %v305_v23  ;;  %v247_v22 = vld [vmem:[%s2856_s24 + $0x248] sm:$0xff]  ;;  %v337_v23 = vld [vmem:[%s2856_s24 + $0x518] sm:$0xff] }
  0x6d   : > { %2569 = vmatprep.mubr.msk.f32.mxu0 %vm365_vm0, %v216_v24  ;;  %2704 = vmatprep.mubr.msk.f32.mxu1 %vm365_vm0, %v306_v25  ;;  %v248_v24 = vld [vmem:[%s2856_s24 + $0x250] sm:$0xff]  ;;  %v338_v25 = vld [vmem:[%s2856_s24 + $0x520] sm:$0xff] }
  0x70   : > { %2570 = vmatmul.mubr.msk.f32.gmra.mxu0 %vm365_vm0, %v217_v26  ;;  %2705 = vmatmul.mubr.msk.f32.gmra.mxu1 %vm365_vm0, %v307_v27  ;;  %v249_v26 = vld [vmem:[%s2856_s24 + $0x258] sm:$0xff]  ;;  %v339_v27 = vld [vmem:[%s2856_s24 + $0x528] sm:$0xff] }
  0x71   : > { %2572 = vmatprep.mubr.msk.f32.mxu0 %vm365_vm0, %v218_v28  ;;  %2707 = vmatprep.mubr.msk.f32.mxu1 %vm365_vm0, %v308_v29  ;;  %v250_v28 = vld [vmem:[%s2856_s24 + $0x260] sm:$0xff]  ;;  %v340_v29 = vld [vmem:[%s2856_s24 + $0x530] sm:$0xff] }
  0x74   : > { %2573 = vmatmul.mubr.msk.f32.gmra.mxu0 %vm365_vm0, %v219_v30  ;;  %2708 = vmatmul.mubr.msk.f32.gmra.mxu1 %vm365_vm0, %v309_v31  ;;  %v251_v30 = vld [vmem:[%s2856_s24 + $0x268] sm:$0xff]  ;;  %v341_v31 = vld [vmem:[%s2856_s24 + $0x538] sm:$0xff] }
  0x75   : > { %2575 = vmatprep.mubr.msk.f32.mxu0 %vm365_vm0, %v220_v32  ;;  %2710 = vmatprep.mubr.msk.f32.mxu1 %vm365_vm0, %v310_v33  ;;  %v252_v32 = vld [vmem:[%s2856_s24 + $0x270] sm:$0xff]  ;;  %v342_v33 = vld [vmem:[%s2856_s24 + $0x540] sm:$0xff] }
  0x78   : > { %2576 = vmatmul.mubr.msk.f32.gmra.mxu0 %vm365_vm0, %v221_v34  ;;  %2711 = vmatmul.mubr.msk.f32.gmra.mxu1 %vm365_vm0, %v311_v35  ;;  %v253_v34 = vld [vmem:[%s2856_s24 + $0x278] sm:$0xff]  ;;  %v343_v35 = vld [vmem:[%s2856_s24 + $0x548] sm:$0xff] }
  0x79   : > { %2578 = vmatprep.mubr.msk.f32.mxu0 %vm365_vm0, %v222_v36  ;;  %2713 = vmatprep.mubr.msk.f32.mxu1 %vm365_vm0, %v312_v37  ;;  %v254_v36 = vld [vmem:[%s2856_s24 + $0x280] sm:$0xff]  ;;  %v344_v37 = vld [vmem:[%s2856_s24 + $0x550] sm:$0xff] }
  0x7c   : > { %2579 = vmatmul.mubr.msk.f32.gmra.mxu0 %vm365_vm0, %v223_v38  ;;  %2714 = vmatmul.mubr.msk.f32.gmra.mxu1 %vm365_vm0, %v313_v39  ;;  %v255_v38 = vld [vmem:[%s2856_s24 + $0x288] sm:$0xff]  ;;  %v345_v39 = vld [vmem:[%s2856_s24 + $0x558] sm:$0xff] }
  0x7d   : > { %2581 = vmatprep.mubr.msk.f32.mxu0 %vm365_vm0, %v224_v40  ;;  %2716 = vmatprep.mubr.msk.f32.mxu1 %vm365_vm0, %v314_v41  ;;  %v256_v40 = vld [vmem:[%s2856_s24 + $0x290] sm:$0xff]  ;;  %v346_v41 = vld [vmem:[%s2856_s24 + $0x560] sm:$0xff] }
  0x80   : > { %2582 = vmatmul.mubr.msk.f32.gmra.mxu0 %vm365_vm0, %v225_v42  ;;  %2717 = vmatmul.mubr.msk.f32.gmra.mxu1 %vm365_vm0, %v315_v43  ;;  %v257_v42 = vld [vmem:[%s2856_s24 + $0x298] sm:$0xff]  ;;  %v347_v43 = vld [vmem:[%s2856_s24 + $0x568] sm:$0xff] }
  0x81   : > { %2584 = vmatprep.mubr.msk.f32.mxu0 %vm365_vm0, %v226_v44  ;;  %2719 = vmatprep.mubr.msk.f32.mxu1 %vm365_vm0, %v316_v45  ;;  %v258_v44 = vld [vmem:[%s2856_s24 + $0x2a0] sm:$0xff]  ;;  %v348_v45 = vld [vmem:[%s2856_s24 + $0x570] sm:$0xff] }
  0x84   : > { %2585 = vmatmul.mubr.msk.f32.gmra.mxu0 %vm365_vm0, %v227_v46  ;;  %2720 = vmatmul.mubr.msk.f32.gmra.mxu1 %vm365_vm0, %v317_v47  ;;  %v259_v46 = vld [vmem:[%s2856_s24 + $0x2a8] sm:$0xff]  ;;  %v349_v47 = vld [vmem:[%s2856_s24 + $0x578] sm:$0xff] }
  0x85   : > { %2587 = vmatprep.mubr.msk.f32.mxu0 %vm365_vm0, %v228_v48  ;;  %2722 = vmatprep.mubr.msk.f32.mxu1 %vm365_vm0, %v318_v49  ;;  %v260_v48 = vld [vmem:[%s2856_s24 + $0x2b0] sm:$0xff]  ;;  %v350_v49 = vld [vmem:[%s2856_s24 + $0x580] sm:$0xff] }
  0x88   : > { %2588 = vmatmul.mubr.msk.f32.gmra.mxu0 %vm365_vm0, %v229_v50  ;;  %2723 = vmatmul.mubr.msk.f32.gmra.mxu1 %vm365_vm0, %v319_v51  ;;  %v261_v50 = vld [vmem:[%s2856_s24 + $0x2b8] sm:$0xff]  ;;  %v351_v51 = vld [vmem:[%s2856_s24 + $0x588] sm:$0xff] }
  0x89   : > { %2590 = vmatprep.mubr.msk.f32.mxu0 %vm365_vm0, %v230_v52  ;;  %2725 = vmatprep.mubr.msk.f32.mxu1 %vm365_vm0, %v320_v53  ;;  %v262_v52 = vld [vmem:[%s2856_s24 + $0x2c0] sm:$0xff]  ;;  %v352_v53 = vld [vmem:[%s2856_s24 + $0x590] sm:$0xff] }
  0x8c   : > { %2591 = vmatmul.mubr.msk.f32.gmra.mxu0 %vm365_vm0, %v231_v54  ;;  %2726 = vmatmul.mubr.msk.f32.gmra.mxu1 %vm365_vm0, %v321_v55  ;;  %v263_v54 = vld [vmem:[%s2856_s24 + $0x2c8] sm:$0xff]  ;;  %v353_v55 = vld [vmem:[%s2856_s24 + $0x598] sm:$0xff] }
  0x8d   : > { %2593 = vmatprep.mubr.msk.f32.mxu0 %vm365_vm0, %v232_v56  ;;  %2728 = vmatprep.mubr.msk.f32.mxu1 %vm365_vm0, %v322_v57  ;;  %v3230_v56 = vld [vmem:[%s3777_s2] ss:$0 sm:$0xff] }
  0x90   : > { %2594 = vmatmul.mubr.msk.f32.gmra.mxu0 %vm365_vm0, %v233_v58  ;;  %2729 = vmatmul.mubr.msk.f32.gmra.mxu1 %vm365_vm0, %v323_v59 }
  0x91   : > { %2596 = vmatprep.mubr.msk.f32.mxu0 %vm365_vm0, %v234_v60  ;;  %2731 = vmatprep.mubr.msk.f32.mxu1 %vm365_vm0, %v324_v61 }
  0x94   : > { %2597 = vmatmul.mubr.msk.f32.gmra.mxu0 %vm365_vm0, %v235_v62  ;;  %2732 = vmatmul.mubr.msk.f32.gmra.mxu1 %vm365_vm0, %v325_v63 }
  0x95   : > { %2599 = vmatprep.mubr.msk.f32.mxu0 %vm365_vm0, %v236_v0  ;;  %2734 = vmatprep.mubr.msk.f32.mxu1 %vm365_vm0, %v326_v1 }
  0x98   : > { %2600 = vmatmul.mubr.msk.f32.gmra.mxu0 %vm365_vm0, %v237_v2  ;;  %2735 = vmatmul.mubr.msk.f32.gmra.mxu1 %vm365_vm0, %v327_v3 }
  0x99   : > { %2602 = vmatprep.mubr.msk.f32.mxu0 %vm365_vm0, %v238_v4  ;;  %2737 = vmatprep.mubr.msk.f32.mxu1 %vm365_vm0, %v328_v5 }
  0x9c   : > { %2603 = vmatmul.mubr.msk.f32.gmra.mxu0 %vm365_vm0, %v239_v6  ;;  %2738 = vmatmul.mubr.msk.f32.gmra.mxu1 %vm365_vm0, %v329_v7 }
  0x9d   : > { %2605 = vmatprep.mubr.msk.f32.mxu0 %vm365_vm0, %v240_v8  ;;  %2740 = vmatprep.mubr.msk.f32.mxu1 %vm365_vm0, %v330_v9 }
  0xa0   : > { %2606 = vmatmul.mubr.msk.f32.gmra.mxu0 %vm365_vm0, %v241_v10  ;;  %2741 = vmatmul.mubr.msk.f32.gmra.mxu1 %vm365_vm0, %v331_v11 }
  0xa1   : > { %2608 = vmatprep.mubr.msk.f32.mxu0 %vm365_vm0, %v242_v12  ;;  %2743 = vmatprep.mubr.msk.f32.mxu1 %vm365_vm0, %v332_v13 }
  0xa4   : > { %2609 = vmatmul.mubr.msk.f32.gmra.mxu0 %vm365_vm0, %v243_v14  ;;  %2744 = vmatmul.mubr.msk.f32.gmra.mxu1 %vm365_vm0, %v333_v15 }
  0xa5   : > { %2611 = vmatprep.mubr.msk.f32.mxu0 %vm365_vm0, %v244_v16  ;;  %2746 = vmatprep.mubr.msk.f32.mxu1 %vm365_vm0, %v334_v17 }
  0xa8   : > { %2612 = vmatmul.mubr.msk.f32.gmra.mxu0 %vm365_vm0, %v245_v18  ;;  %2747 = vmatmul.mubr.msk.f32.gmra.mxu1 %vm365_vm0, %v335_v19 }
  0xa9   : > { %2614 = vmatprep.mubr.msk.f32.mxu0 %vm365_vm0, %v246_v20  ;;  %2749 = vmatprep.mubr.msk.f32.mxu1 %vm365_vm0, %v336_v21 }
  0xac   : > { %2615 = vmatmul.mubr.msk.f32.gmra.mxu0 %vm365_vm0, %v247_v22  ;;  %2750 = vmatmul.mubr.msk.f32.gmra.mxu1 %vm365_vm0, %v337_v23 }
  0xad   : > { %2617 = vmatprep.mubr.msk.f32.mxu0 %vm365_vm0, %v248_v24  ;;  %2752 = vmatprep.mubr.msk.f32.mxu1 %vm365_vm0, %v338_v25 }
  0xb0   : > { %2618 = vmatmul.mubr.msk.f32.gmra.mxu0 %vm365_vm0, %v249_v26  ;;  %2753 = vmatmul.mubr.msk.f32.gmra.mxu1 %vm365_vm0, %v339_v27 }
  0xb1   : > { %2620 = vmatprep.mubr.msk.f32.mxu0 %vm365_vm0, %v250_v28  ;;  %2755 = vmatprep.mubr.msk.f32.mxu1 %vm365_vm0, %v340_v29 }
  0xb4   : > { %2621 = vmatmul.mubr.msk.f32.gmra.mxu0 %vm365_vm0, %v251_v30  ;;  %2756 = vmatmul.mubr.msk.f32.gmra.mxu1 %vm365_vm0, %v341_v31 }
  0xb5   : > { %2623 = vmatprep.mubr.msk.f32.mxu0 %vm365_vm0, %v252_v32  ;;  %2758 = vmatprep.mubr.msk.f32.mxu1 %vm365_vm0, %v342_v33 }
  0xb8   : > { %2624 = vmatmul.mubr.msk.f32.gmra.mxu0 %vm365_vm0, %v253_v34  ;;  %2759 = vmatmul.mubr.msk.f32.gmra.mxu1 %vm365_vm0, %v343_v35 }
  0xb9   : > { %2626 = vmatprep.mubr.msk.f32.mxu0 %vm365_vm0, %v254_v36  ;;  %2761 = vmatprep.mubr.msk.f32.mxu1 %vm365_vm0, %v344_v37 }
  0xbc   : > { %2627 = vmatmul.mubr.msk.f32.gmra.mxu0 %vm365_vm0, %v255_v38  ;;  %2762 = vmatmul.mubr.msk.f32.gmra.mxu1 %vm365_vm0, %v345_v39 }
  0xbd   : > { %2629 = vmatprep.mubr.msk.f32.mxu0 %vm365_vm0, %v256_v40  ;;  %2764 = vmatprep.mubr.msk.f32.mxu1 %vm365_vm0, %v346_v41 }
  0xc0   : > { %2630 = vmatmul.mubr.msk.f32.gmra.mxu0 %vm365_vm0, %v257_v42  ;;  %2765 = vmatmul.mubr.msk.f32.gmra.mxu1 %vm365_vm0, %v347_v43 }
  0xc1   : > { %2632 = vmatprep.mubr.msk.f32.mxu0 %vm365_vm0, %v258_v44  ;;  %2767 = vmatprep.mubr.msk.f32.mxu1 %vm365_vm0, %v348_v45 }
  0xc4   : > { %2633 = vmatmul.mubr.msk.f32.gmra.mxu0 %vm365_vm0, %v259_v46  ;;  %2768 = vmatmul.mubr.msk.f32.gmra.mxu1 %vm365_vm0, %v349_v47 }
  0xc5   : > { %2635 = vmatprep.mubr.msk.f32.mxu0 %vm365_vm0, %v260_v48  ;;  %2770 = vmatprep.mubr.msk.f32.mxu1 %vm365_vm0, %v350_v49 }
  0xc8   : > { %2636 = vmatmul.mubr.msk.f32.gmra.mxu0 %vm365_vm0, %v261_v50  ;;  %2771 = vmatmul.mubr.msk.f32.gmra.mxu1 %vm365_vm0, %v351_v51 }
  0xc9   : > { %2638 = vmatprep.mubr.msk.f32.mxu0 %vm365_vm0, %v262_v52  ;;  %2773 = vmatprep.mubr.msk.f32.mxu1 %vm365_vm0, %v352_v53 }
  0xcc   : > { %2639 = vmatmul.mubr.msk.f32.gmra.mxu0 %vm365_vm0, %v263_v54  ;;  %2774 = vmatmul.mubr.msk.f32.gmra.mxu1 %vm365_vm0, %v353_v55 }
  0xdc   : > { %v2508_v57 = vpop.f32.mrf.mxu0  ;;  %v2643_v58 = vpop.f32.mrf.mxu1 }
  0xdd   : > { %v990_v59 = vadd.f32 %v2508_v57, %v3230_v56  ;;  %v1440_v60 = vadd.f32 %v2643_v58, %v3230_v56 }
  0xde   : > { %v984_v61 = vpop.f32.mrf.mxu0  ;;  %v1434_v62 = vpop.f32.mrf.mxu1 }
  0xdf   : > { %1885 = vst.msk [vmem:[%s3237_s4 + $0x8] sm:$0xff] %vm1883_vm1, %v990_v59  ;;  %1975 = vst.msk [vmem:[%s3237_s4 + $0x2d8] sm:$0xff] %vm1883_vm1, %v1440_v60  ;;  %v985_v63 = vadd.f32 %v3230_v56, %v984_v61  ;;  %v1435_v0 = vadd.f32 %v3230_v56, %v1434_v62 }
  0xe0   : > { %v2511_v1 = vpop.f32.mrf.mxu0  ;;  %v2646_v2 = vpop.f32.mrf.mxu1 }
  0xe1   : > { %1884 = vst.msk [vmem:[%s3237_s4] sm:$0xff] %vm1883_vm1, %v985_v63  ;;  %1974 = vst.msk [vmem:[%s3237_s4 + $0x2d0] sm:$0xff] %vm1883_vm1, %v1435_v0  ;;  %v1000_v3 = vadd.f32 %v2511_v1, %v3230_v56  ;;  %v1450_v4 = vadd.f32 %v2646_v2, %v3230_v56 }
  0xe2   : > { %v994_v5 = vpop.f32.mrf.mxu0  ;;  %v1444_v6 = vpop.f32.mrf.mxu1 }
  0xe3   : > { %1887 = vst.msk [vmem:[%s3237_s4 + $0x18] sm:$0xff] %vm1883_vm1, %v1000_v3  ;;  %1977 = vst.msk [vmem:[%s3237_s4 + $0x2e8] sm:$0xff] %vm1883_vm1, %v1450_v4  ;;  %v995_v7 = vadd.f32 %v3230_v56, %v994_v5  ;;  %v1445_v8 = vadd.f32 %v3230_v56, %v1444_v6 }
  0xe4   : > { %v2514_v9 = vpop.f32.mrf.mxu0  ;;  %v2649_v10 = vpop.f32.mrf.mxu1 }
  0xe5   : > { %1886 = vst.msk [vmem:[%s3237_s4 + $0x10] sm:$0xff] %vm1883_vm1, %v995_v7  ;;  %1976 = vst.msk [vmem:[%s3237_s4 + $0x2e0] sm:$0xff] %vm1883_vm1, %v1445_v8  ;;  %v1010_v11 = vadd.f32 %v2514_v9, %v3230_v56  ;;  %v1460_v12 = vadd.f32 %v2649_v10, %v3230_v56 }
  0xe6   : > { %v1004_v13 = vpop.f32.mrf.mxu0  ;;  %v1454_v14 = vpop.f32.mrf.mxu1 }
  0xe7   : > { %1889 = vst.msk [vmem:[%s3237_s4 + $0x28] sm:$0xff] %vm1883_vm1, %v1010_v11  ;;  %1979 = vst.msk [vmem:[%s3237_s4 + $0x2f8] sm:$0xff] %vm1883_vm1, %v1460_v12  ;;  %v1005_v15 = vadd.f32 %v3230_v56, %v1004_v13  ;;  %v1455_v16 = vadd.f32 %v3230_v56, %v1454_v14 }
  0xe8   : > { %v2517_v17 = vpop.f32.mrf.mxu0  ;;  %v2652_v18 = vpop.f32.mrf.mxu1 }
  0xe9   : > { %1888 = vst.msk [vmem:[%s3237_s4 + $0x20] sm:$0xff] %vm1883_vm1, %v1005_v15  ;;  %1978 = vst.msk [vmem:[%s3237_s4 + $0x2f0] sm:$0xff] %vm1883_vm1, %v1455_v16  ;;  %v1020_v19 = vadd.f32 %v2517_v17, %v3230_v56  ;;  %v1470_v20 = vadd.f32 %v2652_v18, %v3230_v56 }
  0xea   : > { %v1014_v21 = vpop.f32.mrf.mxu0  ;;  %v1464_v22 = vpop.f32.mrf.mxu1 }
  0xeb   : > { %1891 = vst.msk [vmem:[%s3237_s4 + $0x38] sm:$0xff] %vm1883_vm1, %v1020_v19  ;;  %1981 = vst.msk [vmem:[%s3237_s4 + $0x308] sm:$0xff] %vm1883_vm1, %v1470_v20  ;;  %v1015_v23 = vadd.f32 %v3230_v56, %v1014_v21  ;;  %v1465_v24 = vadd.f32 %v3230_v56, %v1464_v22 }
  0xec   : > { %v2520_v25 = vpop.f32.mrf.mxu0  ;;  %v2655_v26 = vpop.f32.mrf.mxu1 }
  0xed   : > { %1890 = vst.msk [vmem:[%s3237_s4 + $0x30] sm:$0xff] %vm1883_vm1, %v1015_v23  ;;  %1980 = vst.msk [vmem:[%s3237_s4 + $0x300] sm:$0xff] %vm1883_vm1, %v1465_v24  ;;  %v1030_v27 = vadd.f32 %v2520_v25, %v3230_v56  ;;  %v1480_v28 = vadd.f32 %v2655_v26, %v3230_v56 }
  0xee   : > { %v1024_v29 = vpop.f32.mrf.mxu0  ;;  %v1474_v30 = vpop.f32.mrf.mxu1 }
  0xef   : > { %1893 = vst.msk [vmem:[%s3237_s4 + $0x48] sm:$0xff] %vm1883_vm1, %v1030_v27  ;;  %1983 = vst.msk [vmem:[%s3237_s4 + $0x318] sm:$0xff] %vm1883_vm1, %v1480_v28  ;;  %v1025_v31 = vadd.f32 %v3230_v56, %v1024_v29  ;;  %v1475_v32 = vadd.f32 %v3230_v56, %v1474_v30 }
  0xf0   : > { %v2523_v33 = vpop.f32.mrf.mxu0  ;;  %v2658_v34 = vpop.f32.mrf.mxu1 }
  0xf1   : > { %1892 = vst.msk [vmem:[%s3237_s4 + $0x40] sm:$0xff] %vm1883_vm1, %v1025_v31  ;;  %1982 = vst.msk [vmem:[%s3237_s4 + $0x310] sm:$0xff] %vm1883_vm1, %v1475_v32  ;;  %v1040_v35 = vadd.f32 %v2523_v33, %v3230_v56  ;;  %v1490_v36 = vadd.f32 %v2658_v34, %v3230_v56 }
  0xf2   : > { %v1034_v37 = vpop.f32.mrf.mxu0  ;;  %v1484_v38 = vpop.f32.mrf.mxu1 }
  0xf3   : > { %1895 = vst.msk [vmem:[%s3237_s4 + $0x58] sm:$0xff] %vm1883_vm1, %v1040_v35  ;;  %1985 = vst.msk [vmem:[%s3237_s4 + $0x328] sm:$0xff] %vm1883_vm1, %v1490_v36  ;;  %v1035_v39 = vadd.f32 %v3230_v56, %v1034_v37  ;;  %v1485_v40 = vadd.f32 %v3230_v56, %v1484_v38 }
  0xf4   : > { %v2526_v41 = vpop.f32.mrf.mxu0  ;;  %v2661_v42 = vpop.f32.mrf.mxu1 }
  0xf5   : > { %1894 = vst.msk [vmem:[%s3237_s4 + $0x50] sm:$0xff] %vm1883_vm1, %v1035_v39  ;;  %1984 = vst.msk [vmem:[%s3237_s4 + $0x320] sm:$0xff] %vm1883_vm1, %v1485_v40  ;;  %v1050_v43 = vadd.f32 %v2526_v41, %v3230_v56  ;;  %v1500_v44 = vadd.f32 %v2661_v42, %v3230_v56 }
  0xf6   : > { %v1044_v45 = vpop.f32.mrf.mxu0  ;;  %v1494_v46 = vpop.f32.mrf.mxu1 }
  0xf7   : > { %1897 = vst.msk [vmem:[%s3237_s4 + $0x68] sm:$0xff] %vm1883_vm1, %v1050_v43  ;;  %1987 = vst.msk [vmem:[%s3237_s4 + $0x338] sm:$0xff] %vm1883_vm1, %v1500_v44  ;;  %v1045_v47 = vadd.f32 %v3230_v56, %v1044_v45  ;;  %v1495_v48 = vadd.f32 %v3230_v56, %v1494_v46 }
  0xf8   : > { %v2529_v49 = vpop.f32.mrf.mxu0  ;;  %v2664_v50 = vpop.f32.mrf.mxu1 }
  0xf9   : > { %1896 = vst.msk [vmem:[%s3237_s4 + $0x60] sm:$0xff] %vm1883_vm1, %v1045_v47  ;;  %1986 = vst.msk [vmem:[%s3237_s4 + $0x330] sm:$0xff] %vm1883_vm1, %v1495_v48  ;;  %v1060_v51 = vadd.f32 %v2529_v49, %v3230_v56  ;;  %v1510_v52 = vadd.f32 %v2664_v50, %v3230_v56 }
  0xfa   : > { %v1054_v53 = vpop.f32.mrf.mxu0  ;;  %v1504_v54 = vpop.f32.mrf.mxu1 }
  0xfb   : > { %1899 = vst.msk [vmem:[%s3237_s4 + $0x78] sm:$0xff] %vm1883_vm1, %v1060_v51  ;;  %1989 = vst.msk [vmem:[%s3237_s4 + $0x348] sm:$0xff] %vm1883_vm1, %v1510_v52  ;;  %v1055_v55 = vadd.f32 %v3230_v56, %v1054_v53  ;;  %v1505_v57 = vadd.f32 %v3230_v56, %v1504_v54 }
  0xfc   : > { %v2532_v58 = vpop.f32.mrf.mxu0  ;;  %v2667_v59 = vpop.f32.mrf.mxu1 }
  0xfd   : > { %1898 = vst.msk [vmem:[%s3237_s4 + $0x70] sm:$0xff] %vm1883_vm1, %v1055_v55  ;;  %1988 = vst.msk [vmem:[%s3237_s4 + $0x340] sm:$0xff] %vm1883_vm1, %v1505_v57  ;;  %v1070_v60 = vadd.f32 %v2532_v58, %v3230_v56  ;;  %v1520_v61 = vadd.f32 %v2667_v59, %v3230_v56 }
  0xfe   : > { %v1064_v62 = vpop.f32.mrf.mxu0  ;;  %v1514_v63 = vpop.f32.mrf.mxu1 }
  0xff   : > { %1901 = vst.msk [vmem:[%s3237_s4 + $0x88] sm:$0xff] %vm1883_vm1, %v1070_v60  ;;  %1991 = vst.msk [vmem:[%s3237_s4 + $0x358] sm:$0xff] %vm1883_vm1, %v1520_v61  ;;  %v1065_v0 = vadd.f32 %v3230_v56, %v1064_v62  ;;  %v1515_v1 = vadd.f32 %v3230_v56, %v1514_v63 }
 0x100   : > { %v2535_v2 = vpop.f32.mrf.mxu0  ;;  %v2670_v3 = vpop.f32.mrf.mxu1 }
 0x101   : > { %1900 = vst.msk [vmem:[%s3237_s4 + $0x80] sm:$0xff] %vm1883_vm1, %v1065_v0  ;;  %1990 = vst.msk [vmem:[%s3237_s4 + $0x350] sm:$0xff] %vm1883_vm1, %v1515_v1  ;;  %v1080_v4 = vadd.f32 %v2535_v2, %v3230_v56  ;;  %v1530_v5 = vadd.f32 %v2670_v3, %v3230_v56 }
 0x102   : > { %v1074_v6 = vpop.f32.mrf.mxu0  ;;  %v1524_v7 = vpop.f32.mrf.mxu1 }
 0x103   : > { %1903 = vst.msk [vmem:[%s3237_s4 + $0x98] sm:$0xff] %vm1883_vm1, %v1080_v4  ;;  %1993 = vst.msk [vmem:[%s3237_s4 + $0x368] sm:$0xff] %vm1883_vm1, %v1530_v5  ;;  %v1075_v8 = vadd.f32 %v3230_v56, %v1074_v6  ;;  %v1525_v9 = vadd.f32 %v3230_v56, %v1524_v7 }
 0x104   : > { %v2538_v10 = vpop.f32.mrf.mxu0  ;;  %v2673_v11 = vpop.f32.mrf.mxu1 }
 0x105   : > { %1902 = vst.msk [vmem:[%s3237_s4 + $0x90] sm:$0xff] %vm1883_vm1, %v1075_v8  ;;  %1992 = vst.msk [vmem:[%s3237_s4 + $0x360] sm:$0xff] %vm1883_vm1, %v1525_v9  ;;  %v1090_v12 = vadd.f32 %v2538_v10, %v3230_v56  ;;  %v1540_v13 = vadd.f32 %v2673_v11, %v3230_v56 }
 0x106   : > { %v1084_v14 = vpop.f32.mrf.mxu0  ;;  %v1534_v15 = vpop.f32.mrf.mxu1 }
 0x107   : > { %1905 = vst.msk [vmem:[%s3237_s4 + $0xa8] sm:$0xff] %vm1883_vm1, %v1090_v12  ;;  %1995 = vst.msk [vmem:[%s3237_s4 + $0x378] sm:$0xff] %vm1883_vm1, %v1540_v13  ;;  %v1085_v16 = vadd.f32 %v3230_v56, %v1084_v14  ;;  %v1535_v17 = vadd.f32 %v3230_v56, %v1534_v15 }
 0x108   : > { %v2541_v18 = vpop.f32.mrf.mxu0  ;;  %v2676_v19 = vpop.f32.mrf.mxu1 }
 0x109   : > { %1904 = vst.msk [vmem:[%s3237_s4 + $0xa0] sm:$0xff] %vm1883_vm1, %v1085_v16  ;;  %1994 = vst.msk [vmem:[%s3237_s4 + $0x370] sm:$0xff] %vm1883_vm1, %v1535_v17  ;;  %v1100_v20 = vadd.f32 %v2541_v18, %v3230_v56  ;;  %v1550_v21 = vadd.f32 %v2676_v19, %v3230_v56 }
 0x10a   : > { %v1094_v22 = vpop.f32.mrf.mxu0  ;;  %v1544_v23 = vpop.f32.mrf.mxu1 }
 0x10b   : > { %1907 = vst.msk [vmem:[%s3237_s4 + $0xb8] sm:$0xff] %vm1883_vm1, %v1100_v20  ;;  %1997 = vst.msk [vmem:[%s3237_s4 + $0x388] sm:$0xff] %vm1883_vm1, %v1550_v21  ;;  %v1095_v24 = vadd.f32 %v3230_v56, %v1094_v22  ;;  %v1545_v25 = vadd.f32 %v3230_v56, %v1544_v23 }
 0x10c   : > { %v2544_v26 = vpop.f32.mrf.mxu0  ;;  %v2679_v27 = vpop.f32.mrf.mxu1 }
 0x10d   : > { %1906 = vst.msk [vmem:[%s3237_s4 + $0xb0] sm:$0xff] %vm1883_vm1, %v1095_v24  ;;  %1996 = vst.msk [vmem:[%s3237_s4 + $0x380] sm:$0xff] %vm1883_vm1, %v1545_v25  ;;  %v1110_v28 = vadd.f32 %v2544_v26, %v3230_v56  ;;  %v1560_v29 = vadd.f32 %v2679_v27, %v3230_v56 }
 0x10e   : > { %v1104_v30 = vpop.f32.mrf.mxu0  ;;  %v1554_v31 = vpop.f32.mrf.mxu1 }
 0x10f   : > { %1909 = vst.msk [vmem:[%s3237_s4 + $0xc8] sm:$0xff] %vm1883_vm1, %v1110_v28  ;;  %1999 = vst.msk [vmem:[%s3237_s4 + $0x398] sm:$0xff] %vm1883_vm1, %v1560_v29  ;;  %v1105_v32 = vadd.f32 %v3230_v56, %v1104_v30  ;;  %v1555_v33 = vadd.f32 %v3230_v56, %v1554_v31 }
 0x110   : > { %v2547_v34 = vpop.f32.mrf.mxu0  ;;  %v2682_v35 = vpop.f32.mrf.mxu1 }
 0x111   : > { %1908 = vst.msk [vmem:[%s3237_s4 + $0xc0] sm:$0xff] %vm1883_vm1, %v1105_v32  ;;  %1998 = vst.msk [vmem:[%s3237_s4 + $0x390] sm:$0xff] %vm1883_vm1, %v1555_v33  ;;  %v1120_v36 = vadd.f32 %v2547_v34, %v3230_v56  ;;  %v1570_v37 = vadd.f32 %v2682_v35, %v3230_v56 }
 0x112   : > { %v1114_v38 = vpop.f32.mrf.mxu0  ;;  %v1564_v39 = vpop.f32.mrf.mxu1 }
 0x113   : > { %1911 = vst.msk [vmem:[%s3237_s4 + $0xd8] sm:$0xff] %vm1883_vm1, %v1120_v36  ;;  %2001 = vst.msk [vmem:[%s3237_s4 + $0x3a8] sm:$0xff] %vm1883_vm1, %v1570_v37  ;;  %v1115_v40 = vadd.f32 %v3230_v56, %v1114_v38  ;;  %v1565_v41 = vadd.f32 %v3230_v56, %v1564_v39 }
 0x114   : > { %v2550_v42 = vpop.f32.mrf.mxu0  ;;  %v2685_v43 = vpop.f32.mrf.mxu1 }
 0x115   : > { %1910 = vst.msk [vmem:[%s3237_s4 + $0xd0] sm:$0xff] %vm1883_vm1, %v1115_v40  ;;  %2000 = vst.msk [vmem:[%s3237_s4 + $0x3a0] sm:$0xff] %vm1883_vm1, %v1565_v41  ;;  %v1130_v44 = vadd.f32 %v2550_v42, %v3230_v56  ;;  %v1580_v45 = vadd.f32 %v2685_v43, %v3230_v56 }
 0x116   : > { %v1124_v46 = vpop.f32.mrf.mxu0  ;;  %v1574_v47 = vpop.f32.mrf.mxu1 }
 0x117   : > { %1913 = vst.msk [vmem:[%s3237_s4 + $0xe8] sm:$0xff] %vm1883_vm1, %v1130_v44  ;;  %2003 = vst.msk [vmem:[%s3237_s4 + $0x3b8] sm:$0xff] %vm1883_vm1, %v1580_v45  ;;  %v1125_v48 = vadd.f32 %v3230_v56, %v1124_v46  ;;  %v1575_v49 = vadd.f32 %v3230_v56, %v1574_v47 }
 0x118   : > { %v2553_v50 = vpop.f32.mrf.mxu0  ;;  %v2688_v51 = vpop.f32.mrf.mxu1 }
 0x119   : > { %1912 = vst.msk [vmem:[%s3237_s4 + $0xe0] sm:$0xff] %vm1883_vm1, %v1125_v48  ;;  %2002 = vst.msk [vmem:[%s3237_s4 + $0x3b0] sm:$0xff] %vm1883_vm1, %v1575_v49  ;;  %v1140_v52 = vadd.f32 %v2553_v50, %v3230_v56  ;;  %v1590_v53 = vadd.f32 %v2688_v51, %v3230_v56 }
 0x11a   : > { %v1134_v54 = vpop.f32.mrf.mxu0  ;;  %v1584_v55 = vpop.f32.mrf.mxu1 }
 0x11b   : > { %1915 = vst.msk [vmem:[%s3237_s4 + $0xf8] sm:$0xff] %vm1883_vm1, %v1140_v52  ;;  %2005 = vst.msk [vmem:[%s3237_s4 + $0x3c8] sm:$0xff] %vm1883_vm1, %v1590_v53  ;;  %v1135_v57 = vadd.f32 %v3230_v56, %v1134_v54  ;;  %v1585_v58 = vadd.f32 %v3230_v56, %v1584_v55 }
 0x11c   : > { %v2556_v59 = vpop.f32.mrf.mxu0  ;;  %v2691_v60 = vpop.f32.mrf.mxu1 }
 0x11d   : > { %1914 = vst.msk [vmem:[%s3237_s4 + $0xf0] sm:$0xff] %vm1883_vm1, %v1135_v57  ;;  %2004 = vst.msk [vmem:[%s3237_s4 + $0x3c0] sm:$0xff] %vm1883_vm1, %v1585_v58  ;;  %v1150_v61 = vadd.f32 %v2556_v59, %v3230_v56  ;;  %v1600_v62 = vadd.f32 %v2691_v60, %v3230_v56 }
 0x11e   : > { %v1144_v63 = vpop.f32.mrf.mxu0  ;;  %v1594_v0 = vpop.f32.mrf.mxu1 }
 0x11f   : > { %1917 = vst.msk [vmem:[%s3237_s4 + $0x108] sm:$0xff] %vm1883_vm1, %v1150_v61  ;;  %2007 = vst.msk [vmem:[%s3237_s4 + $0x3d8] sm:$0xff] %vm1883_vm1, %v1600_v62  ;;  %v1145_v1 = vadd.f32 %v3230_v56, %v1144_v63  ;;  %v1595_v2 = vadd.f32 %v3230_v56, %v1594_v0 }
 0x120   : > { %v2559_v3 = vpop.f32.mrf.mxu0  ;;  %v2694_v4 = vpop.f32.mrf.mxu1 }
 0x121   : > { %1916 = vst.msk [vmem:[%s3237_s4 + $0x100] sm:$0xff] %vm1883_vm1, %v1145_v1  ;;  %2006 = vst.msk [vmem:[%s3237_s4 + $0x3d0] sm:$0xff] %vm1883_vm1, %v1595_v2  ;;  %v1160_v5 = vadd.f32 %v2559_v3, %v3230_v56  ;;  %v1610_v6 = vadd.f32 %v2694_v4, %v3230_v56 }
 0x122   : > { %v1154_v7 = vpop.f32.mrf.mxu0  ;;  %v1604_v8 = vpop.f32.mrf.mxu1 }
 0x123   : > { %1919 = vst.msk [vmem:[%s3237_s4 + $0x118] sm:$0xff] %vm1883_vm1, %v1160_v5  ;;  %2009 = vst.msk [vmem:[%s3237_s4 + $0x3e8] sm:$0xff] %vm1883_vm1, %v1610_v6  ;;  %v1155_v9 = vadd.f32 %v3230_v56, %v1154_v7  ;;  %v1605_v10 = vadd.f32 %v3230_v56, %v1604_v8 }
 0x124   : > { %v2562_v11 = vpop.f32.mrf.mxu0  ;;  %v2697_v12 = vpop.f32.mrf.mxu1 }
 0x125   : > { %1918 = vst.msk [vmem:[%s3237_s4 + $0x110] sm:$0xff] %vm1883_vm1, %v1155_v9  ;;  %2008 = vst.msk [vmem:[%s3237_s4 + $0x3e0] sm:$0xff] %vm1883_vm1, %v1605_v10  ;;  %v1170_v13 = vadd.f32 %v2562_v11, %v3230_v56  ;;  %v1620_v14 = vadd.f32 %v2697_v12, %v3230_v56 }
 0x126   : > { %v1164_v15 = vpop.f32.mrf.mxu0  ;;  %v1614_v16 = vpop.f32.mrf.mxu1 }
 0x127   : > { %1921 = vst.msk [vmem:[%s3237_s4 + $0x128] sm:$0xff] %vm1883_vm1, %v1170_v13  ;;  %2011 = vst.msk [vmem:[%s3237_s4 + $0x3f8] sm:$0xff] %vm1883_vm1, %v1620_v14  ;;  %v1165_v17 = vadd.f32 %v3230_v56, %v1164_v15  ;;  %v1615_v18 = vadd.f32 %v3230_v56, %v1614_v16 }
 0x128   : > { %v2565_v19 = vpop.f32.mrf.mxu0  ;;  %v2700_v20 = vpop.f32.mrf.mxu1 }
 0x129   : > { %1920 = vst.msk [vmem:[%s3237_s4 + $0x120] sm:$0xff] %vm1883_vm1, %v1165_v17  ;;  %2010 = vst.msk [vmem:[%s3237_s4 + $0x3f0] sm:$0xff] %vm1883_vm1, %v1615_v18  ;;  %v1180_v21 = vadd.f32 %v2565_v19, %v3230_v56  ;;  %v1630_v22 = vadd.f32 %v2700_v20, %v3230_v56 }
 0x12a   : > { %v1174_v23 = vpop.f32.mrf.mxu0  ;;  %v1624_v24 = vpop.f32.mrf.mxu1 }
 0x12b   : > { %1923 = vst.msk [vmem:[%s3237_s4 + $0x138] sm:$0xff] %vm1883_vm1, %v1180_v21  ;;  %2013 = vst.msk [vmem:[%s3237_s4 + $0x408] sm:$0xff] %vm1883_vm1, %v1630_v22  ;;  %v1175_v25 = vadd.f32 %v3230_v56, %v1174_v23  ;;  %v1625_v26 = vadd.f32 %v3230_v56, %v1624_v24 }
 0x12c   : > { %v2568_v27 = vpop.f32.mrf.mxu0  ;;  %v2703_v28 = vpop.f32.mrf.mxu1 }
 0x12d   : > { %1922 = vst.msk [vmem:[%s3237_s4 + $0x130] sm:$0xff] %vm1883_vm1, %v1175_v25  ;;  %2012 = vst.msk [vmem:[%s3237_s4 + $0x400] sm:$0xff] %vm1883_vm1, %v1625_v26  ;;  %v1190_v29 = vadd.f32 %v2568_v27, %v3230_v56  ;;  %v1640_v30 = vadd.f32 %v2703_v28, %v3230_v56 }
 0x12e   : > { %v1184_v31 = vpop.f32.mrf.mxu0  ;;  %v1634_v32 = vpop.f32.mrf.mxu1 }
 0x12f   : > { %1925 = vst.msk [vmem:[%s3237_s4 + $0x148] sm:$0xff] %vm1883_vm1, %v1190_v29  ;;  %2015 = vst.msk [vmem:[%s3237_s4 + $0x418] sm:$0xff] %vm1883_vm1, %v1640_v30  ;;  %v1185_v33 = vadd.f32 %v3230_v56, %v1184_v31  ;;  %v1635_v34 = vadd.f32 %v3230_v56, %v1634_v32 }
 0x130   : > { %v2571_v35 = vpop.f32.mrf.mxu0  ;;  %v2706_v36 = vpop.f32.mrf.mxu1 }
 0x131   : > { %1924 = vst.msk [vmem:[%s3237_s4 + $0x140] sm:$0xff] %vm1883_vm1, %v1185_v33  ;;  %2014 = vst.msk [vmem:[%s3237_s4 + $0x410] sm:$0xff] %vm1883_vm1, %v1635_v34  ;;  %v1200_v37 = vadd.f32 %v2571_v35, %v3230_v56  ;;  %v1650_v38 = vadd.f32 %v2706_v36, %v3230_v56 }
 0x132   : > { %v1194_v39 = vpop.f32.mrf.mxu0  ;;  %v1644_v40 = vpop.f32.mrf.mxu1 }
 0x133   : > { %1927 = vst.msk [vmem:[%s3237_s4 + $0x158] sm:$0xff] %vm1883_vm1, %v1200_v37  ;;  %2017 = vst.msk [vmem:[%s3237_s4 + $0x428] sm:$0xff] %vm1883_vm1, %v1650_v38  ;;  %v1195_v41 = vadd.f32 %v3230_v56, %v1194_v39  ;;  %v1645_v42 = vadd.f32 %v3230_v56, %v1644_v40 }
 0x134   : > { %v2574_v43 = vpop.f32.mrf.mxu0  ;;  %v2709_v44 = vpop.f32.mrf.mxu1 }
 0x135   : > { %1926 = vst.msk [vmem:[%s3237_s4 + $0x150] sm:$0xff] %vm1883_vm1, %v1195_v41  ;;  %2016 = vst.msk [vmem:[%s3237_s4 + $0x420] sm:$0xff] %vm1883_vm1, %v1645_v42  ;;  %v1210_v45 = vadd.f32 %v2574_v43, %v3230_v56  ;;  %v1660_v46 = vadd.f32 %v2709_v44, %v3230_v56 }
 0x136   : > { %v1204_v47 = vpop.f32.mrf.mxu0  ;;  %v1654_v48 = vpop.f32.mrf.mxu1 }
 0x137   : > { %1929 = vst.msk [vmem:[%s3237_s4 + $0x168] sm:$0xff] %vm1883_vm1, %v1210_v45  ;;  %2019 = vst.msk [vmem:[%s3237_s4 + $0x438] sm:$0xff] %vm1883_vm1, %v1660_v46  ;;  %v1205_v49 = vadd.f32 %v3230_v56, %v1204_v47  ;;  %v1655_v50 = vadd.f32 %v3230_v56, %v1654_v48 }
 0x138   : > { %v2577_v51 = vpop.f32.mrf.mxu0  ;;  %v2712_v52 = vpop.f32.mrf.mxu1 }
 0x139   : > { %1928 = vst.msk [vmem:[%s3237_s4 + $0x160] sm:$0xff] %vm1883_vm1, %v1205_v49  ;;  %2018 = vst.msk [vmem:[%s3237_s4 + $0x430] sm:$0xff] %vm1883_vm1, %v1655_v50  ;;  %v1220_v53 = vadd.f32 %v2577_v51, %v3230_v56  ;;  %v1670_v54 = vadd.f32 %v2712_v52, %v3230_v56 }
 0x13a   : > { %v1214_v55 = vpop.f32.mrf.mxu0  ;;  %v1664_v57 = vpop.f32.mrf.mxu1 }
 0x13b   : > { %1931 = vst.msk [vmem:[%s3237_s4 + $0x178] sm:$0xff] %vm1883_vm1, %v1220_v53  ;;  %2021 = vst.msk [vmem:[%s3237_s4 + $0x448] sm:$0xff] %vm1883_vm1, %v1670_v54  ;;  %v1215_v58 = vadd.f32 %v3230_v56, %v1214_v55  ;;  %v1665_v59 = vadd.f32 %v3230_v56, %v1664_v57 }
 0x13c   : > { %v2580_v60 = vpop.f32.mrf.mxu0  ;;  %v2715_v61 = vpop.f32.mrf.mxu1 }
 0x13d   : > { %1930 = vst.msk [vmem:[%s3237_s4 + $0x170] sm:$0xff] %vm1883_vm1, %v1215_v58  ;;  %2020 = vst.msk [vmem:[%s3237_s4 + $0x440] sm:$0xff] %vm1883_vm1, %v1665_v59  ;;  %v1230_v62 = vadd.f32 %v2580_v60, %v3230_v56  ;;  %v1680_v63 = vadd.f32 %v2715_v61, %v3230_v56 }
 0x13e   : > { %v1224_v0 = vpop.f32.mrf.mxu0  ;;  %v1674_v1 = vpop.f32.mrf.mxu1 }
 0x13f   : > { %1933 = vst.msk [vmem:[%s3237_s4 + $0x188] sm:$0xff] %vm1883_vm1, %v1230_v62  ;;  %2023 = vst.msk [vmem:[%s3237_s4 + $0x458] sm:$0xff] %vm1883_vm1, %v1680_v63  ;;  %v1225_v2 = vadd.f32 %v3230_v56, %v1224_v0  ;;  %v1675_v3 = vadd.f32 %v3230_v56, %v1674_v1 }
 0x140   : > { %v2583_v4 = vpop.f32.mrf.mxu0  ;;  %v2718_v5 = vpop.f32.mrf.mxu1 }
 0x141   : > { %1932 = vst.msk [vmem:[%s3237_s4 + $0x180] sm:$0xff] %vm1883_vm1, %v1225_v2  ;;  %2022 = vst.msk [vmem:[%s3237_s4 + $0x450] sm:$0xff] %vm1883_vm1, %v1675_v3  ;;  %v1240_v6 = vadd.f32 %v2583_v4, %v3230_v56  ;;  %v1690_v7 = vadd.f32 %v2718_v5, %v3230_v56 }
 0x142   : > { %v1234_v8 = vpop.f32.mrf.mxu0  ;;  %v1684_v9 = vpop.f32.mrf.mxu1 }
 0x143   : > { %1935 = vst.msk [vmem:[%s3237_s4 + $0x198] sm:$0xff] %vm1883_vm1, %v1240_v6  ;;  %2025 = vst.msk [vmem:[%s3237_s4 + $0x468] sm:$0xff] %vm1883_vm1, %v1690_v7  ;;  %v1235_v10 = vadd.f32 %v3230_v56, %v1234_v8  ;;  %v1685_v11 = vadd.f32 %v3230_v56, %v1684_v9 }
 0x144   : > { %v2586_v12 = vpop.f32.mrf.mxu0  ;;  %v2721_v13 = vpop.f32.mrf.mxu1 }
 0x145   : > { %1934 = vst.msk [vmem:[%s3237_s4 + $0x190] sm:$0xff] %vm1883_vm1, %v1235_v10  ;;  %2024 = vst.msk [vmem:[%s3237_s4 + $0x460] sm:$0xff] %vm1883_vm1, %v1685_v11  ;;  %v1250_v14 = vadd.f32 %v2586_v12, %v3230_v56  ;;  %v1700_v15 = vadd.f32 %v2721_v13, %v3230_v56 }
 0x146   : > { %v1244_v16 = vpop.f32.mrf.mxu0  ;;  %v1694_v17 = vpop.f32.mrf.mxu1 }
 0x147   : > { %1937 = vst.msk [vmem:[%s3237_s4 + $0x1a8] sm:$0xff] %vm1883_vm1, %v1250_v14  ;;  %2027 = vst.msk [vmem:[%s3237_s4 + $0x478] sm:$0xff] %vm1883_vm1, %v1700_v15  ;;  %v1245_v18 = vadd.f32 %v3230_v56, %v1244_v16  ;;  %v1695_v19 = vadd.f32 %v3230_v56, %v1694_v17 }
 0x148   : > { %v2589_v20 = vpop.f32.mrf.mxu0  ;;  %v2724_v21 = vpop.f32.mrf.mxu1 }
 0x149   : > { %1936 = vst.msk [vmem:[%s3237_s4 + $0x1a0] sm:$0xff] %vm1883_vm1, %v1245_v18  ;;  %2026 = vst.msk [vmem:[%s3237_s4 + $0x470] sm:$0xff] %vm1883_vm1, %v1695_v19  ;;  %v1260_v22 = vadd.f32 %v2589_v20, %v3230_v56  ;;  %v1710_v23 = vadd.f32 %v2724_v21, %v3230_v56 }
 0x14a   : > { %v1254_v24 = vpop.f32.mrf.mxu0  ;;  %v1704_v25 = vpop.f32.mrf.mxu1 }
 0x14b   : > { %1939 = vst.msk [vmem:[%s3237_s4 + $0x1b8] sm:$0xff] %vm1883_vm1, %v1260_v22  ;;  %2029 = vst.msk [vmem:[%s3237_s4 + $0x488] sm:$0xff] %vm1883_vm1, %v1710_v23  ;;  %v1255_v26 = vadd.f32 %v3230_v56, %v1254_v24  ;;  %v1705_v27 = vadd.f32 %v3230_v56, %v1704_v25 }
 0x14c   : > { %v2592_v28 = vpop.f32.mrf.mxu0  ;;  %v2727_v29 = vpop.f32.mrf.mxu1 }
 0x14d   : > { %1938 = vst.msk [vmem:[%s3237_s4 + $0x1b0] sm:$0xff] %vm1883_vm1, %v1255_v26  ;;  %2028 = vst.msk [vmem:[%s3237_s4 + $0x480] sm:$0xff] %vm1883_vm1, %v1705_v27  ;;  %v1270_v30 = vadd.f32 %v2592_v28, %v3230_v56  ;;  %v1720_v31 = vadd.f32 %v2727_v29, %v3230_v56 }
 0x14e   : > { %v1264_v32 = vpop.f32.mrf.mxu0  ;;  %v1714_v33 = vpop.f32.mrf.mxu1 }
 0x14f   : > { %1941 = vst.msk [vmem:[%s3237_s4 + $0x1c8] sm:$0xff] %vm1883_vm1, %v1270_v30  ;;  %2031 = vst.msk [vmem:[%s3237_s4 + $0x498] sm:$0xff] %vm1883_vm1, %v1720_v31  ;;  %v1265_v34 = vadd.f32 %v3230_v56, %v1264_v32  ;;  %v1715_v35 = vadd.f32 %v3230_v56, %v1714_v33 }
 0x150   : > { %v2595_v36 = vpop.f32.mrf.mxu0  ;;  %v2730_v37 = vpop.f32.mrf.mxu1 }
 0x151   : > { %1940 = vst.msk [vmem:[%s3237_s4 + $0x1c0] sm:$0xff] %vm1883_vm1, %v1265_v34  ;;  %2030 = vst.msk [vmem:[%s3237_s4 + $0x490] sm:$0xff] %vm1883_vm1, %v1715_v35  ;;  %v1280_v38 = vadd.f32 %v2595_v36, %v3230_v56  ;;  %v1730_v39 = vadd.f32 %v2730_v37, %v3230_v56 }
 0x152   : > { %v1274_v40 = vpop.f32.mrf.mxu0  ;;  %v1724_v41 = vpop.f32.mrf.mxu1 }
 0x153   : > { %1943 = vst.msk [vmem:[%s3237_s4 + $0x1d8] sm:$0xff] %vm1883_vm1, %v1280_v38  ;;  %2033 = vst.msk [vmem:[%s3237_s4 + $0x4a8] sm:$0xff] %vm1883_vm1, %v1730_v39  ;;  %v1275_v42 = vadd.f32 %v3230_v56, %v1274_v40  ;;  %v1725_v43 = vadd.f32 %v3230_v56, %v1724_v41 }
 0x154   : > { %v2598_v44 = vpop.f32.mrf.mxu0  ;;  %v2733_v45 = vpop.f32.mrf.mxu1 }
 0x155   : > { %1942 = vst.msk [vmem:[%s3237_s4 + $0x1d0] sm:$0xff] %vm1883_vm1, %v1275_v42  ;;  %2032 = vst.msk [vmem:[%s3237_s4 + $0x4a0] sm:$0xff] %vm1883_vm1, %v1725_v43  ;;  %v1290_v46 = vadd.f32 %v2598_v44, %v3230_v56  ;;  %v1740_v47 = vadd.f32 %v2733_v45, %v3230_v56 }
 0x156   : > { %v1284_v48 = vpop.f32.mrf.mxu0  ;;  %v1734_v49 = vpop.f32.mrf.mxu1 }
 0x157   : > { %1945 = vst.msk [vmem:[%s3237_s4 + $0x1e8] sm:$0xff] %vm1883_vm1, %v1290_v46  ;;  %2035 = vst.msk [vmem:[%s3237_s4 + $0x4b8] sm:$0xff] %vm1883_vm1, %v1740_v47  ;;  %v1285_v50 = vadd.f32 %v3230_v56, %v1284_v48  ;;  %v1735_v51 = vadd.f32 %v3230_v56, %v1734_v49 }
 0x158   : > { %v2601_v52 = vpop.f32.mrf.mxu0  ;;  %v2736_v53 = vpop.f32.mrf.mxu1 }
 0x159   : > { %1944 = vst.msk [vmem:[%s3237_s4 + $0x1e0] sm:$0xff] %vm1883_vm1, %v1285_v50  ;;  %2034 = vst.msk [vmem:[%s3237_s4 + $0x4b0] sm:$0xff] %vm1883_vm1, %v1735_v51  ;;  %v1300_v54 = vadd.f32 %v2601_v52, %v3230_v56  ;;  %v1750_v55 = vadd.f32 %v2736_v53, %v3230_v56 }
 0x15a   : > { %v1294_v57 = vpop.f32.mrf.mxu0  ;;  %v1744_v58 = vpop.f32.mrf.mxu1 }
 0x15b   : > { %1947 = vst.msk [vmem:[%s3237_s4 + $0x1f8] sm:$0xff] %vm1883_vm1, %v1300_v54  ;;  %2037 = vst.msk [vmem:[%s3237_s4 + $0x4c8] sm:$0xff] %vm1883_vm1, %v1750_v55  ;;  %v1295_v59 = vadd.f32 %v3230_v56, %v1294_v57  ;;  %v1745_v60 = vadd.f32 %v3230_v56, %v1744_v58 }
 0x15c   : > { %v2604_v61 = vpop.f32.mrf.mxu0  ;;  %v2739_v62 = vpop.f32.mrf.mxu1 }
 0x15d   : > { %1946 = vst.msk [vmem:[%s3237_s4 + $0x1f0] sm:$0xff] %vm1883_vm1, %v1295_v59  ;;  %2036 = vst.msk [vmem:[%s3237_s4 + $0x4c0] sm:$0xff] %vm1883_vm1, %v1745_v60  ;;  %v1310_v63 = vadd.f32 %v2604_v61, %v3230_v56  ;;  %v1760_v0 = vadd.f32 %v2739_v62, %v3230_v56 }
 0x15e   : > { %v1304_v1 = vpop.f32.mrf.mxu0  ;;  %v1754_v2 = vpop.f32.mrf.mxu1 }
 0x15f   : > { %1949 = vst.msk [vmem:[%s3237_s4 + $0x208] sm:$0xff] %vm1883_vm1, %v1310_v63  ;;  %2039 = vst.msk [vmem:[%s3237_s4 + $0x4d8] sm:$0xff] %vm1883_vm1, %v1760_v0  ;;  %v1305_v3 = vadd.f32 %v3230_v56, %v1304_v1  ;;  %v1755_v4 = vadd.f32 %v3230_v56, %v1754_v2 }
 0x160   : > { %v2607_v5 = vpop.f32.mrf.mxu0  ;;  %v2742_v6 = vpop.f32.mrf.mxu1 }
 0x161   : > { %1948 = vst.msk [vmem:[%s3237_s4 + $0x200] sm:$0xff] %vm1883_vm1, %v1305_v3  ;;  %2038 = vst.msk [vmem:[%s3237_s4 + $0x4d0] sm:$0xff] %vm1883_vm1, %v1755_v4  ;;  %v1320_v7 = vadd.f32 %v2607_v5, %v3230_v56  ;;  %v1770_v8 = vadd.f32 %v2742_v6, %v3230_v56 }
 0x162   : > { %v1314_v9 = vpop.f32.mrf.mxu0  ;;  %v1764_v10 = vpop.f32.mrf.mxu1 }
 0x163   : > { %1951 = vst.msk [vmem:[%s3237_s4 + $0x218] sm:$0xff] %vm1883_vm1, %v1320_v7  ;;  %2041 = vst.msk [vmem:[%s3237_s4 + $0x4e8] sm:$0xff] %vm1883_vm1, %v1770_v8  ;;  %v1315_v11 = vadd.f32 %v3230_v56, %v1314_v9  ;;  %v1765_v12 = vadd.f32 %v3230_v56, %v1764_v10 }
 0x164   : > { %v2610_v13 = vpop.f32.mrf.mxu0  ;;  %v2745_v14 = vpop.f32.mrf.mxu1 }
 0x165   : > { %1950 = vst.msk [vmem:[%s3237_s4 + $0x210] sm:$0xff] %vm1883_vm1, %v1315_v11  ;;  %2040 = vst.msk [vmem:[%s3237_s4 + $0x4e0] sm:$0xff] %vm1883_vm1, %v1765_v12  ;;  %v1330_v15 = vadd.f32 %v2610_v13, %v3230_v56  ;;  %v1780_v16 = vadd.f32 %v2745_v14, %v3230_v56 }
 0x166   : > { %v1324_v17 = vpop.f32.mrf.mxu0  ;;  %v1774_v18 = vpop.f32.mrf.mxu1 }
 0x167   : > { %1953 = vst.msk [vmem:[%s3237_s4 + $0x228] sm:$0xff] %vm1883_vm1, %v1330_v15  ;;  %2043 = vst.msk [vmem:[%s3237_s4 + $0x4f8] sm:$0xff] %vm1883_vm1, %v1780_v16  ;;  %v1325_v19 = vadd.f32 %v3230_v56, %v1324_v17  ;;  %v1775_v20 = vadd.f32 %v3230_v56, %v1774_v18 }
 0x168   : > { %v2613_v21 = vpop.f32.mrf.mxu0  ;;  %v2748_v22 = vpop.f32.mrf.mxu1 }
 0x169   : > { %1952 = vst.msk [vmem:[%s3237_s4 + $0x220] sm:$0xff] %vm1883_vm1, %v1325_v19  ;;  %2042 = vst.msk [vmem:[%s3237_s4 + $0x4f0] sm:$0xff] %vm1883_vm1, %v1775_v20  ;;  %v1340_v23 = vadd.f32 %v2613_v21, %v3230_v56  ;;  %v1790_v24 = vadd.f32 %v2748_v22, %v3230_v56  ;;  %v2792_v20 = vld [vmem:[%s3777_s2] ss:$0 sm:$0xff] }
 0x16a   : > { %v1334_v25 = vpop.f32.mrf.mxu0  ;;  %v1784_v26 = vpop.f32.mrf.mxu1 }
 0x16b   : > { %1955 = vst.msk [vmem:[%s3237_s4 + $0x238] sm:$0xff] %vm1883_vm1, %v1340_v23  ;;  %2045 = vst.msk [vmem:[%s3237_s4 + $0x508] sm:$0xff] %vm1883_vm1, %v1790_v24  ;;  %v1335_v27 = vadd.f32 %v3230_v56, %v1334_v25  ;;  %v1785_v28 = vadd.f32 %v3230_v56, %v1784_v26 }
 0x16c   : > { %v2616_v29 = vpop.f32.mrf.mxu0  ;;  %v2751_v30 = vpop.f32.mrf.mxu1 }
 0x16d   : > { %1954 = vst.msk [vmem:[%s3237_s4 + $0x230] sm:$0xff] %vm1883_vm1, %v1335_v27  ;;  %2044 = vst.msk [vmem:[%s3237_s4 + $0x500] sm:$0xff] %vm1883_vm1, %v1785_v28  ;;  %v1350_v31 = vadd.f32 %v2616_v29, %v3230_v56  ;;  %v1800_v32 = vadd.f32 %v2751_v30, %v3230_v56 }
 0x16e   : > { %v1344_v33 = vpop.f32.mrf.mxu0  ;;  %v1794_v34 = vpop.f32.mrf.mxu1 }
 0x16f   : > { %1957 = vst.msk [vmem:[%s3237_s4 + $0x248] sm:$0xff] %vm1883_vm1, %v1350_v31  ;;  %2047 = vst.msk [vmem:[%s3237_s4 + $0x518] sm:$0xff] %vm1883_vm1, %v1800_v32  ;;  %v1345_v35 = vadd.f32 %v3230_v56, %v1344_v33  ;;  %v1795_v36 = vadd.f32 %v3230_v56, %v1794_v34 }
 0x170   : > { %v2619_v37 = vpop.f32.mrf.mxu0  ;;  %v2754_v38 = vpop.f32.mrf.mxu1 }
 0x171   : > { %1956 = vst.msk [vmem:[%s3237_s4 + $0x240] sm:$0xff] %vm1883_vm1, %v1345_v35  ;;  %2046 = vst.msk [vmem:[%s3237_s4 + $0x510] sm:$0xff] %vm1883_vm1, %v1795_v36  ;;  %v1360_v39 = vadd.f32 %v2619_v37, %v3230_v56  ;;  %v1810_v40 = vadd.f32 %v2754_v38, %v3230_v56 }
 0x172   : > { %v1354_v41 = vpop.f32.mrf.mxu0  ;;  %v1804_v42 = vpop.f32.mrf.mxu1 }
 0x173   : > { %1959 = vst.msk [vmem:[%s3237_s4 + $0x258] sm:$0xff] %vm1883_vm1, %v1360_v39  ;;  %2049 = vst.msk [vmem:[%s3237_s4 + $0x528] sm:$0xff] %vm1883_vm1, %v1810_v40  ;;  %v1355_v43 = vadd.f32 %v3230_v56, %v1354_v41  ;;  %v1805_v44 = vadd.f32 %v3230_v56, %v1804_v42 }
 0x174   : > { %v2622_v45 = vpop.f32.mrf.mxu0  ;;  %v2757_v46 = vpop.f32.mrf.mxu1 }
 0x175   : > { %1958 = vst.msk [vmem:[%s3237_s4 + $0x250] sm:$0xff] %vm1883_vm1, %v1355_v43  ;;  %2048 = vst.msk [vmem:[%s3237_s4 + $0x520] sm:$0xff] %vm1883_vm1, %v1805_v44  ;;  %v1370_v47 = vadd.f32 %v2622_v45, %v3230_v56  ;;  %v1820_v48 = vadd.f32 %v2757_v46, %v3230_v56 }
 0x176   : > { %v1364_v49 = vpop.f32.mrf.mxu0  ;;  %v1814_v50 = vpop.f32.mrf.mxu1 }
 0x177   : > { %1961 = vst.msk [vmem:[%s3237_s4 + $0x268] sm:$0xff] %vm1883_vm1, %v1370_v47  ;;  %2051 = vst.msk [vmem:[%s3237_s4 + $0x538] sm:$0xff] %vm1883_vm1, %v1820_v48  ;;  %v1365_v51 = vadd.f32 %v3230_v56, %v1364_v49  ;;  %v1815_v52 = vadd.f32 %v3230_v56, %v1814_v50 }
 0x178   : > { %v2625_v53 = vpop.f32.mrf.mxu0  ;;  %v2760_v54 = vpop.f32.mrf.mxu1 }
 0x179   : > { %1960 = vst.msk [vmem:[%s3237_s4 + $0x260] sm:$0xff] %vm1883_vm1, %v1365_v51  ;;  %2050 = vst.msk [vmem:[%s3237_s4 + $0x530] sm:$0xff] %vm1883_vm1, %v1815_v52  ;;  %v1380_v55 = vadd.f32 %v2625_v53, %v3230_v56  ;;  %v1830_v57 = vadd.f32 %v2760_v54, %v3230_v56 }
 0x17a   : > { %v1374_v58 = vpop.f32.mrf.mxu0  ;;  %v1824_v59 = vpop.f32.mrf.mxu1 }
 0x17b   : > { %1963 = vst.msk [vmem:[%s3237_s4 + $0x278] sm:$0xff] %vm1883_vm1, %v1380_v55  ;;  %2053 = vst.msk [vmem:[%s3237_s4 + $0x548] sm:$0xff] %vm1883_vm1, %v1830_v57  ;;  %v1375_v60 = vadd.f32 %v3230_v56, %v1374_v58  ;;  %v1825_v61 = vadd.f32 %v3230_v56, %v1824_v59 }
 0x17c   : > { %v2628_v62 = vpop.f32.mrf.mxu0  ;;  %v2763_v63 = vpop.f32.mrf.mxu1 }
 0x17d   : > { %1962 = vst.msk [vmem:[%s3237_s4 + $0x270] sm:$0xff] %vm1883_vm1, %v1375_v60  ;;  %2052 = vst.msk [vmem:[%s3237_s4 + $0x540] sm:$0xff] %vm1883_vm1, %v1825_v61  ;;  %v1390_v0 = vadd.f32 %v2628_v62, %v3230_v56  ;;  %v1840_v1 = vadd.f32 %v2763_v63, %v3230_v56 }
 0x17e   : > { %v1384_v2 = vpop.f32.mrf.mxu0  ;;  %v1834_v3 = vpop.f32.mrf.mxu1 }
 0x17f   : > { %1965 = vst.msk [vmem:[%s3237_s4 + $0x288] sm:$0xff] %vm1883_vm1, %v1390_v0  ;;  %2055 = vst.msk [vmem:[%s3237_s4 + $0x558] sm:$0xff] %vm1883_vm1, %v1840_v1  ;;  %v1385_v4 = vadd.f32 %v3230_v56, %v1384_v2  ;;  %v1835_v5 = vadd.f32 %v3230_v56, %v1834_v3 }
 0x180   : > { %v2631_v6 = vpop.f32.mrf.mxu0  ;;  %v2766_v7 = vpop.f32.mrf.mxu1 }
 0x181   : > { %1964 = vst.msk [vmem:[%s3237_s4 + $0x280] sm:$0xff] %vm1883_vm1, %v1385_v4  ;;  %2054 = vst.msk [vmem:[%s3237_s4 + $0x550] sm:$0xff] %vm1883_vm1, %v1835_v5  ;;  %v1400_v8 = vadd.f32 %v2631_v6, %v3230_v56  ;;  %v1850_v9 = vadd.f32 %v2766_v7, %v3230_v56 }
 0x182   : > { %v1394_v10 = vpop.f32.mrf.mxu0  ;;  %v1844_v11 = vpop.f32.mrf.mxu1 }
 0x183   : > { %1967 = vst.msk [vmem:[%s3237_s4 + $0x298] sm:$0xff] %vm1883_vm1, %v1400_v8  ;;  %2057 = vst.msk [vmem:[%s3237_s4 + $0x568] sm:$0xff] %vm1883_vm1, %v1850_v9  ;;  %v1395_v12 = vadd.f32 %v3230_v56, %v1394_v10  ;;  %v1845_v13 = vadd.f32 %v3230_v56, %v1844_v11 }
 0x184   : > { %v2634_v14 = vpop.f32.mrf.mxu0  ;;  %v2769_v15 = vpop.f32.mrf.mxu1 }
 0x185   : > { %1966 = vst.msk [vmem:[%s3237_s4 + $0x290] sm:$0xff] %vm1883_vm1, %v1395_v12  ;;  %2056 = vst.msk [vmem:[%s3237_s4 + $0x560] sm:$0xff] %vm1883_vm1, %v1845_v13  ;;  %v1410_v16 = vadd.f32 %v2634_v14, %v3230_v56  ;;  %v1860_v17 = vadd.f32 %v2769_v15, %v3230_v56 }
 0x186   : > { %v1404_v18 = vpop.f32.mrf.mxu0  ;;  %v1854_v19 = vpop.f32.mrf.mxu1 }
 0x187   : > { %1969 = vst.msk [vmem:[%s3237_s4 + $0x2a8] sm:$0xff] %vm1883_vm1, %v1410_v16  ;;  %2059 = vst.msk [vmem:[%s3237_s4 + $0x578] sm:$0xff] %vm1883_vm1, %v1860_v17  ;;  %v1405_v21 = vadd.f32 %v2792_v20, %v1404_v18  ;;  %v1855_v22 = vadd.f32 %v2792_v20, %v1854_v19 }
 0x188   : > { %v2637_v23 = vpop.f32.mrf.mxu0  ;;  %v2772_v24 = vpop.f32.mrf.mxu1 }
 0x189   : > { %1968 = vst.msk [vmem:[%s3237_s4 + $0x2a0] sm:$0xff] %vm1883_vm1, %v1405_v21  ;;  %2058 = vst.msk [vmem:[%s3237_s4 + $0x570] sm:$0xff] %vm1883_vm1, %v1855_v22  ;;  %v1420_v56 = vadd.f32 %v2792_v20, %v2637_v23  ;;  %v1870_v25 = vadd.f32 %v2792_v20, %v2772_v24 }
 0x18a   : > { %v1414_v26 = vpop.f32.mrf.mxu0  ;;  %v1864_v27 = vpop.f32.mrf.mxu1 }
 0x18b   : > { %1971 = vst.msk [vmem:[%s3237_s4 + $0x2b8] sm:$0xff] %vm1883_vm1, %v1420_v56  ;;  %2061 = vst.msk [vmem:[%s3237_s4 + $0x588] sm:$0xff] %vm1883_vm1, %v1870_v25  ;;  %v1415_v28 = vadd.f32 %v2792_v20, %v1414_v26  ;;  %v1865_v29 = vadd.f32 %v2792_v20, %v1864_v27 }
 0x18c   : > { %v2640_v30 = vpop.f32.mrf.mxu0  ;;  %v2775_v31 = vpop.f32.mrf.mxu1 }
 0x18d   : > { %1970 = vst.msk [vmem:[%s3237_s4 + $0x2b0] sm:$0xff] %vm1883_vm1, %v1415_v28  ;;  %2060 = vst.msk [vmem:[%s3237_s4 + $0x580] sm:$0xff] %vm1883_vm1, %v1865_v29  ;;  %v1430_v32 = vadd.f32 %v2792_v20, %v2640_v30  ;;  %v1880_v33 = vadd.f32 %v2792_v20, %v2775_v31 }
 0x18e   : > { %v1424_v34 = vpop.f32.mrf.mxu0  ;;  %v1874_v35 = vpop.f32.mrf.mxu1 }
 0x18f   : > { %1973 = vst.msk [vmem:[%s3237_s4 + $0x2c8] sm:$0xff] %vm1883_vm1, %v1430_v32  ;;  %2063 = vst.msk [vmem:[%s3237_s4 + $0x598] sm:$0xff] %vm1883_vm1, %v1880_v33  ;;  %v1425_v36 = vadd.f32 %v2792_v20, %v1424_v34  ;;  %v1875_v37 = vadd.f32 %v2792_v20, %v1874_v35 }
 0x191   : > { %1972 = vst.msk [vmem:[%s3237_s4 + $0x2c0] sm:$0xff] %vm1883_vm1, %v1425_v36  ;;  %2062 = vst.msk [vmem:[%s3237_s4 + $0x590] sm:$0xff] %vm1883_vm1, %v1875_v37 }
 0x192 PF: > { %s13_s12 = sadd.s32 1, %s2799_s12  }
 0x193   : > { %p10_p4 = scmp.ge.s32.totalorder %s13_s12, 7  }
 0x195   :  { %12 = sbr.rel (!%p10_p4) target bundleno = 1 (0x1), region = 62 }

// kernel: spherenet_forward.6
= control target key start
LH: loop header
LB: loop body
LE: loop exit
PB: predicated region body
PF: predicated region fallthrough
CT: control target
= control target key end

     0   :  { %s1296_s6 = smov 0   ;;  %s1298_s7 = smov 0   ;;  %s1883_s0 = inlined_call_operand.vmem [shape: f32[2,9,28800], index: 0, kind: input, shape index: {}]   ;;  %s1884_s1 = inlined_call_operand.vmem [shape: f32[2,1,28800], index: 1, kind: output, shape index: {}]  }
   0x1   :  { %s1300_s8 = smov 0   ;;  %s1302_s9 = smov 0  }
   0x2   :  { %s1304_s10 = smov 0   ;;  %s1306_s11 = smov 0  }
   0x3   :  { %s1308_s12 = smov 0  }
   0x4 LB: > { %s20_s13 = sadd.s32 1, %s1276_s10  ;;  %s23_s14 = sadd.s32 1, %s1280_s11  ;;  %s1284_s12 = sphi %s1308_s12, %s11_s12   ;;  %s1280_s11 = sphi %s1306_s11, %s1890_s11   ;;  %s1276_s10 = sphi %s1304_s10, %s1889_s10   ;;  %s1272_s9 = sphi %s1302_s9, %s1888_s9   ;;  %s1268_s8 = sphi %s1300_s8, %s1887_s8   ;;  %s1264_s7 = sphi %s1298_s7, %s1886_s7   ;;  %s1260_s6 = sphi %s1296_s6, %s1885_s6  }
   0x5   : > { %p21_p0 = scmp.ge.s32.totalorder %s20_s13, 3  ;;  %p39_p1 = scmp.ne.s32.totalorder %s1264_s7, %s1260_s6 }
   0x6   : > { %p40_p2 = scmp.eq.s32.totalorder %s1284_s12, 0  ;;  %s32_s18 = sadd.s32 1, %s1264_s7 }
   0x7   : > { %s1892_s13 = smov (%p21_p0, %s20_s13), 0  ;;  %s1894_s14 = smov (!%p21_p0, %s23_s14), %s1280_s11 }
   0x8   : > { %p41_p3 = por %p40_p2, %p39_p1  ;;  %p25_p4 = scmp.ge.s32.totalorder %s1894_s14, 2 }
   0x9   : > { %s28_s15 = ssub.s32 %s1276_s10, %s1892_s13  ;;  %p996_p6 = scmp.ge.s32.totalorder %s1284_s12, 6 }
   0xa   : > { %s1896_s14 = smov (%p25_p4, %s1894_s14), 0 }
   0xb   : > { %s27_s16 = ssub.s32 %s1280_s11, %s1896_s14  ;;  %93 = sbr.rel (%p996_p6) target bundleno = 100 (0x64), region = 16 }
   0xc   : > { %s29_s17 = sor.u32 %s28_s15, %s27_s16 }
   0xd   : > { %p30_p5 = scmp.eq.s32.totalorder %s29_s17, 0 }
   0xf   : > { %s1347_s19 = scalar_select %p30_p5, %s1264_s7, %s32_s18  }
  0x10   : > { %96 = sbr.rel (!%p41_p3) target bundleno = 100 (0x64), region = 20  ;;  %s98_s20 = sand.u32 (%p41_p3), 1, %s1264_s7  }
  0x11   : > { %s101_s21 = smul.u32 (%p41_p3), 75, %s1276_s10 }
  0x12   : > { %s1170_s22 = smul.u32 (%p41_p3), 1200, %s98_s20 }
  0x13   : > { %s1171_s23 = smul.u32 (%p41_p3), 450, %s1280_s11 }
  0x14   : > { %s1361_s29 = scalar_lea.vmem (%p41_p3), [#allocation2], %s1170_s22 }
  0x15   : > { %s103_s24 = sadd.s32 %s1171_s23, %s101_s21 }
  0x16   : > { %s997_s25 = sshll.u32 %s103_s24, 3 }
  0x17   : > { %s1356_s28 = scalar_lea.vmem %s1883_s0, %s997_s25 }
  0x18   : > { %v118_v0 = vld [vmem:[%s1356_s28] sm:$0xff]  ;;  %v120_v1 = vld [vmem:[%s1356_s28 + $0x8] sm:$0xff]  ;;  %v122_v2 = vld [vmem:[%s1356_s28 + $0x10] sm:$0xff] }
  0x19   : > { %119 = vst [vmem:[%s1361_s29] sm:$0xff] %v118_v0  ;;  %121 = vst [vmem:[%s1361_s29 + $0x8] sm:$0xff] %v120_v1  ;;  %v124_v3 = vld [vmem:[%s1356_s28 + $0x18] sm:$0xff]  ;;  %v126_v4 = vld [vmem:[%s1356_s28 + $0x20] sm:$0xff] }
  0x1a   : > { %123 = vst [vmem:[%s1361_s29 + $0x10] sm:$0xff] %v122_v2  ;;  %v128_v5 = vld [vmem:[%s1356_s28 + $0x28] sm:$0xff]  ;;  %125 = vst [vmem:[%s1361_s29 + $0x18] sm:$0xff] %v124_v3  ;;  %v130_v6 = vld [vmem:[%s1356_s28 + $0x30] sm:$0xff] }
  0x1b   : > { %127 = vst [vmem:[%s1361_s29 + $0x20] sm:$0xff] %v126_v4  ;;  %129 = vst [vmem:[%s1361_s29 + $0x28] sm:$0xff] %v128_v5  ;;  %v132_v7 = vld [vmem:[%s1356_s28 + $0x38] sm:$0xff]  ;;  %v134_v8 = vld [vmem:[%s1356_s28 + $0x40] sm:$0xff] }
  0x1c   : > { %131 = vst [vmem:[%s1361_s29 + $0x30] sm:$0xff] %v130_v6  ;;  %133 = vst [vmem:[%s1361_s29 + $0x38] sm:$0xff] %v132_v7  ;;  %v136_v9 = vld [vmem:[%s1356_s28 + $0x48] sm:$0xff]  ;;  %v138_v10 = vld [vmem:[%s1356_s28 + $0x50] sm:$0xff] }
  0x1d   : > { %135 = vst [vmem:[%s1361_s29 + $0x40] sm:$0xff] %v134_v8  ;;  %v140_v11 = vld [vmem:[%s1356_s28 + $0x58] sm:$0xff]  ;;  %137 = vst [vmem:[%s1361_s29 + $0x48] sm:$0xff] %v136_v9  ;;  %v142_v12 = vld [vmem:[%s1356_s28 + $0x60] sm:$0xff] }
  0x1e   : > { %139 = vst [vmem:[%s1361_s29 + $0x50] sm:$0xff] %v138_v10  ;;  %141 = vst [vmem:[%s1361_s29 + $0x58] sm:$0xff] %v140_v11  ;;  %v144_v13 = vld [vmem:[%s1356_s28 + $0x68] sm:$0xff]  ;;  %v146_v14 = vld [vmem:[%s1356_s28 + $0x70] sm:$0xff] }
  0x1f   : > { %143 = vst [vmem:[%s1361_s29 + $0x60] sm:$0xff] %v142_v12  ;;  %145 = vst [vmem:[%s1361_s29 + $0x68] sm:$0xff] %v144_v13  ;;  %v148_v15 = vld [vmem:[%s1356_s28 + $0x78] sm:$0xff]  ;;  %v150_v16 = vld [vmem:[%s1356_s28 + $0x80] sm:$0xff] }
  0x20   : > { %147 = vst [vmem:[%s1361_s29 + $0x70] sm:$0xff] %v146_v14  ;;  %v152_v17 = vld [vmem:[%s1356_s28 + $0x88] sm:$0xff]  ;;  %149 = vst [vmem:[%s1361_s29 + $0x78] sm:$0xff] %v148_v15  ;;  %v154_v18 = vld [vmem:[%s1356_s28 + $0x90] sm:$0xff] }
  0x21   : > { %151 = vst [vmem:[%s1361_s29 + $0x80] sm:$0xff] %v150_v16  ;;  %153 = vst [vmem:[%s1361_s29 + $0x88] sm:$0xff] %v152_v17  ;;  %v156_v19 = vld [vmem:[%s1356_s28 + $0x98] sm:$0xff]  ;;  %v158_v20 = vld [vmem:[%s1356_s28 + $0xa0] sm:$0xff] }
  0x22   : > { %155 = vst [vmem:[%s1361_s29 + $0x90] sm:$0xff] %v154_v18  ;;  %157 = vst [vmem:[%s1361_s29 + $0x98] sm:$0xff] %v156_v19  ;;  %v160_v21 = vld [vmem:[%s1356_s28 + $0xa8] sm:$0xff]  ;;  %v162_v22 = vld [vmem:[%s1356_s28 + $0xb0] sm:$0xff] }
  0x23   : > { %159 = vst [vmem:[%s1361_s29 + $0xa0] sm:$0xff] %v158_v20  ;;  %v164_v23 = vld [vmem:[%s1356_s28 + $0xb8] sm:$0xff]  ;;  %161 = vst [vmem:[%s1361_s29 + $0xa8] sm:$0xff] %v160_v21  ;;  %v166_v24 = vld [vmem:[%s1356_s28 + $0xc0] sm:$0xff] }
  0x24   : > { %163 = vst [vmem:[%s1361_s29 + $0xb0] sm:$0xff] %v162_v22  ;;  %165 = vst [vmem:[%s1361_s29 + $0xb8] sm:$0xff] %v164_v23  ;;  %v168_v25 = vld [vmem:[%s1356_s28 + $0xc8] sm:$0xff]  ;;  %v170_v26 = vld [vmem:[%s1356_s28 + $0xd0] sm:$0xff] }
  0x25   : > { %167 = vst [vmem:[%s1361_s29 + $0xc0] sm:$0xff] %v166_v24  ;;  %169 = vst [vmem:[%s1361_s29 + $0xc8] sm:$0xff] %v168_v25  ;;  %v172_v27 = vld [vmem:[%s1356_s28 + $0xd8] sm:$0xff]  ;;  %v174_v28 = vld [vmem:[%s1356_s28 + $0xe0] sm:$0xff] }
  0x26   : > { %171 = vst [vmem:[%s1361_s29 + $0xd0] sm:$0xff] %v170_v26  ;;  %v176_v29 = vld [vmem:[%s1356_s28 + $0xe8] sm:$0xff]  ;;  %173 = vst [vmem:[%s1361_s29 + $0xd8] sm:$0xff] %v172_v27  ;;  %v178_v30 = vld [vmem:[%s1356_s28 + $0xf0] sm:$0xff] }
  0x27   : > { %175 = vst [vmem:[%s1361_s29 + $0xe0] sm:$0xff] %v174_v28  ;;  %177 = vst [vmem:[%s1361_s29 + $0xe8] sm:$0xff] %v176_v29  ;;  %v180_v31 = vld [vmem:[%s1356_s28 + $0xf8] sm:$0xff]  ;;  %v182_v32 = vld [vmem:[%s1356_s28 + $0x100] sm:$0xff] }
  0x28   : > { %179 = vst [vmem:[%s1361_s29 + $0xf0] sm:$0xff] %v178_v30  ;;  %181 = vst [vmem:[%s1361_s29 + $0xf8] sm:$0xff] %v180_v31  ;;  %v184_v33 = vld [vmem:[%s1356_s28 + $0x108] sm:$0xff]  ;;  %v186_v34 = vld [vmem:[%s1356_s28 + $0x110] sm:$0xff] }
  0x29   : > { %183 = vst [vmem:[%s1361_s29 + $0x100] sm:$0xff] %v182_v32  ;;  %v188_v35 = vld [vmem:[%s1356_s28 + $0x118] sm:$0xff]  ;;  %185 = vst [vmem:[%s1361_s29 + $0x108] sm:$0xff] %v184_v33  ;;  %v190_v36 = vld [vmem:[%s1356_s28 + $0x120] sm:$0xff] }
  0x2a   : > { %187 = vst [vmem:[%s1361_s29 + $0x110] sm:$0xff] %v186_v34  ;;  %189 = vst [vmem:[%s1361_s29 + $0x118] sm:$0xff] %v188_v35  ;;  %v192_v37 = vld [vmem:[%s1356_s28 + $0x128] sm:$0xff]  ;;  %v194_v38 = vld [vmem:[%s1356_s28 + $0x130] sm:$0xff] }
  0x2b   : > { %191 = vst [vmem:[%s1361_s29 + $0x120] sm:$0xff] %v190_v36  ;;  %193 = vst [vmem:[%s1361_s29 + $0x128] sm:$0xff] %v192_v37  ;;  %v196_v39 = vld [vmem:[%s1356_s28 + $0x138] sm:$0xff]  ;;  %v198_v40 = vld [vmem:[%s1356_s28 + $0x140] sm:$0xff] }
  0x2c   : > { %195 = vst [vmem:[%s1361_s29 + $0x130] sm:$0xff] %v194_v38  ;;  %v200_v41 = vld [vmem:[%s1356_s28 + $0x148] sm:$0xff]  ;;  %197 = vst [vmem:[%s1361_s29 + $0x138] sm:$0xff] %v196_v39  ;;  %v202_v42 = vld [vmem:[%s1356_s28 + $0x150] sm:$0xff] }
  0x2d   : > { %199 = vst [vmem:[%s1361_s29 + $0x140] sm:$0xff] %v198_v40  ;;  %201 = vst [vmem:[%s1361_s29 + $0x148] sm:$0xff] %v200_v41  ;;  %v204_v43 = vld [vmem:[%s1356_s28 + $0x158] sm:$0xff]  ;;  %v206_v44 = vld [vmem:[%s1356_s28 + $0x160] sm:$0xff] }
  0x2e   : > { %203 = vst [vmem:[%s1361_s29 + $0x150] sm:$0xff] %v202_v42  ;;  %205 = vst [vmem:[%s1361_s29 + $0x158] sm:$0xff] %v204_v43  ;;  %v208_v45 = vld [vmem:[%s1356_s28 + $0x168] sm:$0xff]  ;;  %v210_v46 = vld [vmem:[%s1356_s28 + $0x170] sm:$0xff] }
  0x2f   : > { %207 = vst [vmem:[%s1361_s29 + $0x160] sm:$0xff] %v206_v44  ;;  %v212_v47 = vld [vmem:[%s1356_s28 + $0x178] sm:$0xff]  ;;  %209 = vst [vmem:[%s1361_s29 + $0x168] sm:$0xff] %v208_v45  ;;  %v214_v48 = vld [vmem:[%s1356_s28 + $0x180] sm:$0xff] }
  0x30   : > { %211 = vst [vmem:[%s1361_s29 + $0x170] sm:$0xff] %v210_v46  ;;  %213 = vst [vmem:[%s1361_s29 + $0x178] sm:$0xff] %v212_v47  ;;  %v216_v49 = vld [vmem:[%s1356_s28 + $0x188] sm:$0xff]  ;;  %v218_v50 = vld [vmem:[%s1356_s28 + $0x190] sm:$0xff] }
  0x31   : > { %215 = vst [vmem:[%s1361_s29 + $0x180] sm:$0xff] %v214_v48  ;;  %217 = vst [vmem:[%s1361_s29 + $0x188] sm:$0xff] %v216_v49  ;;  %v220_v51 = vld [vmem:[%s1356_s28 + $0x198] sm:$0xff]  ;;  %v222_v52 = vld [vmem:[%s1356_s28 + $0x1a0] sm:$0xff] }
  0x32   : > { %219 = vst [vmem:[%s1361_s29 + $0x190] sm:$0xff] %v218_v50  ;;  %v224_v53 = vld [vmem:[%s1356_s28 + $0x1a8] sm:$0xff]  ;;  %221 = vst [vmem:[%s1361_s29 + $0x198] sm:$0xff] %v220_v51  ;;  %v226_v54 = vld [vmem:[%s1356_s28 + $0x1b0] sm:$0xff] }
  0x33   : > { %223 = vst [vmem:[%s1361_s29 + $0x1a0] sm:$0xff] %v222_v52  ;;  %225 = vst [vmem:[%s1361_s29 + $0x1a8] sm:$0xff] %v224_v53  ;;  %v228_v55 = vld [vmem:[%s1356_s28 + $0x1b8] sm:$0xff]  ;;  %v230_v56 = vld [vmem:[%s1356_s28 + $0x1c0] sm:$0xff] }
  0x34   : > { %227 = vst [vmem:[%s1361_s29 + $0x1b0] sm:$0xff] %v226_v54  ;;  %229 = vst [vmem:[%s1361_s29 + $0x1b8] sm:$0xff] %v228_v55  ;;  %v232_v57 = vld [vmem:[%s1356_s28 + $0x1c8] sm:$0xff]  ;;  %v234_v58 = vld [vmem:[%s1356_s28 + $0x1d0] sm:$0xff] }
  0x35   : > { %231 = vst [vmem:[%s1361_s29 + $0x1c0] sm:$0xff] %v230_v56  ;;  %v236_v59 = vld [vmem:[%s1356_s28 + $0x1d8] sm:$0xff]  ;;  %233 = vst [vmem:[%s1361_s29 + $0x1c8] sm:$0xff] %v232_v57  ;;  %v238_v60 = vld [vmem:[%s1356_s28 + $0x1e0] sm:$0xff] }
  0x36   : > { %235 = vst [vmem:[%s1361_s29 + $0x1d0] sm:$0xff] %v234_v58  ;;  %237 = vst [vmem:[%s1361_s29 + $0x1d8] sm:$0xff] %v236_v59  ;;  %v240_v61 = vld [vmem:[%s1356_s28 + $0x1e8] sm:$0xff]  ;;  %v242_v62 = vld [vmem:[%s1356_s28 + $0x1f0] sm:$0xff] }
  0x37   : > { %239 = vst [vmem:[%s1361_s29 + $0x1e0] sm:$0xff] %v238_v60  ;;  %241 = vst [vmem:[%s1361_s29 + $0x1e8] sm:$0xff] %v240_v61  ;;  %v244_v63 = vld [vmem:[%s1356_s28 + $0x1f8] sm:$0xff]  ;;  %v246_v0 = vld [vmem:[%s1356_s28 + $0x200] sm:$0xff] }
  0x38   : > { %243 = vst [vmem:[%s1361_s29 + $0x1f0] sm:$0xff] %v242_v62  ;;  %v248_v1 = vld [vmem:[%s1356_s28 + $0x208] sm:$0xff]  ;;  %245 = vst [vmem:[%s1361_s29 + $0x1f8] sm:$0xff] %v244_v63  ;;  %v250_v2 = vld [vmem:[%s1356_s28 + $0x210] sm:$0xff] }
  0x39   : > { %247 = vst [vmem:[%s1361_s29 + $0x200] sm:$0xff] %v246_v0  ;;  %249 = vst [vmem:[%s1361_s29 + $0x208] sm:$0xff] %v248_v1  ;;  %v252_v3 = vld [vmem:[%s1356_s28 + $0x218] sm:$0xff]  ;;  %v254_v4 = vld [vmem:[%s1356_s28 + $0x220] sm:$0xff] }
  0x3a   : > { %251 = vst [vmem:[%s1361_s29 + $0x210] sm:$0xff] %v250_v2  ;;  %253 = vst [vmem:[%s1361_s29 + $0x218] sm:$0xff] %v252_v3  ;;  %v256_v5 = vld [vmem:[%s1356_s28 + $0x228] sm:$0xff]  ;;  %v258_v6 = vld [vmem:[%s1356_s28 + $0x230] sm:$0xff] }
  0x3b   : > { %255 = vst [vmem:[%s1361_s29 + $0x220] sm:$0xff] %v254_v4  ;;  %v260_v7 = vld [vmem:[%s1356_s28 + $0x238] sm:$0xff]  ;;  %257 = vst [vmem:[%s1361_s29 + $0x228] sm:$0xff] %v256_v5  ;;  %v262_v8 = vld [vmem:[%s1356_s28 + $0x240] sm:$0xff] }
  0x3c   : > { %259 = vst [vmem:[%s1361_s29 + $0x230] sm:$0xff] %v258_v6  ;;  %261 = vst [vmem:[%s1361_s29 + $0x238] sm:$0xff] %v260_v7  ;;  %v264_v9 = vld [vmem:[%s1356_s28 + $0x248] sm:$0xff]  ;;  %v266_v10 = vld [vmem:[%s1356_s28 + $0x250] sm:$0xff] }
  0x3d   : > { %263 = vst [vmem:[%s1361_s29 + $0x240] sm:$0xff] %v262_v8  ;;  %265 = vst [vmem:[%s1361_s29 + $0x248] sm:$0xff] %v264_v9  ;;  %v268_v11 = vld [vmem:[%s1356_s28 + $0x708] sm:$0xff]  ;;  %v270_v12 = vld [vmem:[%s1356_s28 + $0x710] sm:$0xff] }
  0x3e   : > { %267 = vst [vmem:[%s1361_s29 + $0x250] sm:$0xff] %v266_v10  ;;  %v272_v13 = vld [vmem:[%s1356_s28 + $0x718] sm:$0xff]  ;;  %269 = vst [vmem:[%s1361_s29 + $0x258] sm:$0xff] %v268_v11  ;;  %v274_v14 = vld [vmem:[%s1356_s28 + $0x720] sm:$0xff] }
  0x3f   : > { %271 = vst [vmem:[%s1361_s29 + $0x260] sm:$0xff] %v270_v12  ;;  %273 = vst [vmem:[%s1361_s29 + $0x268] sm:$0xff] %v272_v13  ;;  %v276_v15 = vld [vmem:[%s1356_s28 + $0x728] sm:$0xff]  ;;  %v278_v16 = vld [vmem:[%s1356_s28 + $0x730] sm:$0xff] }
  0x40   : > { %275 = vst [vmem:[%s1361_s29 + $0x270] sm:$0xff] %v274_v14  ;;  %277 = vst [vmem:[%s1361_s29 + $0x278] sm:$0xff] %v276_v15  ;;  %v280_v17 = vld [vmem:[%s1356_s28 + $0x738] sm:$0xff]  ;;  %v282_v18 = vld [vmem:[%s1356_s28 + $0x740] sm:$0xff] }
  0x41   : > { %279 = vst [vmem:[%s1361_s29 + $0x280] sm:$0xff] %v278_v16  ;;  %v284_v19 = vld [vmem:[%s1356_s28 + $0x748] sm:$0xff]  ;;  %281 = vst [vmem:[%s1361_s29 + $0x288] sm:$0xff] %v280_v17  ;;  %v286_v20 = vld [vmem:[%s1356_s28 + $0x750] sm:$0xff] }
  0x42   : > { %283 = vst [vmem:[%s1361_s29 + $0x290] sm:$0xff] %v282_v18  ;;  %285 = vst [vmem:[%s1361_s29 + $0x298] sm:$0xff] %v284_v19  ;;  %v288_v21 = vld [vmem:[%s1356_s28 + $0x758] sm:$0xff]  ;;  %v290_v22 = vld [vmem:[%s1356_s28 + $0x760] sm:$0xff] }
  0x43   : > { %287 = vst [vmem:[%s1361_s29 + $0x2a0] sm:$0xff] %v286_v20  ;;  %289 = vst [vmem:[%s1361_s29 + $0x2a8] sm:$0xff] %v288_v21  ;;  %v292_v23 = vld [vmem:[%s1356_s28 + $0x768] sm:$0xff]  ;;  %v294_v24 = vld [vmem:[%s1356_s28 + $0x770] sm:$0xff] }
  0x44   : > { %291 = vst [vmem:[%s1361_s29 + $0x2b0] sm:$0xff] %v290_v22  ;;  %v296_v25 = vld [vmem:[%s1356_s28 + $0x778] sm:$0xff]  ;;  %293 = vst [vmem:[%s1361_s29 + $0x2b8] sm:$0xff] %v292_v23  ;;  %v298_v26 = vld [vmem:[%s1356_s28 + $0x780] sm:$0xff] }
  0x45   : > { %295 = vst [vmem:[%s1361_s29 + $0x2c0] sm:$0xff] %v294_v24  ;;  %297 = vst [vmem:[%s1361_s29 + $0x2c8] sm:$0xff] %v296_v25  ;;  %v300_v27 = vld [vmem:[%s1356_s28 + $0x788] sm:$0xff]  ;;  %v302_v28 = vld [vmem:[%s1356_s28 + $0x790] sm:$0xff] }
  0x46   : > { %299 = vst [vmem:[%s1361_s29 + $0x2d0] sm:$0xff] %v298_v26  ;;  %301 = vst [vmem:[%s1361_s29 + $0x2d8] sm:$0xff] %v300_v27  ;;  %v304_v29 = vld [vmem:[%s1356_s28 + $0x798] sm:$0xff]  ;;  %v306_v30 = vld [vmem:[%s1356_s28 + $0x7a0] sm:$0xff] }
  0x47   : > { %303 = vst [vmem:[%s1361_s29 + $0x2e0] sm:$0xff] %v302_v28  ;;  %v308_v31 = vld [vmem:[%s1356_s28 + $0x7a8] sm:$0xff]  ;;  %305 = vst [vmem:[%s1361_s29 + $0x2e8] sm:$0xff] %v304_v29  ;;  %v310_v32 = vld [vmem:[%s1356_s28 + $0x7b0] sm:$0xff] }
  0x48   : > { %307 = vst [vmem:[%s1361_s29 + $0x2f0] sm:$0xff] %v306_v30  ;;  %309 = vst [vmem:[%s1361_s29 + $0x2f8] sm:$0xff] %v308_v31  ;;  %v312_v33 = vld [vmem:[%s1356_s28 + $0x7b8] sm:$0xff]  ;;  %v314_v34 = vld [vmem:[%s1356_s28 + $0x7c0] sm:$0xff] }
  0x49   : > { %311 = vst [vmem:[%s1361_s29 + $0x300] sm:$0xff] %v310_v32  ;;  %313 = vst [vmem:[%s1361_s29 + $0x308] sm:$0xff] %v312_v33  ;;  %v316_v35 = vld [vmem:[%s1356_s28 + $0x7c8] sm:$0xff]  ;;  %v318_v36 = vld [vmem:[%s1356_s28 + $0x7d0] sm:$0xff] }
  0x4a   : > { %315 = vst [vmem:[%s1361_s29 + $0x310] sm:$0xff] %v314_v34  ;;  %v320_v37 = vld [vmem:[%s1356_s28 + $0x7d8] sm:$0xff]  ;;  %317 = vst [vmem:[%s1361_s29 + $0x318] sm:$0xff] %v316_v35  ;;  %v322_v38 = vld [vmem:[%s1356_s28 + $0x7e0] sm:$0xff] }
  0x4b   : > { %319 = vst [vmem:[%s1361_s29 + $0x320] sm:$0xff] %v318_v36  ;;  %321 = vst [vmem:[%s1361_s29 + $0x328] sm:$0xff] %v320_v37  ;;  %v324_v39 = vld [vmem:[%s1356_s28 + $0x7e8] sm:$0xff]  ;;  %v326_v40 = vld [vmem:[%s1356_s28 + $0x7f0] sm:$0xff] }
  0x4c   : > { %323 = vst [vmem:[%s1361_s29 + $0x330] sm:$0xff] %v322_v38  ;;  %325 = vst [vmem:[%s1361_s29 + $0x338] sm:$0xff] %v324_v39  ;;  %v328_v41 = vld [vmem:[%s1356_s28 + $0x7f8] sm:$0xff]  ;;  %v330_v42 = vld [vmem:[%s1356_s28 + $0x800] sm:$0xff] }
  0x4d   : > { %327 = vst [vmem:[%s1361_s29 + $0x340] sm:$0xff] %v326_v40  ;;  %v332_v43 = vld [vmem:[%s1356_s28 + $0x808] sm:$0xff]  ;;  %329 = vst [vmem:[%s1361_s29 + $0x348] sm:$0xff] %v328_v41  ;;  %v334_v44 = vld [vmem:[%s1356_s28 + $0x810] sm:$0xff] }
  0x4e   : > { %331 = vst [vmem:[%s1361_s29 + $0x350] sm:$0xff] %v330_v42  ;;  %333 = vst [vmem:[%s1361_s29 + $0x358] sm:$0xff] %v332_v43  ;;  %v336_v45 = vld [vmem:[%s1356_s28 + $0x818] sm:$0xff]  ;;  %v338_v46 = vld [vmem:[%s1356_s28 + $0x820] sm:$0xff] }
  0x4f   : > { %335 = vst [vmem:[%s1361_s29 + $0x360] sm:$0xff] %v334_v44  ;;  %337 = vst [vmem:[%s1361_s29 + $0x368] sm:$0xff] %v336_v45  ;;  %v340_v47 = vld [vmem:[%s1356_s28 + $0x828] sm:$0xff]  ;;  %v342_v48 = vld [vmem:[%s1356_s28 + $0x830] sm:$0xff] }
  0x50   : > { %339 = vst [vmem:[%s1361_s29 + $0x370] sm:$0xff] %v338_v46  ;;  %v344_v49 = vld [vmem:[%s1356_s28 + $0x838] sm:$0xff]  ;;  %341 = vst [vmem:[%s1361_s29 + $0x378] sm:$0xff] %v340_v47  ;;  %v346_v50 = vld [vmem:[%s1356_s28 + $0x840] sm:$0xff] }
  0x51   : > { %343 = vst [vmem:[%s1361_s29 + $0x380] sm:$0xff] %v342_v48  ;;  %345 = vst [vmem:[%s1361_s29 + $0x388] sm:$0xff] %v344_v49  ;;  %v348_v51 = vld [vmem:[%s1356_s28 + $0x848] sm:$0xff]  ;;  %v350_v52 = vld [vmem:[%s1356_s28 + $0x850] sm:$0xff] }
  0x52   : > { %347 = vst [vmem:[%s1361_s29 + $0x390] sm:$0xff] %v346_v50  ;;  %349 = vst [vmem:[%s1361_s29 + $0x398] sm:$0xff] %v348_v51  ;;  %v352_v53 = vld [vmem:[%s1356_s28 + $0x858] sm:$0xff]  ;;  %v354_v54 = vld [vmem:[%s1356_s28 + $0x860] sm:$0xff] }
  0x53   : > { %351 = vst [vmem:[%s1361_s29 + $0x3a0] sm:$0xff] %v350_v52  ;;  %v356_v55 = vld [vmem:[%s1356_s28 + $0x868] sm:$0xff]  ;;  %353 = vst [vmem:[%s1361_s29 + $0x3a8] sm:$0xff] %v352_v53  ;;  %v358_v56 = vld [vmem:[%s1356_s28 + $0x870] sm:$0xff] }
  0x54   : > { %355 = vst [vmem:[%s1361_s29 + $0x3b0] sm:$0xff] %v354_v54  ;;  %357 = vst [vmem:[%s1361_s29 + $0x3b8] sm:$0xff] %v356_v55  ;;  %v360_v57 = vld [vmem:[%s1356_s28 + $0x878] sm:$0xff]  ;;  %v362_v58 = vld [vmem:[%s1356_s28 + $0x880] sm:$0xff] }
  0x55   : > { %359 = vst [vmem:[%s1361_s29 + $0x3c0] sm:$0xff] %v358_v56  ;;  %361 = vst [vmem:[%s1361_s29 + $0x3c8] sm:$0xff] %v360_v57  ;;  %v364_v59 = vld [vmem:[%s1356_s28 + $0x888] sm:$0xff]  ;;  %v366_v60 = vld [vmem:[%s1356_s28 + $0x890] sm:$0xff] }
  0x56   : > { %363 = vst [vmem:[%s1361_s29 + $0x3d0] sm:$0xff] %v362_v58  ;;  %v368_v61 = vld [vmem:[%s1356_s28 + $0x898] sm:$0xff]  ;;  %365 = vst [vmem:[%s1361_s29 + $0x3d8] sm:$0xff] %v364_v59  ;;  %v370_v62 = vld [vmem:[%s1356_s28 + $0x8a0] sm:$0xff] }
  0x57   : > { %367 = vst [vmem:[%s1361_s29 + $0x3e0] sm:$0xff] %v366_v60  ;;  %369 = vst [vmem:[%s1361_s29 + $0x3e8] sm:$0xff] %v368_v61  ;;  %v372_v63 = vld [vmem:[%s1356_s28 + $0x8a8] sm:$0xff]  ;;  %v374_v0 = vld [vmem:[%s1356_s28 + $0x8b0] sm:$0xff] }
  0x58   : > { %371 = vst [vmem:[%s1361_s29 + $0x3f0] sm:$0xff] %v370_v62  ;;  %373 = vst [vmem:[%s1361_s29 + $0x3f8] sm:$0xff] %v372_v63  ;;  %v376_v1 = vld [vmem:[%s1356_s28 + $0x8b8] sm:$0xff]  ;;  %v378_v2 = vld [vmem:[%s1356_s28 + $0x8c0] sm:$0xff] }
  0x59   : > { %375 = vst [vmem:[%s1361_s29 + $0x400] sm:$0xff] %v374_v0  ;;  %v380_v3 = vld [vmem:[%s1356_s28 + $0x8c8] sm:$0xff]  ;;  %377 = vst [vmem:[%s1361_s29 + $0x408] sm:$0xff] %v376_v1  ;;  %v382_v4 = vld [vmem:[%s1356_s28 + $0x8d0] sm:$0xff] }
  0x5a   : > { %379 = vst [vmem:[%s1361_s29 + $0x410] sm:$0xff] %v378_v2  ;;  %381 = vst [vmem:[%s1361_s29 + $0x418] sm:$0xff] %v380_v3  ;;  %v384_v5 = vld [vmem:[%s1356_s28 + $0x8d8] sm:$0xff]  ;;  %v386_v6 = vld [vmem:[%s1356_s28 + $0x8e0] sm:$0xff] }
  0x5b   : > { %383 = vst [vmem:[%s1361_s29 + $0x420] sm:$0xff] %v382_v4  ;;  %385 = vst [vmem:[%s1361_s29 + $0x428] sm:$0xff] %v384_v5  ;;  %v388_v7 = vld [vmem:[%s1356_s28 + $0x8e8] sm:$0xff]  ;;  %v390_v8 = vld [vmem:[%s1356_s28 + $0x8f0] sm:$0xff] }
  0x5c   : > { %387 = vst [vmem:[%s1361_s29 + $0x430] sm:$0xff] %v386_v6  ;;  %v392_v9 = vld [vmem:[%s1356_s28 + $0x8f8] sm:$0xff]  ;;  %389 = vst [vmem:[%s1361_s29 + $0x438] sm:$0xff] %v388_v7  ;;  %v394_v10 = vld [vmem:[%s1356_s28 + $0x900] sm:$0xff] }
  0x5d   : > { %391 = vst [vmem:[%s1361_s29 + $0x440] sm:$0xff] %v390_v8  ;;  %393 = vst [vmem:[%s1361_s29 + $0x448] sm:$0xff] %v392_v9  ;;  %v396_v11 = vld [vmem:[%s1356_s28 + $0x908] sm:$0xff]  ;;  %v398_v12 = vld [vmem:[%s1356_s28 + $0x910] sm:$0xff] }
  0x5e   : > { %395 = vst [vmem:[%s1361_s29 + $0x450] sm:$0xff] %v394_v10  ;;  %397 = vst [vmem:[%s1361_s29 + $0x458] sm:$0xff] %v396_v11  ;;  %v400_v13 = vld [vmem:[%s1356_s28 + $0x918] sm:$0xff]  ;;  %v402_v14 = vld [vmem:[%s1356_s28 + $0x920] sm:$0xff] }
  0x5f   : > { %399 = vst [vmem:[%s1361_s29 + $0x460] sm:$0xff] %v398_v12  ;;  %v404_v15 = vld [vmem:[%s1356_s28 + $0x928] sm:$0xff]  ;;  %401 = vst [vmem:[%s1361_s29 + $0x468] sm:$0xff] %v400_v13  ;;  %v406_v16 = vld [vmem:[%s1356_s28 + $0x930] sm:$0xff] }
  0x60   : > { %403 = vst [vmem:[%s1361_s29 + $0x470] sm:$0xff] %v402_v14  ;;  %405 = vst [vmem:[%s1361_s29 + $0x478] sm:$0xff] %v404_v15  ;;  %v408_v17 = vld [vmem:[%s1356_s28 + $0x938] sm:$0xff]  ;;  %v410_v18 = vld [vmem:[%s1356_s28 + $0x940] sm:$0xff] }
  0x61   : > { %407 = vst [vmem:[%s1361_s29 + $0x480] sm:$0xff] %v406_v16  ;;  %409 = vst [vmem:[%s1361_s29 + $0x488] sm:$0xff] %v408_v17  ;;  %v412_v19 = vld [vmem:[%s1356_s28 + $0x948] sm:$0xff]  ;;  %v414_v20 = vld [vmem:[%s1356_s28 + $0x950] sm:$0xff] }
  0x62   : > { %411 = vst [vmem:[%s1361_s29 + $0x490] sm:$0xff] %v410_v18  ;;  %v416_v21 = vld [vmem:[%s1356_s28 + $0x958] sm:$0xff]  ;;  %413 = vst [vmem:[%s1361_s29 + $0x498] sm:$0xff] %v412_v19 }
  0x63   : > { %415 = vst [vmem:[%s1361_s29 + $0x4a0] sm:$0xff] %v414_v20  ;;  %417 = vst [vmem:[%s1361_s29 + $0x4a8] sm:$0xff] %v416_v21 }
  0x64 PF: > { %p998_p7 = scmp.ge.s32.totalorder %s1284_s12, 1  ;;  %p422_p8 = scmp.lt.s32.totalorder %s1284_s12, 7 }
  0x66   : > { %p423_p9 = pnand %p998_p7, %p422_p8 }
  0x67   : > { %s429_s30 = sand.u32 (!%p423_p9), 1, %s1260_s6   ;;  %s452_s2 = smul.u32 (!%p423_p9), 75, %s1268_s8 }
  0x68   : > { %426 = sbr.rel (%p423_p9) target bundleno = 217 (0xd9), region = 43  ;;  %p453_p10 = scmp.lt.s32.totalorder (!%p423_p9), %s1272_s9, 1 }
  0x69   : > { %s1172_s3 = smul.u32 (!%p423_p9), 1200, %s429_s30  ;;  %p455_p11 = scmp.lt.s32.totalorder (!%p423_p9), %s452_s2, 224 }
  0x6b   : > { %s1665_s4 = scalar_lea.vmem (!%p423_p9), [#allocation2], %s1172_s3 }
  0x6d   : > { %v461_v22 = vld [vmem:[%s1665_s4] ss:$8 sm:$0xf]  ;;  %s1898_s9 = smov (!%p453_p10, %s1272_s9), 1  ;;  %s1900_s2 = smov (!%p455_p11, %s452_s2), 224 }
  0x6e   : > { %v462_v23 = vld [vmem:[%s1665_s4] ss:$8 sm:$0xf0]  ;;  %v1016_v25 = vld [vmem:[%s1665_s4 + $0x1] ss:$8 sm:$0xf] }
  0x6f   : > { %v463_v24 = vor.u32 %v462_v23, %v461_v22  ;;  %v1017_v26 = vld [vmem:[%s1665_s4 + $0x1] ss:$8 sm:$0xf0]  ;;  %v1035_v27 = vld [vmem:[%s1665_s4 + $0x2] ss:$8 sm:$0xf] }
  0x70   : > { %v501_v28 = vor.u32 %v1017_v26, %v1016_v25  ;;  %v1036_v29 = vld [vmem:[%s1665_s4 + $0x2] ss:$8 sm:$0xf0]  ;;  %v1054_v30 = vld [vmem:[%s1665_s4 + $0x3] ss:$8 sm:$0xf] }
  0x71   : > { %v549_v31 = vor.u32 %v1036_v29, %v1035_v27  ;;  %v1055_v32 = vld [vmem:[%s1665_s4 + $0x3] ss:$8 sm:$0xf0]  ;;  %v1073_v33 = vld [vmem:[%s1665_s4 + $0x4] ss:$8 sm:$0xf] }
  0x72   : > { %v536_v34 = vmax.f32 %v463_v24, %v501_v28  ;;  %v597_v35 = vor.u32 %v1055_v32, %v1054_v30  ;;  %v1074_v36 = vld [vmem:[%s1665_s4 + $0x4] ss:$8 sm:$0xf0]  ;;  %v1092_v37 = vld [vmem:[%s1665_s4 + $0x5] ss:$8 sm:$0xf] }
  0x73   : > { %v1093_v38 = vld [vmem:[%s1665_s4 + $0x5] ss:$8 sm:$0xf0]  ;;  %s1173_s5 = smul.u32 225, %s1898_s9  ;;  %v645_v40 = vor.u32 %v1074_v36, %v1073_v33 }
  0x74   : > { %v584_v39 = vmax.f32 %v536_v34, %v549_v31  ;;  %v1111_v41 = vld [vmem:[%s1665_s4 + $0x6] ss:$8 sm:$0xf]  ;;  %v1130_v43 = vld [vmem:[%s1665_s4 + $0x7] ss:$8 sm:$0xf]  ;;  %v693_v45 = vor.u32 %v1093_v38, %v1092_v37 }
  0x75   : > { %v1112_v42 = vld [vmem:[%s1665_s4 + $0x6] ss:$8 sm:$0xf0]  ;;  %v1131_v46 = vld [vmem:[%s1665_s4 + $0x7] ss:$8 sm:$0xf0]  ;;  %s458_s6 = sadd.s32 %s1173_s5, %s1900_s2 }
  0x76   : > { %v632_v44 = vmax.f32 %v584_v39, %v597_v35  ;;  %v999_v47 = vld [vmem:[%s1665_s4 + $0x40] ss:$8 sm:$0xf]  ;;  %v1018_v51 = vld [vmem:[%s1665_s4 + $0x41] ss:$8 sm:$0xf]  ;;  %v741_v53 = vor.u32 %v1112_v42, %v1111_v41  ;;  %v789_v61 = vor.u32 %v1131_v46, %v1130_v43  ;;  %s1718_s15 = scalar_lea.vmem %s1884_s1, %s458_s6 }
  0x77   : > { %v1149_v48 = vld [vmem:[%s1665_s4 + $0x258] ss:$8 sm:$0xf]  ;;  %v1019_v55 = vld [vmem:[%s1665_s4 + $0x41] ss:$8 sm:$0xf0] }
  0x78   : > { %v1150_v49 = vld [vmem:[%s1665_s4 + $0x258] ss:$8 sm:$0xf0]  ;;  %v680_v52 = vmax.f32 %v632_v44, %v645_v40  ;;  %v1037_v56 = vld [vmem:[%s1665_s4 + $0x42] ss:$8 sm:$0xf]  ;;  %v505_v57 = vor.u32 %v1019_v55, %v1018_v51 }
  0x79   : > { %v1000_v50 = vld [vmem:[%s1665_s4 + $0x40] ss:$8 sm:$0xf0]  ;;  %v1038_v58 = vld [vmem:[%s1665_s4 + $0x42] ss:$8 sm:$0xf0]  ;;  %v837_v5 = vor.u32 %v1150_v49, %v1149_v48 }
  0x7a   : > { %v467_v54 = vor.u32 %v1000_v50, %v999_v47  ;;  %v1056_v59 = vld [vmem:[%s1665_s4 + $0x43] ss:$8 sm:$0xf]  ;;  %v728_v60 = vmax.f32 %v680_v52, %v693_v45  ;;  %v553_v62 = vor.u32 %v1038_v58, %v1037_v56  ;;  %v1075_v0 = vld [vmem:[%s1665_s4 + $0x44] ss:$8 sm:$0xf] }
  0x7b   : > { %v1057_v63 = vld [vmem:[%s1665_s4 + $0x43] ss:$8 sm:$0xf0]  ;;  %v1076_v3 = vld [vmem:[%s1665_s4 + $0x44] ss:$8 sm:$0xf0] }
  0x7c   : > { %v537_v1 = vmax.f32 %v467_v54, %v505_v57  ;;  %v601_v2 = vor.u32 %v1057_v63, %v1056_v59  ;;  %v776_v4 = vmax.f32 %v728_v60, %v741_v53  ;;  %v1094_v6 = vld [vmem:[%s1665_s4 + $0x45] ss:$8 sm:$0xf]  ;;  %v649_v9 = vor.u32 %v1076_v3, %v1075_v0  ;;  %v1113_v10 = vld [vmem:[%s1665_s4 + $0x46] ss:$8 sm:$0xf] }
  0x7d   : > { %v1095_v7 = vld [vmem:[%s1665_s4 + $0x45] ss:$8 sm:$0xf0]  ;;  %v1114_v12 = vld [vmem:[%s1665_s4 + $0x46] ss:$8 sm:$0xf0] }
  0x7e   : > { %v585_v8 = vmax.f32 %v537_v1, %v553_v62  ;;  %v824_v11 = vmax.f32 %v776_v4, %v789_v61  ;;  %v1132_v13 = vld [vmem:[%s1665_s4 + $0x47] ss:$8 sm:$0xf]  ;;  %v697_v15 = vor.u32 %v1095_v7, %v1094_v6  ;;  %v1001_v17 = vld [vmem:[%s1665_s4 + $0x80] ss:$8 sm:$0xf]  ;;  %v745_v24 = vor.u32 %v1114_v12, %v1113_v10 }
  0x7f   : > { %v1133_v16 = vld [vmem:[%s1665_s4 + $0x47] ss:$8 sm:$0xf0]  ;;  %v1151_v19 = vld [vmem:[%s1665_s4 + $0x298] ss:$8 sm:$0xf] }
  0x80   : > { %v633_v14 = vmax.f32 %v585_v8, %v601_v2  ;;  %v872_v18 = vmax.f32 %v824_v11, %v837_v5  ;;  %v1152_v20 = vld [vmem:[%s1665_s4 + $0x298] ss:$8 sm:$0xf0]  ;;  %v1020_v22 = vld [vmem:[%s1665_s4 + $0x81] ss:$8 sm:$0xf]  ;;  %v793_v32 = vor.u32 %v1133_v16, %v1132_v13 }
  0x81   : > { %v1002_v21 = vld [vmem:[%s1665_s4 + $0x80] ss:$8 sm:$0xf0]  ;;  %v1021_v26 = vld [vmem:[%s1665_s4 + $0x81] ss:$8 sm:$0xf0]  ;;  %v841_v41 = vor.u32 %v1152_v20, %v1151_v19 }
  0x82   : > { %v681_v23 = vmax.f32 %v633_v14, %v649_v9  ;;  %v471_v25 = vor.u32 %v1002_v21, %v1001_v17  ;;  %v1039_v27 = vld [vmem:[%s1665_s4 + $0x82] ss:$8 sm:$0xf]  ;;  %v882_v28 = vmax.f32 %v872_v18, 0.0  ;;  %v509_v29 = vor.u32 %v1021_v26, %v1020_v22 }
  0x83   : > { %v1040_v30 = vld [vmem:[%s1665_s4 + $0x82] ss:$8 sm:$0xf0]  ;;  %v1058_v34 = vld [vmem:[%s1665_s4 + $0x83] ss:$8 sm:$0xf] }
  0x84   : > { %v729_v31 = vmax.f32 %v681_v23, %v697_v15  ;;  %v557_v33 = vor.u32 %v1040_v30, %v1039_v27  ;;  %v1059_v35 = vld [vmem:[%s1665_s4 + $0x83] ss:$8 sm:$0xf0]  ;;  %892 = vst [vmem:[%s1718_s15] sm:$0xff] %v882_v28  ;;  %v538_v36 = vmax.f32 %v471_v25, %v509_v29  ;;  %v1077_v38 = vld [vmem:[%s1665_s4 + $0x84] ss:$8 sm:$0xf] }
  0x85   : > { %v605_v37 = vor.u32 %v1059_v35, %v1058_v34  ;;  %v1078_v39 = vld [vmem:[%s1665_s4 + $0x84] ss:$8 sm:$0xf0]  ;;  %v1096_v42 = vld [vmem:[%s1665_s4 + $0x85] ss:$8 sm:$0xf] }
  0x86   : > { %v777_v40 = vmax.f32 %v729_v31, %v745_v24  ;;  %v1097_v43 = vld [vmem:[%s1665_s4 + $0x85] ss:$8 sm:$0xf0]  ;;  %v586_v44 = vmax.f32 %v538_v36, %v557_v33  ;;  %v653_v45 = vor.u32 %v1078_v39, %v1077_v38  ;;  %v1115_v47 = vld [vmem:[%s1665_s4 + $0x86] ss:$8 sm:$0xf] }
  0x87   : > { %v1116_v48 = vld [vmem:[%s1665_s4 + $0x86] ss:$8 sm:$0xf0]  ;;  %v701_v50 = vor.u32 %v1097_v43, %v1096_v42  ;;  %v1134_v51 = vld [vmem:[%s1665_s4 + $0x87] ss:$8 sm:$0xf] }
  0x88   : > { %v825_v46 = vmax.f32 %v777_v40, %v793_v32  ;;  %v634_v49 = vmax.f32 %v586_v44, %v605_v37  ;;  %v1135_v52 = vld [vmem:[%s1665_s4 + $0x87] ss:$8 sm:$0xf0]  ;;  %v1153_v54 = vld [vmem:[%s1665_s4 + $0x2d8] ss:$8 sm:$0xf]  ;;  %v749_v59 = vor.u32 %v1116_v48, %v1115_v47 }
  0x89   : > { %v1154_v55 = vld [vmem:[%s1665_s4 + $0x2d8] ss:$8 sm:$0xf0]  ;;  %v1022_v61 = vld [vmem:[%s1665_s4 + $0xc1] ss:$8 sm:$0xf]  ;;  %v797_v3 = vor.u32 %v1135_v52, %v1134_v51 }
  0x8a   : > { %v873_v53 = vmax.f32 %v825_v46, %v841_v41  ;;  %v1003_v56 = vld [vmem:[%s1665_s4 + $0xc0] ss:$8 sm:$0xf]  ;;  %v682_v58 = vmax.f32 %v634_v49, %v653_v45  ;;  %v1023_v62 = vld [vmem:[%s1665_s4 + $0xc1] ss:$8 sm:$0xf0]  ;;  %v845_v11 = vor.u32 %v1154_v55, %v1153_v54 }
  0x8b   : > { %v1004_v57 = vld [vmem:[%s1665_s4 + $0xc0] ss:$8 sm:$0xf0]  ;;  %v513_v0 = vor.u32 %v1023_v62, %v1022_v61  ;;  %v1041_v1 = vld [vmem:[%s1665_s4 + $0xc2] ss:$8 sm:$0xf] }
  0x8c   : > { %v475_v60 = vor.u32 %v1004_v57, %v1003_v56  ;;  %v883_v63 = vmax.f32 %v873_v53, 0.0  ;;  %v730_v2 = vmax.f32 %v682_v58, %v701_v50  ;;  %v1042_v4 = vld [vmem:[%s1665_s4 + $0xc2] ss:$8 sm:$0xf0] }
  0x8d   : > { %v1060_v5 = vld [vmem:[%s1665_s4 + $0xc3] ss:$8 sm:$0xf]  ;;  %v561_v7 = vor.u32 %v1042_v4, %v1041_v1  ;;  %v1079_v9 = vld [vmem:[%s1665_s4 + $0xc4] ss:$8 sm:$0xf] }
  0x8e   : > { %893 = vst [vmem:[%s1718_s15 + $0x8] sm:$0xff] %v883_v63  ;;  %v539_v6 = vmax.f32 %v475_v60, %v513_v0  ;;  %v1061_v8 = vld [vmem:[%s1665_s4 + $0xc3] ss:$8 sm:$0xf0]  ;;  %v778_v10 = vmax.f32 %v730_v2, %v749_v59 }
  0x8f   : > { %v609_v12 = vor.u32 %v1061_v8, %v1060_v5  ;;  %v1080_v13 = vld [vmem:[%s1665_s4 + $0xc4] ss:$8 sm:$0xf0]  ;;  %v1098_v14 = vld [vmem:[%s1665_s4 + $0xc5] ss:$8 sm:$0xf] }
  0x90   : > { %v587_v15 = vmax.f32 %v539_v6, %v561_v7  ;;  %v657_v16 = vor.u32 %v1080_v13, %v1079_v9  ;;  %v1099_v17 = vld [vmem:[%s1665_s4 + $0xc5] ss:$8 sm:$0xf0]  ;;  %v826_v18 = vmax.f32 %v778_v10, %v797_v3  ;;  %v1117_v19 = vld [vmem:[%s1665_s4 + $0xc6] ss:$8 sm:$0xf] }
  0x91   : > { %v1118_v20 = vld [vmem:[%s1665_s4 + $0xc6] ss:$8 sm:$0xf0]  ;;  %v705_v22 = vor.u32 %v1099_v17, %v1098_v14  ;;  %v1136_v23 = vld [vmem:[%s1665_s4 + $0xc7] ss:$8 sm:$0xf] }
  0x92   : > { %v635_v21 = vmax.f32 %v587_v15, %v609_v12  ;;  %v1137_v24 = vld [vmem:[%s1665_s4 + $0xc7] ss:$8 sm:$0xf0]  ;;  %v874_v25 = vmax.f32 %v826_v18, %v845_v11  ;;  %v1155_v26 = vld [vmem:[%s1665_s4 + $0x318] ss:$8 sm:$0xf]  ;;  %v753_v30 = vor.u32 %v1118_v20, %v1117_v19 }
  0x93   : > { %v1156_v27 = vld [vmem:[%s1665_s4 + $0x318] ss:$8 sm:$0xf0]  ;;  %v1024_v32 = vld [vmem:[%s1665_s4 + $0x101] ss:$8 sm:$0xf]  ;;  %v801_v37 = vor.u32 %v1137_v24, %v1136_v23 }
  0x94   : > { %v1005_v28 = vld [vmem:[%s1665_s4 + $0x100] ss:$8 sm:$0xf]  ;;  %v683_v29 = vmax.f32 %v635_v21, %v657_v16  ;;  %v884_v33 = vmax.f32 %v874_v25, 0.0  ;;  %v849_v45 = vor.u32 %v1156_v27, %v1155_v26 }
  0x95   : > { %v1006_v31 = vld [vmem:[%s1665_s4 + $0x100] ss:$8 sm:$0xf0]  ;;  %v1025_v35 = vld [vmem:[%s1665_s4 + $0x101] ss:$8 sm:$0xf0] }
  0x96   : > { %v479_v34 = vor.u32 %v1006_v31, %v1005_v28  ;;  %v731_v36 = vmax.f32 %v683_v29, %v705_v22  ;;  %v517_v38 = vor.u32 %v1025_v35, %v1024_v32  ;;  %v1043_v39 = vld [vmem:[%s1665_s4 + $0x102] ss:$8 sm:$0xf]  ;;  %894 = vst [vmem:[%s1718_s15 + $0x10] sm:$0xff] %v884_v33 }
  0x97   : > { %v1044_v40 = vld [vmem:[%s1665_s4 + $0x102] ss:$8 sm:$0xf0]  ;;  %v1062_v42 = vld [vmem:[%s1665_s4 + $0x103] ss:$8 sm:$0xf] }
  0x98   : > { %v565_v41 = vor.u32 %v1044_v40, %v1043_v39  ;;  %v1063_v43 = vld [vmem:[%s1665_s4 + $0x103] ss:$8 sm:$0xf0]  ;;  %v779_v44 = vmax.f32 %v731_v36, %v753_v30  ;;  %v540_v46 = vmax.f32 %v479_v34, %v517_v38  ;;  %v1081_v48 = vld [vmem:[%s1665_s4 + $0x104] ss:$8 sm:$0xf] }
  0x99   : > { %v613_v47 = vor.u32 %v1063_v43, %v1062_v42  ;;  %v1082_v49 = vld [vmem:[%s1665_s4 + $0x104] ss:$8 sm:$0xf0]  ;;  %v1100_v50 = vld [vmem:[%s1665_s4 + $0x105] ss:$8 sm:$0xf] }
  0x9a   : > { %v1101_v51 = vld [vmem:[%s1665_s4 + $0x105] ss:$8 sm:$0xf0]  ;;  %v827_v52 = vmax.f32 %v779_v44, %v801_v37  ;;  %v588_v53 = vmax.f32 %v540_v46, %v565_v41  ;;  %v661_v54 = vor.u32 %v1082_v49, %v1081_v48  ;;  %v1119_v55 = vld [vmem:[%s1665_s4 + $0x106] ss:$8 sm:$0xf] }
  0x9b   : > { %v1120_v56 = vld [vmem:[%s1665_s4 + $0x106] ss:$8 sm:$0xf0]  ;;  %v709_v59 = vor.u32 %v1101_v51, %v1100_v50  ;;  %v1138_v60 = vld [vmem:[%s1665_s4 + $0x107] ss:$8 sm:$0xf] }
  0x9c   : > { %v875_v57 = vmax.f32 %v827_v52, %v849_v45  ;;  %v636_v58 = vmax.f32 %v588_v53, %v613_v47  ;;  %v1139_v61 = vld [vmem:[%s1665_s4 + $0x107] ss:$8 sm:$0xf0]  ;;  %v1157_v62 = vld [vmem:[%s1665_s4 + $0x358] ss:$8 sm:$0xf]  ;;  %v757_v4 = vor.u32 %v1120_v56, %v1119_v55 }
  0x9d   : > { %v1158_v63 = vld [vmem:[%s1665_s4 + $0x358] ss:$8 sm:$0xf0]  ;;  %v1026_v6 = vld [vmem:[%s1665_s4 + $0x141] ss:$8 sm:$0xf]  ;;  %v805_v10 = vor.u32 %v1139_v61, %v1138_v60 }
  0x9e   : > { %v1007_v0 = vld [vmem:[%s1665_s4 + $0x140] ss:$8 sm:$0xf]  ;;  %v885_v2 = vmax.f32 %v875_v57, 0.0  ;;  %v684_v3 = vmax.f32 %v636_v58, %v661_v54  ;;  %v853_v18 = vor.u32 %v1158_v63, %v1157_v62 }
  0x9f   : > { %v1008_v1 = vld [vmem:[%s1665_s4 + $0x140] ss:$8 sm:$0xf0]  ;;  %v1027_v7 = vld [vmem:[%s1665_s4 + $0x141] ss:$8 sm:$0xf0] }
  0xa0   : > { %v483_v5 = vor.u32 %v1008_v1, %v1007_v0  ;;  %v1045_v8 = vld [vmem:[%s1665_s4 + $0x142] ss:$8 sm:$0xf]  ;;  %895 = vst [vmem:[%s1718_s15 + $0x18] sm:$0xff] %v885_v2  ;;  %v732_v9 = vmax.f32 %v684_v3, %v709_v59  ;;  %v521_v11 = vor.u32 %v1027_v7, %v1026_v6 }
  0xa1   : > { %v1046_v12 = vld [vmem:[%s1665_s4 + $0x142] ss:$8 sm:$0xf0]  ;;  %v1064_v13 = vld [vmem:[%s1665_s4 + $0x143] ss:$8 sm:$0xf] }
  0xa2   : > { %v569_v14 = vor.u32 %v1046_v12, %v1045_v8  ;;  %v1065_v15 = vld [vmem:[%s1665_s4 + $0x143] ss:$8 sm:$0xf0]  ;;  %v1083_v16 = vld [vmem:[%s1665_s4 + $0x144] ss:$8 sm:$0xf]  ;;  %v780_v17 = vmax.f32 %v732_v9, %v757_v4  ;;  %v541_v19 = vmax.f32 %v483_v5, %v521_v11 }
  0xa3   : > { %v617_v20 = vor.u32 %v1065_v15, %v1064_v13  ;;  %v1084_v21 = vld [vmem:[%s1665_s4 + $0x144] ss:$8 sm:$0xf0]  ;;  %v1102_v22 = vld [vmem:[%s1665_s4 + $0x145] ss:$8 sm:$0xf] }
  0xa4   : > { %v1103_v23 = vld [vmem:[%s1665_s4 + $0x145] ss:$8 sm:$0xf0]  ;;  %v828_v24 = vmax.f32 %v780_v17, %v805_v10  ;;  %v589_v25 = vmax.f32 %v541_v19, %v569_v14  ;;  %v665_v26 = vor.u32 %v1084_v21, %v1083_v16  ;;  %v1121_v27 = vld [vmem:[%s1665_s4 + $0x146] ss:$8 sm:$0xf] }
  0xa5   : > { %v1122_v28 = vld [vmem:[%s1665_s4 + $0x146] ss:$8 sm:$0xf0]  ;;  %v1140_v29 = vld [vmem:[%s1665_s4 + $0x147] ss:$8 sm:$0xf]  ;;  %v713_v32 = vor.u32 %v1103_v23, %v1102_v22 }
  0xa6   : > { %v876_v30 = vmax.f32 %v828_v24, %v853_v18  ;;  %v637_v31 = vmax.f32 %v589_v25, %v617_v20  ;;  %v1141_v33 = vld [vmem:[%s1665_s4 + $0x147] ss:$8 sm:$0xf0]  ;;  %v1009_v34 = vld [vmem:[%s1665_s4 + $0x180] ss:$8 sm:$0xf]  ;;  %v761_v41 = vor.u32 %v1122_v28, %v1121_v27 }
  0xa7   : > { %v1159_v35 = vld [vmem:[%s1665_s4 + $0x398] ss:$8 sm:$0xf]  ;;  %v1028_v38 = vld [vmem:[%s1665_s4 + $0x181] ss:$8 sm:$0xf]  ;;  %v809_v48 = vor.u32 %v1141_v33, %v1140_v29 }
  0xa8   : > { %v1160_v36 = vld [vmem:[%s1665_s4 + $0x398] ss:$8 sm:$0xf0]  ;;  %v886_v39 = vmax.f32 %v876_v30, 0.0  ;;  %v685_v40 = vmax.f32 %v637_v31, %v665_v26 }
  0xa9   : > { %v1010_v37 = vld [vmem:[%s1665_s4 + $0x180] ss:$8 sm:$0xf0]  ;;  %v1029_v43 = vld [vmem:[%s1665_s4 + $0x181] ss:$8 sm:$0xf0]  ;;  %v857_v57 = vor.u32 %v1160_v36, %v1159_v35 }
  0xaa   : > { %v487_v42 = vor.u32 %v1010_v37, %v1009_v34  ;;  %v525_v44 = vor.u32 %v1029_v43, %v1028_v38  ;;  %v1047_v45 = vld [vmem:[%s1665_s4 + $0x182] ss:$8 sm:$0xf]  ;;  %896 = vst [vmem:[%s1718_s15 + $0x20] sm:$0xff] %v886_v39  ;;  %v733_v47 = vmax.f32 %v685_v40, %v713_v32 }
  0xab   : > { %v1048_v46 = vld [vmem:[%s1665_s4 + $0x182] ss:$8 sm:$0xf0]  ;;  %v1066_v50 = vld [vmem:[%s1665_s4 + $0x183] ss:$8 sm:$0xf] }
  0xac   : > { %v573_v49 = vor.u32 %v1048_v46, %v1047_v45  ;;  %v1067_v51 = vld [vmem:[%s1665_s4 + $0x183] ss:$8 sm:$0xf0]  ;;  %v542_v52 = vmax.f32 %v487_v42, %v525_v44  ;;  %v1085_v54 = vld [vmem:[%s1665_s4 + $0x184] ss:$8 sm:$0xf]  ;;  %v781_v56 = vmax.f32 %v733_v47, %v761_v41 }
  0xad   : > { %v621_v53 = vor.u32 %v1067_v51, %v1066_v50  ;;  %v1086_v55 = vld [vmem:[%s1665_s4 + $0x184] ss:$8 sm:$0xf0]  ;;  %v1104_v58 = vld [vmem:[%s1665_s4 + $0x185] ss:$8 sm:$0xf] }
  0xae   : > { %v1105_v59 = vld [vmem:[%s1665_s4 + $0x185] ss:$8 sm:$0xf0]  ;;  %v590_v60 = vmax.f32 %v542_v52, %v573_v49  ;;  %v669_v61 = vor.u32 %v1086_v55, %v1085_v54  ;;  %v829_v62 = vmax.f32 %v781_v56, %v809_v48  ;;  %v1123_v63 = vld [vmem:[%s1665_s4 + $0x186] ss:$8 sm:$0xf] }
  0xaf   : > { %v1124_v0 = vld [vmem:[%s1665_s4 + $0x186] ss:$8 sm:$0xf0]  ;;  %v717_v2 = vor.u32 %v1105_v59, %v1104_v58  ;;  %v1142_v3 = vld [vmem:[%s1665_s4 + $0x187] ss:$8 sm:$0xf] }
  0xb0   : > { %v638_v1 = vmax.f32 %v590_v60, %v621_v53  ;;  %v1143_v4 = vld [vmem:[%s1665_s4 + $0x187] ss:$8 sm:$0xf0]  ;;  %v877_v5 = vmax.f32 %v829_v62, %v857_v57  ;;  %v1161_v6 = vld [vmem:[%s1665_s4 + $0x3d8] ss:$8 sm:$0xf]  ;;  %v765_v11 = vor.u32 %v1124_v0, %v1123_v63 }
  0xb1   : > { %v1162_v7 = vld [vmem:[%s1665_s4 + $0x3d8] ss:$8 sm:$0xf0]  ;;  %v1030_v13 = vld [vmem:[%s1665_s4 + $0x1c1] ss:$8 sm:$0xf]  ;;  %v813_v19 = vor.u32 %v1143_v4, %v1142_v3 }
  0xb2   : > { %v1011_v8 = vld [vmem:[%s1665_s4 + $0x1c0] ss:$8 sm:$0xf]  ;;  %v686_v10 = vmax.f32 %v638_v1, %v669_v61  ;;  %v1031_v14 = vld [vmem:[%s1665_s4 + $0x1c1] ss:$8 sm:$0xf0]  ;;  %v861_v27 = vor.u32 %v1162_v7, %v1161_v6 }
  0xb3   : > { %v1012_v9 = vld [vmem:[%s1665_s4 + $0x1c0] ss:$8 sm:$0xf0]  ;;  %v887_v15 = vmax.f32 %v877_v5, 0.0  ;;  %v529_v16 = vor.u32 %v1031_v14, %v1030_v13 }
  0xb4   : > { %v491_v12 = vor.u32 %v1012_v9, %v1011_v8  ;;  %v1049_v17 = vld [vmem:[%s1665_s4 + $0x1c2] ss:$8 sm:$0xf]  ;;  %v734_v18 = vmax.f32 %v686_v10, %v717_v2  ;;  %v1068_v21 = vld [vmem:[%s1665_s4 + $0x1c3] ss:$8 sm:$0xf] }
  0xb5   : > { %v1050_v20 = vld [vmem:[%s1665_s4 + $0x1c2] ss:$8 sm:$0xf0]  ;;  %897 = vst [vmem:[%s1718_s15 + $0x28] sm:$0xff] %v887_v15 }
  0xb6   : > { %v543_v22 = vmax.f32 %v491_v12, %v529_v16  ;;  %v577_v23 = vor.u32 %v1050_v20, %v1049_v17  ;;  %v1069_v24 = vld [vmem:[%s1665_s4 + $0x1c3] ss:$8 sm:$0xf0]  ;;  %v1087_v25 = vld [vmem:[%s1665_s4 + $0x1c4] ss:$8 sm:$0xf]  ;;  %v782_v26 = vmax.f32 %v734_v18, %v765_v11 }
  0xb7   : > { %v625_v28 = vor.u32 %v1069_v24, %v1068_v21  ;;  %v1088_v29 = vld [vmem:[%s1665_s4 + $0x1c4] ss:$8 sm:$0xf0]  ;;  %v1106_v30 = vld [vmem:[%s1665_s4 + $0x1c5] ss:$8 sm:$0xf] }
  0xb8   : > { %v591_v31 = vmax.f32 %v543_v22, %v577_v23  ;;  %v673_v32 = vor.u32 %v1088_v29, %v1087_v25  ;;  %v1107_v33 = vld [vmem:[%s1665_s4 + $0x1c5] ss:$8 sm:$0xf0]  ;;  %v830_v34 = vmax.f32 %v782_v26, %v813_v19  ;;  %v1125_v35 = vld [vmem:[%s1665_s4 + $0x1c6] ss:$8 sm:$0xf] }
  0xb9   : > { %v1126_v36 = vld [vmem:[%s1665_s4 + $0x1c6] ss:$8 sm:$0xf0]  ;;  %v721_v38 = vor.u32 %v1107_v33, %v1106_v30  ;;  %v1144_v39 = vld [vmem:[%s1665_s4 + $0x1c7] ss:$8 sm:$0xf] }
  0xba   : > { %v639_v37 = vmax.f32 %v591_v31, %v625_v28  ;;  %v1145_v40 = vld [vmem:[%s1665_s4 + $0x1c7] ss:$8 sm:$0xf0]  ;;  %v878_v41 = vmax.f32 %v830_v34, %v861_v27  ;;  %v1163_v42 = vld [vmem:[%s1665_s4 + $0x418] ss:$8 sm:$0xf]  ;;  %v769_v46 = vor.u32 %v1126_v36, %v1125_v35 }
  0xbb   : > { %v1164_v43 = vld [vmem:[%s1665_s4 + $0x418] ss:$8 sm:$0xf0]  ;;  %v1032_v48 = vld [vmem:[%s1665_s4 + $0x201] ss:$8 sm:$0xf]  ;;  %v817_v53 = vor.u32 %v1145_v40, %v1144_v39 }
  0xbc   : > { %v1013_v44 = vld [vmem:[%s1665_s4 + $0x200] ss:$8 sm:$0xf]  ;;  %v687_v45 = vmax.f32 %v639_v37, %v673_v32  ;;  %v888_v49 = vmax.f32 %v878_v41, 0.0  ;;  %v865_v61 = vor.u32 %v1164_v43, %v1163_v42  ;;  %v901_v41 = vlaneseq }
  0xbd   : > { %v1014_v47 = vld [vmem:[%s1665_s4 + $0x200] ss:$8 sm:$0xf0]  ;;  %v1033_v51 = vld [vmem:[%s1665_s4 + $0x201] ss:$8 sm:$0xf0] }
  0xbe   : > { %v495_v50 = vor.u32 %v1014_v47, %v1013_v44  ;;  %v735_v52 = vmax.f32 %v687_v45, %v721_v38  ;;  %v533_v54 = vor.u32 %v1033_v51, %v1032_v48  ;;  %v1051_v55 = vld [vmem:[%s1665_s4 + $0x202] ss:$8 sm:$0xf]  ;;  %898 = vst [vmem:[%s1718_s15 + $0x30] sm:$0xff] %v888_v49  ;;  %vm903_vm0 = vcmp.lt.s32.totalorder %v901_v41, 384 }
  0xbf   : > { %v1052_v56 = vld [vmem:[%s1665_s4 + $0x202] ss:$8 sm:$0xf0]  ;;  %v1070_v58 = vld [vmem:[%s1665_s4 + $0x203] ss:$8 sm:$0xf] }
  0xc0   : > { %v581_v57 = vor.u32 %v1052_v56, %v1051_v55  ;;  %v1071_v59 = vld [vmem:[%s1665_s4 + $0x203] ss:$8 sm:$0xf0]  ;;  %v783_v60 = vmax.f32 %v735_v52, %v769_v46  ;;  %v544_v62 = vmax.f32 %v495_v50, %v533_v54  ;;  %v1089_v0 = vld [vmem:[%s1665_s4 + $0x204] ss:$8 sm:$0xf] }
  0xc1   : > { %v629_v63 = vor.u32 %v1071_v59, %v1070_v58  ;;  %v1090_v1 = vld [vmem:[%s1665_s4 + $0x204] ss:$8 sm:$0xf0]  ;;  %v1108_v2 = vld [vmem:[%s1665_s4 + $0x205] ss:$8 sm:$0xf] }
  0xc2   : > { %v1109_v3 = vld [vmem:[%s1665_s4 + $0x205] ss:$8 sm:$0xf0]  ;;  %v831_v4 = vmax.f32 %v783_v60, %v817_v53  ;;  %v592_v5 = vmax.f32 %v544_v62, %v581_v57  ;;  %v677_v6 = vor.u32 %v1090_v1, %v1089_v0  ;;  %v1127_v7 = vld [vmem:[%s1665_s4 + $0x206] ss:$8 sm:$0xf] }
  0xc3   : > { %v1128_v8 = vld [vmem:[%s1665_s4 + $0x206] ss:$8 sm:$0xf0]  ;;  %v725_v11 = vor.u32 %v1109_v3, %v1108_v2  ;;  %v1146_v12 = vld [vmem:[%s1665_s4 + $0x207] ss:$8 sm:$0xf] }
  0xc4   : > { %v879_v9 = vmax.f32 %v831_v4, %v865_v61  ;;  %v640_v10 = vmax.f32 %v592_v5, %v629_v63  ;;  %v1147_v13 = vld [vmem:[%s1665_s4 + $0x207] ss:$8 sm:$0xf0]  ;;  %v1165_v14 = vld [vmem:[%s1665_s4 + $0x458] ss:$8 sm:$0xf]  ;;  %v773_v19 = vor.u32 %v1128_v8, %v1127_v7 }
  0xc5   : > { %v1015_v15 = vld [vmem:[%s1665_s4 + $0x240] ss:$8 sm:$0x7]  ;;  %v1034_v16 = vld [vmem:[%s1665_s4 + $0x241] ss:$8 sm:$0x7]  ;;  %v821_v25 = vor.u32 %v1147_v13, %v1146_v12 }
  0xc6   : > { %v889_v17 = vmax.f32 %v879_v9, 0.0  ;;  %v688_v18 = vmax.f32 %v640_v10, %v677_v6  ;;  %v545_v20 = vmax.f32 %v1015_v15, %v1034_v16  ;;  %v1053_v21 = vld [vmem:[%s1665_s4 + $0x242] ss:$8 sm:$0x7] }
  0xc7   : > { %v1166_v22 = vld [vmem:[%s1665_s4 + $0x458] ss:$8 sm:$0xf0]  ;;  %v1072_v23 = vld [vmem:[%s1665_s4 + $0x243] ss:$8 sm:$0x7] }
  0xc8   : > { %899 = vst [vmem:[%s1718_s15 + $0x38] sm:$0xff] %v889_v17  ;;  %v736_v24 = vmax.f32 %v688_v18, %v725_v11  ;;  %v593_v26 = vmax.f32 %v545_v20, %v1053_v21  ;;  %v1091_v27 = vld [vmem:[%s1665_s4 + $0x244] ss:$8 sm:$0x7]  ;;  %v869_v29 = vor.u32 %v1166_v22, %v1165_v14 }
  0xc9   : > { %v1110_v31 = vld [vmem:[%s1665_s4 + $0x245] ss:$8 sm:$0x7]  ;;  %v1129_v34 = vld [vmem:[%s1665_s4 + $0x246] ss:$8 sm:$0x7] }
  0xca   : > { %v784_v28 = vmax.f32 %v736_v24, %v773_v19  ;;  %v641_v30 = vmax.f32 %v593_v26, %v1072_v23  ;;  %v1148_v37 = vld [vmem:[%s1665_s4 + $0x247] ss:$8 sm:$0x7]  ;;  %v1167_v40 = vld [vmem:[%s1665_s4 + $0x498] ss:$8 sm:$0x7] }
  0xcc   : > { %v832_v32 = vmax.f32 %v784_v28, %v821_v25  ;;  %v689_v33 = vmax.f32 %v641_v30, %v1091_v27 }
  0xce   : > { %v880_v35 = vmax.f32 %v832_v32, %v869_v29  ;;  %v737_v36 = vmax.f32 %v689_v33, %v1110_v31 }
  0xd0   : > { %v890_v38 = vmax.f32 %v880_v35, 0.0  ;;  %v785_v39 = vmax.f32 %v737_v36, %v1129_v34 }
  0xd2   : > { %900 = vst [vmem:[%s1718_s15 + $0x40] sm:$0xff] %v890_v38  ;;  %v833_v42 = vmax.f32 %v785_v39, %v1148_v37 }
  0xd4   : > { %v881_v43 = vmax.f32 %v833_v42, %v1167_v40 }
  0xd6   : > { %v891_v44 = vmax.f32 %v881_v43, 0.0 }
  0xd8   : > { %905 = vst.msk [vmem:[%s1718_s15 + $0x48] sm:$0x7] %vm903_vm0, %v891_v44 }
  0xd9 PF: > { %s11_s12 = sadd.s32 1, %s1284_s12   ;;  %s1885_s6 = smov %s1264_s7 }
  0xda   : > { %p8_p12 = scmp.ge.s32.totalorder %s11_s12, 8   ;;  %s1886_s7 = smov %s1347_s19 }
  0xdb   : > { %s1887_s8 = smov %s1276_s10  ;;  %s1888_s9 = smov %s1280_s11 }
  0xdc   : > { %s1889_s10 = smov %s1892_s13  ;;  %s1890_s11 = smov %s1896_s14 }
  0xdd   :  { %10 = sbr.rel (!%p8_p12) target bundleno = 4 (0x4), region = 171 }

// kernel: spherenet_forward.7
= control target key start
LH: loop header
LB: loop body
LE: loop exit
PB: predicated region body
PF: predicated region fallthrough
CT: control target
= control target key end

     0   :  { %s2154_s12 = smov 0   ;;  %s2952_s0 = inlined_call_operand.vmem [shape: f32[1800,288], index: 0, kind: input, shape index: {}]   ;;  %s2953_s1 = inlined_call_operand.vmem [shape: f32[64,288], index: 1, kind: input, shape index: {}]   ;;  %s2954_s2 = inlined_call_operand.vmem [shape: f32[1,64], index: 2, kind: input, shape index: {}]   ;;  %s2955_s3 = inlined_call_operand.vmem [shape: f32[1800,64], index: 3, kind: output, shape index: {}]  }
   0x1 LB: > { %s1695_s13 = sadd.s32 4294967295, %s2130_s12   ;;  %p1699_p0 = scmp.ge.s32.totalorder %s2130_s12, 1  ;;  %s2130_s12 = sphi %s2154_s12, %s13_s12  }
   0x2   : > { %p139_p1 = scmp.lt.s32.totalorder %s2130_s12, 4 }
   0x4   : > { %p140_p2 = pnand %p1699_p0, %p139_p1 }
   0x5   : > { %s164_s20 = smul.u32 (!%p140_p2), 75, %s1695_s13 }
   0x6   : > { %143 = sbr.rel (%p140_p2) target bundleno = 538 (0x21a), region = 32 }
   0x7   : > { %p165_p3 = scmp.lt.s32.totalorder (!%p140_p2), %s164_s20, 224 }
   0xb   : > { %v424_v0 = vld [vmem:[%s2953_s1 + $0xb0] sm:$0xff]  ;;  %v423_v1 = vld [vmem:[%s2953_s1 + $0xa8] sm:$0xff]  ;;  %v425_v2 = vld [vmem:[%s2953_s1 + $0xb8] sm:$0xff]  ;;  %vm433_vm0 = vcmask 261120   ;;  %v2132_v3 = vmov 0.0   ;;  %s2957_s20 = smov (!%p165_p3, %s164_s20), 224 }
   0xc   : > { %699 = vmatprep.subr.mxu0 %v424_v0  ;;  %1871 = vmatprep.subr.mxu1 %v2132_v3  ;;  %v421_v4 = vld [vmem:[%s2953_s1 + $0x98] sm:$0xff]  ;;  %v420_v5 = vld [vmem:[%s2953_s1 + $0x90] sm:$0xff]  ;;  %v422_v6 = vld [vmem:[%s2953_s1 + $0xa0] sm:$0xff]  ;;  %vm2133_vm1 = vmmov 0   ;;  %s2112_s29 = smul.u32 24, %s2957_s20  ;;  %s1701_s19 = sshll.u32 %s2957_s20, 3 }
   0xd   : > { %700 = vmatpush1.xpose.msra.mxu0 %v423_v1  ;;  %1872 = vmatpush3.xpose.msk.msra.mxu1 %vm433_vm0, %v425_v2  ;;  %v418_v7 = vld [vmem:[%s2953_s1 + $0x80] sm:$0xff]  ;;  %v417_v8 = vld [vmem:[%s2953_s1 + $0x78] sm:$0xff]  ;;  %v419_v9 = vld [vmem:[%s2953_s1 + $0x88] sm:$0xff]  ;;  %s2567_s23 = scalar_lea.vmem %s2955_s3, %s1701_s19  ;;  %vm1563_vm2 = vcmask 523264  }
   0xe   : > { %701 = vmatprep.subr.mxu0 %v421_v4  ;;  %1873 = vmatprep.subr.mxu1 %v2132_v3  ;;  %v415_v10 = vld [vmem:[%s2953_s1 + $0x68] sm:$0xff]  ;;  %s2205_s11 = scalar_lea.vmem %s2952_s0, %s2112_s29  ;;  %v414_v12 = vld [vmem:[%s2953_s1 + $0x60] sm:$0xff]  ;;  %v416_v13 = vld [vmem:[%s2953_s1 + $0x70] sm:$0xff] }
   0xf   : > { %1887 = vmatprep.mubr.msk.f32.mxu1 %vm2133_vm1, %v2132_v3  ;;  %v178_v11 = vld [vmem:[%s2205_s11 + $0x8] sm:$0xff]  ;;  %v412_v14 = vld [vmem:[%s2953_s1 + $0x50] sm:$0xff]  ;;  %v413_v16 = vld [vmem:[%s2953_s1 + $0x58] sm:$0xff] }
  0x10   : > { %747 = vmatprep.mubr.f32.mxu0 %v178_v11  ;;  %v411_v15 = vld [vmem:[%s2953_s1 + $0x48] sm:$0xff]  ;;  %v409_v17 = vld [vmem:[%s2953_s1 + $0x38] sm:$0xff]  ;;  %v408_v18 = vld [vmem:[%s2953_s1 + $0x30] sm:$0xff] }
  0x11   : > { %702 = vmatpush1.xpose.msra.mxu0 %v420_v5  ;;  %1874 = vmatpush3.xpose.msk.msra.mxu1 %vm433_vm0, %v422_v6  ;;  %v410_v19 = vld [vmem:[%s2953_s1 + $0x40] sm:$0xff]  ;;  %v405_v21 = vld [vmem:[%s2953_s1 + $0x18] sm:$0xff]  ;;  %v407_v22 = vld [vmem:[%s2953_s1 + $0x28] sm:$0xff] }
  0x12   : > { %703 = vmatprep.subr.mxu0 %v418_v7  ;;  %1875 = vmatprep.subr.mxu1 %v2132_v3  ;;  %v406_v20 = vld [vmem:[%s2953_s1 + $0x20] sm:$0xff]  ;;  %v403_v23 = vld [vmem:[%s2953_s1 + $0x8] sm:$0xff]  ;;  %v404_v25 = vld [vmem:[%s2953_s1 + $0x10] sm:$0xff] }
  0x13   : > { %v402_v24 = vld [vmem:[%s2953_s1] sm:$0xff]  ;;  %v179_v27 = vld [vmem:[%s2205_s11 + $0x10] sm:$0xff]  ;;  %v180_v29 = vld [vmem:[%s2205_s11 + $0x18] sm:$0xff] }
  0x14   : > { %v177_v26 = vld [vmem:[%s2205_s11] sm:$0xff]  ;;  %v182_v30 = vld [vmem:[%s2205_s11 + $0x28] sm:$0xff]  ;;  %v184_v31 = vld [vmem:[%s2205_s11 + $0x38] sm:$0xff] }
  0x15   : > { %704 = vmatpush1.xpose.msra.mxu0 %v417_v8  ;;  %1876 = vmatpush3.xpose.msk.msra.mxu1 %vm433_vm0, %v419_v9  ;;  %v181_v28 = vld [vmem:[%s2205_s11 + $0x20] sm:$0xff]  ;;  %v183_v32 = vld [vmem:[%s2205_s11 + $0x30] sm:$0xff]  ;;  %v186_v35 = vld [vmem:[%s2205_s11 + $0x48] sm:$0xff] }
  0x16   : > { %705 = vmatprep.subr.mxu0 %v415_v10  ;;  %1877 = vmatprep.subr.mxu1 %v2132_v3  ;;  %v185_v33 = vld [vmem:[%s2205_s11 + $0x40] sm:$0xff]  ;;  %v187_v34 = vld [vmem:[%s2205_s11 + $0x50] sm:$0xff]  ;;  %v188_v36 = vld [vmem:[%s2205_s11 + $0x58] sm:$0xff] }
  0x17   : > { %v190_v37 = vld [vmem:[%s2205_s11 + $0x68] sm:$0xff]  ;;  %v189_v38 = vld [vmem:[%s2205_s11 + $0x60] sm:$0xff]  ;;  %v191_v39 = vld [vmem:[%s2205_s11 + $0x70] sm:$0xff] }
  0x18   : > { %v193_v40 = vld [vmem:[%s2205_s11 + $0x80] sm:$0xff]  ;;  %v192_v41 = vld [vmem:[%s2205_s11 + $0x78] sm:$0xff]  ;;  %v194_v42 = vld [vmem:[%s2205_s11 + $0x88] sm:$0xff] }
  0x19   : > { %706 = vmatpush1.xpose.msra.mxu0 %v414_v12  ;;  %1878 = vmatpush3.xpose.msk.msra.mxu1 %vm433_vm0, %v416_v13  ;;  %v196_v43 = vld [vmem:[%s2205_s11 + $0x98] sm:$0xff]  ;;  %v195_v44 = vld [vmem:[%s2205_s11 + $0x90] sm:$0xff]  ;;  %v197_v45 = vld [vmem:[%s2205_s11 + $0xa0] sm:$0xff] }
  0x1a   : > { %707 = vmatprep.subr.mxu0 %v412_v14  ;;  %1879 = vmatprep.subr.mxu1 %v2132_v3  ;;  %v199_v46 = vld [vmem:[%s2205_s11 + $0xb0] sm:$0xff]  ;;  %v198_v47 = vld [vmem:[%s2205_s11 + $0xa8] sm:$0xff]  ;;  %v200_v48 = vld [vmem:[%s2205_s11 + $0xb8] sm:$0xff] }
  0x1b   : > { %v202_v49 = vld [vmem:[%s2205_s11 + $0xc8] sm:$0xff]  ;;  %v201_v50 = vld [vmem:[%s2205_s11 + $0xc0] sm:$0xff]  ;;  %v203_v51 = vld [vmem:[%s2205_s11 + $0xd0] sm:$0xff] }
  0x1c   : > { %v205_v52 = vld [vmem:[%s2205_s11 + $0xe0] sm:$0xff]  ;;  %v204_v53 = vld [vmem:[%s2205_s11 + $0xd8] sm:$0xff]  ;;  %v206_v54 = vld [vmem:[%s2205_s11 + $0xe8] sm:$0xff] }
  0x1d   : > { %708 = vmatpush1.xpose.msra.mxu0 %v411_v15  ;;  %1880 = vmatpush3.xpose.msk.msra.mxu1 %vm433_vm0, %v413_v16  ;;  %v208_v55 = vld [vmem:[%s2205_s11 + $0xf8] sm:$0xff]  ;;  %v207_v56 = vld [vmem:[%s2205_s11 + $0xf0] sm:$0xff]  ;;  %v209_v57 = vld [vmem:[%s2205_s11 + $0x100] sm:$0xff] }
  0x1e   : > { %709 = vmatprep.subr.mxu0 %v409_v17  ;;  %1881 = vmatprep.subr.mxu1 %v2132_v3  ;;  %v211_v58 = vld [vmem:[%s2205_s11 + $0x110] sm:$0xff]  ;;  %v210_v59 = vld [vmem:[%s2205_s11 + $0x108] sm:$0xff]  ;;  %v212_v60 = vld [vmem:[%s2205_s11 + $0x118] sm:$0xff] }
  0x1f   : > { %v214_v61 = vld [vmem:[%s2205_s11 + $0x128] sm:$0xff]  ;;  %v213_v62 = vld [vmem:[%s2205_s11 + $0x120] sm:$0xff]  ;;  %v215_v63 = vld [vmem:[%s2205_s11 + $0x130] sm:$0xff] }
  0x20   : > { %v217_v0 = vld [vmem:[%s2205_s11 + $0x140] sm:$0xff]  ;;  %v216_v1 = vld [vmem:[%s2205_s11 + $0x138] sm:$0xff]  ;;  %v218_v2 = vld [vmem:[%s2205_s11 + $0x148] sm:$0xff] }
  0x21   : > { %710 = vmatpush1.xpose.msra.mxu0 %v408_v18  ;;  %1882 = vmatpush3.xpose.msk.msra.mxu1 %vm433_vm0, %v410_v19  ;;  %v220_v4 = vld [vmem:[%s2205_s11 + $0x158] sm:$0xff]  ;;  %v219_v5 = vld [vmem:[%s2205_s11 + $0x150] sm:$0xff]  ;;  %v221_v6 = vld [vmem:[%s2205_s11 + $0x160] sm:$0xff] }
  0x22   : > { %711 = vmatprep.subr.mxu0 %v406_v20  ;;  %1883 = vmatprep.subr.mxu1 %v2132_v3  ;;  %v223_v7 = vld [vmem:[%s2205_s11 + $0x170] sm:$0xff]  ;;  %v222_v8 = vld [vmem:[%s2205_s11 + $0x168] sm:$0xff]  ;;  %v224_v9 = vld [vmem:[%s2205_s11 + $0x178] sm:$0xff] }
  0x23   : > { %v226_v10 = vld [vmem:[%s2205_s11 + $0x188] sm:$0xff]  ;;  %v225_v11 = vld [vmem:[%s2205_s11 + $0x180] sm:$0xff]  ;;  %v227_v12 = vld [vmem:[%s2205_s11 + $0x190] sm:$0xff] }
  0x24   : > { %v229_v13 = vld [vmem:[%s2205_s11 + $0x1a0] sm:$0xff]  ;;  %v228_v14 = vld [vmem:[%s2205_s11 + $0x198] sm:$0xff]  ;;  %v230_v15 = vld [vmem:[%s2205_s11 + $0x1a8] sm:$0xff] }
  0x25   : > { %712 = vmatpush1.xpose.msra.mxu0 %v405_v21  ;;  %1884 = vmatpush3.xpose.msk.msra.mxu1 %vm433_vm0, %v407_v22  ;;  %v232_v16 = vld [vmem:[%s2205_s11 + $0x1b8] sm:$0xff]  ;;  %v231_v17 = vld [vmem:[%s2205_s11 + $0x1b0] sm:$0xff]  ;;  %v233_v18 = vld [vmem:[%s2205_s11 + $0x1c0] sm:$0xff] }
  0x26   : > { %713 = vmatprep.subr.mxu0 %v403_v23  ;;  %1885 = vmatprep.subr.mxu1 %v2132_v3  ;;  %v235_v19 = vld [vmem:[%s2205_s11 + $0x1d0] sm:$0xff]  ;;  %v234_v20 = vld [vmem:[%s2205_s11 + $0x1c8] sm:$0xff]  ;;  %v236_v21 = vld [vmem:[%s2205_s11 + $0x1d8] sm:$0xff] }
  0x27   : > { %v238_v22 = vld [vmem:[%s2205_s11 + $0x1e8] sm:$0xff]  ;;  %v237_v23 = vld [vmem:[%s2205_s11 + $0x1e0] sm:$0xff] }
  0x29   : > { %714 = vmatpush1.xpose.msra.mxu0 %v402_v24  ;;  %1886 = vmatpush3.xpose.msk.msra.mxu1 %vm433_vm0, %v404_v25  ;;  %v239_v24 = vld [vmem:[%s2205_s11 + $0x1f0] sm:$0xff]  ;;  %v241_v25 = vld [vmem:[%s2205_s11 + $0x200] sm:$0xff] }
  0x2c   : > { %748 = vmatmul.mubr.f32.vlgmr.msra.gmra.mxu0 %v177_v26  ;;  %1888 = vmatmul.mubr.msk.f32.vlgmr.msra.gmra.mxu1 %vm433_vm0, %v179_v27  ;;  %v240_v26 = vld [vmem:[%s2205_s11 + $0x1f8] sm:$0xff]  ;;  %v242_v27 = vld [vmem:[%s2205_s11 + $0x208] sm:$0xff] }
  0x2d   : > { %752 = vmatprep.mubr.f32.mxu0 %v181_v28  ;;  %1890 = vmatprep.mubr.msk.f32.mxu1 %vm2133_vm1, %v2132_v3  ;;  %v244_v28 = vld [vmem:[%s2205_s11 + $0x218] sm:$0xff] }
  0x30   : > { %753 = vmatmul.mubr.f32.gmra.mxu0 %v180_v29  ;;  %1891 = vmatmul.mubr.msk.f32.gmra.mxu1 %vm433_vm0, %v182_v30  ;;  %v243_v29 = vld [vmem:[%s2205_s11 + $0x210] sm:$0xff]  ;;  %v245_v30 = vld [vmem:[%s2205_s11 + $0x220] sm:$0xff] }
  0x31   : > { %757 = vmatprep.mubr.f32.mxu0 %v184_v31  ;;  %1893 = vmatprep.mubr.msk.f32.mxu1 %vm2133_vm1, %v2132_v3  ;;  %v247_v31 = vld [vmem:[%s2205_s11 + $0x230] sm:$0xff] }
  0x34   : > { %758 = vmatmul.mubr.f32.gmra.mxu0 %v183_v32  ;;  %1894 = vmatmul.mubr.msk.f32.gmra.mxu1 %vm433_vm0, %v185_v33  ;;  %v246_v32 = vld [vmem:[%s2205_s11 + $0x228] sm:$0xff]  ;;  %v248_v33 = vld [vmem:[%s2205_s11 + $0x238] sm:$0xff] }
  0x35   : > { %762 = vmatprep.mubr.f32.mxu0 %v187_v34  ;;  %1896 = vmatprep.mubr.msk.f32.mxu1 %vm2133_vm1, %v2132_v3  ;;  %v250_v34 = vld [vmem:[%s2205_s11 + $0x248] sm:$0xff] }
  0x38   : > { %763 = vmatmul.mubr.f32.gmra.mxu0 %v186_v35  ;;  %1897 = vmatmul.mubr.msk.f32.gmra.mxu1 %vm433_vm0, %v188_v36  ;;  %v249_v35 = vld [vmem:[%s2205_s11 + $0x240] sm:$0xff]  ;;  %v251_v36 = vld [vmem:[%s2205_s11 + $0x250] sm:$0xff] }
  0x39   : > { %767 = vmatprep.mubr.f32.mxu0 %v190_v37  ;;  %1899 = vmatprep.mubr.msk.f32.mxu1 %vm2133_vm1, %v2132_v3  ;;  %v253_v37 = vld [vmem:[%s2205_s11 + $0x260] sm:$0xff] }
  0x3c   : > { %768 = vmatmul.mubr.f32.gmra.mxu0 %v189_v38  ;;  %1900 = vmatmul.mubr.msk.f32.gmra.mxu1 %vm433_vm0, %v191_v39  ;;  %v252_v38 = vld [vmem:[%s2205_s11 + $0x258] sm:$0xff]  ;;  %v254_v39 = vld [vmem:[%s2205_s11 + $0x268] sm:$0xff] }
  0x3d   : > { %772 = vmatprep.mubr.f32.mxu0 %v193_v40  ;;  %1902 = vmatprep.mubr.msk.f32.mxu1 %vm2133_vm1, %v2132_v3  ;;  %v256_v40 = vld [vmem:[%s2205_s11 + $0x278] sm:$0xff] }
  0x40   : > { %773 = vmatmul.mubr.f32.gmra.mxu0 %v192_v41  ;;  %1903 = vmatmul.mubr.msk.f32.gmra.mxu1 %vm433_vm0, %v194_v42  ;;  %v255_v41 = vld [vmem:[%s2205_s11 + $0x270] sm:$0xff]  ;;  %v257_v42 = vld [vmem:[%s2205_s11 + $0x280] sm:$0xff] }
  0x41   : > { %777 = vmatprep.mubr.f32.mxu0 %v196_v43  ;;  %1905 = vmatprep.mubr.msk.f32.mxu1 %vm2133_vm1, %v2132_v3  ;;  %v259_v43 = vld [vmem:[%s2205_s11 + $0x290] sm:$0xff] }
  0x44   : > { %778 = vmatmul.mubr.f32.gmra.mxu0 %v195_v44  ;;  %1906 = vmatmul.mubr.msk.f32.gmra.mxu1 %vm433_vm0, %v197_v45  ;;  %v258_v44 = vld [vmem:[%s2205_s11 + $0x288] sm:$0xff]  ;;  %v260_v45 = vld [vmem:[%s2205_s11 + $0x298] sm:$0xff] }
  0x45   : > { %782 = vmatprep.mubr.f32.mxu0 %v199_v46  ;;  %1908 = vmatprep.mubr.msk.f32.mxu1 %vm2133_vm1, %v2132_v3  ;;  %v262_v46 = vld [vmem:[%s2205_s11 + $0x2a8] sm:$0xff] }
  0x48   : > { %783 = vmatmul.mubr.f32.gmra.mxu0 %v198_v47  ;;  %1909 = vmatmul.mubr.msk.f32.gmra.mxu1 %vm433_vm0, %v200_v48  ;;  %v261_v47 = vld [vmem:[%s2205_s11 + $0x2a0] sm:$0xff]  ;;  %v263_v48 = vld [vmem:[%s2205_s11 + $0x2b0] sm:$0xff] }
  0x49   : > { %787 = vmatprep.mubr.f32.mxu0 %v202_v49  ;;  %1911 = vmatprep.mubr.msk.f32.mxu1 %vm2133_vm1, %v2132_v3  ;;  %v265_v49 = vld [vmem:[%s2205_s11 + $0x2c0] sm:$0xff] }
  0x4c   : > { %788 = vmatmul.mubr.f32.gmra.mxu0 %v201_v50  ;;  %1912 = vmatmul.mubr.msk.f32.gmra.mxu1 %vm433_vm0, %v203_v51  ;;  %v264_v50 = vld [vmem:[%s2205_s11 + $0x2b8] sm:$0xff]  ;;  %v266_v51 = vld [vmem:[%s2205_s11 + $0x2c8] sm:$0xff] }
  0x4d   : > { %792 = vmatprep.mubr.f32.mxu0 %v205_v52  ;;  %1914 = vmatprep.mubr.msk.f32.mxu1 %vm2133_vm1, %v2132_v3  ;;  %v268_v52 = vld [vmem:[%s2205_s11 + $0x2d8] sm:$0xff] }
  0x50   : > { %793 = vmatmul.mubr.f32.gmra.mxu0 %v204_v53  ;;  %1915 = vmatmul.mubr.msk.f32.gmra.mxu1 %vm433_vm0, %v206_v54  ;;  %v267_v53 = vld [vmem:[%s2205_s11 + $0x2d0] sm:$0xff]  ;;  %v269_v54 = vld [vmem:[%s2205_s11 + $0x2e0] sm:$0xff] }
  0x51   : > { %797 = vmatprep.mubr.f32.mxu0 %v208_v55  ;;  %1917 = vmatprep.mubr.msk.f32.mxu1 %vm2133_vm1, %v2132_v3  ;;  %v271_v55 = vld [vmem:[%s2205_s11 + $0x2f0] sm:$0xff] }
  0x54   : > { %798 = vmatmul.mubr.f32.gmra.mxu0 %v207_v56  ;;  %1918 = vmatmul.mubr.msk.f32.gmra.mxu1 %vm433_vm0, %v209_v57  ;;  %v270_v56 = vld [vmem:[%s2205_s11 + $0x2e8] sm:$0xff]  ;;  %v272_v57 = vld [vmem:[%s2205_s11 + $0x2f8] sm:$0xff] }
  0x55   : > { %802 = vmatprep.mubr.f32.mxu0 %v211_v58  ;;  %1920 = vmatprep.mubr.msk.f32.mxu1 %vm2133_vm1, %v2132_v3  ;;  %v274_v58 = vld [vmem:[%s2205_s11 + $0x308] sm:$0xff] }
  0x58   : > { %803 = vmatmul.mubr.f32.gmra.mxu0 %v210_v59  ;;  %1921 = vmatmul.mubr.msk.f32.gmra.mxu1 %vm433_vm0, %v212_v60  ;;  %v273_v59 = vld [vmem:[%s2205_s11 + $0x300] sm:$0xff]  ;;  %v275_v60 = vld [vmem:[%s2205_s11 + $0x310] sm:$0xff] }
  0x59   : > { %807 = vmatprep.mubr.f32.mxu0 %v214_v61  ;;  %1923 = vmatprep.mubr.msk.f32.mxu1 %vm2133_vm1, %v2132_v3  ;;  %v277_v61 = vld [vmem:[%s2205_s11 + $0x320] sm:$0xff] }
  0x5c   : > { %808 = vmatmul.mubr.f32.gmra.mxu0 %v213_v62  ;;  %1924 = vmatmul.mubr.msk.f32.gmra.mxu1 %vm433_vm0, %v215_v63  ;;  %v276_v62 = vld [vmem:[%s2205_s11 + $0x318] sm:$0xff]  ;;  %v278_v63 = vld [vmem:[%s2205_s11 + $0x328] sm:$0xff] }
  0x5d   : > { %812 = vmatprep.mubr.f32.mxu0 %v217_v0  ;;  %1926 = vmatprep.mubr.msk.f32.mxu1 %vm2133_vm1, %v2132_v3  ;;  %v280_v0 = vld [vmem:[%s2205_s11 + $0x338] sm:$0xff] }
  0x60   : > { %813 = vmatmul.mubr.f32.gmra.mxu0 %v216_v1  ;;  %1927 = vmatmul.mubr.msk.f32.gmra.mxu1 %vm433_vm0, %v218_v2  ;;  %v279_v1 = vld [vmem:[%s2205_s11 + $0x330] sm:$0xff]  ;;  %v281_v2 = vld [vmem:[%s2205_s11 + $0x340] sm:$0xff] }
  0x61   : > { %817 = vmatprep.mubr.f32.mxu0 %v220_v4  ;;  %1929 = vmatprep.mubr.msk.f32.mxu1 %vm2133_vm1, %v2132_v3  ;;  %v283_v4 = vld [vmem:[%s2205_s11 + $0x350] sm:$0xff] }
  0x64   : > { %818 = vmatmul.mubr.f32.gmra.mxu0 %v219_v5  ;;  %1930 = vmatmul.mubr.msk.f32.gmra.mxu1 %vm433_vm0, %v221_v6  ;;  %v282_v5 = vld [vmem:[%s2205_s11 + $0x348] sm:$0xff]  ;;  %v284_v6 = vld [vmem:[%s2205_s11 + $0x358] sm:$0xff] }
  0x65   : > { %822 = vmatprep.mubr.f32.mxu0 %v223_v7  ;;  %1932 = vmatprep.mubr.msk.f32.mxu1 %vm2133_vm1, %v2132_v3  ;;  %v286_v7 = vld [vmem:[%s2205_s11 + $0x368] sm:$0xff] }
  0x68   : > { %823 = vmatmul.mubr.f32.gmra.mxu0 %v222_v8  ;;  %1933 = vmatmul.mubr.msk.f32.gmra.mxu1 %vm433_vm0, %v224_v9  ;;  %v285_v8 = vld [vmem:[%s2205_s11 + $0x360] sm:$0xff]  ;;  %v287_v9 = vld [vmem:[%s2205_s11 + $0x370] sm:$0xff] }
  0x69   : > { %827 = vmatprep.mubr.f32.mxu0 %v226_v10  ;;  %1935 = vmatprep.mubr.msk.f32.mxu1 %vm2133_vm1, %v2132_v3  ;;  %v289_v10 = vld [vmem:[%s2205_s11 + $0x380] sm:$0xff] }
  0x6c   : > { %828 = vmatmul.mubr.f32.gmra.mxu0 %v225_v11  ;;  %1936 = vmatmul.mubr.msk.f32.gmra.mxu1 %vm433_vm0, %v227_v12  ;;  %v288_v11 = vld [vmem:[%s2205_s11 + $0x378] sm:$0xff]  ;;  %v290_v12 = vld [vmem:[%s2205_s11 + $0x388] sm:$0xff] }
  0x6d   : > { %832 = vmatprep.mubr.f32.mxu0 %v229_v13  ;;  %1938 = vmatprep.mubr.msk.f32.mxu1 %vm2133_vm1, %v2132_v3  ;;  %v292_v13 = vld [vmem:[%s2205_s11 + $0x398] sm:$0xff] }
  0x70   : > { %833 = vmatmul.mubr.f32.gmra.mxu0 %v228_v14  ;;  %1939 = vmatmul.mubr.msk.f32.gmra.mxu1 %vm433_vm0, %v230_v15  ;;  %v291_v14 = vld [vmem:[%s2205_s11 + $0x390] sm:$0xff]  ;;  %v293_v15 = vld [vmem:[%s2205_s11 + $0x3a0] sm:$0xff] }
  0x71   : > { %837 = vmatprep.mubr.f32.mxu0 %v232_v16  ;;  %1941 = vmatprep.mubr.msk.f32.mxu1 %vm2133_vm1, %v2132_v3  ;;  %v295_v16 = vld [vmem:[%s2205_s11 + $0x3b0] sm:$0xff] }
  0x74   : > { %838 = vmatmul.mubr.f32.gmra.mxu0 %v231_v17  ;;  %1942 = vmatmul.mubr.msk.f32.gmra.mxu1 %vm433_vm0, %v233_v18  ;;  %v294_v17 = vld [vmem:[%s2205_s11 + $0x3a8] sm:$0xff]  ;;  %v296_v18 = vld [vmem:[%s2205_s11 + $0x3b8] sm:$0xff] }
  0x75   : > { %842 = vmatprep.mubr.f32.mxu0 %v235_v19  ;;  %1944 = vmatprep.mubr.msk.f32.mxu1 %vm2133_vm1, %v2132_v3  ;;  %v298_v19 = vld [vmem:[%s2205_s11 + $0x3c8] sm:$0xff] }
  0x78   : > { %843 = vmatmul.mubr.f32.gmra.mxu0 %v234_v20  ;;  %1945 = vmatmul.mubr.msk.f32.gmra.mxu1 %vm433_vm0, %v236_v21  ;;  %v297_v20 = vld [vmem:[%s2205_s11 + $0x3c0] sm:$0xff]  ;;  %v299_v21 = vld [vmem:[%s2205_s11 + $0x3d0] sm:$0xff] }
  0x79   : > { %847 = vmatprep.mubr.f32.mxu0 %v238_v22  ;;  %1947 = vmatprep.mubr.msk.f32.mxu1 %vm2133_vm1, %v2132_v3  ;;  %v301_v22 = vld [vmem:[%s2205_s11 + $0x3e0] sm:$0xff] }
  0x7c   : > { %848 = vmatmul.mubr.f32.gmra.mxu0 %v237_v23  ;;  %1948 = vmatmul.mubr.msk.f32.gmra.mxu1 %vm433_vm0, %v239_v24  ;;  %v300_v23 = vld [vmem:[%s2205_s11 + $0x3d8] sm:$0xff]  ;;  %v302_v24 = vld [vmem:[%s2205_s11 + $0x3e8] sm:$0xff] }
  0x7d   : > { %852 = vmatprep.mubr.f32.mxu0 %v241_v25  ;;  %1950 = vmatprep.mubr.msk.f32.mxu1 %vm2133_vm1, %v2132_v3  ;;  %v304_v25 = vld [vmem:[%s2205_s11 + $0x3f8] sm:$0xff] }
  0x80   : > { %853 = vmatmul.mubr.f32.gmra.mxu0 %v240_v26  ;;  %1951 = vmatmul.mubr.msk.f32.gmra.mxu1 %vm433_vm0, %v242_v27  ;;  %v303_v26 = vld [vmem:[%s2205_s11 + $0x3f0] sm:$0xff]  ;;  %v305_v27 = vld [vmem:[%s2205_s11 + $0x400] sm:$0xff] }
  0x81   : > { %857 = vmatprep.mubr.f32.mxu0 %v244_v28  ;;  %1953 = vmatprep.mubr.msk.f32.mxu1 %vm2133_vm1, %v2132_v3  ;;  %v307_v28 = vld [vmem:[%s2205_s11 + $0x410] sm:$0xff] }
  0x84   : > { %858 = vmatmul.mubr.f32.gmra.mxu0 %v243_v29  ;;  %1954 = vmatmul.mubr.msk.f32.gmra.mxu1 %vm433_vm0, %v245_v30  ;;  %v306_v29 = vld [vmem:[%s2205_s11 + $0x408] sm:$0xff]  ;;  %v308_v30 = vld [vmem:[%s2205_s11 + $0x418] sm:$0xff] }
  0x85   : > { %862 = vmatprep.mubr.f32.mxu0 %v247_v31  ;;  %1956 = vmatprep.mubr.msk.f32.mxu1 %vm2133_vm1, %v2132_v3  ;;  %v310_v31 = vld [vmem:[%s2205_s11 + $0x428] sm:$0xff] }
  0x88   : > { %863 = vmatmul.mubr.f32.gmra.mxu0 %v246_v32  ;;  %1957 = vmatmul.mubr.msk.f32.gmra.mxu1 %vm433_vm0, %v248_v33  ;;  %v309_v32 = vld [vmem:[%s2205_s11 + $0x420] sm:$0xff]  ;;  %v311_v33 = vld [vmem:[%s2205_s11 + $0x430] sm:$0xff] }
  0x89   : > { %867 = vmatprep.mubr.f32.mxu0 %v250_v34  ;;  %1959 = vmatprep.mubr.msk.f32.mxu1 %vm2133_vm1, %v2132_v3  ;;  %v313_v34 = vld [vmem:[%s2205_s11 + $0x440] sm:$0xff] }
  0x8c   : > { %868 = vmatmul.mubr.f32.gmra.mxu0 %v249_v35  ;;  %1960 = vmatmul.mubr.msk.f32.gmra.mxu1 %vm433_vm0, %v251_v36  ;;  %v312_v35 = vld [vmem:[%s2205_s11 + $0x438] sm:$0xff]  ;;  %v314_v36 = vld [vmem:[%s2205_s11 + $0x448] sm:$0xff] }
  0x8d   : > { %872 = vmatprep.mubr.f32.mxu0 %v253_v37  ;;  %1962 = vmatprep.mubr.msk.f32.mxu1 %vm2133_vm1, %v2132_v3  ;;  %v316_v37 = vld [vmem:[%s2205_s11 + $0x458] sm:$0xff] }
  0x90   : > { %873 = vmatmul.mubr.f32.gmra.mxu0 %v252_v38  ;;  %1963 = vmatmul.mubr.msk.f32.gmra.mxu1 %vm433_vm0, %v254_v39  ;;  %v315_v38 = vld [vmem:[%s2205_s11 + $0x450] sm:$0xff]  ;;  %v317_v39 = vld [vmem:[%s2205_s11 + $0x460] sm:$0xff] }
  0x91   : > { %877 = vmatprep.mubr.f32.mxu0 %v256_v40  ;;  %1965 = vmatprep.mubr.msk.f32.mxu1 %vm2133_vm1, %v2132_v3  ;;  %v319_v40 = vld [vmem:[%s2205_s11 + $0x470] sm:$0xff] }
  0x94   : > { %878 = vmatmul.mubr.f32.gmra.mxu0 %v255_v41  ;;  %1966 = vmatmul.mubr.msk.f32.gmra.mxu1 %vm433_vm0, %v257_v42  ;;  %v318_v41 = vld [vmem:[%s2205_s11 + $0x468] sm:$0xff]  ;;  %v320_v42 = vld [vmem:[%s2205_s11 + $0x478] sm:$0xff] }
  0x95   : > { %882 = vmatprep.mubr.f32.mxu0 %v259_v43  ;;  %1968 = vmatprep.mubr.msk.f32.mxu1 %vm2133_vm1, %v2132_v3  ;;  %v322_v43 = vld [vmem:[%s2205_s11 + $0x488] sm:$0xff] }
  0x98   : > { %883 = vmatmul.mubr.f32.gmra.mxu0 %v258_v44  ;;  %1969 = vmatmul.mubr.msk.f32.gmra.mxu1 %vm433_vm0, %v260_v45  ;;  %v321_v44 = vld [vmem:[%s2205_s11 + $0x480] sm:$0xff]  ;;  %v323_v45 = vld [vmem:[%s2205_s11 + $0x490] sm:$0xff] }
  0x99   : > { %887 = vmatprep.mubr.f32.mxu0 %v262_v46  ;;  %1971 = vmatprep.mubr.msk.f32.mxu1 %vm2133_vm1, %v2132_v3  ;;  %v2554_v46 = vld [vmem:[%s2954_s2] ss:$0 sm:$0xff] }
  0x9c   : > { %888 = vmatmul.mubr.f32.gmra.mxu0 %v261_v47  ;;  %1972 = vmatmul.mubr.msk.f32.gmra.mxu1 %vm433_vm0, %v263_v48  ;;  %v325_v47 = vld [vmem:[%s2205_s11 + $0x4a0] sm:$0xff] }
  0x9d   : > { %892 = vmatprep.mubr.f32.mxu0 %v265_v49  ;;  %1974 = vmatprep.mubr.msk.f32.mxu1 %vm2133_vm1, %v2132_v3 }
  0xa0   : > { %893 = vmatmul.mubr.f32.gmra.mxu0 %v264_v50  ;;  %1975 = vmatmul.mubr.msk.f32.gmra.mxu1 %vm433_vm0, %v266_v51  ;;  %v324_v51 = vld [vmem:[%s2205_s11 + $0x498] sm:$0xff] }
  0xa1   : > { %897 = vmatprep.mubr.f32.mxu0 %v268_v52  ;;  %1977 = vmatprep.mubr.msk.f32.mxu1 %vm2133_vm1, %v2132_v3  ;;  %v326_v52 = vld [vmem:[%s2205_s11 + $0x4a8] sm:$0xff] }
  0xa4   : > { %898 = vmatmul.mubr.f32.gmra.mxu0 %v267_v53  ;;  %1978 = vmatmul.mubr.msk.f32.gmra.mxu1 %vm433_vm0, %v269_v54 }
  0xa5   : > { %902 = vmatprep.mubr.f32.mxu0 %v271_v55  ;;  %1980 = vmatprep.mubr.msk.f32.mxu1 %vm2133_vm1, %v2132_v3  ;;  %v328_v55 = vld [vmem:[%s2205_s11 + $0x4b8] sm:$0xff] }
  0xa8   : > { %903 = vmatmul.mubr.f32.gmra.mxu0 %v270_v56  ;;  %1981 = vmatmul.mubr.msk.f32.gmra.mxu1 %vm433_vm0, %v272_v57 }
  0xa9   : > { %907 = vmatprep.mubr.f32.mxu0 %v274_v58  ;;  %1983 = vmatprep.mubr.msk.f32.mxu1 %vm2133_vm1, %v2132_v3 }
  0xac   : > { %908 = vmatmul.mubr.f32.gmra.mxu0 %v273_v59  ;;  %1984 = vmatmul.mubr.msk.f32.gmra.mxu1 %vm433_vm0, %v275_v60  ;;  %v327_v60 = vld [vmem:[%s2205_s11 + $0x4b0] sm:$0xff] }
  0xad   : > { %912 = vmatprep.mubr.f32.mxu0 %v277_v61  ;;  %1986 = vmatprep.mubr.msk.f32.mxu1 %vm2133_vm1, %v2132_v3  ;;  %v329_v61 = vld [vmem:[%s2205_s11 + $0x4c0] sm:$0xff] }
  0xb0   : > { %913 = vmatmul.mubr.f32.gmra.mxu0 %v276_v62  ;;  %1987 = vmatmul.mubr.msk.f32.gmra.mxu1 %vm433_vm0, %v278_v63 }
  0xb1   : > { %917 = vmatprep.mubr.f32.mxu0 %v280_v0  ;;  %1989 = vmatprep.mubr.msk.f32.mxu1 %vm2133_vm1, %v2132_v3  ;;  %v331_v0 = vld [vmem:[%s2205_s11 + $0x4d0] sm:$0xff] }
  0xb4   : > { %918 = vmatmul.mubr.f32.gmra.mxu0 %v279_v1  ;;  %1990 = vmatmul.mubr.msk.f32.gmra.mxu1 %vm433_vm0, %v281_v2 }
  0xb5   : > { %922 = vmatprep.mubr.f32.mxu0 %v283_v4  ;;  %1992 = vmatprep.mubr.msk.f32.mxu1 %vm2133_vm1, %v2132_v3 }
  0xb8   : > { %923 = vmatmul.mubr.f32.gmra.mxu0 %v282_v5  ;;  %1993 = vmatmul.mubr.msk.f32.gmra.mxu1 %vm433_vm0, %v284_v6  ;;  %v330_v6 = vld [vmem:[%s2205_s11 + $0x4c8] sm:$0xff] }
  0xb9   : > { %927 = vmatprep.mubr.f32.mxu0 %v286_v7  ;;  %1995 = vmatprep.mubr.msk.f32.mxu1 %vm2133_vm1, %v2132_v3  ;;  %v332_v7 = vld [vmem:[%s2205_s11 + $0x4d8] sm:$0xff] }
  0xbc   : > { %928 = vmatmul.mubr.f32.gmra.mxu0 %v285_v8  ;;  %1996 = vmatmul.mubr.msk.f32.gmra.mxu1 %vm433_vm0, %v287_v9 }
  0xbd   : > { %932 = vmatprep.mubr.f32.mxu0 %v289_v10  ;;  %1998 = vmatprep.mubr.msk.f32.mxu1 %vm2133_vm1, %v2132_v3  ;;  %v334_v10 = vld [vmem:[%s2205_s11 + $0x4e8] sm:$0xff] }
  0xc0   : > { %933 = vmatmul.mubr.f32.gmra.mxu0 %v288_v11  ;;  %1999 = vmatmul.mubr.msk.f32.gmra.mxu1 %vm433_vm0, %v290_v12 }
  0xc1   : > { %937 = vmatprep.mubr.f32.mxu0 %v292_v13  ;;  %2001 = vmatprep.mubr.msk.f32.mxu1 %vm2133_vm1, %v2132_v3 }
  0xc4   : > { %938 = vmatmul.mubr.f32.gmra.mxu0 %v291_v14  ;;  %2002 = vmatmul.mubr.msk.f32.gmra.mxu1 %vm433_vm0, %v293_v15  ;;  %v333_v15 = vld [vmem:[%s2205_s11 + $0x4e0] sm:$0xff] }
  0xc5   : > { %942 = vmatprep.mubr.f32.mxu0 %v295_v16  ;;  %2004 = vmatprep.mubr.msk.f32.mxu1 %vm2133_vm1, %v2132_v3  ;;  %v335_v16 = vld [vmem:[%s2205_s11 + $0x4f0] sm:$0xff] }
  0xc8   : > { %943 = vmatmul.mubr.f32.gmra.mxu0 %v294_v17  ;;  %2005 = vmatmul.mubr.msk.f32.gmra.mxu1 %vm433_vm0, %v296_v18 }
  0xc9   : > { %947 = vmatprep.mubr.f32.mxu0 %v298_v19  ;;  %2007 = vmatprep.mubr.msk.f32.mxu1 %vm2133_vm1, %v2132_v3  ;;  %v337_v19 = vld [vmem:[%s2205_s11 + $0x500] sm:$0xff] }
  0xcc   : > { %948 = vmatmul.mubr.f32.gmra.mxu0 %v297_v20  ;;  %2008 = vmatmul.mubr.msk.f32.gmra.mxu1 %vm433_vm0, %v299_v21 }
  0xcd   : > { %952 = vmatprep.mubr.f32.mxu0 %v301_v22  ;;  %2010 = vmatprep.mubr.msk.f32.mxu1 %vm2133_vm1, %v2132_v3 }
  0xd0   : > { %953 = vmatmul.mubr.f32.gmra.mxu0 %v300_v23  ;;  %2011 = vmatmul.mubr.msk.f32.gmra.mxu1 %vm433_vm0, %v302_v24  ;;  %v336_v24 = vld [vmem:[%s2205_s11 + $0x4f8] sm:$0xff] }
  0xd1   : > { %957 = vmatprep.mubr.f32.mxu0 %v304_v25  ;;  %2013 = vmatprep.mubr.msk.f32.mxu1 %vm2133_vm1, %v2132_v3  ;;  %v338_v25 = vld [vmem:[%s2205_s11 + $0x508] sm:$0xff] }
  0xd4   : > { %958 = vmatmul.mubr.f32.gmra.mxu0 %v303_v26  ;;  %2014 = vmatmul.mubr.msk.f32.gmra.mxu1 %vm433_vm0, %v305_v27 }
  0xd5   : > { %962 = vmatprep.mubr.f32.mxu0 %v307_v28  ;;  %2016 = vmatprep.mubr.msk.f32.mxu1 %vm2133_vm1, %v2132_v3  ;;  %v340_v28 = vld [vmem:[%s2205_s11 + $0x518] sm:$0xff] }
  0xd8   : > { %963 = vmatmul.mubr.f32.gmra.mxu0 %v306_v29  ;;  %2017 = vmatmul.mubr.msk.f32.gmra.mxu1 %vm433_vm0, %v308_v30 }
  0xd9   : > { %967 = vmatprep.mubr.f32.mxu0 %v310_v31  ;;  %2019 = vmatprep.mubr.msk.f32.mxu1 %vm2133_vm1, %v2132_v3 }
  0xdc   : > { %968 = vmatmul.mubr.f32.gmra.mxu0 %v309_v32  ;;  %2020 = vmatmul.mubr.msk.f32.gmra.mxu1 %vm433_vm0, %v311_v33  ;;  %v339_v33 = vld [vmem:[%s2205_s11 + $0x510] sm:$0xff] }
  0xdd   : > { %972 = vmatprep.mubr.f32.mxu0 %v313_v34  ;;  %2022 = vmatprep.mubr.msk.f32.mxu1 %vm2133_vm1, %v2132_v3  ;;  %v341_v34 = vld [vmem:[%s2205_s11 + $0x520] sm:$0xff] }
  0xe0   : > { %973 = vmatmul.mubr.f32.gmra.mxu0 %v312_v35  ;;  %2023 = vmatmul.mubr.msk.f32.gmra.mxu1 %vm433_vm0, %v314_v36 }
  0xe1   : > { %977 = vmatprep.mubr.f32.mxu0 %v316_v37  ;;  %2025 = vmatprep.mubr.msk.f32.mxu1 %vm2133_vm1, %v2132_v3  ;;  %v343_v37 = vld [vmem:[%s2205_s11 + $0x530] sm:$0xff] }
  0xe4   : > { %978 = vmatmul.mubr.f32.gmra.mxu0 %v315_v38  ;;  %2026 = vmatmul.mubr.msk.f32.gmra.mxu1 %vm433_vm0, %v317_v39 }
  0xe5   : > { %982 = vmatprep.mubr.f32.mxu0 %v319_v40  ;;  %2028 = vmatprep.mubr.msk.f32.mxu1 %vm2133_vm1, %v2132_v3 }
  0xe8   : > { %983 = vmatmul.mubr.f32.gmra.mxu0 %v318_v41  ;;  %2029 = vmatmul.mubr.msk.f32.gmra.mxu1 %vm433_vm0, %v320_v42  ;;  %v342_v42 = vld [vmem:[%s2205_s11 + $0x528] sm:$0xff] }
  0xe9   : > { %987 = vmatprep.mubr.f32.mxu0 %v322_v43  ;;  %2031 = vmatprep.mubr.msk.f32.mxu1 %vm2133_vm1, %v2132_v3  ;;  %v344_v43 = vld [vmem:[%s2205_s11 + $0x538] sm:$0xff] }
  0xec   : > { %v749_v48 = vpop.f32.mrf.mxu0  ;;  %988 = vmatmul.mubr.f32.gmra.mxu0 %v321_v44  ;;  %v1189_v49 = vpop.f32.mrf.mxu1  ;;  %2032 = vmatmul.mubr.msk.f32.gmra.mxu1 %vm433_vm0, %v323_v45 }
  0xed   : > { %v750_v50 = vadd.f32 %v2554_v46, %v749_v48  ;;  %992 = vmatprep.mubr.f32.mxu0 %v325_v47  ;;  %2034 = vmatprep.mubr.msk.f32.mxu1 %vm2133_vm1, %v2132_v3  ;;  %v346_v47 = vld [vmem:[%s2205_s11 + $0x548] sm:$0xff] }
  0xee   : > { %v751_v53 = vpop.f32.mrf.mxu0  ;;  %v1889_v54 = vpop.f32.mrf.mxu1 }
  0xef   : > { %v1190_v56 = vadd.f32 %v1189_v49, %v750_v50  ;;  %v347_v53 = vld [vmem:[%s2205_s11 + $0x550] sm:$0xff] }
  0xf0   : > { %v754_v57 = vpop.f32.mrf.mxu0  ;;  %993 = vmatmul.mubr.f32.gmra.mxu0 %v324_v51  ;;  %v1194_v58 = vpop.f32.mrf.mxu1  ;;  %2035 = vmatmul.mubr.msk.f32.gmra.mxu1 %vm433_vm0, %v326_v52  ;;  %v345_v52 = vld [vmem:[%s2205_s11 + $0x540] sm:$0xff] }
  0xf1   : > { %1564 = vst.msk [vmem:[%s2567_s23] sm:$0xff] %vm1563_vm2, %v1190_v56  ;;  %v755_v59 = vadd.f32 %v2554_v46, %v754_v57  ;;  %997 = vmatprep.mubr.f32.mxu0 %v328_v55  ;;  %2037 = vmatprep.mubr.msk.f32.mxu1 %vm2133_vm1, %v2132_v3  ;;  %v349_v56 = vld [vmem:[%s2205_s11 + $0x560] sm:$0xff] }
  0xf2   : > { %v756_v62 = vpop.f32.mrf.mxu0  ;;  %v1892_v63 = vpop.f32.mrf.mxu1 }
  0xf3   : > { %v1195_v1 = vadd.f32 %v1194_v58, %v755_v59  ;;  %v350_v62 = vld [vmem:[%s2205_s11 + $0x568] sm:$0xff] }
  0xf4   : > { %v759_v2 = vpop.f32.mrf.mxu0  ;;  %998 = vmatmul.mubr.f32.gmra.mxu0 %v327_v60  ;;  %v1199_v4 = vpop.f32.mrf.mxu1  ;;  %2038 = vmatmul.mubr.msk.f32.gmra.mxu1 %vm433_vm0, %v329_v61  ;;  %v348_v61 = vld [vmem:[%s2205_s11 + $0x558] sm:$0xff] }
  0xf5   : > { %1565 = vst.msk [vmem:[%s2567_s23 + $0x8] sm:$0xff] %vm1563_vm2, %v1195_v1  ;;  %v760_v5 = vadd.f32 %v2554_v46, %v759_v2  ;;  %1002 = vmatprep.mubr.f32.mxu0 %v331_v0  ;;  %2040 = vmatprep.mubr.msk.f32.mxu1 %vm2133_vm1, %v2132_v3  ;;  %v352_v1 = vld [vmem:[%s2205_s11 + $0x578] sm:$0xff] }
  0xf6   : > { %v761_v8 = vpop.f32.mrf.mxu0  ;;  %v1895_v9 = vpop.f32.mrf.mxu1 }
  0xf7   : > { %v1200_v11 = vadd.f32 %v1199_v4, %v760_v5  ;;  %v353_v8 = vld [vmem:[%s2205_s11 + $0x580] sm:$0xff] }
  0xf8   : > { %v764_v12 = vpop.f32.mrf.mxu0  ;;  %1003 = vmatmul.mubr.f32.gmra.mxu0 %v330_v6  ;;  %v1204_v13 = vpop.f32.mrf.mxu1  ;;  %2041 = vmatmul.mubr.msk.f32.gmra.mxu1 %vm433_vm0, %v332_v7  ;;  %v351_v7 = vld [vmem:[%s2205_s11 + $0x570] sm:$0xff] }
  0xf9   : > { %1566 = vst.msk [vmem:[%s2567_s23 + $0x10] sm:$0xff] %vm1563_vm2, %v1200_v11  ;;  %v765_v14 = vadd.f32 %v2554_v46, %v764_v12  ;;  %1007 = vmatprep.mubr.f32.mxu0 %v334_v10  ;;  %2043 = vmatprep.mubr.msk.f32.mxu1 %vm2133_vm1, %v2132_v3  ;;  %v355_v11 = vld [vmem:[%s2205_s11 + $0x590] sm:$0xff] }
  0xfa   : > { %v766_v17 = vpop.f32.mrf.mxu0  ;;  %v1898_v18 = vpop.f32.mrf.mxu1 }
  0xfb   : > { %v1205_v20 = vadd.f32 %v1204_v13, %v765_v14  ;;  %v356_v17 = vld [vmem:[%s2205_s11 + $0x598] sm:$0xff] }
  0xfc   : > { %v769_v21 = vpop.f32.mrf.mxu0  ;;  %1008 = vmatmul.mubr.f32.gmra.mxu0 %v333_v15  ;;  %v1209_v22 = vpop.f32.mrf.mxu1  ;;  %2044 = vmatmul.mubr.msk.f32.gmra.mxu1 %vm433_vm0, %v335_v16  ;;  %v354_v16 = vld [vmem:[%s2205_s11 + $0x588] sm:$0xff] }
  0xfd   : > { %1567 = vst.msk [vmem:[%s2567_s23 + $0x18] sm:$0xff] %vm1563_vm2, %v1205_v20  ;;  %v770_v23 = vadd.f32 %v2554_v46, %v769_v21  ;;  %1012 = vmatprep.mubr.f32.mxu0 %v337_v19  ;;  %2046 = vmatprep.mubr.msk.f32.mxu1 %vm2133_vm1, %v2132_v3  ;;  %v358_v20 = vld [vmem:[%s2205_s11 + $0x5a8] sm:$0xff] }
  0xfe   : > { %v771_v26 = vpop.f32.mrf.mxu0  ;;  %v1901_v27 = vpop.f32.mrf.mxu1 }
  0xff   : > { %v1210_v29 = vadd.f32 %v1209_v22, %v770_v23  ;;  %v359_v26 = vld [vmem:[%s2205_s11 + $0x5b0] sm:$0xff] }
 0x100   : > { %v774_v30 = vpop.f32.mrf.mxu0  ;;  %1013 = vmatmul.mubr.f32.gmra.mxu0 %v336_v24  ;;  %v1214_v31 = vpop.f32.mrf.mxu1  ;;  %2047 = vmatmul.mubr.msk.f32.gmra.mxu1 %vm433_vm0, %v338_v25  ;;  %v357_v25 = vld [vmem:[%s2205_s11 + $0x5a0] sm:$0xff] }
 0x101   : > { %1568 = vst.msk [vmem:[%s2567_s23 + $0x20] sm:$0xff] %vm1563_vm2, %v1210_v29  ;;  %v775_v32 = vadd.f32 %v2554_v46, %v774_v30  ;;  %1017 = vmatprep.mubr.f32.mxu0 %v340_v28  ;;  %2049 = vmatprep.mubr.msk.f32.mxu1 %vm2133_vm1, %v2132_v3  ;;  %v361_v29 = vld [vmem:[%s2205_s11 + $0x5c0] sm:$0xff] }
 0x102   : > { %v776_v35 = vpop.f32.mrf.mxu0  ;;  %v1904_v36 = vpop.f32.mrf.mxu1 }
 0x103   : > { %v1215_v38 = vadd.f32 %v1214_v31, %v775_v32  ;;  %v362_v35 = vld [vmem:[%s2205_s11 + $0x5c8] sm:$0xff] }
 0x104   : > { %v779_v39 = vpop.f32.mrf.mxu0  ;;  %1018 = vmatmul.mubr.f32.gmra.mxu0 %v339_v33  ;;  %v1219_v40 = vpop.f32.mrf.mxu1  ;;  %2050 = vmatmul.mubr.msk.f32.gmra.mxu1 %vm433_vm0, %v341_v34  ;;  %v360_v34 = vld [vmem:[%s2205_s11 + $0x5b8] sm:$0xff] }
 0x105   : > { %1569 = vst.msk [vmem:[%s2567_s23 + $0x28] sm:$0xff] %vm1563_vm2, %v1215_v38  ;;  %v780_v41 = vadd.f32 %v2554_v46, %v779_v39  ;;  %1022 = vmatprep.mubr.f32.mxu0 %v343_v37  ;;  %2052 = vmatprep.mubr.msk.f32.mxu1 %vm2133_vm1, %v2132_v3  ;;  %v364_v38 = vld [vmem:[%s2205_s11 + $0x5d8] sm:$0xff] }
 0x106   : > { %v781_v44 = vpop.f32.mrf.mxu0  ;;  %v1907_v45 = vpop.f32.mrf.mxu1 }
 0x107   : > { %v1220_v48 = vadd.f32 %v1219_v40, %v780_v41  ;;  %v365_v44 = vld [vmem:[%s2205_s11 + $0x5e0] sm:$0xff] }
 0x108   : > { %v784_v49 = vpop.f32.mrf.mxu0  ;;  %1023 = vmatmul.mubr.f32.gmra.mxu0 %v342_v42  ;;  %v1224_v50 = vpop.f32.mrf.mxu1  ;;  %2053 = vmatmul.mubr.msk.f32.gmra.mxu1 %vm433_vm0, %v344_v43  ;;  %v363_v43 = vld [vmem:[%s2205_s11 + $0x5d0] sm:$0xff] }
 0x109   : > { %1570 = vst.msk [vmem:[%s2567_s23 + $0x30] sm:$0xff] %vm1563_vm2, %v1220_v48  ;;  %v785_v51 = vadd.f32 %v2554_v46, %v784_v49  ;;  %1027 = vmatprep.mubr.f32.mxu0 %v346_v47  ;;  %2055 = vmatprep.mubr.msk.f32.mxu1 %vm2133_vm1, %v2132_v3  ;;  %v367_v48 = vld [vmem:[%s2205_s11 + $0x5f0] sm:$0xff] }
 0x10a   : > { %v786_v54 = vpop.f32.mrf.mxu0  ;;  %v1910_v55 = vpop.f32.mrf.mxu1 }
 0x10b   : > { %v1225_v57 = vadd.f32 %v1224_v50, %v785_v51  ;;  %v368_v54 = vld [vmem:[%s2205_s11 + $0x5f8] sm:$0xff] }
 0x10c   : > { %v789_v58 = vpop.f32.mrf.mxu0  ;;  %1028 = vmatmul.mubr.f32.gmra.mxu0 %v345_v52  ;;  %v1229_v59 = vpop.f32.mrf.mxu1  ;;  %2056 = vmatmul.mubr.msk.f32.gmra.mxu1 %vm433_vm0, %v347_v53  ;;  %v366_v53 = vld [vmem:[%s2205_s11 + $0x5e8] sm:$0xff] }
 0x10d   : > { %1571 = vst.msk [vmem:[%s2567_s23 + $0x38] sm:$0xff] %vm1563_vm2, %v1225_v57  ;;  %v790_v60 = vadd.f32 %v2554_v46, %v789_v58  ;;  %1032 = vmatprep.mubr.f32.mxu0 %v349_v56  ;;  %2058 = vmatprep.mubr.msk.f32.mxu1 %vm2133_vm1, %v2132_v3  ;;  %v370_v57 = vld [vmem:[%s2205_s11 + $0x608] sm:$0xff] }
 0x10e   : > { %v791_v63 = vpop.f32.mrf.mxu0  ;;  %v1913_v0 = vpop.f32.mrf.mxu1 }
 0x10f   : > { %v1230_v2 = vadd.f32 %v1229_v59, %v790_v60  ;;  %v371_v63 = vld [vmem:[%s2205_s11 + $0x610] sm:$0xff] }
 0x110   : > { %v794_v4 = vpop.f32.mrf.mxu0  ;;  %1033 = vmatmul.mubr.f32.gmra.mxu0 %v348_v61  ;;  %v1234_v5 = vpop.f32.mrf.mxu1  ;;  %2059 = vmatmul.mubr.msk.f32.gmra.mxu1 %vm433_vm0, %v350_v62  ;;  %v369_v62 = vld [vmem:[%s2205_s11 + $0x600] sm:$0xff] }
 0x111   : > { %1572 = vst.msk [vmem:[%s2567_s23 + $0x40] sm:$0xff] %vm1563_vm2, %v1230_v2  ;;  %v795_v6 = vadd.f32 %v2554_v46, %v794_v4  ;;  %1037 = vmatprep.mubr.f32.mxu0 %v352_v1  ;;  %2061 = vmatprep.mubr.msk.f32.mxu1 %vm2133_vm1, %v2132_v3  ;;  %v373_v2 = vld [vmem:[%s2205_s11 + $0x620] sm:$0xff] }
 0x112   : > { %v796_v9 = vpop.f32.mrf.mxu0  ;;  %v1916_v10 = vpop.f32.mrf.mxu1 }
 0x113   : > { %v1235_v12 = vadd.f32 %v1234_v5, %v795_v6  ;;  %v374_v9 = vld [vmem:[%s2205_s11 + $0x628] sm:$0xff] }
 0x114   : > { %v799_v13 = vpop.f32.mrf.mxu0  ;;  %1038 = vmatmul.mubr.f32.gmra.mxu0 %v351_v7  ;;  %v1239_v14 = vpop.f32.mrf.mxu1  ;;  %2062 = vmatmul.mubr.msk.f32.gmra.mxu1 %vm433_vm0, %v353_v8  ;;  %v372_v8 = vld [vmem:[%s2205_s11 + $0x618] sm:$0xff] }
 0x115   : > { %1573 = vst.msk [vmem:[%s2567_s23 + $0x48] sm:$0xff] %vm1563_vm2, %v1235_v12  ;;  %v800_v15 = vadd.f32 %v2554_v46, %v799_v13  ;;  %1042 = vmatprep.mubr.f32.mxu0 %v355_v11  ;;  %2064 = vmatprep.mubr.msk.f32.mxu1 %vm2133_vm1, %v2132_v3  ;;  %v376_v12 = vld [vmem:[%s2205_s11 + $0x638] sm:$0xff] }
 0x116   : > { %v801_v18 = vpop.f32.mrf.mxu0  ;;  %v1919_v19 = vpop.f32.mrf.mxu1 }
 0x117   : > { %v1240_v21 = vadd.f32 %v1239_v14, %v800_v15  ;;  %v377_v18 = vld [vmem:[%s2205_s11 + $0x640] sm:$0xff] }
 0x118   : > { %v804_v22 = vpop.f32.mrf.mxu0  ;;  %1043 = vmatmul.mubr.f32.gmra.mxu0 %v354_v16  ;;  %v1244_v23 = vpop.f32.mrf.mxu1  ;;  %2065 = vmatmul.mubr.msk.f32.gmra.mxu1 %vm433_vm0, %v356_v17  ;;  %v375_v17 = vld [vmem:[%s2205_s11 + $0x630] sm:$0xff] }
 0x119   : > { %1574 = vst.msk [vmem:[%s2567_s23 + $0x50] sm:$0xff] %vm1563_vm2, %v1240_v21  ;;  %v805_v24 = vadd.f32 %v2554_v46, %v804_v22  ;;  %1047 = vmatprep.mubr.f32.mxu0 %v358_v20  ;;  %2067 = vmatprep.mubr.msk.f32.mxu1 %vm2133_vm1, %v2132_v3  ;;  %v379_v21 = vld [vmem:[%s2205_s11 + $0x650] sm:$0xff] }
 0x11a   : > { %v806_v27 = vpop.f32.mrf.mxu0  ;;  %v1922_v28 = vpop.f32.mrf.mxu1 }
 0x11b   : > { %v1245_v30 = vadd.f32 %v1244_v23, %v805_v24  ;;  %v380_v27 = vld [vmem:[%s2205_s11 + $0x658] sm:$0xff] }
 0x11c   : > { %v809_v31 = vpop.f32.mrf.mxu0  ;;  %1048 = vmatmul.mubr.f32.gmra.mxu0 %v357_v25  ;;  %v1249_v32 = vpop.f32.mrf.mxu1  ;;  %2068 = vmatmul.mubr.msk.f32.gmra.mxu1 %vm433_vm0, %v359_v26  ;;  %v378_v26 = vld [vmem:[%s2205_s11 + $0x648] sm:$0xff] }
 0x11d   : > { %1575 = vst.msk [vmem:[%s2567_s23 + $0x58] sm:$0xff] %vm1563_vm2, %v1245_v30  ;;  %v810_v33 = vadd.f32 %v2554_v46, %v809_v31  ;;  %1052 = vmatprep.mubr.f32.mxu0 %v361_v29  ;;  %2070 = vmatprep.mubr.msk.f32.mxu1 %vm2133_vm1, %v2132_v3  ;;  %v382_v30 = vld [vmem:[%s2205_s11 + $0x668] sm:$0xff] }
 0x11e   : > { %v811_v36 = vpop.f32.mrf.mxu0  ;;  %v1925_v37 = vpop.f32.mrf.mxu1 }
 0x11f   : > { %v1250_v39 = vadd.f32 %v1249_v32, %v810_v33  ;;  %v383_v36 = vld [vmem:[%s2205_s11 + $0x670] sm:$0xff] }
 0x120   : > { %v814_v40 = vpop.f32.mrf.mxu0  ;;  %1053 = vmatmul.mubr.f32.gmra.mxu0 %v360_v34  ;;  %v1254_v41 = vpop.f32.mrf.mxu1  ;;  %2071 = vmatmul.mubr.msk.f32.gmra.mxu1 %vm433_vm0, %v362_v35  ;;  %v381_v35 = vld [vmem:[%s2205_s11 + $0x660] sm:$0xff] }
 0x121   : > { %1576 = vst.msk [vmem:[%s2567_s23 + $0x60] sm:$0xff] %vm1563_vm2, %v1250_v39  ;;  %v815_v42 = vadd.f32 %v2554_v46, %v814_v40  ;;  %1057 = vmatprep.mubr.f32.mxu0 %v364_v38  ;;  %2073 = vmatprep.mubr.msk.f32.mxu1 %vm2133_vm1, %v2132_v3  ;;  %v385_v39 = vld [vmem:[%s2205_s11 + $0x680] sm:$0xff] }
 0x122   : > { %v816_v45 = vpop.f32.mrf.mxu0  ;;  %v1928_v47 = vpop.f32.mrf.mxu1 }
 0x123   : > { %v1255_v49 = vadd.f32 %v1254_v41, %v815_v42  ;;  %v386_v45 = vld [vmem:[%s2205_s11 + $0x688] sm:$0xff] }
 0x124   : > { %v819_v50 = vpop.f32.mrf.mxu0  ;;  %1058 = vmatmul.mubr.f32.gmra.mxu0 %v363_v43  ;;  %v1259_v51 = vpop.f32.mrf.mxu1  ;;  %2074 = vmatmul.mubr.msk.f32.gmra.mxu1 %vm433_vm0, %v365_v44  ;;  %v384_v44 = vld [vmem:[%s2205_s11 + $0x678] sm:$0xff] }
 0x125   : > { %1577 = vst.msk [vmem:[%s2567_s23 + $0x68] sm:$0xff] %vm1563_vm2, %v1255_v49  ;;  %v820_v52 = vadd.f32 %v2554_v46, %v819_v50  ;;  %1062 = vmatprep.mubr.f32.mxu0 %v367_v48  ;;  %2076 = vmatprep.mubr.msk.f32.mxu1 %vm2133_vm1, %v2132_v3  ;;  %v388_v49 = vld [vmem:[%s2205_s11 + $0x698] sm:$0xff] }
 0x126   : > { %v821_v55 = vpop.f32.mrf.mxu0  ;;  %v1931_v56 = vpop.f32.mrf.mxu1 }
 0x127   : > { %v1260_v58 = vadd.f32 %v1259_v51, %v820_v52  ;;  %v389_v55 = vld [vmem:[%s2205_s11 + $0x6a0] sm:$0xff] }
 0x128   : > { %v824_v59 = vpop.f32.mrf.mxu0  ;;  %1063 = vmatmul.mubr.f32.gmra.mxu0 %v366_v53  ;;  %v1264_v60 = vpop.f32.mrf.mxu1  ;;  %2077 = vmatmul.mubr.msk.f32.gmra.mxu1 %vm433_vm0, %v368_v54  ;;  %v387_v54 = vld [vmem:[%s2205_s11 + $0x690] sm:$0xff] }
 0x129   : > { %1578 = vst.msk [vmem:[%s2567_s23 + $0x70] sm:$0xff] %vm1563_vm2, %v1260_v58  ;;  %v825_v61 = vadd.f32 %v2554_v46, %v824_v59  ;;  %1067 = vmatprep.mubr.f32.mxu0 %v370_v57  ;;  %2079 = vmatprep.mubr.msk.f32.mxu1 %vm2133_vm1, %v2132_v3  ;;  %v391_v58 = vld [vmem:[%s2205_s11 + $0x6b0] sm:$0xff] }
 0x12a   : > { %v826_v0 = vpop.f32.mrf.mxu0  ;;  %v1934_v1 = vpop.f32.mrf.mxu1 }
 0x12b   : > { %v1265_v4 = vadd.f32 %v1264_v60, %v825_v61  ;;  %v392_v0 = vld [vmem:[%s2205_s11 + $0x6b8] sm:$0xff] }
 0x12c   : > { %v829_v5 = vpop.f32.mrf.mxu0  ;;  %1068 = vmatmul.mubr.f32.gmra.mxu0 %v369_v62  ;;  %v1269_v6 = vpop.f32.mrf.mxu1  ;;  %2080 = vmatmul.mubr.msk.f32.gmra.mxu1 %vm433_vm0, %v371_v63  ;;  %v390_v63 = vld [vmem:[%s2205_s11 + $0x6a8] sm:$0xff] }
 0x12d   : > { %1579 = vst.msk [vmem:[%s2567_s23 + $0x78] sm:$0xff] %vm1563_vm2, %v1265_v4  ;;  %v830_v7 = vadd.f32 %v2554_v46, %v829_v5  ;;  %1072 = vmatprep.mubr.f32.mxu0 %v373_v2  ;;  %2082 = vmatprep.mubr.msk.f32.mxu1 %vm2133_vm1, %v2132_v3  ;;  %v394_v4 = vld [vmem:[%s2205_s11 + $0x6c8] sm:$0xff] }
 0x12e   : > { %v831_v10 = vpop.f32.mrf.mxu0  ;;  %v1937_v11 = vpop.f32.mrf.mxu1 }
 0x12f   : > { %v1270_v13 = vadd.f32 %v1269_v6, %v830_v7  ;;  %v395_v10 = vld [vmem:[%s2205_s11 + $0x6d0] sm:$0xff] }
 0x130   : > { %v834_v14 = vpop.f32.mrf.mxu0  ;;  %1073 = vmatmul.mubr.f32.gmra.mxu0 %v372_v8  ;;  %v1274_v15 = vpop.f32.mrf.mxu1  ;;  %2083 = vmatmul.mubr.msk.f32.gmra.mxu1 %vm433_vm0, %v374_v9  ;;  %v393_v9 = vld [vmem:[%s2205_s11 + $0x6c0] sm:$0xff] }
 0x131   : > { %1580 = vst.msk [vmem:[%s2567_s23 + $0x80] sm:$0xff] %vm1563_vm2, %v1270_v13  ;;  %v835_v16 = vadd.f32 %v2554_v46, %v834_v14  ;;  %1077 = vmatprep.mubr.f32.mxu0 %v376_v12  ;;  %2085 = vmatprep.mubr.msk.f32.mxu1 %vm2133_vm1, %v2132_v3  ;;  %v397_v13 = vld [vmem:[%s2205_s11 + $0x6e0] sm:$0xff] }
 0x132   : > { %v836_v19 = vpop.f32.mrf.mxu0  ;;  %v1940_v20 = vpop.f32.mrf.mxu1 }
 0x133   : > { %v1275_v22 = vadd.f32 %v1274_v15, %v835_v16  ;;  %v398_v19 = vld [vmem:[%s2205_s11 + $0x6e8] sm:$0xff] }
 0x134   : > { %v839_v23 = vpop.f32.mrf.mxu0  ;;  %1078 = vmatmul.mubr.f32.gmra.mxu0 %v375_v17  ;;  %v1279_v24 = vpop.f32.mrf.mxu1  ;;  %2086 = vmatmul.mubr.msk.f32.gmra.mxu1 %vm433_vm0, %v377_v18  ;;  %v396_v18 = vld [vmem:[%s2205_s11 + $0x6d8] sm:$0xff] }
 0x135   : > { %1581 = vst.msk [vmem:[%s2567_s23 + $0x88] sm:$0xff] %vm1563_vm2, %v1275_v22  ;;  %v840_v25 = vadd.f32 %v2554_v46, %v839_v23  ;;  %1082 = vmatprep.mubr.f32.mxu0 %v379_v21  ;;  %2088 = vmatprep.mubr.msk.f32.mxu1 %vm2133_vm1, %v2132_v3  ;;  %v400_v22 = vld [vmem:[%s2205_s11 + $0x6f8] sm:$0xff] }
 0x136   : > { %v841_v28 = vpop.f32.mrf.mxu0  ;;  %v1943_v29 = vpop.f32.mrf.mxu1 }
 0x137   : > { %v1280_v31 = vadd.f32 %v1279_v24, %v840_v25  ;;  %v401_v28 = vld [vmem:[%s2205_s11 + $0x700] sm:$0xff] }
 0x138   : > { %v844_v32 = vpop.f32.mrf.mxu0  ;;  %1083 = vmatmul.mubr.f32.gmra.mxu0 %v378_v26  ;;  %v1284_v33 = vpop.f32.mrf.mxu1  ;;  %2089 = vmatmul.mubr.msk.f32.gmra.mxu1 %vm433_vm0, %v380_v27  ;;  %v399_v27 = vld [vmem:[%s2205_s11 + $0x6f0] sm:$0xff] }
 0x139   : > { %1582 = vst.msk [vmem:[%s2567_s23 + $0x90] sm:$0xff] %vm1563_vm2, %v1280_v31  ;;  %v845_v34 = vadd.f32 %v2554_v46, %v844_v32  ;;  %1087 = vmatprep.mubr.f32.mxu0 %v382_v30  ;;  %2091 = vmatprep.mubr.msk.f32.mxu1 %vm2133_vm1, %v2132_v3 }
 0x13a   : > { %v846_v37 = vpop.f32.mrf.mxu0  ;;  %v1946_v38 = vpop.f32.mrf.mxu1 }
 0x13b   : > { %v1285_v40 = vadd.f32 %v1284_v33, %v845_v34 }
 0x13c   : > { %v849_v41 = vpop.f32.mrf.mxu0  ;;  %1088 = vmatmul.mubr.f32.gmra.mxu0 %v381_v35  ;;  %v1289_v42 = vpop.f32.mrf.mxu1  ;;  %2092 = vmatmul.mubr.msk.f32.gmra.mxu1 %vm433_vm0, %v383_v36 }
 0x13d   : > { %1583 = vst.msk [vmem:[%s2567_s23 + $0x98] sm:$0xff] %vm1563_vm2, %v1285_v40  ;;  %v850_v43 = vadd.f32 %v2554_v46, %v849_v41  ;;  %1092 = vmatprep.mubr.f32.mxu0 %v385_v39  ;;  %2094 = vmatprep.mubr.msk.f32.mxu1 %vm2133_vm1, %v2132_v3 }
 0x13e   : > { %v851_v47 = vpop.f32.mrf.mxu0  ;;  %v1949_v48 = vpop.f32.mrf.mxu1 }
 0x13f   : > { %v1290_v50 = vadd.f32 %v1289_v42, %v850_v43 }
 0x140   : > { %v854_v51 = vpop.f32.mrf.mxu0  ;;  %1093 = vmatmul.mubr.f32.gmra.mxu0 %v384_v44  ;;  %v1294_v52 = vpop.f32.mrf.mxu1  ;;  %2095 = vmatmul.mubr.msk.f32.gmra.mxu1 %vm433_vm0, %v386_v45 }
 0x141   : > { %1584 = vst.msk [vmem:[%s2567_s23 + $0xa0] sm:$0xff] %vm1563_vm2, %v1290_v50  ;;  %v855_v53 = vadd.f32 %v2554_v46, %v854_v51  ;;  %1097 = vmatprep.mubr.f32.mxu0 %v388_v49  ;;  %2097 = vmatprep.mubr.msk.f32.mxu1 %vm2133_vm1, %v2132_v3 }
 0x142   : > { %v856_v56 = vpop.f32.mrf.mxu0  ;;  %v1952_v57 = vpop.f32.mrf.mxu1 }
 0x143   : > { %v1295_v59 = vadd.f32 %v1294_v52, %v855_v53 }
 0x144   : > { %v859_v60 = vpop.f32.mrf.mxu0  ;;  %1098 = vmatmul.mubr.f32.gmra.mxu0 %v387_v54  ;;  %v1299_v61 = vpop.f32.mrf.mxu1  ;;  %2098 = vmatmul.mubr.msk.f32.gmra.mxu1 %vm433_vm0, %v389_v55 }
 0x145   : > { %1585 = vst.msk [vmem:[%s2567_s23 + $0xa8] sm:$0xff] %vm1563_vm2, %v1295_v59  ;;  %v860_v62 = vadd.f32 %v2554_v46, %v859_v60  ;;  %1102 = vmatprep.mubr.f32.mxu0 %v391_v58  ;;  %2100 = vmatprep.mubr.msk.f32.mxu1 %vm2133_vm1, %v2132_v3 }
 0x146   : > { %v861_v1 = vpop.f32.mrf.mxu0  ;;  %v1955_v2 = vpop.f32.mrf.mxu1 }
 0x147   : > { %v1300_v5 = vadd.f32 %v1299_v61, %v860_v62 }
 0x148   : > { %v864_v6 = vpop.f32.mrf.mxu0  ;;  %1103 = vmatmul.mubr.f32.gmra.mxu0 %v390_v63  ;;  %v1304_v7 = vpop.f32.mrf.mxu1  ;;  %2101 = vmatmul.mubr.msk.f32.gmra.mxu1 %vm433_vm0, %v392_v0 }
 0x149   : > { %1586 = vst.msk [vmem:[%s2567_s23 + $0xb0] sm:$0xff] %vm1563_vm2, %v1300_v5  ;;  %v865_v8 = vadd.f32 %v2554_v46, %v864_v6  ;;  %1107 = vmatprep.mubr.f32.mxu0 %v394_v4  ;;  %2103 = vmatprep.mubr.msk.f32.mxu1 %vm2133_vm1, %v2132_v3 }
 0x14a   : > { %v866_v11 = vpop.f32.mrf.mxu0  ;;  %v1958_v12 = vpop.f32.mrf.mxu1 }
 0x14b   : > { %v1305_v14 = vadd.f32 %v1304_v7, %v865_v8 }
 0x14c   : > { %v869_v15 = vpop.f32.mrf.mxu0  ;;  %1108 = vmatmul.mubr.f32.gmra.mxu0 %v393_v9  ;;  %v1309_v16 = vpop.f32.mrf.mxu1  ;;  %2104 = vmatmul.mubr.msk.f32.gmra.mxu1 %vm433_vm0, %v395_v10 }
 0x14d   : > { %1587 = vst.msk [vmem:[%s2567_s23 + $0xb8] sm:$0xff] %vm1563_vm2, %v1305_v14  ;;  %v870_v17 = vadd.f32 %v2554_v46, %v869_v15  ;;  %1112 = vmatprep.mubr.f32.mxu0 %v397_v13  ;;  %2106 = vmatprep.mubr.msk.f32.mxu1 %vm2133_vm1, %v2132_v3 }
 0x14e   : > { %v871_v20 = vpop.f32.mrf.mxu0  ;;  %v1961_v21 = vpop.f32.mrf.mxu1 }
 0x14f   : > { %v1310_v23 = vadd.f32 %v1309_v16, %v870_v17 }
 0x150   : > { %v874_v24 = vpop.f32.mrf.mxu0  ;;  %1113 = vmatmul.mubr.f32.gmra.mxu0 %v396_v18  ;;  %v1314_v25 = vpop.f32.mrf.mxu1  ;;  %2107 = vmatmul.mubr.msk.f32.gmra.mxu1 %vm433_vm0, %v398_v19 }
 0x151   : > { %1588 = vst.msk [vmem:[%s2567_s23 + $0xc0] sm:$0xff] %vm1563_vm2, %v1310_v23  ;;  %v875_v26 = vadd.f32 %v2554_v46, %v874_v24  ;;  %1117 = vmatprep.mubr.f32.mxu0 %v400_v22  ;;  %2109 = vmatprep.mubr.msk.f32.mxu1 %vm2133_vm1, %v2132_v3 }
 0x152   : > { %v876_v29 = vpop.f32.mrf.mxu0  ;;  %v1964_v30 = vpop.f32.mrf.mxu1 }
 0x153   : > { %v1315_v31 = vadd.f32 %v1314_v25, %v875_v26 }
 0x154   : > { %v879_v32 = vpop.f32.mrf.mxu0  ;;  %1118 = vmatmul.mubr.f32.gmra.mxu0 %v399_v27  ;;  %v1319_v33 = vpop.f32.mrf.mxu1  ;;  %2110 = vmatmul.mubr.msk.f32.gmra.mxu1 %vm433_vm0, %v401_v28 }
 0x155   : > { %1589 = vst.msk [vmem:[%s2567_s23 + $0xc8] sm:$0xff] %vm1563_vm2, %v1315_v31  ;;  %v880_v34 = vadd.f32 %v2554_v46, %v879_v32 }
 0x156   : > { %v881_v35 = vpop.f32.mrf.mxu0  ;;  %v1967_v36 = vpop.f32.mrf.mxu1 }
 0x157   : > { %v1320_v37 = vadd.f32 %v1319_v33, %v880_v34 }
 0x158   : > { %v884_v3 = vpop.f32.mrf.mxu0  ;;  %v1324_v38 = vpop.f32.mrf.mxu1 }
 0x159   : > { %1590 = vst.msk [vmem:[%s2567_s23 + $0xd0] sm:$0xff] %vm1563_vm2, %v1320_v37  ;;  %v885_v39 = vadd.f32 %v2554_v46, %v884_v3 }
 0x15a   : > { %v886_v40 = vpop.f32.mrf.mxu0  ;;  %v1970_v41 = vpop.f32.mrf.mxu1 }
 0x15b   : > { %v1325_v42 = vadd.f32 %v1324_v38, %v885_v39 }
 0x15c   : > { %v889_v43 = vpop.f32.mrf.mxu0  ;;  %v1329_v44 = vpop.f32.mrf.mxu1 }
 0x15d   : > { %1591 = vst.msk [vmem:[%s2567_s23 + $0xd8] sm:$0xff] %vm1563_vm2, %v1325_v42  ;;  %v890_v45 = vadd.f32 %v2554_v46, %v889_v43 }
 0x15e   : > { %v891_v47 = vpop.f32.mrf.mxu0  ;;  %v1973_v48 = vpop.f32.mrf.mxu1 }
 0x15f   : > { %v1330_v49 = vadd.f32 %v1329_v44, %v890_v45 }
 0x160   : > { %v894_v50 = vpop.f32.mrf.mxu0  ;;  %v1334_v51 = vpop.f32.mrf.mxu1 }
 0x161   : > { %1592 = vst.msk [vmem:[%s2567_s23 + $0xe0] sm:$0xff] %vm1563_vm2, %v1330_v49  ;;  %v895_v52 = vadd.f32 %v2554_v46, %v894_v50 }
 0x162   : > { %v896_v53 = vpop.f32.mrf.mxu0  ;;  %v1976_v54 = vpop.f32.mrf.mxu1 }
 0x163   : > { %v1335_v55 = vadd.f32 %v1334_v51, %v895_v52 }
 0x164   : > { %v899_v56 = vpop.f32.mrf.mxu0  ;;  %v1339_v57 = vpop.f32.mrf.mxu1 }
 0x165   : > { %1593 = vst.msk [vmem:[%s2567_s23 + $0xe8] sm:$0xff] %vm1563_vm2, %v1335_v55  ;;  %v900_v58 = vadd.f32 %v2554_v46, %v899_v56 }
 0x166   : > { %v901_v59 = vpop.f32.mrf.mxu0  ;;  %v1979_v60 = vpop.f32.mrf.mxu1 }
 0x167   : > { %v1340_v61 = vadd.f32 %v1339_v57, %v900_v58 }
 0x168   : > { %v904_v62 = vpop.f32.mrf.mxu0  ;;  %v1344_v63 = vpop.f32.mrf.mxu1 }
 0x169   : > { %1594 = vst.msk [vmem:[%s2567_s23 + $0xf0] sm:$0xff] %vm1563_vm2, %v1340_v61  ;;  %v905_v0 = vadd.f32 %v2554_v46, %v904_v62 }
 0x16a   : > { %v906_v1 = vpop.f32.mrf.mxu0  ;;  %v1982_v2 = vpop.f32.mrf.mxu1 }
 0x16b   : > { %v1345_v4 = vadd.f32 %v1344_v63, %v905_v0 }
 0x16c   : > { %v909_v5 = vpop.f32.mrf.mxu0  ;;  %v1349_v6 = vpop.f32.mrf.mxu1 }
 0x16d   : > { %1595 = vst.msk [vmem:[%s2567_s23 + $0xf8] sm:$0xff] %vm1563_vm2, %v1345_v4  ;;  %v910_v7 = vadd.f32 %v2554_v46, %v909_v5 }
 0x16e   : > { %v911_v8 = vpop.f32.mrf.mxu0  ;;  %v1985_v9 = vpop.f32.mrf.mxu1 }
 0x16f   : > { %v1350_v10 = vadd.f32 %v1349_v6, %v910_v7 }
 0x170   : > { %v914_v11 = vpop.f32.mrf.mxu0  ;;  %v1354_v12 = vpop.f32.mrf.mxu1 }
 0x171   : > { %1596 = vst.msk [vmem:[%s2567_s23 + $0x100] sm:$0xff] %vm1563_vm2, %v1350_v10  ;;  %v915_v13 = vadd.f32 %v2554_v46, %v914_v11 }
 0x172   : > { %v916_v14 = vpop.f32.mrf.mxu0  ;;  %v1988_v15 = vpop.f32.mrf.mxu1 }
 0x173   : > { %v1355_v16 = vadd.f32 %v1354_v12, %v915_v13 }
 0x174   : > { %v919_v17 = vpop.f32.mrf.mxu0  ;;  %v1359_v18 = vpop.f32.mrf.mxu1 }
 0x175   : > { %1597 = vst.msk [vmem:[%s2567_s23 + $0x108] sm:$0xff] %vm1563_vm2, %v1355_v16  ;;  %v920_v19 = vadd.f32 %v2554_v46, %v919_v17 }
 0x176   : > { %v921_v20 = vpop.f32.mrf.mxu0  ;;  %v1991_v21 = vpop.f32.mrf.mxu1 }
 0x177   : > { %v1360_v22 = vadd.f32 %v1359_v18, %v920_v19 }
 0x178   : > { %v924_v23 = vpop.f32.mrf.mxu0  ;;  %v1364_v24 = vpop.f32.mrf.mxu1 }
 0x179   : > { %1598 = vst.msk [vmem:[%s2567_s23 + $0x110] sm:$0xff] %vm1563_vm2, %v1360_v22  ;;  %v925_v25 = vadd.f32 %v2554_v46, %v924_v23 }
 0x17a   : > { %v926_v26 = vpop.f32.mrf.mxu0  ;;  %v1994_v27 = vpop.f32.mrf.mxu1 }
 0x17b   : > { %v1365_v28 = vadd.f32 %v1364_v24, %v925_v25 }
 0x17c   : > { %v929_v29 = vpop.f32.mrf.mxu0  ;;  %v1369_v30 = vpop.f32.mrf.mxu1 }
 0x17d   : > { %1599 = vst.msk [vmem:[%s2567_s23 + $0x118] sm:$0xff] %vm1563_vm2, %v1365_v28  ;;  %v930_v31 = vadd.f32 %v2554_v46, %v929_v29  ;;  %v2860_v28 = vld [vmem:[%s2954_s2] ss:$0 sm:$0xff] }
 0x17e   : > { %v931_v32 = vpop.f32.mrf.mxu0  ;;  %v1997_v33 = vpop.f32.mrf.mxu1 }
 0x17f   : > { %v1370_v34 = vadd.f32 %v1369_v30, %v930_v31 }
 0x180   : > { %v934_v35 = vpop.f32.mrf.mxu0  ;;  %v1374_v36 = vpop.f32.mrf.mxu1 }
 0x181   : > { %1600 = vst.msk [vmem:[%s2567_s23 + $0x120] sm:$0xff] %vm1563_vm2, %v1370_v34  ;;  %v935_v37 = vadd.f32 %v2554_v46, %v934_v35 }
 0x182   : > { %v936_v3 = vpop.f32.mrf.mxu0  ;;  %v2000_v38 = vpop.f32.mrf.mxu1 }
 0x183   : > { %v1375_v39 = vadd.f32 %v1374_v36, %v935_v37 }
 0x184   : > { %v939_v40 = vpop.f32.mrf.mxu0  ;;  %v1379_v41 = vpop.f32.mrf.mxu1 }
 0x185   : > { %1601 = vst.msk [vmem:[%s2567_s23 + $0x128] sm:$0xff] %vm1563_vm2, %v1375_v39  ;;  %v940_v42 = vadd.f32 %v2554_v46, %v939_v40 }
 0x186   : > { %v941_v43 = vpop.f32.mrf.mxu0  ;;  %v2003_v44 = vpop.f32.mrf.mxu1 }
 0x187   : > { %v1380_v45 = vadd.f32 %v1379_v41, %v940_v42 }
 0x188   : > { %v944_v47 = vpop.f32.mrf.mxu0  ;;  %v1384_v48 = vpop.f32.mrf.mxu1 }
 0x189   : > { %1602 = vst.msk [vmem:[%s2567_s23 + $0x130] sm:$0xff] %vm1563_vm2, %v1380_v45  ;;  %v945_v49 = vadd.f32 %v2554_v46, %v944_v47 }
 0x18a   : > { %v946_v50 = vpop.f32.mrf.mxu0  ;;  %v2006_v51 = vpop.f32.mrf.mxu1 }
 0x18b   : > { %v1385_v52 = vadd.f32 %v1384_v48, %v945_v49 }
 0x18c   : > { %v949_v53 = vpop.f32.mrf.mxu0  ;;  %v1389_v54 = vpop.f32.mrf.mxu1 }
 0x18d   : > { %1603 = vst.msk [vmem:[%s2567_s23 + $0x138] sm:$0xff] %vm1563_vm2, %v1385_v52  ;;  %v950_v55 = vadd.f32 %v2554_v46, %v949_v53 }
 0x18e   : > { %v951_v56 = vpop.f32.mrf.mxu0  ;;  %v2009_v57 = vpop.f32.mrf.mxu1 }
 0x18f   : > { %v1390_v58 = vadd.f32 %v1389_v54, %v950_v55 }
 0x190   : > { %v954_v59 = vpop.f32.mrf.mxu0  ;;  %v1394_v60 = vpop.f32.mrf.mxu1 }
 0x191   : > { %1604 = vst.msk [vmem:[%s2567_s23 + $0x140] sm:$0xff] %vm1563_vm2, %v1390_v58  ;;  %v955_v61 = vadd.f32 %v2554_v46, %v954_v59 }
 0x192   : > { %v956_v62 = vpop.f32.mrf.mxu0  ;;  %v2012_v63 = vpop.f32.mrf.mxu1 }
 0x193   : > { %v1395_v0 = vadd.f32 %v1394_v60, %v955_v61 }
 0x194   : > { %v959_v1 = vpop.f32.mrf.mxu0  ;;  %v1399_v2 = vpop.f32.mrf.mxu1 }
 0x195   : > { %1605 = vst.msk [vmem:[%s2567_s23 + $0x148] sm:$0xff] %vm1563_vm2, %v1395_v0  ;;  %v960_v4 = vadd.f32 %v2554_v46, %v959_v1 }
 0x196   : > { %v961_v5 = vpop.f32.mrf.mxu0  ;;  %v2015_v6 = vpop.f32.mrf.mxu1 }
 0x197   : > { %v1400_v7 = vadd.f32 %v1399_v2, %v960_v4 }
 0x198   : > { %v964_v8 = vpop.f32.mrf.mxu0  ;;  %v1404_v9 = vpop.f32.mrf.mxu1 }
 0x199   : > { %1606 = vst.msk [vmem:[%s2567_s23 + $0x150] sm:$0xff] %vm1563_vm2, %v1400_v7  ;;  %v965_v10 = vadd.f32 %v2554_v46, %v964_v8 }
 0x19a   : > { %v966_v11 = vpop.f32.mrf.mxu0  ;;  %v2018_v12 = vpop.f32.mrf.mxu1 }
 0x19b   : > { %v1405_v13 = vadd.f32 %v1404_v9, %v965_v10 }
 0x19c   : > { %v969_v14 = vpop.f32.mrf.mxu0  ;;  %v1409_v15 = vpop.f32.mrf.mxu1 }
 0x19d   : > { %1607 = vst.msk [vmem:[%s2567_s23 + $0x158] sm:$0xff] %vm1563_vm2, %v1405_v13  ;;  %v970_v16 = vadd.f32 %v2554_v46, %v969_v14 }
 0x19e   : > { %v971_v17 = vpop.f32.mrf.mxu0  ;;  %v2021_v18 = vpop.f32.mrf.mxu1 }
 0x19f   : > { %v1410_v19 = vadd.f32 %v1409_v15, %v970_v16 }
 0x1a0   : > { %v974_v20 = vpop.f32.mrf.mxu0  ;;  %v1414_v21 = vpop.f32.mrf.mxu1 }
 0x1a1   : > { %1608 = vst.msk [vmem:[%s2567_s23 + $0x160] sm:$0xff] %vm1563_vm2, %v1410_v19  ;;  %v975_v22 = vadd.f32 %v2554_v46, %v974_v20 }
 0x1a2   : > { %v976_v23 = vpop.f32.mrf.mxu0  ;;  %v2024_v24 = vpop.f32.mrf.mxu1 }
 0x1a3   : > { %v1415_v25 = vadd.f32 %v1414_v21, %v975_v22 }
 0x1a4   : > { %v979_v26 = vpop.f32.mrf.mxu0  ;;  %v1419_v27 = vpop.f32.mrf.mxu1 }
 0x1a5   : > { %1609 = vst.msk [vmem:[%s2567_s23 + $0x168] sm:$0xff] %vm1563_vm2, %v1415_v25  ;;  %v980_v29 = vadd.f32 %v2860_v28, %v979_v26 }
 0x1a6   : > { %v981_v30 = vpop.f32.mrf.mxu0  ;;  %v2027_v31 = vpop.f32.mrf.mxu1 }
 0x1a7   : > { %v1420_v32 = vadd.f32 %v1419_v27, %v980_v29 }
 0x1a8   : > { %v984_v33 = vpop.f32.mrf.mxu0  ;;  %v1424_v46 = vpop.f32.mrf.mxu1 }
 0x1a9   : > { %1610 = vst.msk [vmem:[%s2567_s23 + $0x170] sm:$0xff] %vm1563_vm2, %v1420_v32  ;;  %v985_v34 = vadd.f32 %v2860_v28, %v984_v33 }
 0x1aa   : > { %v986_v35 = vpop.f32.mrf.mxu0  ;;  %v2030_v36 = vpop.f32.mrf.mxu1 }
 0x1ab   : > { %v1425_v37 = vadd.f32 %v1424_v46, %v985_v34 }
 0x1ac   : > { %v989_v3 = vpop.f32.mrf.mxu0  ;;  %v1429_v38 = vpop.f32.mrf.mxu1 }
 0x1ad   : > { %1611 = vst.msk [vmem:[%s2567_s23 + $0x178] sm:$0xff] %vm1563_vm2, %v1425_v37  ;;  %v990_v39 = vadd.f32 %v2860_v28, %v989_v3 }
 0x1ae   : > { %v991_v40 = vpop.f32.mrf.mxu0  ;;  %v2033_v41 = vpop.f32.mrf.mxu1 }
 0x1af   : > { %v1430_v42 = vadd.f32 %v1429_v38, %v990_v39 }
 0x1b0   : > { %v994_v43 = vpop.f32.mrf.mxu0  ;;  %v1434_v44 = vpop.f32.mrf.mxu1 }
 0x1b1   : > { %1612 = vst.msk [vmem:[%s2567_s23 + $0x180] sm:$0xff] %vm1563_vm2, %v1430_v42  ;;  %v995_v45 = vadd.f32 %v2860_v28, %v994_v43 }
 0x1b2   : > { %v996_v47 = vpop.f32.mrf.mxu0  ;;  %v2036_v48 = vpop.f32.mrf.mxu1 }
 0x1b3   : > { %v1435_v49 = vadd.f32 %v1434_v44, %v995_v45 }
 0x1b4   : > { %v999_v50 = vpop.f32.mrf.mxu0  ;;  %v1439_v51 = vpop.f32.mrf.mxu1 }
 0x1b5   : > { %1613 = vst.msk [vmem:[%s2567_s23 + $0x188] sm:$0xff] %vm1563_vm2, %v1435_v49  ;;  %v1000_v52 = vadd.f32 %v2860_v28, %v999_v50 }
 0x1b6   : > { %v1001_v53 = vpop.f32.mrf.mxu0  ;;  %v2039_v54 = vpop.f32.mrf.mxu1 }
 0x1b7   : > { %v1440_v55 = vadd.f32 %v1439_v51, %v1000_v52 }
 0x1b8   : > { %v1004_v56 = vpop.f32.mrf.mxu0  ;;  %v1444_v57 = vpop.f32.mrf.mxu1 }
 0x1b9   : > { %1614 = vst.msk [vmem:[%s2567_s23 + $0x190] sm:$0xff] %vm1563_vm2, %v1440_v55  ;;  %v1005_v58 = vadd.f32 %v2860_v28, %v1004_v56 }
 0x1ba   : > { %v1006_v59 = vpop.f32.mrf.mxu0  ;;  %v2042_v60 = vpop.f32.mrf.mxu1 }
 0x1bb   : > { %v1445_v61 = vadd.f32 %v1444_v57, %v1005_v58 }
 0x1bc   : > { %v1009_v62 = vpop.f32.mrf.mxu0  ;;  %v1449_v63 = vpop.f32.mrf.mxu1 }
 0x1bd   : > { %1615 = vst.msk [vmem:[%s2567_s23 + $0x198] sm:$0xff] %vm1563_vm2, %v1445_v61  ;;  %v1010_v0 = vadd.f32 %v2860_v28, %v1009_v62 }
 0x1be   : > { %v1011_v1 = vpop.f32.mrf.mxu0  ;;  %v2045_v2 = vpop.f32.mrf.mxu1 }
 0x1bf   : > { %v1450_v4 = vadd.f32 %v1449_v63, %v1010_v0 }
 0x1c0   : > { %v1014_v5 = vpop.f32.mrf.mxu0  ;;  %v1454_v6 = vpop.f32.mrf.mxu1 }
 0x1c1   : > { %1616 = vst.msk [vmem:[%s2567_s23 + $0x1a0] sm:$0xff] %vm1563_vm2, %v1450_v4  ;;  %v1015_v7 = vadd.f32 %v2860_v28, %v1014_v5 }
 0x1c2   : > { %v1016_v8 = vpop.f32.mrf.mxu0  ;;  %v2048_v9 = vpop.f32.mrf.mxu1 }
 0x1c3   : > { %v1455_v10 = vadd.f32 %v1454_v6, %v1015_v7 }
 0x1c4   : > { %v1019_v11 = vpop.f32.mrf.mxu0  ;;  %v1459_v12 = vpop.f32.mrf.mxu1 }
 0x1c5   : > { %1617 = vst.msk [vmem:[%s2567_s23 + $0x1a8] sm:$0xff] %vm1563_vm2, %v1455_v10  ;;  %v1020_v13 = vadd.f32 %v2860_v28, %v1019_v11 }
 0x1c6   : > { %v1021_v14 = vpop.f32.mrf.mxu0  ;;  %v2051_v15 = vpop.f32.mrf.mxu1 }
 0x1c7   : > { %v1460_v16 = vadd.f32 %v1459_v12, %v1020_v13 }
 0x1c8   : > { %v1024_v17 = vpop.f32.mrf.mxu0  ;;  %v1464_v18 = vpop.f32.mrf.mxu1 }
 0x1c9   : > { %1618 = vst.msk [vmem:[%s2567_s23 + $0x1b0] sm:$0xff] %vm1563_vm2, %v1460_v16  ;;  %v1025_v19 = vadd.f32 %v2860_v28, %v1024_v17 }
 0x1ca   : > { %v1026_v20 = vpop.f32.mrf.mxu0  ;;  %v2054_v21 = vpop.f32.mrf.mxu1 }
 0x1cb   : > { %v1465_v22 = vadd.f32 %v1464_v18, %v1025_v19 }
 0x1cc   : > { %v1029_v23 = vpop.f32.mrf.mxu0  ;;  %v1469_v24 = vpop.f32.mrf.mxu1 }
 0x1cd   : > { %1619 = vst.msk [vmem:[%s2567_s23 + $0x1b8] sm:$0xff] %vm1563_vm2, %v1465_v22  ;;  %v1030_v25 = vadd.f32 %v2860_v28, %v1029_v23 }
 0x1ce   : > { %v1031_v26 = vpop.f32.mrf.mxu0  ;;  %v2057_v27 = vpop.f32.mrf.mxu1 }
 0x1cf   : > { %v1470_v29 = vadd.f32 %v1469_v24, %v1030_v25 }
 0x1d0   : > { %v1034_v30 = vpop.f32.mrf.mxu0  ;;  %v1474_v31 = vpop.f32.mrf.mxu1 }
 0x1d1   : > { %1620 = vst.msk [vmem:[%s2567_s23 + $0x1c0] sm:$0xff] %vm1563_vm2, %v1470_v29  ;;  %v1035_v32 = vadd.f32 %v2860_v28, %v1034_v30 }
 0x1d2   : > { %v1036_v33 = vpop.f32.mrf.mxu0  ;;  %v2060_v46 = vpop.f32.mrf.mxu1 }
 0x1d3   : > { %v1475_v34 = vadd.f32 %v1474_v31, %v1035_v32 }
 0x1d4   : > { %v1039_v35 = vpop.f32.mrf.mxu0  ;;  %v1479_v36 = vpop.f32.mrf.mxu1 }
 0x1d5   : > { %1621 = vst.msk [vmem:[%s2567_s23 + $0x1c8] sm:$0xff] %vm1563_vm2, %v1475_v34  ;;  %v1040_v37 = vadd.f32 %v2860_v28, %v1039_v35 }
 0x1d6   : > { %v1041_v3 = vpop.f32.mrf.mxu0  ;;  %v2063_v38 = vpop.f32.mrf.mxu1 }
 0x1d7   : > { %v1480_v39 = vadd.f32 %v1479_v36, %v1040_v37 }
 0x1d8   : > { %v1044_v40 = vpop.f32.mrf.mxu0  ;;  %v1484_v41 = vpop.f32.mrf.mxu1 }
 0x1d9   : > { %1622 = vst.msk [vmem:[%s2567_s23 + $0x1d0] sm:$0xff] %vm1563_vm2, %v1480_v39  ;;  %v1045_v42 = vadd.f32 %v2860_v28, %v1044_v40 }
 0x1da   : > { %v1046_v43 = vpop.f32.mrf.mxu0  ;;  %v2066_v44 = vpop.f32.mrf.mxu1 }
 0x1db   : > { %v1485_v45 = vadd.f32 %v1484_v41, %v1045_v42 }
 0x1dc   : > { %v1049_v47 = vpop.f32.mrf.mxu0  ;;  %v1489_v48 = vpop.f32.mrf.mxu1 }
 0x1dd   : > { %1623 = vst.msk [vmem:[%s2567_s23 + $0x1d8] sm:$0xff] %vm1563_vm2, %v1485_v45  ;;  %v1050_v49 = vadd.f32 %v2860_v28, %v1049_v47 }
 0x1de   : > { %v1051_v50 = vpop.f32.mrf.mxu0  ;;  %v2069_v51 = vpop.f32.mrf.mxu1 }
 0x1df   : > { %v1490_v52 = vadd.f32 %v1489_v48, %v1050_v49 }
 0x1e0   : > { %v1054_v53 = vpop.f32.mrf.mxu0  ;;  %v1494_v54 = vpop.f32.mrf.mxu1 }
 0x1e1   : > { %1624 = vst.msk [vmem:[%s2567_s23 + $0x1e0] sm:$0xff] %vm1563_vm2, %v1490_v52  ;;  %v1055_v55 = vadd.f32 %v2860_v28, %v1054_v53 }
 0x1e2   : > { %v1056_v56 = vpop.f32.mrf.mxu0  ;;  %v2072_v57 = vpop.f32.mrf.mxu1 }
 0x1e3   : > { %v1495_v58 = vadd.f32 %v1494_v54, %v1055_v55 }
 0x1e4   : > { %v1059_v59 = vpop.f32.mrf.mxu0  ;;  %v1499_v60 = vpop.f32.mrf.mxu1 }
 0x1e5   : > { %1625 = vst.msk [vmem:[%s2567_s23 + $0x1e8] sm:$0xff] %vm1563_vm2, %v1495_v58  ;;  %v1060_v61 = vadd.f32 %v2860_v28, %v1059_v59 }
 0x1e6   : > { %v1061_v62 = vpop.f32.mrf.mxu0  ;;  %v2075_v63 = vpop.f32.mrf.mxu1 }
 0x1e7   : > { %v1500_v0 = vadd.f32 %v1499_v60, %v1060_v61 }
 0x1e8   : > { %v1064_v1 = vpop.f32.mrf.mxu0  ;;  %v1504_v2 = vpop.f32.mrf.mxu1 }
 0x1e9   : > { %1626 = vst.msk [vmem:[%s2567_s23 + $0x1f0] sm:$0xff] %vm1563_vm2, %v1500_v0  ;;  %v1065_v4 = vadd.f32 %v2860_v28, %v1064_v1 }
 0x1ea   : > { %v1066_v5 = vpop.f32.mrf.mxu0  ;;  %v2078_v6 = vpop.f32.mrf.mxu1 }
 0x1eb   : > { %v1505_v7 = vadd.f32 %v1504_v2, %v1065_v4 }
 0x1ec   : > { %v1069_v8 = vpop.f32.mrf.mxu0  ;;  %v1509_v9 = vpop.f32.mrf.mxu1 }
 0x1ed   : > { %1627 = vst.msk [vmem:[%s2567_s23 + $0x1f8] sm:$0xff] %vm1563_vm2, %v1505_v7  ;;  %v1070_v10 = vadd.f32 %v2860_v28, %v1069_v8 }
 0x1ee   : > { %v1071_v11 = vpop.f32.mrf.mxu0  ;;  %v2081_v12 = vpop.f32.mrf.mxu1 }
 0x1ef   : > { %v1510_v13 = vadd.f32 %v1509_v9, %v1070_v10 }
 0x1f0   : > { %v1074_v14 = vpop.f32.mrf.mxu0  ;;  %v1514_v15 = vpop.f32.mrf.mxu1 }
 0x1f1   : > { %1628 = vst.msk [vmem:[%s2567_s23 + $0x200] sm:$0xff] %vm1563_vm2, %v1510_v13  ;;  %v1075_v16 = vadd.f32 %v2860_v28, %v1074_v14 }
 0x1f2   : > { %v1076_v17 = vpop.f32.mrf.mxu0  ;;  %v2084_v18 = vpop.f32.mrf.mxu1 }
 0x1f3   : > { %v1515_v19 = vadd.f32 %v1514_v15, %v1075_v16 }
 0x1f4   : > { %v1079_v20 = vpop.f32.mrf.mxu0  ;;  %v1519_v21 = vpop.f32.mrf.mxu1 }
 0x1f5   : > { %1629 = vst.msk [vmem:[%s2567_s23 + $0x208] sm:$0xff] %vm1563_vm2, %v1515_v19  ;;  %v1080_v22 = vadd.f32 %v2860_v28, %v1079_v20 }
 0x1f6   : > { %v1081_v23 = vpop.f32.mrf.mxu0  ;;  %v2087_v24 = vpop.f32.mrf.mxu1 }
 0x1f7   : > { %v1520_v25 = vadd.f32 %v1519_v21, %v1080_v22 }
 0x1f8   : > { %v1084_v26 = vpop.f32.mrf.mxu0  ;;  %v1524_v27 = vpop.f32.mrf.mxu1 }
 0x1f9   : > { %1630 = vst.msk [vmem:[%s2567_s23 + $0x210] sm:$0xff] %vm1563_vm2, %v1520_v25  ;;  %v1085_v29 = vadd.f32 %v2860_v28, %v1084_v26 }
 0x1fa   : > { %v1086_v30 = vpop.f32.mrf.mxu0  ;;  %v2090_v31 = vpop.f32.mrf.mxu1 }
 0x1fb   : > { %v1525_v32 = vadd.f32 %v1524_v27, %v1085_v29 }
 0x1fc   : > { %v1089_v33 = vpop.f32.mrf.mxu0  ;;  %v1529_v46 = vpop.f32.mrf.mxu1 }
 0x1fd   : > { %1631 = vst.msk [vmem:[%s2567_s23 + $0x218] sm:$0xff] %vm1563_vm2, %v1525_v32  ;;  %v1090_v34 = vadd.f32 %v2860_v28, %v1089_v33 }
 0x1fe   : > { %v1091_v35 = vpop.f32.mrf.mxu0  ;;  %v2093_v36 = vpop.f32.mrf.mxu1 }
 0x1ff   : > { %v1530_v37 = vadd.f32 %v1529_v46, %v1090_v34 }
 0x200   : > { %v1094_v3 = vpop.f32.mrf.mxu0  ;;  %v1534_v38 = vpop.f32.mrf.mxu1 }
 0x201   : > { %1632 = vst.msk [vmem:[%s2567_s23 + $0x220] sm:$0xff] %vm1563_vm2, %v1530_v37  ;;  %v1095_v39 = vadd.f32 %v2860_v28, %v1094_v3 }
 0x202   : > { %v1096_v40 = vpop.f32.mrf.mxu0  ;;  %v2096_v41 = vpop.f32.mrf.mxu1 }
 0x203   : > { %v1535_v42 = vadd.f32 %v1534_v38, %v1095_v39 }
 0x204   : > { %v1099_v43 = vpop.f32.mrf.mxu0  ;;  %v1539_v44 = vpop.f32.mrf.mxu1 }
 0x205   : > { %1633 = vst.msk [vmem:[%s2567_s23 + $0x228] sm:$0xff] %vm1563_vm2, %v1535_v42  ;;  %v1100_v45 = vadd.f32 %v2860_v28, %v1099_v43 }
 0x206   : > { %v1101_v47 = vpop.f32.mrf.mxu0  ;;  %v2099_v48 = vpop.f32.mrf.mxu1 }
 0x207   : > { %v1540_v49 = vadd.f32 %v1539_v44, %v1100_v45 }
 0x208   : > { %v1104_v50 = vpop.f32.mrf.mxu0  ;;  %v1544_v51 = vpop.f32.mrf.mxu1 }
 0x209   : > { %1634 = vst.msk [vmem:[%s2567_s23 + $0x230] sm:$0xff] %vm1563_vm2, %v1540_v49  ;;  %v1105_v52 = vadd.f32 %v2860_v28, %v1104_v50 }
 0x20a   : > { %v1106_v53 = vpop.f32.mrf.mxu0  ;;  %v2102_v54 = vpop.f32.mrf.mxu1 }
 0x20b   : > { %v1545_v55 = vadd.f32 %v1544_v51, %v1105_v52 }
 0x20c   : > { %v1109_v56 = vpop.f32.mrf.mxu0  ;;  %v1549_v57 = vpop.f32.mrf.mxu1 }
 0x20d   : > { %1635 = vst.msk [vmem:[%s2567_s23 + $0x238] sm:$0xff] %vm1563_vm2, %v1545_v55  ;;  %v1110_v58 = vadd.f32 %v2860_v28, %v1109_v56 }
 0x20e   : > { %v1111_v59 = vpop.f32.mrf.mxu0  ;;  %v2105_v60 = vpop.f32.mrf.mxu1 }
 0x20f   : > { %v1550_v61 = vadd.f32 %v1549_v57, %v1110_v58 }
 0x210   : > { %v1114_v62 = vpop.f32.mrf.mxu0  ;;  %v1554_v63 = vpop.f32.mrf.mxu1 }
 0x211   : > { %1636 = vst.msk [vmem:[%s2567_s23 + $0x240] sm:$0xff] %vm1563_vm2, %v1550_v61  ;;  %v1115_v0 = vadd.f32 %v2860_v28, %v1114_v62 }
 0x212   : > { %v1116_v1 = vpop.f32.mrf.mxu0  ;;  %v2108_v2 = vpop.f32.mrf.mxu1 }
 0x213   : > { %v1555_v4 = vadd.f32 %v1554_v63, %v1115_v0 }
 0x214   : > { %v1119_v5 = vpop.f32.mrf.mxu0  ;;  %v1559_v6 = vpop.f32.mrf.mxu1 }
 0x215   : > { %1637 = vst.msk [vmem:[%s2567_s23 + $0x248] sm:$0xff] %vm1563_vm2, %v1555_v4  ;;  %v1120_v7 = vadd.f32 %v2860_v28, %v1119_v5 }
 0x216   : > { %v1121_v8 = vpop.f32.mrf.mxu0  ;;  %v2111_v9 = vpop.f32.mrf.mxu1 }
 0x217   : > { %v1560_v10 = vadd.f32 %v1559_v6, %v1120_v7 }
 0x219   : > { %1638 = vst.msk [vmem:[%s2567_s23 + $0x250] sm:$0xff] %vm1563_vm2, %v1560_v10 }
 0x21a PF: > { %s13_s12 = sadd.s32 1, %s2130_s12  }
 0x21b   : > { %p10_p4 = scmp.ge.s32.totalorder %s13_s12, 5  }
 0x21d   :  { %12 = sbr.rel (!%p10_p4) target bundleno = 1 (0x1), region = 62 }

// kernel: spherenet_forward.8
= control target key start
LH: loop header
LB: loop body
LE: loop exit
PB: predicated region body
PF: predicated region fallthrough
CT: control target
= control target key end

     0   :  { %s1237_s6 = smov 0   ;;  %s1239_s7 = smov 0   ;;  %s1554_s0 = inlined_call_operand.vmem [shape: f32[2,9,14400], index: 0, kind: input, shape index: {}]   ;;  %s1555_s1 = inlined_call_operand.vmem [shape: f32[2,1,14400], index: 1, kind: output, shape index: {}]  }
   0x1   :  { %s1241_s8 = smov 0  }
   0x2 LB: > { %s23_s9 = sadd.s32 1, %s1221_s7  ;;  %p914_p0 = scmp.ge.s32.totalorder %s1225_s8, 1  ;;  %s1225_s8 = sphi %s1241_s8, %s11_s8   ;;  %s1221_s7 = sphi %s1239_s7, %s1557_s7   ;;  %s1217_s6 = sphi %s1237_s6, %s1556_s6  }
   0x3   : > { %p25_p1 = scmp.ge.s32.totalorder %s23_s9, 2  ;;  %p108_p2 = scmp.lt.s32.totalorder %s1225_s8, 3 }
   0x5   : > { %s1559_s9 = smov (%p25_p1, %s23_s9), 0  ;;  %p109_p3 = pnand %p914_p0, %p108_p2 }
   0x6   : > { %p136_p4 = scmp.lt.s32.totalorder (!%p109_p3), %s1217_s6, 1 }
   0x7   : > { %112 = sbr.rel (%p109_p3) target bundleno = 173 (0xad), region = 24 }
   0xc   : > { %s1561_s6 = smov (!%p136_p4, %s1217_s6), 1 }
   0xd   : > { %s1177_s10 = smul.u32 1808, %s1561_s6 }
   0xe   : > { %s1178_s14 = smul.u32 113, %s1561_s6 }
   0xf   : > { %s1261_s13 = scalar_lea.vmem %s1554_s0, %s1177_s10 }
  0x10   : > { %v154_v0 = vld [vmem:[%s1261_s13] ss:$8 sm:$0xf]  ;;  %v943_v3 = vld [vmem:[%s1261_s13 + $0x1] ss:$8 sm:$0xf]  ;;  %s1305_s17 = scalar_lea.vmem %s1555_s1, %s1178_s14 }
  0x11   : > { %v155_v1 = vld [vmem:[%s1261_s13] ss:$8 sm:$0xf0]  ;;  %v944_v4 = vld [vmem:[%s1261_s13 + $0x1] ss:$8 sm:$0xf0] }
  0x12   : > { %v156_v2 = vor.u32 %v155_v1, %v154_v0  ;;  %v214_v5 = vor.u32 %v944_v4, %v943_v3  ;;  %v972_v6 = vld [vmem:[%s1261_s13 + $0x2] ss:$8 sm:$0xf]  ;;  %v1001_v9 = vld [vmem:[%s1261_s13 + $0x3] ss:$8 sm:$0xf] }
  0x13   : > { %v973_v7 = vld [vmem:[%s1261_s13 + $0x2] ss:$8 sm:$0xf0]  ;;  %v1002_v10 = vld [vmem:[%s1261_s13 + $0x3] ss:$8 sm:$0xf0] }
  0x14   : > { %v287_v8 = vor.u32 %v973_v7, %v972_v6  ;;  %v269_v11 = vmax.f32 %v156_v2, %v214_v5  ;;  %v360_v12 = vor.u32 %v1002_v10, %v1001_v9  ;;  %v1030_v13 = vld [vmem:[%s1261_s13 + $0x4] ss:$8 sm:$0xf]  ;;  %v1059_v15 = vld [vmem:[%s1261_s13 + $0x5] ss:$8 sm:$0xf] }
  0x15   : > { %v1031_v14 = vld [vmem:[%s1261_s13 + $0x4] ss:$8 sm:$0xf0]  ;;  %v1060_v16 = vld [vmem:[%s1261_s13 + $0x5] ss:$8 sm:$0xf0] }
  0x16   : > { %v342_v17 = vmax.f32 %v269_v11, %v287_v8  ;;  %v433_v18 = vor.u32 %v1031_v14, %v1030_v13  ;;  %v1088_v19 = vld [vmem:[%s1261_s13 + $0x6] ss:$8 sm:$0xf]  ;;  %v506_v22 = vor.u32 %v1060_v16, %v1059_v15  ;;  %v1117_v23 = vld [vmem:[%s1261_s13 + $0x7] ss:$8 sm:$0xf] }
  0x17   : > { %v1089_v20 = vld [vmem:[%s1261_s13 + $0x6] ss:$8 sm:$0xf0]  ;;  %v1118_v24 = vld [vmem:[%s1261_s13 + $0x7] ss:$8 sm:$0xf0] }
  0x18   : > { %v415_v21 = vmax.f32 %v342_v17, %v360_v12  ;;  %v1146_v25 = vld [vmem:[%s1261_s13 + $0x388] ss:$8 sm:$0xf]  ;;  %v579_v30 = vor.u32 %v1089_v20, %v1088_v19  ;;  %v945_v32 = vld [vmem:[%s1261_s13 + $0x41] ss:$8 sm:$0xf]  ;;  %v652_v38 = vor.u32 %v1118_v24, %v1117_v23 }
  0x19   : > { %v1147_v26 = vld [vmem:[%s1261_s13 + $0x388] ss:$8 sm:$0xf0]  ;;  %v946_v33 = vld [vmem:[%s1261_s13 + $0x41] ss:$8 sm:$0xf0] }
  0x1a   : > { %v916_v27 = vld [vmem:[%s1261_s13 + $0x40] ss:$8 sm:$0xf]  ;;  %v488_v29 = vmax.f32 %v415_v21, %v433_v18  ;;  %v218_v34 = vor.u32 %v946_v33, %v945_v32  ;;  %v974_v35 = vld [vmem:[%s1261_s13 + $0x42] ss:$8 sm:$0xf]  ;;  %v725_v47 = vor.u32 %v1147_v26, %v1146_v25 }
  0x1b   : > { %v917_v28 = vld [vmem:[%s1261_s13 + $0x40] ss:$8 sm:$0xf0]  ;;  %v975_v36 = vld [vmem:[%s1261_s13 + $0x42] ss:$8 sm:$0xf0] }
  0x1c   : > { %v160_v31 = vor.u32 %v917_v28, %v916_v27  ;;  %v561_v37 = vmax.f32 %v488_v29, %v506_v22  ;;  %v291_v39 = vor.u32 %v975_v36, %v974_v35  ;;  %v1003_v40 = vld [vmem:[%s1261_s13 + $0x43] ss:$8 sm:$0xf]  ;;  %v1032_v44 = vld [vmem:[%s1261_s13 + $0x44] ss:$8 sm:$0xf] }
  0x1d   : > { %v1004_v41 = vld [vmem:[%s1261_s13 + $0x43] ss:$8 sm:$0xf0]  ;;  %v1033_v45 = vld [vmem:[%s1261_s13 + $0x44] ss:$8 sm:$0xf0] }
  0x1e   : > { %v270_v42 = vmax.f32 %v160_v31, %v218_v34  ;;  %v364_v43 = vor.u32 %v1004_v41, %v1003_v40  ;;  %v634_v46 = vmax.f32 %v561_v37, %v579_v30  ;;  %v1061_v48 = vld [vmem:[%s1261_s13 + $0x45] ss:$8 sm:$0xf]  ;;  %v437_v51 = vor.u32 %v1033_v45, %v1032_v44  ;;  %v1090_v53 = vld [vmem:[%s1261_s13 + $0x46] ss:$8 sm:$0xf] }
  0x1f   : > { %v1062_v49 = vld [vmem:[%s1261_s13 + $0x45] ss:$8 sm:$0xf0]  ;;  %v1091_v54 = vld [vmem:[%s1261_s13 + $0x46] ss:$8 sm:$0xf0] }
  0x20   : > { %v343_v50 = vmax.f32 %v270_v42, %v291_v39  ;;  %v707_v52 = vmax.f32 %v634_v46, %v652_v38  ;;  %v510_v56 = vor.u32 %v1062_v49, %v1061_v48  ;;  %v1119_v57 = vld [vmem:[%s1261_s13 + $0x47] ss:$8 sm:$0xf]  ;;  %v1148_v60 = vld [vmem:[%s1261_s13 + $0x3c8] ss:$8 sm:$0xf]  ;;  %v583_v1 = vor.u32 %v1091_v54, %v1090_v53 }
  0x21   : > { %v1120_v58 = vld [vmem:[%s1261_s13 + $0x47] ss:$8 sm:$0xf0]  ;;  %v1149_v61 = vld [vmem:[%s1261_s13 + $0x3c8] ss:$8 sm:$0xf0] }
  0x22   : > { %v416_v55 = vmax.f32 %v343_v50, %v364_v43  ;;  %v780_v59 = vmax.f32 %v707_v52, %v725_v47  ;;  %v918_v62 = vld [vmem:[%s1261_s13 + $0x80] ss:$8 sm:$0xf]  ;;  %v947_v3 = vld [vmem:[%s1261_s13 + $0x81] ss:$8 sm:$0xf]  ;;  %v656_v9 = vor.u32 %v1120_v58, %v1119_v57  ;;  %v729_v17 = vor.u32 %v1149_v61, %v1148_v60 }
  0x23   : > { %v919_v63 = vld [vmem:[%s1261_s13 + $0x80] ss:$8 sm:$0xf0]  ;;  %v948_v4 = vld [vmem:[%s1261_s13 + $0x81] ss:$8 sm:$0xf0] }
  0x24   : > { %v489_v0 = vmax.f32 %v416_v55, %v437_v51  ;;  %v164_v2 = vor.u32 %v919_v63, %v918_v62  ;;  %v795_v5 = vmax.f32 %v780_v59, 0.0  ;;  %v222_v6 = vor.u32 %v948_v4, %v947_v3  ;;  %v976_v7 = vld [vmem:[%s1261_s13 + $0x82] ss:$8 sm:$0xf] }
  0x25   : > { %v977_v10 = vld [vmem:[%s1261_s13 + $0x82] ss:$8 sm:$0xf0]  ;;  %v1005_v11 = vld [vmem:[%s1261_s13 + $0x83] ss:$8 sm:$0xf] }
  0x26   : > { %v562_v8 = vmax.f32 %v489_v0, %v510_v56  ;;  %810 = vst [vmem:[%s1305_s17] sm:$0xff] %v795_v5  ;;  %v271_v12 = vmax.f32 %v164_v2, %v222_v6  ;;  %v295_v13 = vor.u32 %v977_v10, %v976_v7  ;;  %v1006_v14 = vld [vmem:[%s1261_s13 + $0x83] ss:$8 sm:$0xf0]  ;;  %v1034_v15 = vld [vmem:[%s1261_s13 + $0x84] ss:$8 sm:$0xf] }
  0x27   : > { %v368_v18 = vor.u32 %v1006_v14, %v1005_v11  ;;  %v1035_v19 = vld [vmem:[%s1261_s13 + $0x84] ss:$8 sm:$0xf0]  ;;  %v1063_v20 = vld [vmem:[%s1261_s13 + $0x85] ss:$8 sm:$0xf] }
  0x28   : > { %v635_v16 = vmax.f32 %v562_v8, %v583_v1  ;;  %v344_v21 = vmax.f32 %v271_v12, %v295_v13  ;;  %v441_v22 = vor.u32 %v1035_v19, %v1034_v15  ;;  %v1064_v23 = vld [vmem:[%s1261_s13 + $0x85] ss:$8 sm:$0xf0]  ;;  %v1092_v25 = vld [vmem:[%s1261_s13 + $0x86] ss:$8 sm:$0xf] }
  0x29   : > { %v1093_v26 = vld [vmem:[%s1261_s13 + $0x86] ss:$8 sm:$0xf0]  ;;  %v514_v28 = vor.u32 %v1064_v23, %v1063_v20  ;;  %v1121_v29 = vld [vmem:[%s1261_s13 + $0x87] ss:$8 sm:$0xf] }
  0x2a   : > { %v708_v24 = vmax.f32 %v635_v16, %v656_v9  ;;  %v417_v27 = vmax.f32 %v344_v21, %v368_v18  ;;  %v1122_v30 = vld [vmem:[%s1261_s13 + $0x87] ss:$8 sm:$0xf0]  ;;  %v1150_v32 = vld [vmem:[%s1261_s13 + $0x408] ss:$8 sm:$0xf]  ;;  %v587_v36 = vor.u32 %v1093_v26, %v1092_v25 }
  0x2b   : > { %v1151_v33 = vld [vmem:[%s1261_s13 + $0x408] ss:$8 sm:$0xf0]  ;;  %v949_v38 = vld [vmem:[%s1261_s13 + $0xc1] ss:$8 sm:$0xf]  ;;  %v660_v43 = vor.u32 %v1122_v30, %v1121_v29 }
  0x2c   : > { %v781_v31 = vmax.f32 %v708_v24, %v729_v17  ;;  %v920_v34 = vld [vmem:[%s1261_s13 + $0xc0] ss:$8 sm:$0xf]  ;;  %v490_v35 = vmax.f32 %v417_v27, %v441_v22  ;;  %v950_v41 = vld [vmem:[%s1261_s13 + $0xc1] ss:$8 sm:$0xf0]  ;;  %v733_v51 = vor.u32 %v1151_v33, %v1150_v32 }
  0x2d   : > { %v921_v37 = vld [vmem:[%s1261_s13 + $0xc0] ss:$8 sm:$0xf0]  ;;  %v226_v44 = vor.u32 %v950_v41, %v949_v38  ;;  %v978_v45 = vld [vmem:[%s1261_s13 + $0xc2] ss:$8 sm:$0xf] }
  0x2e   : > { %v796_v39 = vmax.f32 %v781_v31, 0.0  ;;  %v168_v40 = vor.u32 %v921_v37, %v920_v34  ;;  %v563_v42 = vmax.f32 %v490_v35, %v514_v28  ;;  %v979_v46 = vld [vmem:[%s1261_s13 + $0xc2] ss:$8 sm:$0xf0] }
  0x2f   : > { %v299_v47 = vor.u32 %v979_v46, %v978_v45  ;;  %v1007_v48 = vld [vmem:[%s1261_s13 + $0xc3] ss:$8 sm:$0xf]  ;;  %v1036_v54 = vld [vmem:[%s1261_s13 + $0xc4] ss:$8 sm:$0xf] }
  0x30   : > { %811 = vst [vmem:[%s1305_s17 + $0x8] sm:$0xff] %v796_v39  ;;  %v1008_v49 = vld [vmem:[%s1261_s13 + $0xc3] ss:$8 sm:$0xf0]  ;;  %v636_v50 = vmax.f32 %v563_v42, %v587_v36  ;;  %v272_v52 = vmax.f32 %v168_v40, %v226_v44 }
  0x31   : > { %v372_v53 = vor.u32 %v1008_v49, %v1007_v48  ;;  %v1037_v55 = vld [vmem:[%s1261_s13 + $0xc4] ss:$8 sm:$0xf0]  ;;  %v1065_v56 = vld [vmem:[%s1261_s13 + $0xc5] ss:$8 sm:$0xf] }
  0x32   : > { %v1066_v57 = vld [vmem:[%s1261_s13 + $0xc5] ss:$8 sm:$0xf0]  ;;  %v709_v58 = vmax.f32 %v636_v50, %v660_v43  ;;  %v345_v59 = vmax.f32 %v272_v52, %v299_v47  ;;  %v445_v60 = vor.u32 %v1037_v55, %v1036_v54  ;;  %v1094_v61 = vld [vmem:[%s1261_s13 + $0xc6] ss:$8 sm:$0xf] }
  0x33   : > { %v1095_v62 = vld [vmem:[%s1261_s13 + $0xc6] ss:$8 sm:$0xf0]  ;;  %v518_v1 = vor.u32 %v1066_v57, %v1065_v56  ;;  %v1123_v2 = vld [vmem:[%s1261_s13 + $0xc7] ss:$8 sm:$0xf] }
  0x34   : > { %v782_v63 = vmax.f32 %v709_v58, %v733_v51  ;;  %v418_v0 = vmax.f32 %v345_v59, %v372_v53  ;;  %v1124_v3 = vld [vmem:[%s1261_s13 + $0xc7] ss:$8 sm:$0xf0]  ;;  %v1152_v4 = vld [vmem:[%s1261_s13 + $0x448] ss:$8 sm:$0xf]  ;;  %v591_v10 = vor.u32 %v1095_v62, %v1094_v61 }
  0x35   : > { %v1153_v5 = vld [vmem:[%s1261_s13 + $0x448] ss:$8 sm:$0xf0]  ;;  %v951_v12 = vld [vmem:[%s1261_s13 + $0x101] ss:$8 sm:$0xf]  ;;  %v664_v16 = vor.u32 %v1124_v3, %v1123_v2 }
  0x36   : > { %v922_v6 = vld [vmem:[%s1261_s13 + $0x100] ss:$8 sm:$0xf]  ;;  %v797_v8 = vmax.f32 %v782_v63, 0.0  ;;  %v491_v9 = vmax.f32 %v418_v0, %v445_v60  ;;  %v737_v24 = vor.u32 %v1153_v5, %v1152_v4 }
  0x37   : > { %v923_v7 = vld [vmem:[%s1261_s13 + $0x100] ss:$8 sm:$0xf0]  ;;  %v952_v13 = vld [vmem:[%s1261_s13 + $0x101] ss:$8 sm:$0xf0] }
  0x38   : > { %v172_v11 = vor.u32 %v923_v7, %v922_v6  ;;  %v980_v14 = vld [vmem:[%s1261_s13 + $0x102] ss:$8 sm:$0xf]  ;;  %812 = vst [vmem:[%s1305_s17 + $0x10] sm:$0xff] %v797_v8  ;;  %v564_v15 = vmax.f32 %v491_v9, %v518_v1  ;;  %v230_v17 = vor.u32 %v952_v13, %v951_v12 }
  0x39   : > { %v981_v18 = vld [vmem:[%s1261_s13 + $0x102] ss:$8 sm:$0xf0]  ;;  %v1009_v19 = vld [vmem:[%s1261_s13 + $0x103] ss:$8 sm:$0xf] }
  0x3a   : > { %v303_v20 = vor.u32 %v981_v18, %v980_v14  ;;  %v1010_v21 = vld [vmem:[%s1261_s13 + $0x103] ss:$8 sm:$0xf0]  ;;  %v1038_v22 = vld [vmem:[%s1261_s13 + $0x104] ss:$8 sm:$0xf]  ;;  %v637_v23 = vmax.f32 %v564_v15, %v591_v10  ;;  %v273_v25 = vmax.f32 %v172_v11, %v230_v17 }
  0x3b   : > { %v376_v26 = vor.u32 %v1010_v21, %v1009_v19  ;;  %v1039_v27 = vld [vmem:[%s1261_s13 + $0x104] ss:$8 sm:$0xf0]  ;;  %v1067_v28 = vld [vmem:[%s1261_s13 + $0x105] ss:$8 sm:$0xf] }
  0x3c   : > { %v1068_v29 = vld [vmem:[%s1261_s13 + $0x105] ss:$8 sm:$0xf0]  ;;  %v710_v30 = vmax.f32 %v637_v23, %v664_v16  ;;  %v346_v31 = vmax.f32 %v273_v25, %v303_v20  ;;  %v449_v32 = vor.u32 %v1039_v27, %v1038_v22  ;;  %v1096_v33 = vld [vmem:[%s1261_s13 + $0x106] ss:$8 sm:$0xf] }
  0x3d   : > { %v1097_v34 = vld [vmem:[%s1261_s13 + $0x106] ss:$8 sm:$0xf0]  ;;  %v1125_v35 = vld [vmem:[%s1261_s13 + $0x107] ss:$8 sm:$0xf]  ;;  %v522_v38 = vor.u32 %v1068_v29, %v1067_v28 }
  0x3e   : > { %v783_v36 = vmax.f32 %v710_v30, %v737_v24  ;;  %v419_v37 = vmax.f32 %v346_v31, %v376_v26  ;;  %v1126_v39 = vld [vmem:[%s1261_s13 + $0x107] ss:$8 sm:$0xf0]  ;;  %v924_v40 = vld [vmem:[%s1261_s13 + $0x140] ss:$8 sm:$0xf]  ;;  %v595_v47 = vor.u32 %v1097_v34, %v1096_v33 }
  0x3f   : > { %v1154_v41 = vld [vmem:[%s1261_s13 + $0x488] ss:$8 sm:$0xf]  ;;  %v953_v44 = vld [vmem:[%s1261_s13 + $0x141] ss:$8 sm:$0xf]  ;;  %v668_v54 = vor.u32 %v1126_v39, %v1125_v35 }
  0x40   : > { %v1155_v42 = vld [vmem:[%s1261_s13 + $0x488] ss:$8 sm:$0xf0]  ;;  %v798_v45 = vmax.f32 %v783_v36, 0.0  ;;  %v492_v46 = vmax.f32 %v419_v37, %v449_v32 }
  0x41   : > { %v925_v43 = vld [vmem:[%s1261_s13 + $0x140] ss:$8 sm:$0xf0]  ;;  %v954_v49 = vld [vmem:[%s1261_s13 + $0x141] ss:$8 sm:$0xf0]  ;;  %v741_v63 = vor.u32 %v1155_v42, %v1154_v41 }
  0x42   : > { %v176_v48 = vor.u32 %v925_v43, %v924_v40  ;;  %v234_v50 = vor.u32 %v954_v49, %v953_v44  ;;  %v982_v51 = vld [vmem:[%s1261_s13 + $0x142] ss:$8 sm:$0xf]  ;;  %813 = vst [vmem:[%s1305_s17 + $0x18] sm:$0xff] %v798_v45  ;;  %v565_v53 = vmax.f32 %v492_v46, %v522_v38 }
  0x43   : > { %v983_v52 = vld [vmem:[%s1261_s13 + $0x142] ss:$8 sm:$0xf0]  ;;  %v1011_v56 = vld [vmem:[%s1261_s13 + $0x143] ss:$8 sm:$0xf] }
  0x44   : > { %v307_v55 = vor.u32 %v983_v52, %v982_v51  ;;  %v1012_v57 = vld [vmem:[%s1261_s13 + $0x143] ss:$8 sm:$0xf0]  ;;  %v274_v58 = vmax.f32 %v176_v48, %v234_v50  ;;  %v1040_v60 = vld [vmem:[%s1261_s13 + $0x144] ss:$8 sm:$0xf]  ;;  %v638_v62 = vmax.f32 %v565_v53, %v595_v47 }
  0x45   : > { %v380_v59 = vor.u32 %v1012_v57, %v1011_v56  ;;  %v1041_v61 = vld [vmem:[%s1261_s13 + $0x144] ss:$8 sm:$0xf0]  ;;  %v1069_v0 = vld [vmem:[%s1261_s13 + $0x145] ss:$8 sm:$0xf] }
  0x46   : > { %v1070_v1 = vld [vmem:[%s1261_s13 + $0x145] ss:$8 sm:$0xf0]  ;;  %v347_v2 = vmax.f32 %v274_v58, %v307_v55  ;;  %v453_v3 = vor.u32 %v1041_v61, %v1040_v60  ;;  %v711_v4 = vmax.f32 %v638_v62, %v668_v54  ;;  %v1098_v5 = vld [vmem:[%s1261_s13 + $0x146] ss:$8 sm:$0xf] }
  0x47   : > { %v1099_v6 = vld [vmem:[%s1261_s13 + $0x146] ss:$8 sm:$0xf0]  ;;  %v526_v8 = vor.u32 %v1070_v1, %v1069_v0  ;;  %v1127_v9 = vld [vmem:[%s1261_s13 + $0x147] ss:$8 sm:$0xf] }
  0x48   : > { %v420_v7 = vmax.f32 %v347_v2, %v380_v59  ;;  %v1128_v10 = vld [vmem:[%s1261_s13 + $0x147] ss:$8 sm:$0xf0]  ;;  %v784_v11 = vmax.f32 %v711_v4, %v741_v63  ;;  %v1156_v12 = vld [vmem:[%s1261_s13 + $0x4c8] ss:$8 sm:$0xf]  ;;  %v599_v17 = vor.u32 %v1099_v6, %v1098_v5 }
  0x49   : > { %v1157_v13 = vld [vmem:[%s1261_s13 + $0x4c8] ss:$8 sm:$0xf0]  ;;  %v955_v19 = vld [vmem:[%s1261_s13 + $0x181] ss:$8 sm:$0xf]  ;;  %v672_v25 = vor.u32 %v1128_v10, %v1127_v9 }
  0x4a   : > { %v926_v14 = vld [vmem:[%s1261_s13 + $0x180] ss:$8 sm:$0xf]  ;;  %v493_v16 = vmax.f32 %v420_v7, %v453_v3  ;;  %v956_v20 = vld [vmem:[%s1261_s13 + $0x181] ss:$8 sm:$0xf0]  ;;  %v745_v33 = vor.u32 %v1157_v13, %v1156_v12 }
  0x4b   : > { %v927_v15 = vld [vmem:[%s1261_s13 + $0x180] ss:$8 sm:$0xf0]  ;;  %v799_v21 = vmax.f32 %v784_v11, 0.0  ;;  %v238_v22 = vor.u32 %v956_v20, %v955_v19 }
  0x4c   : > { %v180_v18 = vor.u32 %v927_v15, %v926_v14  ;;  %v984_v23 = vld [vmem:[%s1261_s13 + $0x182] ss:$8 sm:$0xf]  ;;  %v566_v24 = vmax.f32 %v493_v16, %v526_v8  ;;  %v1013_v27 = vld [vmem:[%s1261_s13 + $0x183] ss:$8 sm:$0xf] }
  0x4d   : > { %v985_v26 = vld [vmem:[%s1261_s13 + $0x182] ss:$8 sm:$0xf0]  ;;  %814 = vst [vmem:[%s1305_s17 + $0x20] sm:$0xff] %v799_v21 }
  0x4e   : > { %v275_v28 = vmax.f32 %v180_v18, %v238_v22  ;;  %v311_v29 = vor.u32 %v985_v26, %v984_v23  ;;  %v1014_v30 = vld [vmem:[%s1261_s13 + $0x183] ss:$8 sm:$0xf0]  ;;  %v1042_v31 = vld [vmem:[%s1261_s13 + $0x184] ss:$8 sm:$0xf]  ;;  %v639_v32 = vmax.f32 %v566_v24, %v599_v17 }
  0x4f   : > { %v384_v34 = vor.u32 %v1014_v30, %v1013_v27  ;;  %v1043_v35 = vld [vmem:[%s1261_s13 + $0x184] ss:$8 sm:$0xf0]  ;;  %v1071_v36 = vld [vmem:[%s1261_s13 + $0x185] ss:$8 sm:$0xf] }
  0x50   : > { %v348_v37 = vmax.f32 %v275_v28, %v311_v29  ;;  %v457_v38 = vor.u32 %v1043_v35, %v1042_v31  ;;  %v1072_v39 = vld [vmem:[%s1261_s13 + $0x185] ss:$8 sm:$0xf0]  ;;  %v712_v40 = vmax.f32 %v639_v32, %v672_v25  ;;  %v1100_v41 = vld [vmem:[%s1261_s13 + $0x186] ss:$8 sm:$0xf] }
  0x51   : > { %v1101_v42 = vld [vmem:[%s1261_s13 + $0x186] ss:$8 sm:$0xf0]  ;;  %v530_v44 = vor.u32 %v1072_v39, %v1071_v36  ;;  %v1129_v45 = vld [vmem:[%s1261_s13 + $0x187] ss:$8 sm:$0xf] }
  0x52   : > { %v421_v43 = vmax.f32 %v348_v37, %v384_v34  ;;  %v1130_v46 = vld [vmem:[%s1261_s13 + $0x187] ss:$8 sm:$0xf0]  ;;  %v785_v47 = vmax.f32 %v712_v40, %v745_v33  ;;  %v1158_v48 = vld [vmem:[%s1261_s13 + $0x508] ss:$8 sm:$0xf]  ;;  %v603_v52 = vor.u32 %v1101_v42, %v1100_v41 }
  0x53   : > { %v1159_v49 = vld [vmem:[%s1261_s13 + $0x508] ss:$8 sm:$0xf0]  ;;  %v957_v54 = vld [vmem:[%s1261_s13 + $0x1c1] ss:$8 sm:$0xf]  ;;  %v676_v59 = vor.u32 %v1130_v46, %v1129_v45 }
  0x54   : > { %v928_v50 = vld [vmem:[%s1261_s13 + $0x1c0] ss:$8 sm:$0xf]  ;;  %v494_v51 = vmax.f32 %v421_v43, %v457_v38  ;;  %v800_v55 = vmax.f32 %v785_v47, 0.0  ;;  %v749_v3 = vor.u32 %v1159_v49, %v1158_v48 }
  0x55   : > { %v929_v53 = vld [vmem:[%s1261_s13 + $0x1c0] ss:$8 sm:$0xf0]  ;;  %v958_v57 = vld [vmem:[%s1261_s13 + $0x1c1] ss:$8 sm:$0xf0] }
  0x56   : > { %v184_v56 = vor.u32 %v929_v53, %v928_v50  ;;  %v567_v58 = vmax.f32 %v494_v51, %v530_v44  ;;  %v242_v60 = vor.u32 %v958_v57, %v957_v54  ;;  %v986_v61 = vld [vmem:[%s1261_s13 + $0x1c2] ss:$8 sm:$0xf]  ;;  %815 = vst [vmem:[%s1305_s17 + $0x28] sm:$0xff] %v800_v55 }
  0x57   : > { %v987_v62 = vld [vmem:[%s1261_s13 + $0x1c2] ss:$8 sm:$0xf0]  ;;  %v1015_v0 = vld [vmem:[%s1261_s13 + $0x1c3] ss:$8 sm:$0xf] }
  0x58   : > { %v315_v63 = vor.u32 %v987_v62, %v986_v61  ;;  %v1016_v1 = vld [vmem:[%s1261_s13 + $0x1c3] ss:$8 sm:$0xf0]  ;;  %v640_v2 = vmax.f32 %v567_v58, %v603_v52  ;;  %v276_v4 = vmax.f32 %v184_v56, %v242_v60  ;;  %v1044_v6 = vld [vmem:[%s1261_s13 + $0x1c4] ss:$8 sm:$0xf] }
  0x59   : > { %v388_v5 = vor.u32 %v1016_v1, %v1015_v0  ;;  %v1045_v7 = vld [vmem:[%s1261_s13 + $0x1c4] ss:$8 sm:$0xf0]  ;;  %v1073_v8 = vld [vmem:[%s1261_s13 + $0x1c5] ss:$8 sm:$0xf] }
  0x5a   : > { %v1074_v9 = vld [vmem:[%s1261_s13 + $0x1c5] ss:$8 sm:$0xf0]  ;;  %v713_v10 = vmax.f32 %v640_v2, %v676_v59  ;;  %v349_v11 = vmax.f32 %v276_v4, %v315_v63  ;;  %v461_v12 = vor.u32 %v1045_v7, %v1044_v6  ;;  %v1102_v13 = vld [vmem:[%s1261_s13 + $0x1c6] ss:$8 sm:$0xf] }
  0x5b   : > { %v1103_v14 = vld [vmem:[%s1261_s13 + $0x1c6] ss:$8 sm:$0xf0]  ;;  %v534_v17 = vor.u32 %v1074_v9, %v1073_v8  ;;  %v1131_v18 = vld [vmem:[%s1261_s13 + $0x1c7] ss:$8 sm:$0xf] }
  0x5c   : > { %v786_v15 = vmax.f32 %v713_v10, %v749_v3  ;;  %v422_v16 = vmax.f32 %v349_v11, %v388_v5  ;;  %v1132_v19 = vld [vmem:[%s1261_s13 + $0x1c7] ss:$8 sm:$0xf0]  ;;  %v1160_v20 = vld [vmem:[%s1261_s13 + $0x548] ss:$8 sm:$0xf]  ;;  %v607_v26 = vor.u32 %v1103_v14, %v1102_v13 }
  0x5d   : > { %v1161_v21 = vld [vmem:[%s1261_s13 + $0x548] ss:$8 sm:$0xf0]  ;;  %v959_v28 = vld [vmem:[%s1261_s13 + $0x201] ss:$8 sm:$0xf]  ;;  %v680_v32 = vor.u32 %v1132_v19, %v1131_v18 }
  0x5e   : > { %v930_v22 = vld [vmem:[%s1261_s13 + $0x200] ss:$8 sm:$0xf]  ;;  %v801_v24 = vmax.f32 %v786_v15, 0.0  ;;  %v495_v25 = vmax.f32 %v422_v16, %v461_v12  ;;  %v753_v40 = vor.u32 %v1161_v21, %v1160_v20 }
  0x5f   : > { %v931_v23 = vld [vmem:[%s1261_s13 + $0x200] ss:$8 sm:$0xf0]  ;;  %v960_v29 = vld [vmem:[%s1261_s13 + $0x201] ss:$8 sm:$0xf0] }
  0x60   : > { %v188_v27 = vor.u32 %v931_v23, %v930_v22  ;;  %v988_v30 = vld [vmem:[%s1261_s13 + $0x202] ss:$8 sm:$0xf]  ;;  %816 = vst [vmem:[%s1305_s17 + $0x30] sm:$0xff] %v801_v24  ;;  %v568_v31 = vmax.f32 %v495_v25, %v534_v17  ;;  %v246_v33 = vor.u32 %v960_v29, %v959_v28 }
  0x61   : > { %v989_v34 = vld [vmem:[%s1261_s13 + $0x202] ss:$8 sm:$0xf0]  ;;  %v1017_v35 = vld [vmem:[%s1261_s13 + $0x203] ss:$8 sm:$0xf] }
  0x62   : > { %v319_v36 = vor.u32 %v989_v34, %v988_v30  ;;  %v1018_v37 = vld [vmem:[%s1261_s13 + $0x203] ss:$8 sm:$0xf0]  ;;  %v1046_v38 = vld [vmem:[%s1261_s13 + $0x204] ss:$8 sm:$0xf]  ;;  %v641_v39 = vmax.f32 %v568_v31, %v607_v26  ;;  %v277_v41 = vmax.f32 %v188_v27, %v246_v33 }
  0x63   : > { %v392_v42 = vor.u32 %v1018_v37, %v1017_v35  ;;  %v1047_v43 = vld [vmem:[%s1261_s13 + $0x204] ss:$8 sm:$0xf0]  ;;  %v1075_v44 = vld [vmem:[%s1261_s13 + $0x205] ss:$8 sm:$0xf] }
  0x64   : > { %v1076_v45 = vld [vmem:[%s1261_s13 + $0x205] ss:$8 sm:$0xf0]  ;;  %v714_v46 = vmax.f32 %v641_v39, %v680_v32  ;;  %v350_v47 = vmax.f32 %v277_v41, %v319_v36  ;;  %v465_v48 = vor.u32 %v1047_v43, %v1046_v38  ;;  %v1104_v49 = vld [vmem:[%s1261_s13 + $0x206] ss:$8 sm:$0xf] }
  0x65   : > { %v1105_v50 = vld [vmem:[%s1261_s13 + $0x206] ss:$8 sm:$0xf0]  ;;  %v1133_v51 = vld [vmem:[%s1261_s13 + $0x207] ss:$8 sm:$0xf]  ;;  %v538_v54 = vor.u32 %v1076_v45, %v1075_v44 }
  0x66   : > { %v787_v52 = vmax.f32 %v714_v46, %v753_v40  ;;  %v423_v53 = vmax.f32 %v350_v47, %v392_v42  ;;  %v1134_v55 = vld [vmem:[%s1261_s13 + $0x207] ss:$8 sm:$0xf0]  ;;  %v932_v56 = vld [vmem:[%s1261_s13 + $0x240] ss:$8 sm:$0xf]  ;;  %v611_v63 = vor.u32 %v1105_v50, %v1104_v49 }
  0x67   : > { %v1162_v57 = vld [vmem:[%s1261_s13 + $0x588] ss:$8 sm:$0xf]  ;;  %v961_v60 = vld [vmem:[%s1261_s13 + $0x241] ss:$8 sm:$0xf]  ;;  %v684_v6 = vor.u32 %v1134_v55, %v1133_v51 }
  0x68   : > { %v1163_v58 = vld [vmem:[%s1261_s13 + $0x588] ss:$8 sm:$0xf0]  ;;  %v802_v61 = vmax.f32 %v787_v52, 0.0  ;;  %v496_v62 = vmax.f32 %v423_v53, %v465_v48 }
  0x69   : > { %v933_v59 = vld [vmem:[%s1261_s13 + $0x240] ss:$8 sm:$0xf0]  ;;  %v962_v1 = vld [vmem:[%s1261_s13 + $0x241] ss:$8 sm:$0xf0]  ;;  %v757_v15 = vor.u32 %v1163_v58, %v1162_v57 }
  0x6a   : > { %v192_v0 = vor.u32 %v933_v59, %v932_v56  ;;  %v250_v2 = vor.u32 %v962_v1, %v961_v60  ;;  %v990_v3 = vld [vmem:[%s1261_s13 + $0x242] ss:$8 sm:$0xf]  ;;  %817 = vst [vmem:[%s1305_s17 + $0x38] sm:$0xff] %v802_v61  ;;  %v569_v5 = vmax.f32 %v496_v62, %v538_v54 }
  0x6b   : > { %v991_v4 = vld [vmem:[%s1261_s13 + $0x242] ss:$8 sm:$0xf0]  ;;  %v1019_v8 = vld [vmem:[%s1261_s13 + $0x243] ss:$8 sm:$0xf] }
  0x6c   : > { %v323_v7 = vor.u32 %v991_v4, %v990_v3  ;;  %v1020_v9 = vld [vmem:[%s1261_s13 + $0x243] ss:$8 sm:$0xf0]  ;;  %v278_v10 = vmax.f32 %v192_v0, %v250_v2  ;;  %v1048_v12 = vld [vmem:[%s1261_s13 + $0x244] ss:$8 sm:$0xf]  ;;  %v642_v14 = vmax.f32 %v569_v5, %v611_v63 }
  0x6d   : > { %v396_v11 = vor.u32 %v1020_v9, %v1019_v8  ;;  %v1049_v13 = vld [vmem:[%s1261_s13 + $0x244] ss:$8 sm:$0xf0]  ;;  %v1077_v16 = vld [vmem:[%s1261_s13 + $0x245] ss:$8 sm:$0xf] }
  0x6e   : > { %v1078_v17 = vld [vmem:[%s1261_s13 + $0x245] ss:$8 sm:$0xf0]  ;;  %v351_v18 = vmax.f32 %v278_v10, %v323_v7  ;;  %v469_v19 = vor.u32 %v1049_v13, %v1048_v12  ;;  %v715_v20 = vmax.f32 %v642_v14, %v684_v6  ;;  %v1106_v21 = vld [vmem:[%s1261_s13 + $0x246] ss:$8 sm:$0xf] }
  0x6f   : > { %v1107_v22 = vld [vmem:[%s1261_s13 + $0x246] ss:$8 sm:$0xf0]  ;;  %v542_v24 = vor.u32 %v1078_v17, %v1077_v16  ;;  %v1135_v25 = vld [vmem:[%s1261_s13 + $0x247] ss:$8 sm:$0xf] }
  0x70   : > { %v424_v23 = vmax.f32 %v351_v18, %v396_v11  ;;  %v1136_v26 = vld [vmem:[%s1261_s13 + $0x247] ss:$8 sm:$0xf0]  ;;  %v788_v27 = vmax.f32 %v715_v20, %v757_v15  ;;  %v1164_v28 = vld [vmem:[%s1261_s13 + $0x5c8] ss:$8 sm:$0xf]  ;;  %v615_v33 = vor.u32 %v1107_v22, %v1106_v21 }
  0x71   : > { %v1165_v29 = vld [vmem:[%s1261_s13 + $0x5c8] ss:$8 sm:$0xf0]  ;;  %v963_v35 = vld [vmem:[%s1261_s13 + $0x281] ss:$8 sm:$0xf]  ;;  %v688_v41 = vor.u32 %v1136_v26, %v1135_v25 }
  0x72   : > { %v934_v30 = vld [vmem:[%s1261_s13 + $0x280] ss:$8 sm:$0xf]  ;;  %v497_v32 = vmax.f32 %v424_v23, %v469_v19  ;;  %v964_v36 = vld [vmem:[%s1261_s13 + $0x281] ss:$8 sm:$0xf0]  ;;  %v761_v49 = vor.u32 %v1165_v29, %v1164_v28 }
  0x73   : > { %v935_v31 = vld [vmem:[%s1261_s13 + $0x280] ss:$8 sm:$0xf0]  ;;  %v803_v37 = vmax.f32 %v788_v27, 0.0  ;;  %v254_v38 = vor.u32 %v964_v36, %v963_v35 }
  0x74   : > { %v196_v34 = vor.u32 %v935_v31, %v934_v30  ;;  %v992_v39 = vld [vmem:[%s1261_s13 + $0x282] ss:$8 sm:$0xf]  ;;  %v570_v40 = vmax.f32 %v497_v32, %v542_v24  ;;  %v1021_v43 = vld [vmem:[%s1261_s13 + $0x283] ss:$8 sm:$0xf] }
  0x75   : > { %v993_v42 = vld [vmem:[%s1261_s13 + $0x282] ss:$8 sm:$0xf0]  ;;  %818 = vst [vmem:[%s1305_s17 + $0x40] sm:$0xff] %v803_v37 }
  0x76   : > { %v279_v44 = vmax.f32 %v196_v34, %v254_v38  ;;  %v327_v45 = vor.u32 %v993_v42, %v992_v39  ;;  %v1022_v46 = vld [vmem:[%s1261_s13 + $0x283] ss:$8 sm:$0xf0]  ;;  %v1050_v47 = vld [vmem:[%s1261_s13 + $0x284] ss:$8 sm:$0xf]  ;;  %v643_v48 = vmax.f32 %v570_v40, %v615_v33 }
  0x77   : > { %v400_v50 = vor.u32 %v1022_v46, %v1021_v43  ;;  %v1051_v51 = vld [vmem:[%s1261_s13 + $0x284] ss:$8 sm:$0xf0]  ;;  %v1079_v52 = vld [vmem:[%s1261_s13 + $0x285] ss:$8 sm:$0xf] }
  0x78   : > { %v352_v53 = vmax.f32 %v279_v44, %v327_v45  ;;  %v473_v54 = vor.u32 %v1051_v51, %v1050_v47  ;;  %v1080_v55 = vld [vmem:[%s1261_s13 + $0x285] ss:$8 sm:$0xf0]  ;;  %v716_v56 = vmax.f32 %v643_v48, %v688_v41  ;;  %v1108_v57 = vld [vmem:[%s1261_s13 + $0x286] ss:$8 sm:$0xf] }
  0x79   : > { %v1109_v58 = vld [vmem:[%s1261_s13 + $0x286] ss:$8 sm:$0xf0]  ;;  %v546_v60 = vor.u32 %v1080_v55, %v1079_v52  ;;  %v1137_v61 = vld [vmem:[%s1261_s13 + $0x287] ss:$8 sm:$0xf] }
  0x7a   : > { %v425_v59 = vmax.f32 %v352_v53, %v400_v50  ;;  %v1138_v62 = vld [vmem:[%s1261_s13 + $0x287] ss:$8 sm:$0xf0]  ;;  %v789_v63 = vmax.f32 %v716_v56, %v761_v49  ;;  %v1166_v0 = vld [vmem:[%s1261_s13 + $0x608] ss:$8 sm:$0xf]  ;;  %v619_v4 = vor.u32 %v1109_v58, %v1108_v57 }
  0x7b   : > { %v1167_v1 = vld [vmem:[%s1261_s13 + $0x608] ss:$8 sm:$0xf0]  ;;  %v965_v6 = vld [vmem:[%s1261_s13 + $0x2c1] ss:$8 sm:$0xf]  ;;  %v692_v11 = vor.u32 %v1138_v62, %v1137_v61 }
  0x7c   : > { %v936_v2 = vld [vmem:[%s1261_s13 + $0x2c0] ss:$8 sm:$0xf]  ;;  %v498_v3 = vmax.f32 %v425_v59, %v473_v54  ;;  %v804_v7 = vmax.f32 %v789_v63, 0.0  ;;  %v765_v19 = vor.u32 %v1167_v1, %v1166_v0 }
  0x7d   : > { %v937_v5 = vld [vmem:[%s1261_s13 + $0x2c0] ss:$8 sm:$0xf0]  ;;  %v966_v9 = vld [vmem:[%s1261_s13 + $0x2c1] ss:$8 sm:$0xf0] }
  0x7e   : > { %v200_v8 = vor.u32 %v937_v5, %v936_v2  ;;  %v571_v10 = vmax.f32 %v498_v3, %v546_v60  ;;  %v258_v12 = vor.u32 %v966_v9, %v965_v6  ;;  %v994_v13 = vld [vmem:[%s1261_s13 + $0x2c2] ss:$8 sm:$0xf]  ;;  %819 = vst [vmem:[%s1305_s17 + $0x48] sm:$0xff] %v804_v7 }
  0x7f   : > { %v995_v14 = vld [vmem:[%s1261_s13 + $0x2c2] ss:$8 sm:$0xf0]  ;;  %v1023_v16 = vld [vmem:[%s1261_s13 + $0x2c3] ss:$8 sm:$0xf] }
  0x80   : > { %v331_v15 = vor.u32 %v995_v14, %v994_v13  ;;  %v1024_v17 = vld [vmem:[%s1261_s13 + $0x2c3] ss:$8 sm:$0xf0]  ;;  %v644_v18 = vmax.f32 %v571_v10, %v619_v4  ;;  %v280_v20 = vmax.f32 %v200_v8, %v258_v12  ;;  %v1052_v22 = vld [vmem:[%s1261_s13 + $0x2c4] ss:$8 sm:$0xf] }
  0x81   : > { %v404_v21 = vor.u32 %v1024_v17, %v1023_v16  ;;  %v1053_v23 = vld [vmem:[%s1261_s13 + $0x2c4] ss:$8 sm:$0xf0]  ;;  %v1081_v24 = vld [vmem:[%s1261_s13 + $0x2c5] ss:$8 sm:$0xf] }
  0x82   : > { %v1082_v25 = vld [vmem:[%s1261_s13 + $0x2c5] ss:$8 sm:$0xf0]  ;;  %v717_v26 = vmax.f32 %v644_v18, %v692_v11  ;;  %v353_v27 = vmax.f32 %v280_v20, %v331_v15  ;;  %v477_v28 = vor.u32 %v1053_v23, %v1052_v22  ;;  %v1110_v29 = vld [vmem:[%s1261_s13 + $0x2c6] ss:$8 sm:$0xf] }
  0x83   : > { %v1111_v30 = vld [vmem:[%s1261_s13 + $0x2c6] ss:$8 sm:$0xf0]  ;;  %v550_v33 = vor.u32 %v1082_v25, %v1081_v24  ;;  %v1139_v34 = vld [vmem:[%s1261_s13 + $0x2c7] ss:$8 sm:$0xf] }
  0x84   : > { %v790_v31 = vmax.f32 %v717_v26, %v765_v19  ;;  %v426_v32 = vmax.f32 %v353_v27, %v404_v21  ;;  %v1140_v35 = vld [vmem:[%s1261_s13 + $0x2c7] ss:$8 sm:$0xf0]  ;;  %v1168_v36 = vld [vmem:[%s1261_s13 + $0x648] ss:$8 sm:$0xf]  ;;  %v623_v42 = vor.u32 %v1111_v30, %v1110_v29 }
  0x85   : > { %v1169_v37 = vld [vmem:[%s1261_s13 + $0x648] ss:$8 sm:$0xf0]  ;;  %v967_v44 = vld [vmem:[%s1261_s13 + $0x301] ss:$8 sm:$0xf]  ;;  %v696_v48 = vor.u32 %v1140_v35, %v1139_v34 }
  0x86   : > { %v938_v38 = vld [vmem:[%s1261_s13 + $0x300] ss:$8 sm:$0xf]  ;;  %v805_v40 = vmax.f32 %v790_v31, 0.0  ;;  %v499_v41 = vmax.f32 %v426_v32, %v477_v28  ;;  %v769_v56 = vor.u32 %v1169_v37, %v1168_v36 }
  0x87   : > { %v939_v39 = vld [vmem:[%s1261_s13 + $0x300] ss:$8 sm:$0xf0]  ;;  %v968_v45 = vld [vmem:[%s1261_s13 + $0x301] ss:$8 sm:$0xf0] }
  0x88   : > { %v204_v43 = vor.u32 %v939_v39, %v938_v38  ;;  %v996_v46 = vld [vmem:[%s1261_s13 + $0x302] ss:$8 sm:$0xf]  ;;  %820 = vst [vmem:[%s1305_s17 + $0x50] sm:$0xff] %v805_v40  ;;  %v572_v47 = vmax.f32 %v499_v41, %v550_v33  ;;  %v262_v49 = vor.u32 %v968_v45, %v967_v44 }
  0x89   : > { %v997_v50 = vld [vmem:[%s1261_s13 + $0x302] ss:$8 sm:$0xf0]  ;;  %v1025_v51 = vld [vmem:[%s1261_s13 + $0x303] ss:$8 sm:$0xf] }
  0x8a   : > { %v335_v52 = vor.u32 %v997_v50, %v996_v46  ;;  %v1026_v53 = vld [vmem:[%s1261_s13 + $0x303] ss:$8 sm:$0xf0]  ;;  %v1054_v54 = vld [vmem:[%s1261_s13 + $0x304] ss:$8 sm:$0xf]  ;;  %v645_v55 = vmax.f32 %v572_v47, %v623_v42  ;;  %v281_v57 = vmax.f32 %v204_v43, %v262_v49 }
  0x8b   : > { %v408_v58 = vor.u32 %v1026_v53, %v1025_v51  ;;  %v1055_v59 = vld [vmem:[%s1261_s13 + $0x304] ss:$8 sm:$0xf0]  ;;  %v1083_v60 = vld [vmem:[%s1261_s13 + $0x305] ss:$8 sm:$0xf] }
  0x8c   : > { %v1084_v61 = vld [vmem:[%s1261_s13 + $0x305] ss:$8 sm:$0xf0]  ;;  %v718_v62 = vmax.f32 %v645_v55, %v696_v48  ;;  %v354_v63 = vmax.f32 %v281_v57, %v335_v52  ;;  %v481_v0 = vor.u32 %v1055_v59, %v1054_v54  ;;  %v1112_v1 = vld [vmem:[%s1261_s13 + $0x306] ss:$8 sm:$0xf] }
  0x8d   : > { %v1113_v2 = vld [vmem:[%s1261_s13 + $0x306] ss:$8 sm:$0xf0]  ;;  %v1141_v3 = vld [vmem:[%s1261_s13 + $0x307] ss:$8 sm:$0xf]  ;;  %v554_v6 = vor.u32 %v1084_v61, %v1083_v60 }
  0x8e   : > { %v791_v4 = vmax.f32 %v718_v62, %v769_v56  ;;  %v427_v5 = vmax.f32 %v354_v63, %v408_v58  ;;  %v1142_v7 = vld [vmem:[%s1261_s13 + $0x307] ss:$8 sm:$0xf0]  ;;  %v940_v8 = vld [vmem:[%s1261_s13 + $0x340] ss:$8 sm:$0xf]  ;;  %v627_v15 = vor.u32 %v1113_v2, %v1112_v1 }
  0x8f   : > { %v1170_v9 = vld [vmem:[%s1261_s13 + $0x688] ss:$8 sm:$0xf]  ;;  %v969_v12 = vld [vmem:[%s1261_s13 + $0x341] ss:$8 sm:$0xf]  ;;  %v700_v22 = vor.u32 %v1142_v7, %v1141_v3  ;;  %v824_v7 = vlaneseq }
  0x90   : > { %v1171_v10 = vld [vmem:[%s1261_s13 + $0x688] ss:$8 sm:$0xf0]  ;;  %v806_v13 = vmax.f32 %v791_v4, 0.0  ;;  %v500_v14 = vmax.f32 %v427_v5, %v481_v0 }
  0x91   : > { %v941_v11 = vld [vmem:[%s1261_s13 + $0x340] ss:$8 sm:$0xf0]  ;;  %v970_v17 = vld [vmem:[%s1261_s13 + $0x341] ss:$8 sm:$0xf0]  ;;  %v773_v31 = vor.u32 %v1171_v10, %v1170_v9 }
  0x92   : > { %v208_v16 = vor.u32 %v941_v11, %v940_v8  ;;  %v266_v18 = vor.u32 %v970_v17, %v969_v12  ;;  %v998_v19 = vld [vmem:[%s1261_s13 + $0x342] ss:$8 sm:$0xf]  ;;  %821 = vst [vmem:[%s1305_s17 + $0x58] sm:$0xff] %v806_v13  ;;  %v573_v21 = vmax.f32 %v500_v14, %v554_v6  ;;  %vm826_vm0 = vcmp.lt.s32.totalorder %v824_v7, 64 }
  0x93   : > { %v999_v20 = vld [vmem:[%s1261_s13 + $0x342] ss:$8 sm:$0xf0]  ;;  %v1027_v24 = vld [vmem:[%s1261_s13 + $0x343] ss:$8 sm:$0xf] }
  0x94   : > { %v339_v23 = vor.u32 %v999_v20, %v998_v19  ;;  %v1028_v25 = vld [vmem:[%s1261_s13 + $0x343] ss:$8 sm:$0xf0]  ;;  %v282_v26 = vmax.f32 %v208_v16, %v266_v18  ;;  %v1056_v28 = vld [vmem:[%s1261_s13 + $0x344] ss:$8 sm:$0xf]  ;;  %v646_v30 = vmax.f32 %v573_v21, %v627_v15 }
  0x95   : > { %v412_v27 = vor.u32 %v1028_v25, %v1027_v24  ;;  %v1057_v29 = vld [vmem:[%s1261_s13 + $0x344] ss:$8 sm:$0xf0]  ;;  %v1085_v32 = vld [vmem:[%s1261_s13 + $0x345] ss:$8 sm:$0xf] }
  0x96   : > { %v1086_v33 = vld [vmem:[%s1261_s13 + $0x345] ss:$8 sm:$0xf0]  ;;  %v355_v34 = vmax.f32 %v282_v26, %v339_v23  ;;  %v485_v35 = vor.u32 %v1057_v29, %v1056_v28  ;;  %v719_v36 = vmax.f32 %v646_v30, %v700_v22  ;;  %v1114_v37 = vld [vmem:[%s1261_s13 + $0x346] ss:$8 sm:$0xf] }
  0x97   : > { %v1115_v38 = vld [vmem:[%s1261_s13 + $0x346] ss:$8 sm:$0xf0]  ;;  %v558_v40 = vor.u32 %v1086_v33, %v1085_v32  ;;  %v1143_v41 = vld [vmem:[%s1261_s13 + $0x347] ss:$8 sm:$0xf] }
  0x98   : > { %v428_v39 = vmax.f32 %v355_v34, %v412_v27  ;;  %v1144_v42 = vld [vmem:[%s1261_s13 + $0x347] ss:$8 sm:$0xf0]  ;;  %v792_v43 = vmax.f32 %v719_v36, %v773_v31  ;;  %v1172_v44 = vld [vmem:[%s1261_s13 + $0x6c8] ss:$8 sm:$0xf]  ;;  %v631_v48 = vor.u32 %v1115_v38, %v1114_v37 }
  0x99   : > { %v942_v45 = vld [vmem:[%s1261_s13 + $0x380] ss:$8 sm:$0x1]  ;;  %v971_v46 = vld [vmem:[%s1261_s13 + $0x381] ss:$8 sm:$0x1]  ;;  %v704_v55 = vor.u32 %v1144_v42, %v1143_v41 }
  0x9a   : > { %v501_v47 = vmax.f32 %v428_v39, %v485_v35  ;;  %v1173_v49 = vld [vmem:[%s1261_s13 + $0x6c8] ss:$8 sm:$0xf0]  ;;  %v283_v50 = vmax.f32 %v942_v45, %v971_v46  ;;  %v1000_v51 = vld [vmem:[%s1261_s13 + $0x382] ss:$8 sm:$0x1] }
  0x9b   : > { %v807_v52 = vmax.f32 %v792_v43, 0.0  ;;  %v1029_v53 = vld [vmem:[%s1261_s13 + $0x383] ss:$8 sm:$0x1]  ;;  %v777_v59 = vor.u32 %v1173_v49, %v1172_v44 }
  0x9c   : > { %v574_v54 = vmax.f32 %v501_v47, %v558_v40  ;;  %v356_v56 = vmax.f32 %v283_v50, %v1000_v51  ;;  %v1058_v57 = vld [vmem:[%s1261_s13 + $0x384] ss:$8 sm:$0x1]  ;;  %v1087_v61 = vld [vmem:[%s1261_s13 + $0x385] ss:$8 sm:$0x1] }
  0x9d   : > { %822 = vst [vmem:[%s1305_s17 + $0x60] sm:$0xff] %v807_v52  ;;  %v1116_v0 = vld [vmem:[%s1261_s13 + $0x386] ss:$8 sm:$0x1] }
  0x9e   : > { %v647_v58 = vmax.f32 %v574_v54, %v631_v48  ;;  %v429_v60 = vmax.f32 %v356_v56, %v1029_v53  ;;  %v1145_v3 = vld [vmem:[%s1261_s13 + $0x387] ss:$8 sm:$0x1]  ;;  %v1174_v6 = vld [vmem:[%s1261_s13 + $0x708] ss:$8 sm:$0x1] }
  0xa0   : > { %v720_v62 = vmax.f32 %v647_v58, %v704_v55  ;;  %v502_v63 = vmax.f32 %v429_v60, %v1058_v57 }
  0xa2   : > { %v793_v1 = vmax.f32 %v720_v62, %v777_v59  ;;  %v575_v2 = vmax.f32 %v502_v63, %v1087_v61 }
  0xa4   : > { %v808_v4 = vmax.f32 %v793_v1, 0.0  ;;  %v648_v5 = vmax.f32 %v575_v2, %v1116_v0 }
  0xa6   : > { %823 = vst [vmem:[%s1305_s17 + $0x68] sm:$0xff] %v808_v4  ;;  %v721_v8 = vmax.f32 %v648_v5, %v1145_v3 }
  0xa8   : > { %v794_v9 = vmax.f32 %v721_v8, %v1174_v6 }
  0xaa   : > { %v809_v10 = vmax.f32 %v794_v9, 0.0 }
  0xac   : > { %828 = vst.msk [vmem:[%s1305_s17 + $0x70] sm:$0x1] %vm826_vm0, %v809_v10 }
  0xad PF: > { %s11_s8 = sadd.s32 1, %s1225_s8   ;;  %s1556_s6 = smov %s1221_s7 }
  0xae   : > { %p8_p5 = scmp.ge.s32.totalorder %s11_s8, 4   ;;  %s1557_s7 = smov %s1559_s9 }
  0xb0   :  { %10 = sbr.rel (!%p8_p5) target bundleno = 2 (0x2), region = 188 }

// kernel: spherenet_forward.9
= control target key start
LH: loop header
LB: loop body
LE: loop exit
PB: predicated region body
PF: predicated region fallthrough
CT: control target
= control target key end

     0   :  { %v310_v3 = vlaneseq  ;;  %v4985_v8 = vmov 1983009808   ;;  %s5841_s0 = inlined_call_operand.vmem [shape: f32[2,14400], index: 0, kind: input, shape index: {}]   ;;  %s5842_s1 = inlined_call_operand.vmem [shape: f32[10,14400], index: 1, kind: input, shape index: {}]   ;;  %s5843_s2 = inlined_call_operand.vmem [shape: f32[1,10], index: 2, kind: input, shape index: {}]   ;;  %s5844_s3 = inlined_call_operand.hbm [shape: f32[2,10], index: 3, kind: output, shape index: {}]  }
   0x1   :  { %v158_v0 = vld [vmem:[%s5842_s1 + $0x390] sm:$0x3]  ;;  %v157_v1 = vld [vmem:[%s5842_s1 + $0x388] sm:$0x3]  ;;  %v160_v2 = vld [vmem:[%s5842_s1 + $0x3a0] sm:$0x3]  ;;  %v308_v9 = vunpack.c.l.s4 %v4985_v8 }
   0x2   :  { %938 = vmatprep.subr.mxu0 %v158_v0  ;;  %1008 = vmatprep.subr.mxu1 %v160_v2  ;;  %v159_v4 = vld [vmem:[%s5842_s1 + $0x398] sm:$0x3]  ;;  %v45_v5 = vld [vmem:[%s5842_s1 + $0x8] sm:$0xff]  ;;  %v15_v7 = vld [vmem:[%s5841_s0] sm:$0xff]  ;;  %v311_v10 = vshrl.u32 %v310_v3, 7 }
   0x3   :  { %939 = vmatpush1.xpose.msra.mxu0 %v157_v1  ;;  %1009 = vmatpush1.xpose.msra.mxu1 %v159_v4  ;;  %v47_v6 = vld [vmem:[%s5842_s1 + $0x18] sm:$0xff]  ;;  %v44_v11 = vld [vmem:[%s5842_s1] sm:$0xff]  ;;  %v46_v12 = vld [vmem:[%s5842_s1 + $0x10] sm:$0xff]  ;;  %v309_v13 = vunpack.c.0.s8 %v308_v9  ;;  %v306_v15 = vcombine.high %v15_v7, %v15_v7 }
   0x4   :  { %940 = vmatprep.subr.mxu0 %v45_v5  ;;  %1010 = vmatprep.subr.mxu1 %v47_v6  ;;  %v162_v14 = vld [vmem:[%s5842_s1 + $0x3b0] sm:$0x3]  ;;  %v164_v16 = vld [vmem:[%s5842_s1 + $0x3c0] sm:$0x3]  ;;  %v16_v17 = vld [vmem:[%s5841_s0 + $0x8] sm:$0xff] }
   0x5   :  { %v5045_v18 = vsub.s32 %v309_v13, %v311_v10  ;;  %v323_v19 = vcombine.high %v16_v17, %v16_v17  ;;  %v17_v24 = vld [vmem:[%s5841_s0 + $0x10] sm:$0xff]  ;;  %v161_v27 = vld [vmem:[%s5842_s1 + $0x3a8] sm:$0x3]  ;;  %v163_v28 = vld [vmem:[%s5842_s1 + $0x3b8] sm:$0x3] }
   0x6   :  { %v49_v29 = vld [vmem:[%s5842_s1 + $0x28] sm:$0xff]  ;;  %v51_v30 = vld [vmem:[%s5842_s1 + $0x38] sm:$0xff]  ;;  %v340_v33 = vcombine.high %v17_v24, %v17_v24  ;;  %v48_v34 = vld [vmem:[%s5842_s1 + $0x20] sm:$0xff] }
   0x7   :  { %941 = vmatpush1.xpose.msra.mxu0 %v44_v11  ;;  %1011 = vmatpush1.xpose.msra.mxu1 %v46_v12  ;;  %v313_v20 = vrot.slane %v15_v7, %v5045_v18  ;;  %v320_v21 = vrot.slane %v306_v15, %v5045_v18  ;;  %v330_v22 = vrot.slane %v16_v17, %v5045_v18  ;;  %v50_v35 = vld [vmem:[%s5842_s1 + $0x30] sm:$0xff]  ;;  %v168_v37 = vld [vmem:[%s5842_s1 + $0x3e0] sm:$0x3]  ;;  %v18_v40 = vld [vmem:[%s5841_s0 + $0x18] sm:$0xff] }
   0x8   :  { %1078 = vmatprep.subr.mxu0 %v162_v14  ;;  %1148 = vmatprep.subr.mxu1 %v164_v16  ;;  %v337_v23 = vrot.slane %v323_v19, %v5045_v18  ;;  %v166_v36 = vld [vmem:[%s5842_s1 + $0x3d0] sm:$0x3]  ;;  %v347_v38 = vrot.slane %v17_v24, %v5045_v18  ;;  %v354_v39 = vrot.slane %v340_v33, %v5045_v18  ;;  %v165_v41 = vld [vmem:[%s5842_s1 + $0x3c8] sm:$0x3]  ;;  %v167_v42 = vld [vmem:[%s5842_s1 + $0x3d8] sm:$0x3] }
   0x9   :  { %v321_v25 = vcombine.high %v313_v20, %v313_v20  ;;  %v322_v26 = vcombine.high %v320_v21, %v320_v21  ;;  %v338_v31 = vcombine.high %v330_v22, %v330_v22  ;;  %v53_v43 = vld [vmem:[%s5842_s1 + $0x48] sm:$0xff]  ;;  %v55_v44 = vld [vmem:[%s5842_s1 + $0x58] sm:$0xff]  ;;  %v357_v47 = vcombine.high %v18_v40, %v18_v40  ;;  %v52_v48 = vld [vmem:[%s5842_s1 + $0x40] sm:$0xff] }
   0xa   :  { %v339_v32 = vcombine.high %v337_v23, %v337_v23  ;;  %v355_v45 = vcombine.high %v347_v38, %v347_v38  ;;  %v356_v46 = vcombine.high %v354_v39, %v354_v39  ;;  %v54_v49 = vld [vmem:[%s5842_s1 + $0x50] sm:$0xff]  ;;  %v172_v51 = vld [vmem:[%s5842_s1 + $0x400] sm:$0x3]  ;;  %v364_v52 = vrot.slane %v18_v40, %v5045_v18  ;;  %v169_v55 = vld [vmem:[%s5842_s1 + $0x3e8] sm:$0x3] }
   0xb   :  { %974 = vmatprep.mubr.f32.mxu0 %v321_v25  ;;  %1044 = vmatprep.mubr.f32.mxu1 %v322_v26  ;;  %v170_v50 = vld [vmem:[%s5842_s1 + $0x3f0] sm:$0x3]  ;;  %v371_v53 = vrot.slane %v357_v47, %v5045_v18  ;;  %v19_v54 = vld [vmem:[%s5841_s0 + $0x20] sm:$0xff]  ;;  %v171_v56 = vld [vmem:[%s5842_s1 + $0x3f8] sm:$0x3] }
   0xc   :  { %975 = vmatmul.mubr.f32.vlgmr.msra.gmra.mxu0 %v313_v20  ;;  %1045 = vmatmul.mubr.f32.vlgmr.msra.gmra.mxu1 %v320_v21  ;;  %v57_v57 = vld [vmem:[%s5842_s1 + $0x68] sm:$0xff]  ;;  %v59_v58 = vld [vmem:[%s5842_s1 + $0x78] sm:$0xff]  ;;  %v372_v59 = vcombine.high %v364_v52, %v364_v52  ;;  %v374_v61 = vcombine.high %v19_v54, %v19_v54  ;;  %v56_v62 = vld [vmem:[%s5842_s1 + $0x60] sm:$0xff]  ;;  %v381_v2 = vrot.slane %v19_v54, %v5045_v18 }
   0xd   :  { %1079 = vmatpush1.xpose.msra.mxu0 %v161_v27  ;;  %1149 = vmatpush1.xpose.msra.mxu1 %v163_v28  ;;  %v373_v60 = vcombine.high %v371_v53, %v371_v53  ;;  %v58_v63 = vld [vmem:[%s5842_s1 + $0x70] sm:$0xff]  ;;  %v176_v1 = vld [vmem:[%s5842_s1 + $0x420] sm:$0x3]  ;;  %v20_v4 = vld [vmem:[%s5841_s0 + $0x28] sm:$0xff] }
   0xe   :  { %1080 = vmatprep.subr.mxu0 %v49_v29  ;;  %1150 = vmatprep.subr.mxu1 %v51_v30  ;;  %v174_v0 = vld [vmem:[%s5842_s1 + $0x410] sm:$0x3]  ;;  %v388_v3 = vrot.slane %v374_v61, %v5045_v18  ;;  %v173_v5 = vld [vmem:[%s5842_s1 + $0x408] sm:$0x3]  ;;  %v175_v6 = vld [vmem:[%s5842_s1 + $0x418] sm:$0x3]  ;;  %v389_v9 = vcombine.high %v381_v2, %v381_v2  ;;  %v391_v11 = vcombine.high %v20_v4, %v20_v4 }
   0xf   :  { %1114 = vmatprep.mubr.f32.mxu0 %v338_v31  ;;  %1184 = vmatprep.mubr.f32.mxu1 %v339_v32  ;;  %v61_v7 = vld [vmem:[%s5842_s1 + $0x88] sm:$0xff]  ;;  %v63_v8 = vld [vmem:[%s5842_s1 + $0x98] sm:$0xff]  ;;  %v60_v12 = vld [vmem:[%s5842_s1 + $0x80] sm:$0xff]  ;;  %v398_v16 = vrot.slane %v20_v4, %v5045_v18 }
  0x10   :  { %v390_v10 = vcombine.high %v388_v3, %v388_v3  ;;  %v62_v13 = vld [vmem:[%s5842_s1 + $0x90] sm:$0xff]  ;;  %v180_v15 = vld [vmem:[%s5842_s1 + $0x440] sm:$0x3]  ;;  %v405_v17 = vrot.slane %v391_v11, %v5045_v18  ;;  %v177_v20 = vld [vmem:[%s5842_s1 + $0x428] sm:$0x3] }
  0x11   :  { %1081 = vmatpush1.xpose.msra.mxu0 %v48_v34  ;;  %1151 = vmatpush1.xpose.msra.mxu1 %v50_v35  ;;  %v178_v14 = vld [vmem:[%s5842_s1 + $0x430] sm:$0x3]  ;;  %v179_v21 = vld [vmem:[%s5842_s1 + $0x438] sm:$0x3]  ;;  %v406_v24 = vcombine.high %v398_v16, %v398_v16  ;;  %v64_v27 = vld [vmem:[%s5842_s1 + $0xa0] sm:$0xff] }
  0x12   :  { %1218 = vmatprep.subr.mxu0 %v166_v36  ;;  %1288 = vmatprep.subr.mxu1 %v168_v37  ;;  %v21_v19 = vld [vmem:[%s5841_s0 + $0x30] sm:$0xff]  ;;  %v407_v25 = vcombine.high %v405_v17, %v405_v17  ;;  %v184_v30 = vld [vmem:[%s5842_s1 + $0x460] sm:$0x3]  ;;  %v22_v33 = vld [vmem:[%s5841_s0 + $0x38] sm:$0xff] }
  0x13   :  { %v408_v26 = vcombine.high %v21_v19, %v21_v19  ;;  %v66_v28 = vld [vmem:[%s5842_s1 + $0xb0] sm:$0xff]  ;;  %v415_v31 = vrot.slane %v21_v19, %v5045_v18  ;;  %v181_v34 = vld [vmem:[%s5842_s1 + $0x448] sm:$0x3]  ;;  %v183_v35 = vld [vmem:[%s5842_s1 + $0x458] sm:$0x3]  ;;  %v425_v40 = vcombine.high %v22_v33, %v22_v33 }
  0x14   :  { %1115 = vmatmul.mubr.f32.vlgmr.msra.gmra.mxu0 %v330_v22  ;;  %1185 = vmatmul.mubr.f32.vlgmr.msra.gmra.mxu1 %v337_v23  ;;  %v65_v22 = vld [vmem:[%s5842_s1 + $0xa8] sm:$0xff]  ;;  %v67_v23 = vld [vmem:[%s5842_s1 + $0xb8] sm:$0xff]  ;;  %v182_v29 = vld [vmem:[%s5842_s1 + $0x450] sm:$0x3] }
  0x15   :  { %1219 = vmatpush1.xpose.msra.mxu0 %v165_v41  ;;  %1289 = vmatpush1.xpose.msra.mxu1 %v167_v42  ;;  %v422_v32 = vrot.slane %v408_v26, %v5045_v18  ;;  %v69_v36 = vld [vmem:[%s5842_s1 + $0xc8] sm:$0xff]  ;;  %v71_v37 = vld [vmem:[%s5842_s1 + $0xd8] sm:$0xff]  ;;  %v68_v41 = vld [vmem:[%s5842_s1 + $0xc0] sm:$0xff] }
  0x16   :  { %1220 = vmatprep.subr.mxu0 %v53_v43  ;;  %1290 = vmatprep.subr.mxu1 %v55_v44  ;;  %v70_v42 = vld [vmem:[%s5842_s1 + $0xd0] sm:$0xff]  ;;  %v188_v44 = vld [vmem:[%s5842_s1 + $0x480] sm:$0x3]  ;;  %v24_v61 = vld [vmem:[%s5841_s0 + $0x48] sm:$0xff] }
  0x17   :  { %1254 = vmatprep.mubr.f32.mxu0 %v355_v45  ;;  %1324 = vmatprep.mubr.f32.mxu1 %v356_v46  ;;  %v186_v43 = vld [vmem:[%s5842_s1 + $0x470] sm:$0x3]  ;;  %v432_v45 = vrot.slane %v22_v33, %v5045_v18  ;;  %v439_v46 = vrot.slane %v425_v40, %v5045_v18  ;;  %v23_v47 = vld [vmem:[%s5841_s0 + $0x40] sm:$0xff]  ;;  %v459_v4 = vcombine.high %v24_v61, %v24_v61 }
  0x18   :  { %v442_v54 = vcombine.high %v23_v47, %v23_v47  ;;  %v25_v11 = vld [vmem:[%s5841_s0 + $0x50] sm:$0xff] }
  0x19   :  { %1221 = vmatpush1.xpose.msra.mxu0 %v52_v48  ;;  %1291 = vmatpush1.xpose.msra.mxu1 %v54_v49  ;;  %v185_v48 = vld [vmem:[%s5842_s1 + $0x468] sm:$0x3]  ;;  %v187_v49 = vld [vmem:[%s5842_s1 + $0x478] sm:$0x3] }
  0x1a   :  { %1358 = vmatprep.subr.mxu0 %v170_v50  ;;  %1428 = vmatprep.subr.mxu1 %v172_v51  ;;  %v73_v50 = vld [vmem:[%s5842_s1 + $0xe8] sm:$0xff]  ;;  %v75_v51 = vld [vmem:[%s5842_s1 + $0xf8] sm:$0xff] }
  0x1c   :  { %1255 = vmatmul.mubr.f32.vlgmr.msra.gmra.mxu0 %v347_v38  ;;  %1325 = vmatmul.mubr.f32.vlgmr.msra.gmra.mxu1 %v354_v39  ;;  %v423_v38 = vcombine.high %v415_v31, %v415_v31  ;;  %v424_v39 = vcombine.high %v422_v32, %v422_v32 }
  0x1d   :  { %1359 = vmatpush1.xpose.msra.mxu0 %v169_v55  ;;  %1429 = vmatpush1.xpose.msra.mxu1 %v171_v56  ;;  %v72_v55 = vld [vmem:[%s5842_s1 + $0xe0] sm:$0xff]  ;;  %v74_v56 = vld [vmem:[%s5842_s1 + $0xf0] sm:$0xff] }
  0x1e   :  { %1360 = vmatprep.subr.mxu0 %v57_v57  ;;  %1430 = vmatprep.subr.mxu1 %v59_v58  ;;  %v190_v57 = vld [vmem:[%s5842_s1 + $0x490] sm:$0x3]  ;;  %v192_v58 = vld [vmem:[%s5842_s1 + $0x4a0] sm:$0x3] }
  0x1f   :  { %1394 = vmatprep.mubr.f32.mxu0 %v372_v59  ;;  %1464 = vmatprep.mubr.f32.mxu1 %v373_v60  ;;  %v449_v59 = vrot.slane %v23_v47, %v5045_v18  ;;  %v456_v60 = vrot.slane %v442_v54, %v5045_v18 }
  0x21   :  { %1361 = vmatpush1.xpose.msra.mxu0 %v56_v62  ;;  %1431 = vmatpush1.xpose.msra.mxu1 %v58_v63  ;;  %v189_v62 = vld [vmem:[%s5842_s1 + $0x488] sm:$0x3]  ;;  %v191_v63 = vld [vmem:[%s5842_s1 + $0x498] sm:$0x3] }
  0x22   :  { %1498 = vmatprep.subr.mxu0 %v174_v0  ;;  %1568 = vmatprep.subr.mxu1 %v176_v1  ;;  %v77_v0 = vld [vmem:[%s5842_s1 + $0x108] sm:$0xff]  ;;  %v79_v1 = vld [vmem:[%s5842_s1 + $0x118] sm:$0xff] }
  0x24   :  { %1395 = vmatmul.mubr.f32.vlgmr.msra.gmra.mxu0 %v364_v52  ;;  %1465 = vmatmul.mubr.f32.vlgmr.msra.gmra.mxu1 %v371_v53  ;;  %v440_v52 = vcombine.high %v432_v45, %v432_v45  ;;  %v441_v53 = vcombine.high %v439_v46, %v439_v46 }
  0x25   :  { %1499 = vmatpush1.xpose.msra.mxu0 %v173_v5  ;;  %1569 = vmatpush1.xpose.msra.mxu1 %v175_v6  ;;  %v76_v5 = vld [vmem:[%s5842_s1 + $0x100] sm:$0xff]  ;;  %v78_v6 = vld [vmem:[%s5842_s1 + $0x110] sm:$0xff] }
  0x26   :  { %1500 = vmatprep.subr.mxu0 %v61_v7  ;;  %1570 = vmatprep.subr.mxu1 %v63_v8  ;;  %v194_v7 = vld [vmem:[%s5842_s1 + $0x4b0] sm:$0x3]  ;;  %v196_v8 = vld [vmem:[%s5842_s1 + $0x4c0] sm:$0x3] }
  0x27   :  { %1534 = vmatprep.mubr.f32.mxu0 %v389_v9  ;;  %1604 = vmatprep.mubr.f32.mxu1 %v390_v10  ;;  %v466_v9 = vrot.slane %v24_v61, %v5045_v18  ;;  %v473_v10 = vrot.slane %v459_v4, %v5045_v18 }
  0x29   :  { %1501 = vmatpush1.xpose.msra.mxu0 %v60_v12  ;;  %1571 = vmatpush1.xpose.msra.mxu1 %v62_v13  ;;  %v193_v12 = vld [vmem:[%s5842_s1 + $0x4a8] sm:$0x3]  ;;  %v195_v13 = vld [vmem:[%s5842_s1 + $0x4b8] sm:$0x3] }
  0x2a   :  { %1638 = vmatprep.subr.mxu0 %v178_v14  ;;  %1708 = vmatprep.subr.mxu1 %v180_v15 }
  0x2c   :  { %1535 = vmatmul.mubr.f32.vlgmr.msra.gmra.mxu0 %v381_v2  ;;  %1605 = vmatmul.mubr.f32.vlgmr.msra.gmra.mxu1 %v388_v3  ;;  %v457_v2 = vcombine.high %v449_v59, %v449_v59  ;;  %v458_v3 = vcombine.high %v456_v60, %v456_v60 }
  0x2d   :  { %1639 = vmatpush1.xpose.msra.mxu0 %v177_v20  ;;  %1709 = vmatpush1.xpose.msra.mxu1 %v179_v21 }
  0x2e   :  { %1640 = vmatprep.subr.mxu0 %v65_v22  ;;  %1710 = vmatprep.subr.mxu1 %v67_v23 }
  0x2f   :  { %1674 = vmatprep.mubr.f32.mxu0 %v406_v24  ;;  %1744 = vmatprep.mubr.f32.mxu1 %v407_v25 }
  0x31   :  { %1641 = vmatpush1.xpose.msra.mxu0 %v64_v27  ;;  %1711 = vmatpush1.xpose.msra.mxu1 %v66_v28 }
  0x32   :  { %1778 = vmatprep.subr.mxu0 %v182_v29  ;;  %1848 = vmatprep.subr.mxu1 %v184_v30 }
  0x34   :  { %1675 = vmatmul.mubr.f32.vlgmr.msra.gmra.mxu0 %v398_v16  ;;  %1745 = vmatmul.mubr.f32.vlgmr.msra.gmra.mxu1 %v405_v17 }
  0x35   :  { %1779 = vmatpush1.xpose.msra.mxu0 %v181_v34  ;;  %1849 = vmatpush1.xpose.msra.mxu1 %v183_v35 }
  0x36   :  { %1780 = vmatprep.subr.mxu0 %v69_v36  ;;  %1850 = vmatprep.subr.mxu1 %v71_v37 }
  0x37   :  { %1814 = vmatprep.mubr.f32.mxu0 %v423_v38  ;;  %1884 = vmatprep.mubr.f32.mxu1 %v424_v39 }
  0x39   :  { %1781 = vmatpush1.xpose.msra.mxu0 %v68_v41  ;;  %1851 = vmatpush1.xpose.msra.mxu1 %v70_v42 }
  0x3a   :  { %1918 = vmatprep.subr.mxu0 %v186_v43  ;;  %1988 = vmatprep.subr.mxu1 %v188_v44 }
  0x3c   :  { %1815 = vmatmul.mubr.f32.vlgmr.msra.gmra.mxu0 %v415_v31  ;;  %1885 = vmatmul.mubr.f32.vlgmr.msra.gmra.mxu1 %v422_v32 }
  0x3d   :  { %1919 = vmatpush1.xpose.msra.mxu0 %v185_v48  ;;  %1989 = vmatpush1.xpose.msra.mxu1 %v187_v49 }
  0x3e   :  { %1920 = vmatprep.subr.mxu0 %v73_v50  ;;  %1990 = vmatprep.subr.mxu1 %v75_v51 }
  0x3f   :  { %1954 = vmatprep.mubr.f32.mxu0 %v440_v52  ;;  %2024 = vmatprep.mubr.f32.mxu1 %v441_v53 }
  0x41   :  { %1921 = vmatpush1.xpose.msra.mxu0 %v72_v55  ;;  %1991 = vmatpush1.xpose.msra.mxu1 %v74_v56 }
  0x42   :  { %2058 = vmatprep.subr.mxu0 %v190_v57  ;;  %2128 = vmatprep.subr.mxu1 %v192_v58 }
  0x44   :  { %1955 = vmatmul.mubr.f32.vlgmr.msra.gmra.mxu0 %v432_v45  ;;  %2025 = vmatmul.mubr.f32.vlgmr.msra.gmra.mxu1 %v439_v46 }
  0x45   :  { %2059 = vmatpush1.xpose.msra.mxu0 %v189_v62  ;;  %2129 = vmatpush1.xpose.msra.mxu1 %v191_v63 }
  0x46   :  { %2060 = vmatprep.subr.mxu0 %v77_v0  ;;  %2130 = vmatprep.subr.mxu1 %v79_v1 }
  0x47   :  { %2094 = vmatprep.mubr.f32.mxu0 %v457_v2  ;;  %2164 = vmatprep.mubr.f32.mxu1 %v458_v3 }
  0x49   :  { %2061 = vmatpush1.xpose.msra.mxu0 %v76_v5  ;;  %2131 = vmatpush1.xpose.msra.mxu1 %v78_v6 }
  0x4a   :  { %2198 = vmatprep.subr.mxu0 %v194_v7  ;;  %2268 = vmatprep.subr.mxu1 %v196_v8 }
  0x4b   :  { %8 = vsyncpa [#allocation3], 0  ;;  %v81_v14 = vld [vmem:[%s5842_s1 + $0x128] sm:$0xff]  ;;  %v83_v15 = vld [vmem:[%s5842_s1 + $0x138] sm:$0xff]  ;;  %v474_v16 = vcombine.high %v466_v9, %v466_v9  ;;  %v475_v17 = vcombine.high %v473_v10, %v473_v10  ;;  %v476_v19 = vcombine.high %v25_v11, %v25_v11  ;;  %v483_v24 = vrot.slane %v25_v11, %v5045_v18 }
  0x4c   :  { %2095 = vmatmul.mubr.f32.vlgmr.msra.gmra.mxu0 %v449_v59  ;;  %2165 = vmatmul.mubr.f32.vlgmr.msra.gmra.mxu1 %v456_v60  ;;  %v80_v20 = vld [vmem:[%s5842_s1 + $0x120] sm:$0xff]  ;;  %v82_v21 = vld [vmem:[%s5842_s1 + $0x130] sm:$0xff]  ;;  %v26_v26 = vld [vmem:[%s5841_s0 + $0x58] sm:$0xff]  ;;  %vm901_vm0 = vcmask 523264   ;;  %vm4987_vm1 = vmmov 0   ;;  %vm4900_vm2 = vcmask 74752  }
  0x4d   :  { %2199 = vmatpush1.xpose.msra.mxu0 %v193_v12  ;;  %2269 = vmatpush1.xpose.msra.mxu1 %v195_v13  ;;  %v198_v22 = vld [vmem:[%s5842_s1 + $0x4d0] sm:$0x3]  ;;  %v200_v23 = vld [vmem:[%s5842_s1 + $0x4e0] sm:$0x3]  ;;  %v490_v25 = vrot.slane %v476_v19, %v5045_v18  ;;  %v197_v27 = vld [vmem:[%s5842_s1 + $0x4c8] sm:$0x3]  ;;  %v491_v31 = vcombine.high %v483_v24, %v483_v24  ;;  %v493_v33 = vcombine.high %v26_v26, %v26_v26 }
  0x4e   :  { %2200 = vmatprep.subr.mxu0 %v81_v14  ;;  %2270 = vmatprep.subr.mxu1 %v83_v15  ;;  %v199_v28 = vld [vmem:[%s5842_s1 + $0x4d8] sm:$0x3]  ;;  %v85_v29 = vld [vmem:[%s5842_s1 + $0x148] sm:$0xff]  ;;  %v84_v34 = vld [vmem:[%s5842_s1 + $0x140] sm:$0xff]  ;;  %v500_v38 = vrot.slane %v26_v26, %v5045_v18 }
  0x4f   :  { %2234 = vmatprep.mubr.f32.mxu0 %v474_v16  ;;  %2304 = vmatprep.mubr.f32.mxu1 %v475_v17  ;;  %v87_v30 = vld [vmem:[%s5842_s1 + $0x158] sm:$0xff]  ;;  %v492_v32 = vcombine.high %v490_v25, %v490_v25  ;;  %v86_v35 = vld [vmem:[%s5842_s1 + $0x150] sm:$0xff]  ;;  %v204_v37 = vld [vmem:[%s5842_s1 + $0x500] sm:$0x3]  ;;  %v507_v39 = vrot.slane %v493_v33, %v5045_v18 }
  0x50   :  { %v202_v36 = vld [vmem:[%s5842_s1 + $0x4f0] sm:$0x3]  ;;  %v27_v40 = vld [vmem:[%s5841_s0 + $0x60] sm:$0xff]  ;;  %v201_v41 = vld [vmem:[%s5842_s1 + $0x4e8] sm:$0x3]  ;;  %v508_v45 = vcombine.high %v500_v38, %v500_v38 }
  0x51   :  { %2201 = vmatpush1.xpose.msra.mxu0 %v80_v20  ;;  %2271 = vmatpush1.xpose.msra.mxu1 %v82_v21  ;;  %v203_v42 = vld [vmem:[%s5842_s1 + $0x4f8] sm:$0x3]  ;;  %v89_v43 = vld [vmem:[%s5842_s1 + $0x168] sm:$0xff]  ;;  %v509_v46 = vcombine.high %v507_v39, %v507_v39  ;;  %v510_v47 = vcombine.high %v27_v40, %v27_v40  ;;  %v88_v48 = vld [vmem:[%s5842_s1 + $0x160] sm:$0xff]  ;;  %v517_v52 = vrot.slane %v27_v40, %v5045_v18 }
  0x52   :  { %2338 = vmatprep.subr.mxu0 %v198_v22  ;;  %2408 = vmatprep.subr.mxu1 %v200_v23  ;;  %v91_v44 = vld [vmem:[%s5842_s1 + $0x178] sm:$0xff]  ;;  %v90_v49 = vld [vmem:[%s5842_s1 + $0x170] sm:$0xff]  ;;  %v208_v51 = vld [vmem:[%s5842_s1 + $0x520] sm:$0x3] }
  0x53   :  { %v206_v50 = vld [vmem:[%s5842_s1 + $0x510] sm:$0x3]  ;;  %v524_v53 = vrot.slane %v510_v47, %v5045_v18  ;;  %v28_v54 = vld [vmem:[%s5841_s0 + $0x68] sm:$0xff]  ;;  %v207_v56 = vld [vmem:[%s5842_s1 + $0x518] sm:$0x3]  ;;  %v525_v59 = vcombine.high %v517_v52, %v517_v52 }
  0x54   :  { %2235 = vmatmul.mubr.f32.vlgmr.msra.gmra.mxu0 %v466_v9  ;;  %2305 = vmatmul.mubr.f32.vlgmr.msra.gmra.mxu1 %v473_v10  ;;  %v205_v55 = vld [vmem:[%s5842_s1 + $0x508] sm:$0x3]  ;;  %v95_v58 = vld [vmem:[%s5842_s1 + $0x198] sm:$0xff]  ;;  %v527_v61 = vcombine.high %v28_v54, %v28_v54  ;;  %v92_v62 = vld [vmem:[%s5842_s1 + $0x180] sm:$0xff]  ;;  %v534_v2 = vrot.slane %v28_v54, %v5045_v18 }
  0x55   :  { %2339 = vmatpush1.xpose.msra.mxu0 %v197_v27  ;;  %2409 = vmatpush1.xpose.msra.mxu1 %v199_v28  ;;  %v93_v57 = vld [vmem:[%s5842_s1 + $0x188] sm:$0xff]  ;;  %v526_v60 = vcombine.high %v524_v53, %v524_v53  ;;  %v94_v63 = vld [vmem:[%s5842_s1 + $0x190] sm:$0xff]  ;;  %v212_v1 = vld [vmem:[%s5842_s1 + $0x540] sm:$0x3] }
  0x56   :  { %2340 = vmatprep.subr.mxu0 %v85_v29  ;;  %2410 = vmatprep.subr.mxu1 %v87_v30  ;;  %v210_v0 = vld [vmem:[%s5842_s1 + $0x530] sm:$0x3]  ;;  %v541_v3 = vrot.slane %v527_v61, %v5045_v18  ;;  %v209_v5 = vld [vmem:[%s5842_s1 + $0x528] sm:$0x3]  ;;  %v211_v6 = vld [vmem:[%s5842_s1 + $0x538] sm:$0x3]  ;;  %v542_v9 = vcombine.high %v534_v2, %v534_v2 }
  0x57   :  { %2374 = vmatprep.mubr.f32.mxu0 %v491_v31  ;;  %2444 = vmatprep.mubr.f32.mxu1 %v492_v32  ;;  %v29_v4 = vld [vmem:[%s5841_s0 + $0x70] sm:$0xff]  ;;  %v97_v7 = vld [vmem:[%s5842_s1 + $0x1a8] sm:$0xff]  ;;  %v99_v8 = vld [vmem:[%s5842_s1 + $0x1b8] sm:$0xff] }
  0x58   :  { %v543_v10 = vcombine.high %v541_v3, %v541_v3  ;;  %v544_v11 = vcombine.high %v29_v4, %v29_v4  ;;  %v96_v12 = vld [vmem:[%s5842_s1 + $0x1a0] sm:$0xff]  ;;  %v98_v13 = vld [vmem:[%s5842_s1 + $0x1b0] sm:$0xff]  ;;  %v551_v16 = vrot.slane %v29_v4, %v5045_v18  ;;  %v30_v19 = vld [vmem:[%s5841_s0 + $0x78] sm:$0xff] }
  0x59   :  { %2341 = vmatpush1.xpose.msra.mxu0 %v84_v34  ;;  %2411 = vmatpush1.xpose.msra.mxu1 %v86_v35  ;;  %v214_v14 = vld [vmem:[%s5842_s1 + $0x550] sm:$0x3]  ;;  %v216_v15 = vld [vmem:[%s5842_s1 + $0x560] sm:$0x3]  ;;  %v213_v20 = vld [vmem:[%s5842_s1 + $0x548] sm:$0x3]  ;;  %v561_v26 = vcombine.high %v30_v19, %v30_v19  ;;  %v568_v31 = vrot.slane %v30_v19, %v5045_v18 }
  0x5a   :  { %2478 = vmatprep.subr.mxu0 %v202_v36  ;;  %2548 = vmatprep.subr.mxu1 %v204_v37  ;;  %v558_v17 = vrot.slane %v544_v11, %v5045_v18  ;;  %v215_v21 = vld [vmem:[%s5842_s1 + $0x558] sm:$0x3]  ;;  %v101_v22 = vld [vmem:[%s5842_s1 + $0x1c8] sm:$0xff]  ;;  %v100_v27 = vld [vmem:[%s5842_s1 + $0x1c0] sm:$0xff] }
  0x5b   :  { %v103_v23 = vld [vmem:[%s5842_s1 + $0x1d8] sm:$0xff]  ;;  %v102_v28 = vld [vmem:[%s5842_s1 + $0x1d0] sm:$0xff]  ;;  %v220_v30 = vld [vmem:[%s5842_s1 + $0x580] sm:$0x3]  ;;  %v575_v32 = vrot.slane %v561_v26, %v5045_v18 }
  0x5c   :  { %2375 = vmatmul.mubr.f32.vlgmr.msra.gmra.mxu0 %v483_v24  ;;  %2445 = vmatmul.mubr.f32.vlgmr.msra.gmra.mxu1 %v490_v25  ;;  %v559_v24 = vcombine.high %v551_v16, %v551_v16  ;;  %v560_v25 = vcombine.high %v558_v17, %v558_v17  ;;  %v218_v29 = vld [vmem:[%s5842_s1 + $0x570] sm:$0x3]  ;;  %v31_v33 = vld [vmem:[%s5841_s0 + $0x80] sm:$0xff]  ;;  %v217_v34 = vld [vmem:[%s5842_s1 + $0x568] sm:$0x3] }
  0x5d   :  { %2479 = vmatpush1.xpose.msra.mxu0 %v201_v41  ;;  %2549 = vmatpush1.xpose.msra.mxu1 %v203_v42  ;;  %v219_v35 = vld [vmem:[%s5842_s1 + $0x578] sm:$0x3]  ;;  %v105_v36 = vld [vmem:[%s5842_s1 + $0x1e8] sm:$0xff]  ;;  %v578_v40 = vcombine.high %v31_v33, %v31_v33  ;;  %v104_v41 = vld [vmem:[%s5842_s1 + $0x1e0] sm:$0xff] }
  0x5e   :  { %2480 = vmatprep.subr.mxu0 %v89_v43  ;;  %2550 = vmatprep.subr.mxu1 %v91_v44  ;;  %v107_v37 = vld [vmem:[%s5842_s1 + $0x1f8] sm:$0xff]  ;;  %v106_v42 = vld [vmem:[%s5842_s1 + $0x1f0] sm:$0xff]  ;;  %v224_v44 = vld [vmem:[%s5842_s1 + $0x5a0] sm:$0x3] }
  0x5f   :  { %2514 = vmatprep.mubr.f32.mxu0 %v508_v45  ;;  %2584 = vmatprep.mubr.f32.mxu1 %v509_v46  ;;  %v222_v43 = vld [vmem:[%s5842_s1 + $0x590] sm:$0x3]  ;;  %v585_v45 = vrot.slane %v31_v33, %v5045_v18  ;;  %v592_v46 = vrot.slane %v578_v40, %v5045_v18  ;;  %v32_v47 = vld [vmem:[%s5841_s0 + $0x88] sm:$0xff]  ;;  %v34_v11 = vld [vmem:[%s5841_s0 + $0x98] sm:$0xff] }
  0x60   :  { %v595_v54 = vcombine.high %v32_v47, %v32_v47  ;;  %v33_v61 = vld [vmem:[%s5841_s0 + $0x90] sm:$0xff]  ;;  %v629_v19 = vcombine.high %v34_v11, %v34_v11  ;;  %v35_v26 = vld [vmem:[%s5841_s0 + $0xa0] sm:$0xff]  ;;  %v36_v40 = vld [vmem:[%s5841_s0 + $0xa8] sm:$0xff] }
  0x61   :  { %2481 = vmatpush1.xpose.msra.mxu0 %v88_v48  ;;  %2551 = vmatpush1.xpose.msra.mxu1 %v90_v49  ;;  %v221_v48 = vld [vmem:[%s5842_s1 + $0x588] sm:$0x3]  ;;  %v223_v49 = vld [vmem:[%s5842_s1 + $0x598] sm:$0x3]  ;;  %v612_v4 = vcombine.high %v33_v61, %v33_v61  ;;  %v646_v33 = vcombine.high %v35_v26, %v35_v26 }
  0x62   :  { %2618 = vmatprep.subr.mxu0 %v206_v50  ;;  %2688 = vmatprep.subr.mxu1 %v208_v51  ;;  %v109_v50 = vld [vmem:[%s5842_s1 + $0x208] sm:$0xff]  ;;  %v111_v51 = vld [vmem:[%s5842_s1 + $0x218] sm:$0xff] }
  0x64   :  { %2515 = vmatmul.mubr.f32.vlgmr.msra.gmra.mxu0 %v500_v38  ;;  %2585 = vmatmul.mubr.f32.vlgmr.msra.gmra.mxu1 %v507_v39  ;;  %v576_v38 = vcombine.high %v568_v31, %v568_v31  ;;  %v577_v39 = vcombine.high %v575_v32, %v575_v32 }
  0x65   :  { %2619 = vmatpush1.xpose.msra.mxu0 %v205_v55  ;;  %2689 = vmatpush1.xpose.msra.mxu1 %v207_v56  ;;  %v108_v55 = vld [vmem:[%s5842_s1 + $0x200] sm:$0xff]  ;;  %v110_v56 = vld [vmem:[%s5842_s1 + $0x210] sm:$0xff] }
  0x66   :  { %2620 = vmatprep.subr.mxu0 %v93_v57  ;;  %2690 = vmatprep.subr.mxu1 %v95_v58  ;;  %v226_v57 = vld [vmem:[%s5842_s1 + $0x5b0] sm:$0x3]  ;;  %v228_v58 = vld [vmem:[%s5842_s1 + $0x5c0] sm:$0x3] }
  0x67   :  { %2654 = vmatprep.mubr.f32.mxu0 %v525_v59  ;;  %2724 = vmatprep.mubr.f32.mxu1 %v526_v60  ;;  %v602_v59 = vrot.slane %v32_v47, %v5045_v18  ;;  %v609_v60 = vrot.slane %v595_v54, %v5045_v18  ;;  %v663_v47 = vcombine.high %v36_v40, %v36_v40  ;;  %v37_v54 = vld [vmem:[%s5841_s0 + $0xb0] sm:$0xff] }
  0x69   :  { %2621 = vmatpush1.xpose.msra.mxu0 %v92_v62  ;;  %2691 = vmatpush1.xpose.msra.mxu1 %v94_v63  ;;  %v225_v62 = vld [vmem:[%s5842_s1 + $0x5a8] sm:$0x3]  ;;  %v227_v63 = vld [vmem:[%s5842_s1 + $0x5b8] sm:$0x3] }
  0x6a   :  { %2758 = vmatprep.subr.mxu0 %v210_v0  ;;  %2828 = vmatprep.subr.mxu1 %v212_v1  ;;  %v113_v0 = vld [vmem:[%s5842_s1 + $0x228] sm:$0xff]  ;;  %v115_v1 = vld [vmem:[%s5842_s1 + $0x238] sm:$0xff] }
  0x6c   :  { %2655 = vmatmul.mubr.f32.vlgmr.msra.gmra.mxu0 %v517_v52  ;;  %2725 = vmatmul.mubr.f32.vlgmr.msra.gmra.mxu1 %v524_v53  ;;  %v593_v52 = vcombine.high %v585_v45, %v585_v45  ;;  %v594_v53 = vcombine.high %v592_v46, %v592_v46 }
  0x6d   :  { %2759 = vmatpush1.xpose.msra.mxu0 %v209_v5  ;;  %2829 = vmatpush1.xpose.msra.mxu1 %v211_v6  ;;  %v112_v5 = vld [vmem:[%s5842_s1 + $0x220] sm:$0xff]  ;;  %v114_v6 = vld [vmem:[%s5842_s1 + $0x230] sm:$0xff] }
  0x6e   :  { %2760 = vmatprep.subr.mxu0 %v97_v7  ;;  %2830 = vmatprep.subr.mxu1 %v99_v8  ;;  %v230_v7 = vld [vmem:[%s5842_s1 + $0x5d0] sm:$0x3]  ;;  %v232_v8 = vld [vmem:[%s5842_s1 + $0x5e0] sm:$0x3] }
  0x6f   :  { %2794 = vmatprep.mubr.f32.mxu0 %v542_v9  ;;  %2864 = vmatprep.mubr.f32.mxu1 %v543_v10  ;;  %v619_v9 = vrot.slane %v33_v61, %v5045_v18  ;;  %v626_v10 = vrot.slane %v612_v4, %v5045_v18  ;;  %v680_v61 = vcombine.high %v37_v54, %v37_v54  ;;  %v38_v4 = vld [vmem:[%s5841_s0 + $0xb8] sm:$0xff] }
  0x71   :  { %2761 = vmatpush1.xpose.msra.mxu0 %v96_v12  ;;  %2831 = vmatpush1.xpose.msra.mxu1 %v98_v13  ;;  %v229_v12 = vld [vmem:[%s5842_s1 + $0x5c8] sm:$0x3]  ;;  %v231_v13 = vld [vmem:[%s5842_s1 + $0x5d8] sm:$0x3] }
  0x72   :  { %2898 = vmatprep.subr.mxu0 %v214_v14  ;;  %2968 = vmatprep.subr.mxu1 %v216_v15  ;;  %v117_v14 = vld [vmem:[%s5842_s1 + $0x248] sm:$0xff]  ;;  %v119_v15 = vld [vmem:[%s5842_s1 + $0x258] sm:$0xff] }
  0x74   :  { %2795 = vmatmul.mubr.f32.vlgmr.msra.gmra.mxu0 %v534_v2  ;;  %2865 = vmatmul.mubr.f32.vlgmr.msra.gmra.mxu1 %v541_v3  ;;  %v610_v2 = vcombine.high %v602_v59, %v602_v59  ;;  %v611_v3 = vcombine.high %v609_v60, %v609_v60 }
  0x75   :  { %2899 = vmatpush1.xpose.msra.mxu0 %v213_v20  ;;  %2969 = vmatpush1.xpose.msra.mxu1 %v215_v21  ;;  %v116_v20 = vld [vmem:[%s5842_s1 + $0x240] sm:$0xff]  ;;  %v118_v21 = vld [vmem:[%s5842_s1 + $0x250] sm:$0xff] }
  0x76   :  { %2900 = vmatprep.subr.mxu0 %v101_v22  ;;  %2970 = vmatprep.subr.mxu1 %v103_v23  ;;  %v234_v22 = vld [vmem:[%s5842_s1 + $0x5f0] sm:$0x3]  ;;  %v236_v23 = vld [vmem:[%s5842_s1 + $0x600] sm:$0x3] }
  0x77   :  { %2934 = vmatprep.mubr.f32.mxu0 %v559_v24  ;;  %3004 = vmatprep.mubr.f32.mxu1 %v560_v25  ;;  %v636_v24 = vrot.slane %v34_v11, %v5045_v18  ;;  %v643_v25 = vrot.slane %v629_v19, %v5045_v18  ;;  %v697_v11 = vcombine.high %v38_v4, %v38_v4  ;;  %v39_v19 = vld [vmem:[%s5841_s0 + $0xc0] sm:$0xff] }
  0x79   :  { %2901 = vmatpush1.xpose.msra.mxu0 %v100_v27  ;;  %2971 = vmatpush1.xpose.msra.mxu1 %v102_v28  ;;  %v233_v27 = vld [vmem:[%s5842_s1 + $0x5e8] sm:$0x3]  ;;  %v235_v28 = vld [vmem:[%s5842_s1 + $0x5f8] sm:$0x3] }
  0x7a   :  { %3038 = vmatprep.subr.mxu0 %v218_v29  ;;  %3108 = vmatprep.subr.mxu1 %v220_v30  ;;  %v121_v29 = vld [vmem:[%s5842_s1 + $0x268] sm:$0xff]  ;;  %v123_v30 = vld [vmem:[%s5842_s1 + $0x278] sm:$0xff] }
  0x7c   :  { %2935 = vmatmul.mubr.f32.vlgmr.msra.gmra.mxu0 %v551_v16  ;;  %3005 = vmatmul.mubr.f32.vlgmr.msra.gmra.mxu1 %v558_v17  ;;  %v627_v16 = vcombine.high %v619_v9, %v619_v9  ;;  %v628_v17 = vcombine.high %v626_v10, %v626_v10 }
  0x7d   :  { %3039 = vmatpush1.xpose.msra.mxu0 %v217_v34  ;;  %3109 = vmatpush1.xpose.msra.mxu1 %v219_v35  ;;  %v120_v34 = vld [vmem:[%s5842_s1 + $0x260] sm:$0xff]  ;;  %v122_v35 = vld [vmem:[%s5842_s1 + $0x270] sm:$0xff] }
  0x7e   :  { %3040 = vmatprep.subr.mxu0 %v105_v36  ;;  %3110 = vmatprep.subr.mxu1 %v107_v37  ;;  %v238_v36 = vld [vmem:[%s5842_s1 + $0x610] sm:$0x3]  ;;  %v240_v37 = vld [vmem:[%s5842_s1 + $0x620] sm:$0x3] }
  0x7f   :  { %3074 = vmatprep.mubr.f32.mxu0 %v576_v38  ;;  %3144 = vmatprep.mubr.f32.mxu1 %v577_v39  ;;  %v653_v38 = vrot.slane %v35_v26, %v5045_v18  ;;  %v660_v39 = vrot.slane %v646_v33, %v5045_v18  ;;  %v714_v26 = vcombine.high %v39_v19, %v39_v19  ;;  %v40_v33 = vld [vmem:[%s5841_s0 + $0xc8] sm:$0xff] }
  0x81   :  { %3041 = vmatpush1.xpose.msra.mxu0 %v104_v41  ;;  %3111 = vmatpush1.xpose.msra.mxu1 %v106_v42  ;;  %v237_v41 = vld [vmem:[%s5842_s1 + $0x608] sm:$0x3]  ;;  %v239_v42 = vld [vmem:[%s5842_s1 + $0x618] sm:$0x3] }
  0x82   :  { %3178 = vmatprep.subr.mxu0 %v222_v43  ;;  %3248 = vmatprep.subr.mxu1 %v224_v44  ;;  %v125_v43 = vld [vmem:[%s5842_s1 + $0x288] sm:$0xff]  ;;  %v127_v44 = vld [vmem:[%s5842_s1 + $0x298] sm:$0xff] }
  0x84   :  { %3075 = vmatmul.mubr.f32.vlgmr.msra.gmra.mxu0 %v568_v31  ;;  %3145 = vmatmul.mubr.f32.vlgmr.msra.gmra.mxu1 %v575_v32  ;;  %v644_v31 = vcombine.high %v636_v24, %v636_v24  ;;  %v645_v32 = vcombine.high %v643_v25, %v643_v25 }
  0x85   :  { %3179 = vmatpush1.xpose.msra.mxu0 %v221_v48  ;;  %3249 = vmatpush1.xpose.msra.mxu1 %v223_v49  ;;  %v124_v48 = vld [vmem:[%s5842_s1 + $0x280] sm:$0xff]  ;;  %v126_v49 = vld [vmem:[%s5842_s1 + $0x290] sm:$0xff] }
  0x86   :  { %3180 = vmatprep.subr.mxu0 %v109_v50  ;;  %3250 = vmatprep.subr.mxu1 %v111_v51  ;;  %v242_v50 = vld [vmem:[%s5842_s1 + $0x630] sm:$0x3]  ;;  %v244_v51 = vld [vmem:[%s5842_s1 + $0x640] sm:$0x3] }
  0x87   :  { %3214 = vmatprep.mubr.f32.mxu0 %v593_v52  ;;  %3284 = vmatprep.mubr.f32.mxu1 %v594_v53  ;;  %v670_v52 = vrot.slane %v36_v40, %v5045_v18  ;;  %v677_v53 = vrot.slane %v663_v47, %v5045_v18  ;;  %v731_v40 = vcombine.high %v40_v33, %v40_v33  ;;  %v41_v47 = vld [vmem:[%s5841_s0 + $0xd0] sm:$0xff] }
  0x89   :  { %3181 = vmatpush1.xpose.msra.mxu0 %v108_v55  ;;  %3251 = vmatpush1.xpose.msra.mxu1 %v110_v56  ;;  %v241_v55 = vld [vmem:[%s5842_s1 + $0x628] sm:$0x3]  ;;  %v243_v56 = vld [vmem:[%s5842_s1 + $0x638] sm:$0x3] }
  0x8a   :  { %3318 = vmatprep.subr.mxu0 %v226_v57  ;;  %3388 = vmatprep.subr.mxu1 %v228_v58  ;;  %v129_v57 = vld [vmem:[%s5842_s1 + $0x2a8] sm:$0xff]  ;;  %v131_v58 = vld [vmem:[%s5842_s1 + $0x2b8] sm:$0xff] }
  0x8c   :  { %3215 = vmatmul.mubr.f32.vlgmr.msra.gmra.mxu0 %v585_v45  ;;  %3285 = vmatmul.mubr.f32.vlgmr.msra.gmra.mxu1 %v592_v46  ;;  %v661_v45 = vcombine.high %v653_v38, %v653_v38  ;;  %v662_v46 = vcombine.high %v660_v39, %v660_v39 }
  0x8d   :  { %3319 = vmatpush1.xpose.msra.mxu0 %v225_v62  ;;  %3389 = vmatpush1.xpose.msra.mxu1 %v227_v63  ;;  %v128_v62 = vld [vmem:[%s5842_s1 + $0x2a0] sm:$0xff]  ;;  %v130_v63 = vld [vmem:[%s5842_s1 + $0x2b0] sm:$0xff] }
  0x8e   :  { %3320 = vmatprep.subr.mxu0 %v113_v0  ;;  %3390 = vmatprep.subr.mxu1 %v115_v1  ;;  %v246_v0 = vld [vmem:[%s5842_s1 + $0x650] sm:$0x3]  ;;  %v248_v1 = vld [vmem:[%s5842_s1 + $0x660] sm:$0x3] }
  0x8f   :  { %3354 = vmatprep.mubr.f32.mxu0 %v610_v2  ;;  %3424 = vmatprep.mubr.f32.mxu1 %v611_v3  ;;  %v687_v2 = vrot.slane %v37_v54, %v5045_v18  ;;  %v694_v3 = vrot.slane %v680_v61, %v5045_v18 }
  0x91   :  { %3321 = vmatpush1.xpose.msra.mxu0 %v112_v5  ;;  %3391 = vmatpush1.xpose.msra.mxu1 %v114_v6  ;;  %v245_v5 = vld [vmem:[%s5842_s1 + $0x648] sm:$0x3]  ;;  %v247_v6 = vld [vmem:[%s5842_s1 + $0x658] sm:$0x3] }
  0x92   :  { %3458 = vmatprep.subr.mxu0 %v230_v7  ;;  %3528 = vmatprep.subr.mxu1 %v232_v8  ;;  %v133_v7 = vld [vmem:[%s5842_s1 + $0x2c8] sm:$0xff]  ;;  %v135_v8 = vld [vmem:[%s5842_s1 + $0x2d8] sm:$0xff] }
  0x94   :  { %3355 = vmatmul.mubr.f32.vlgmr.msra.gmra.mxu0 %v602_v59  ;;  %3425 = vmatmul.mubr.f32.vlgmr.msra.gmra.mxu1 %v609_v60  ;;  %v678_v59 = vcombine.high %v670_v52, %v670_v52  ;;  %v679_v60 = vcombine.high %v677_v53, %v677_v53 }
  0x95   :  { %3459 = vmatpush1.xpose.msra.mxu0 %v229_v12  ;;  %3529 = vmatpush1.xpose.msra.mxu1 %v231_v13  ;;  %v132_v12 = vld [vmem:[%s5842_s1 + $0x2c0] sm:$0xff]  ;;  %v134_v13 = vld [vmem:[%s5842_s1 + $0x2d0] sm:$0xff] }
  0x96   :  { %3460 = vmatprep.subr.mxu0 %v117_v14  ;;  %3530 = vmatprep.subr.mxu1 %v119_v15  ;;  %v250_v14 = vld [vmem:[%s5842_s1 + $0x670] sm:$0x3]  ;;  %v252_v15 = vld [vmem:[%s5842_s1 + $0x680] sm:$0x3] }
  0x97   :  { %3494 = vmatprep.mubr.f32.mxu0 %v627_v16  ;;  %3564 = vmatprep.mubr.f32.mxu1 %v628_v17  ;;  %v704_v16 = vrot.slane %v38_v4, %v5045_v18  ;;  %v711_v17 = vrot.slane %v697_v11, %v5045_v18  ;;  %v42_v4 = vld [vmem:[%s5841_s0 + $0xd8] sm:$0xff] }
  0x98   :  { %v765_v11 = vcombine.high %v42_v4, %v42_v4 }
  0x99   :  { %3461 = vmatpush1.xpose.msra.mxu0 %v116_v20  ;;  %3531 = vmatpush1.xpose.msra.mxu1 %v118_v21  ;;  %v249_v20 = vld [vmem:[%s5842_s1 + $0x668] sm:$0x3]  ;;  %v251_v21 = vld [vmem:[%s5842_s1 + $0x678] sm:$0x3] }
  0x9a   :  { %3598 = vmatprep.subr.mxu0 %v234_v22  ;;  %3668 = vmatprep.subr.mxu1 %v236_v23  ;;  %v137_v22 = vld [vmem:[%s5842_s1 + $0x2e8] sm:$0xff]  ;;  %v139_v23 = vld [vmem:[%s5842_s1 + $0x2f8] sm:$0xff] }
  0x9c   :  { %3495 = vmatmul.mubr.f32.vlgmr.msra.gmra.mxu0 %v619_v9  ;;  %3565 = vmatmul.mubr.f32.vlgmr.msra.gmra.mxu1 %v626_v10  ;;  %v695_v9 = vcombine.high %v687_v2, %v687_v2  ;;  %v696_v10 = vcombine.high %v694_v3, %v694_v3 }
  0x9d   :  { %3599 = vmatpush1.xpose.msra.mxu0 %v233_v27  ;;  %3669 = vmatpush1.xpose.msra.mxu1 %v235_v28  ;;  %v136_v27 = vld [vmem:[%s5842_s1 + $0x2e0] sm:$0xff]  ;;  %v138_v28 = vld [vmem:[%s5842_s1 + $0x2f0] sm:$0xff] }
  0x9e   :  { %3600 = vmatprep.subr.mxu0 %v121_v29  ;;  %3670 = vmatprep.subr.mxu1 %v123_v30  ;;  %v254_v29 = vld [vmem:[%s5842_s1 + $0x690] sm:$0x3]  ;;  %v256_v30 = vld [vmem:[%s5842_s1 + $0x6a0] sm:$0x3] }
  0x9f   :  { %3634 = vmatprep.mubr.f32.mxu0 %v644_v31  ;;  %3704 = vmatprep.mubr.f32.mxu1 %v645_v32  ;;  %v721_v31 = vrot.slane %v39_v19, %v5045_v18  ;;  %v728_v32 = vrot.slane %v714_v26, %v5045_v18  ;;  %v150_v19 = vld [vmem:[%s5842_s1 + $0x350] sm:$0xff]  ;;  %v267_v26 = vld [vmem:[%s5842_s1 + $0x6f8] sm:$0x3] }
  0xa1   :  { %3601 = vmatpush1.xpose.msra.mxu0 %v120_v34  ;;  %3671 = vmatpush1.xpose.msra.mxu1 %v122_v35  ;;  %v253_v34 = vld [vmem:[%s5842_s1 + $0x688] sm:$0x3]  ;;  %v255_v35 = vld [vmem:[%s5842_s1 + $0x698] sm:$0x3] }
  0xa2   :  { %3738 = vmatprep.subr.mxu0 %v238_v36  ;;  %3808 = vmatprep.subr.mxu1 %v240_v37  ;;  %v141_v36 = vld [vmem:[%s5842_s1 + $0x308] sm:$0xff]  ;;  %v143_v37 = vld [vmem:[%s5842_s1 + $0x318] sm:$0xff] }
  0xa4   :  { %3635 = vmatmul.mubr.f32.vlgmr.msra.gmra.mxu0 %v636_v24  ;;  %3705 = vmatmul.mubr.f32.vlgmr.msra.gmra.mxu1 %v643_v25  ;;  %v712_v24 = vcombine.high %v704_v16, %v704_v16  ;;  %v713_v25 = vcombine.high %v711_v17, %v711_v17 }
  0xa5   :  { %3739 = vmatpush1.xpose.msra.mxu0 %v237_v41  ;;  %3809 = vmatpush1.xpose.msra.mxu1 %v239_v42  ;;  %v140_v41 = vld [vmem:[%s5842_s1 + $0x300] sm:$0xff]  ;;  %v142_v42 = vld [vmem:[%s5842_s1 + $0x310] sm:$0xff] }
  0xa6   :  { %3740 = vmatprep.subr.mxu0 %v125_v43  ;;  %3810 = vmatprep.subr.mxu1 %v127_v44  ;;  %v258_v43 = vld [vmem:[%s5842_s1 + $0x6b0] sm:$0x3]  ;;  %v260_v44 = vld [vmem:[%s5842_s1 + $0x6c0] sm:$0x3] }
  0xa7   :  { %3774 = vmatprep.mubr.f32.mxu0 %v661_v45  ;;  %3844 = vmatprep.mubr.f32.mxu1 %v662_v46  ;;  %v738_v45 = vrot.slane %v40_v33, %v5045_v18  ;;  %v745_v46 = vrot.slane %v731_v40, %v5045_v18 }
  0xa9   :  { %3741 = vmatpush1.xpose.msra.mxu0 %v124_v48  ;;  %3811 = vmatpush1.xpose.msra.mxu1 %v126_v49  ;;  %v4916_v48 = vld [vmem:[%s5843_s2] ss:$0 sm:$0xff]  ;;  %v257_v49 = vld [vmem:[%s5842_s1 + $0x6a8] sm:$0x3]  ;;  %v747_v54 = vcombine.high %v745_v46, %v745_v46 }
  0xaa   :  { %3878 = vmatprep.subr.mxu0 %v242_v50  ;;  %3948 = vmatprep.subr.mxu1 %v244_v51  ;;  %v259_v50 = vld [vmem:[%s5842_s1 + $0x6b8] sm:$0x3]  ;;  %v145_v51 = vld [vmem:[%s5842_s1 + $0x328] sm:$0xff] }
  0xac   :  { %3775 = vmatmul.mubr.f32.vlgmr.msra.gmra.mxu0 %v653_v38  ;;  %3845 = vmatmul.mubr.f32.vlgmr.msra.gmra.mxu1 %v660_v39  ;;  %v729_v38 = vcombine.high %v721_v31, %v721_v31  ;;  %v730_v39 = vcombine.high %v728_v32, %v728_v32 }
  0xad   :  { %3879 = vmatpush1.xpose.msra.mxu0 %v241_v55  ;;  %3949 = vmatpush1.xpose.msra.mxu1 %v243_v56  ;;  %v748_v55 = vcombine.high %v41_v47, %v41_v47 }
  0xae   :  { %3880 = vmatprep.subr.mxu0 %v129_v57  ;;  %3950 = vmatprep.subr.mxu1 %v131_v58 }
  0xaf   :  { %3914 = vmatprep.mubr.f32.mxu0 %v678_v59  ;;  %3984 = vmatprep.mubr.f32.mxu1 %v679_v60  ;;  %v144_v60 = vld [vmem:[%s5842_s1 + $0x320] sm:$0xff] }
  0xb1   :  { %3881 = vmatpush1.xpose.msra.mxu0 %v128_v62  ;;  %3951 = vmatpush1.xpose.msra.mxu1 %v130_v63  ;;  %v146_v62 = vld [vmem:[%s5842_s1 + $0x330] sm:$0xff] }
  0xb2   :  { %4018 = vmatprep.subr.mxu0 %v246_v0  ;;  %4088 = vmatprep.subr.mxu1 %v248_v1  ;;  %v262_v0 = vld [vmem:[%s5842_s1 + $0x6d0] sm:$0x3]  ;;  %v264_v1 = vld [vmem:[%s5842_s1 + $0x6e0] sm:$0x3] }
  0xb4   :  { %3915 = vmatmul.mubr.f32.vlgmr.msra.gmra.mxu0 %v670_v52  ;;  %3985 = vmatmul.mubr.f32.vlgmr.msra.gmra.mxu1 %v677_v53  ;;  %v147_v52 = vld [vmem:[%s5842_s1 + $0x338] sm:$0xff]  ;;  %v746_v53 = vcombine.high %v738_v45, %v738_v45 }
  0xb5   :  { %4019 = vmatpush1.xpose.msra.mxu0 %v245_v5  ;;  %4089 = vmatpush1.xpose.msra.mxu1 %v247_v6  ;;  %v261_v5 = vld [vmem:[%s5842_s1 + $0x6c8] sm:$0x3]  ;;  %v263_v6 = vld [vmem:[%s5842_s1 + $0x6d8] sm:$0x3] }
  0xb6   :  { %4020 = vmatprep.subr.mxu0 %v133_v7  ;;  %4090 = vmatprep.subr.mxu1 %v135_v8  ;;  %v149_v7 = vld [vmem:[%s5842_s1 + $0x348] sm:$0xff]  ;;  %v151_v8 = vld [vmem:[%s5842_s1 + $0x358] sm:$0xff] }
  0xb7   :  { %4054 = vmatprep.mubr.f32.mxu0 %v695_v9  ;;  %4124 = vmatprep.mubr.f32.mxu1 %v696_v10 }
  0xb9   :  { %4021 = vmatpush1.xpose.msra.mxu0 %v132_v12  ;;  %4091 = vmatpush1.xpose.msra.mxu1 %v134_v13 }
  0xba   :  { %4158 = vmatprep.subr.mxu0 %v250_v14  ;;  %4228 = vmatprep.subr.mxu1 %v252_v15 }
  0xbc   :  { %4055 = vmatmul.mubr.f32.vlgmr.msra.gmra.mxu0 %v687_v2  ;;  %4125 = vmatmul.mubr.f32.vlgmr.msra.gmra.mxu1 %v694_v3  ;;  %v755_v2 = vrot.slane %v41_v47, %v5045_v18  ;;  %v762_v3 = vrot.slane %v748_v55, %v5045_v18  ;;  %v4917_v47 = vld.sshfl [vmem:[%s5841_s0 + $0xe0] sm:$0x3 pattern:$0x76325410]  ;;  %s4988_s0 = smov [#allocation2]  }
  0xbd   :  { %4159 = vmatpush1.xpose.msra.mxu0 %v249_v20  ;;  %4229 = vmatpush1.xpose.msra.mxu1 %v251_v21  ;;  %v266_v21 = vld [vmem:[%s5842_s1 + $0x6f0] sm:$0x3] }
  0xbe   :  { %4160 = vmatprep.subr.mxu0 %v137_v22  ;;  %4230 = vmatprep.subr.mxu1 %v139_v23  ;;  %v763_v9 = vcombine.high %v755_v2, %v755_v2  ;;  %v764_v10 = vcombine.high %v762_v3, %v762_v3  ;;  %v268_v22 = vld [vmem:[%s5842_s1 + $0x700] sm:$0x3]  ;;  %v772_v23 = vrot.slane %v42_v4, %v5045_v18 }
  0xbf   :  { %4194 = vmatprep.mubr.f32.mxu0 %v712_v24  ;;  %4264 = vmatprep.mubr.f32.mxu1 %v713_v25  ;;  %v779_v24 = vrot.slane %v765_v11, %v5045_v18  ;;  %v265_v25 = vld [vmem:[%s5842_s1 + $0x6e8] sm:$0x3]  ;;  %v155_v18 = vld [vmem:[%s5842_s1 + $0x378] sm:$0xff] }
  0xc1   :  { %4161 = vmatpush1.xpose.msra.mxu0 %v136_v27  ;;  %4231 = vmatpush1.xpose.msra.mxu1 %v138_v28  ;;  %v153_v27 = vld [vmem:[%s5842_s1 + $0x368] sm:$0xff]  ;;  %v780_v28 = vcombine.high %v772_v23, %v772_v23 }
  0xc2   :  { %4298 = vmatprep.subr.mxu0 %v254_v29  ;;  %4368 = vmatprep.subr.mxu1 %v256_v30  ;;  %v781_v29 = vcombine.high %v779_v24, %v779_v24 }
  0xc4   :  { %4195 = vmatmul.mubr.f32.vlgmr.msra.gmra.mxu0 %v704_v16  ;;  %4265 = vmatmul.mubr.f32.vlgmr.msra.gmra.mxu1 %v711_v17  ;;  %v148_v16 = vld [vmem:[%s5842_s1 + $0x340] sm:$0xff] }
  0xc5   :  { %4299 = vmatpush1.xpose.msra.mxu0 %v253_v34  ;;  %4369 = vmatpush1.xpose.msra.mxu1 %v255_v35  ;;  %v152_v34 = vld [vmem:[%s5842_s1 + $0x360] sm:$0xff] }
  0xc6   :  { %4300 = vmatprep.subr.mxu0 %v141_v36  ;;  %4370 = vmatprep.subr.mxu1 %v143_v37  ;;  %v154_v36 = vld [vmem:[%s5842_s1 + $0x370] sm:$0xff] }
  0xc7   :  { %4334 = vmatprep.mubr.f32.mxu0 %v729_v38  ;;  %4404 = vmatprep.mubr.f32.mxu1 %v730_v39  ;;  %v4986_v38 = vmov 0.0   ;;  %v269_v39 = vld [vmem:[%s5842_s1 + $0x708] sm:$0x3] }
  0xc9   :  { %4301 = vmatpush1.xpose.msra.mxu0 %v140_v41  ;;  %4371 = vmatpush1.xpose.msra.mxu1 %v142_v42 }
  0xca   :  { %4438 = vmatprep.subr.mxu0 %v258_v43  ;;  %4508 = vmatprep.subr.mxu1 %v260_v44  ;;  %v156_v44 = vld [vmem:[%s5842_s1 + $0x380] sm:$0xff]  ;;  %s4908_s1 = sshll.u32 %s4988_s0, 4  ;;  %s4909_s1 = int_to_ptr.vmem [resolvable:$true] %s4908_s1 }
  0xcb   :  { %s4963_s9 = scalar_lea.vmem %s4909_s1, 32  ;;  %p4968_p1 = scmp.lt.s32.totalorder %s4909_s1, %s4909_s1 }
  0xcc   :  { %4335 = vmatmul.mubr.f32.vlgmr.msra.gmra.mxu0 %v721_v31  ;;  %v976_v56 = vpop.f32.mrf.mxu0  ;;  %4405 = vmatmul.mubr.f32.vlgmr.msra.gmra.mxu1 %v728_v32  ;;  %v1046_v57 = vpop.f32.mrf.mxu1  ;;  %p4964_p0 = scmp.ne.s32.totalorder %s4909_s1, %s4963_s9  ;;  %p4969_p2 = scmp.lt.s32.totalorder %s4963_s9, %s4963_s9 }
  0xcd   :  { %v977_v58 = vadd.f32 %v4916_v48, %v976_v56  ;;  %4439 = vmatpush1.xpose.msra.mxu0 %v257_v49  ;;  %4509 = vmatpush1.xpose.msra.mxu1 %v259_v50 }
  0xce   :  { %v978_v59 = vpop.f32.mrf.mxu0  ;;  %4440 = vmatprep.subr.mxu0 %v145_v51  ;;  %4510 = vmatprep.subr.mxu1 %v147_v52  ;;  %v1048_v61 = vpop.f32.mrf.mxu1  ;;  %p4970_p3 = por %p4969_p2, %p4968_p1 }
  0xcf   :  { %v1047_v63 = vadd.f32 %v1046_v57, %v977_v58  ;;  %4474 = vmatprep.mubr.f32.mxu0 %v746_v53  ;;  %4544 = vmatprep.mubr.f32.mxu1 %v747_v54 }
  0xd0   :  { %p4971_p4 = pnand %p4970_p3, %p4964_p0 }
  0xd1   :  { %4441 = vmatpush1.xpose.msra.mxu0 %v144_v60  ;;  %4511 = vmatpush1.xpose.msra.mxu1 %v146_v62 }
  0xd2   :  { %4578 = vmatprep.subr.mxu0 %v262_v0  ;;  %4648 = vmatprep.subr.mxu1 %v264_v1 }
  0xd4   :  { %v1116_v12 = vpop.f32.mrf.mxu0  ;;  %4475 = vmatmul.mubr.f32.vlgmr.msra.gmra.mxu0 %v738_v45  ;;  %v1186_v13 = vpop.f32.mrf.mxu1  ;;  %4545 = vmatmul.mubr.f32.vlgmr.msra.gmra.mxu1 %v745_v46 }
  0xd5   :  { %v1117_v14 = vadd.f32 %v1116_v12, %v1047_v63  ;;  %4579 = vmatpush1.xpose.msra.mxu0 %v261_v5  ;;  %4649 = vmatpush1.xpose.msra.mxu1 %v263_v6 }
  0xd6   :  { %v1118_v15 = vpop.f32.mrf.mxu0  ;;  %4580 = vmatprep.subr.mxu0 %v149_v7  ;;  %4650 = vmatprep.subr.mxu1 %v151_v8  ;;  %v1188_v17 = vpop.f32.mrf.mxu1 }
  0xd7   :  { %v1187_v20 = vadd.f32 %v1186_v13, %v1117_v14  ;;  %4614 = vmatprep.mubr.f32.mxu0 %v763_v9  ;;  %4684 = vmatprep.mubr.f32.mxu1 %v764_v10 }
  0xd9   :  { %4581 = vmatpush1.xpose.msra.mxu0 %v148_v16  ;;  %4651 = vmatpush1.xpose.msra.mxu1 %v150_v19 }
  0xda   :  { %4718 = vmatprep.subr.mxu0 %v266_v21  ;;  %4788 = vmatprep.subr.mxu1 %v268_v22 }
  0xdc   :  { %v1256_v30 = vpop.f32.mrf.mxu0  ;;  %4615 = vmatmul.mubr.f32.vlgmr.msra.gmra.mxu0 %v755_v2  ;;  %v1326_v31 = vpop.f32.mrf.mxu1  ;;  %4685 = vmatmul.mubr.f32.vlgmr.msra.gmra.mxu1 %v762_v3 }
  0xdd   :  { %v1257_v32 = vadd.f32 %v1256_v30, %v1187_v20  ;;  %4719 = vmatpush1.xpose.msra.mxu0 %v265_v25  ;;  %4789 = vmatpush1.xpose.msra.mxu1 %v267_v26 }
  0xde   :  { %v1258_v33 = vpop.f32.mrf.mxu0  ;;  %4720 = vmatprep.subr.mxu0 %v153_v27  ;;  %4790 = vmatprep.subr.mxu1 %v155_v18  ;;  %v1328_v35 = vpop.f32.mrf.mxu1 }
  0xdf   :  { %v1327_v37 = vadd.f32 %v1326_v31, %v1257_v32  ;;  %4754 = vmatprep.mubr.f32.mxu0 %v780_v28  ;;  %4824 = vmatprep.mubr.f32.mxu1 %v781_v29 }
  0xe1   :  { %4721 = vmatpush1.xpose.msra.mxu0 %v152_v34  ;;  %4791 = vmatpush1.xpose.msra.mxu1 %v154_v36 }
  0xe2   :  { %4924 = vmatprep.subr.mxu0 %v4986_v38 }
  0xe4   :  { %v1396_v40 = vpop.f32.mrf.mxu0  ;;  %4755 = vmatmul.mubr.f32.vlgmr.msra.gmra.mxu0 %v772_v23  ;;  %v1466_v41 = vpop.f32.mrf.mxu1  ;;  %4825 = vmatmul.mubr.f32.vlgmr.msra.gmra.mxu1 %v779_v24 }
  0xe5   :  { %v1397_v42 = vadd.f32 %v1396_v40, %v1327_v37  ;;  %4925 = vmatpush3.xpose.msk.msra.mxu0 %vm901_vm0, %v269_v39  ;;  %4928 = vmatprep.mubr.msk.f32.mxu0 %vm4987_vm1, %v4986_v38 }
  0xe6   :  { %v1398_v43 = vpop.f32.mrf.mxu0  ;;  %4926 = vmatprep.subr.mxu0 %v4986_v38  ;;  %v1468_v45 = vpop.f32.mrf.mxu1 }
  0xe7   :  { %v1467_v46 = vadd.f32 %v1466_v41, %v1397_v42 }
  0xe9   :  { %4927 = vmatpush3.xpose.msk.msra.mxu0 %vm901_vm0, %v156_v44 }
  0xec   :  { %v1536_v48 = vpop.f32.mrf.mxu0  ;;  %4929 = vmatmul.mubr.msk.f32.vlgmr.msra.gmra.mxu0 %vm901_vm0, %v4917_v47  ;;  %v1606_v49 = vpop.f32.mrf.mxu1 }
  0xed   :  { %v1537_v50 = vadd.f32 %v1536_v48, %v1467_v46 }
  0xee   :  { %v1538_v51 = vpop.f32.mrf.mxu0  ;;  %v1608_v52 = vpop.f32.mrf.mxu1 }
  0xef   :  { %v1607_v53 = vadd.f32 %v1606_v49, %v1537_v50 }
  0xf4   :  { %v1676_v54 = vpop.f32.mrf.mxu0  ;;  %v1746_v55 = vpop.f32.mrf.mxu1 }
  0xf5   :  { %v1677_v56 = vadd.f32 %v1676_v54, %v1607_v53 }
  0xf6   :  { %v1678_v57 = vpop.f32.mrf.mxu0  ;;  %v1748_v58 = vpop.f32.mrf.mxu1 }
  0xf7   :  { %v1747_v59 = vadd.f32 %v1746_v55, %v1677_v56 }
  0xfc   :  { %v1816_v60 = vpop.f32.mrf.mxu0  ;;  %v1886_v61 = vpop.f32.mrf.mxu1 }
  0xfd   :  { %v1817_v62 = vadd.f32 %v1816_v60, %v1747_v59 }
  0xfe   :  { %v1818_v63 = vpop.f32.mrf.mxu0  ;;  %v1888_v0 = vpop.f32.mrf.mxu1 }
  0xff   :  { %v1887_v1 = vadd.f32 %v1886_v61, %v1817_v62 }
 0x104   :  { %v1956_v2 = vpop.f32.mrf.mxu0  ;;  %v2026_v3 = vpop.f32.mrf.mxu1 }
 0x105   :  { %v1957_v4 = vadd.f32 %v1956_v2, %v1887_v1 }
 0x106   :  { %v1958_v5 = vpop.f32.mrf.mxu0  ;;  %v2028_v6 = vpop.f32.mrf.mxu1 }
 0x107   :  { %v2027_v7 = vadd.f32 %v2026_v3, %v1957_v4 }
 0x10c   :  { %v2096_v8 = vpop.f32.mrf.mxu0  ;;  %v2166_v9 = vpop.f32.mrf.mxu1 }
 0x10d   :  { %v2097_v10 = vadd.f32 %v2096_v8, %v2027_v7 }
 0x10e   :  { %v2098_v11 = vpop.f32.mrf.mxu0  ;;  %v2168_v12 = vpop.f32.mrf.mxu1 }
 0x10f   :  { %v2167_v13 = vadd.f32 %v2166_v9, %v2097_v10 }
 0x114   :  { %v2236_v14 = vpop.f32.mrf.mxu0  ;;  %v2306_v15 = vpop.f32.mrf.mxu1 }
 0x115   :  { %v2237_v16 = vadd.f32 %v2236_v14, %v2167_v13 }
 0x116   :  { %v2238_v17 = vpop.f32.mrf.mxu0  ;;  %v2308_v19 = vpop.f32.mrf.mxu1 }
 0x117   :  { %v2307_v20 = vadd.f32 %v2306_v15, %v2237_v16 }
 0x11c   :  { %v2376_v21 = vpop.f32.mrf.mxu0  ;;  %v2446_v22 = vpop.f32.mrf.mxu1 }
 0x11d   :  { %v2377_v23 = vadd.f32 %v2376_v21, %v2307_v20 }
 0x11e   :  { %v2378_v24 = vpop.f32.mrf.mxu0  ;;  %v2448_v25 = vpop.f32.mrf.mxu1 }
 0x11f   :  { %v2447_v26 = vadd.f32 %v2446_v22, %v2377_v23 }
 0x124   :  { %v2516_v27 = vpop.f32.mrf.mxu0  ;;  %v2586_v18 = vpop.f32.mrf.mxu1 }
 0x125   :  { %v2517_v28 = vadd.f32 %v2516_v27, %v2447_v26 }
 0x126   :  { %v2518_v29 = vpop.f32.mrf.mxu0  ;;  %v2588_v30 = vpop.f32.mrf.mxu1 }
 0x127   :  { %v2587_v31 = vadd.f32 %v2586_v18, %v2517_v28 }
 0x12c   :  { %v2656_v32 = vpop.f32.mrf.mxu0  ;;  %v2726_v33 = vpop.f32.mrf.mxu1 }
 0x12d   :  { %v2657_v34 = vadd.f32 %v2656_v32, %v2587_v31 }
 0x12e   :  { %v2658_v35 = vpop.f32.mrf.mxu0  ;;  %v2728_v36 = vpop.f32.mrf.mxu1 }
 0x12f   :  { %v2727_v37 = vadd.f32 %v2726_v33, %v2657_v34 }
 0x134   :  { %v2796_v38 = vpop.f32.mrf.mxu0  ;;  %v2866_v39 = vpop.f32.mrf.mxu1 }
 0x135   :  { %v2797_v54 = vadd.f32 %v2796_v38, %v2727_v37 }
 0x136   :  { %v2798_v40 = vpop.f32.mrf.mxu0  ;;  %v2868_v41 = vpop.f32.mrf.mxu1 }
 0x137   :  { %v2867_v59 = vadd.f32 %v2866_v39, %v2797_v54 }
 0x13c   :  { %v2936_v42 = vpop.f32.mrf.mxu0  ;;  %v3006_v43 = vpop.f32.mrf.mxu1 }
 0x13d   :  { %v2937_v60 = vadd.f32 %v2936_v42, %v2867_v59 }
 0x13e   :  { %v2938_v44 = vpop.f32.mrf.mxu0  ;;  %v3008_v45 = vpop.f32.mrf.mxu1 }
 0x13f   :  { %v3007_v63 = vadd.f32 %v3006_v43, %v2937_v60 }
 0x144   :  { %v3076_v46 = vpop.f32.mrf.mxu0  ;;  %v3146_v47 = vpop.f32.mrf.mxu1 }
 0x145   :  { %v3077_v2 = vadd.f32 %v3076_v46, %v3007_v63 }
 0x146   :  { %v3078_v48 = vpop.f32.mrf.mxu0  ;;  %v3148_v49 = vpop.f32.mrf.mxu1 }
 0x147   :  { %v3147_v3 = vadd.f32 %v3146_v47, %v3077_v2 }
 0x14c   :  { %v3216_v50 = vpop.f32.mrf.mxu0  ;;  %v3286_v51 = vpop.f32.mrf.mxu1 }
 0x14d   :  { %v3217_v6 = vadd.f32 %v3216_v50, %v3147_v3 }
 0x14e   :  { %v3218_v52 = vpop.f32.mrf.mxu0  ;;  %v3288_v53 = vpop.f32.mrf.mxu1 }
 0x14f   :  { %v3287_v9 = vadd.f32 %v3286_v51, %v3217_v6 }
 0x154   :  { %v3356_v55 = vpop.f32.mrf.mxu0  ;;  %v3426_v56 = vpop.f32.mrf.mxu1 }
 0x155   :  { %v3357_v10 = vadd.f32 %v3356_v55, %v3287_v9 }
 0x156   :  { %v3358_v57 = vpop.f32.mrf.mxu0  ;;  %v3428_v58 = vpop.f32.mrf.mxu1 }
 0x157   :  { %v3427_v15 = vadd.f32 %v3426_v56, %v3357_v10 }
 0x15c   :  { %v3496_v61 = vpop.f32.mrf.mxu0  ;;  %v3566_v62 = vpop.f32.mrf.mxu1 }
 0x15d   :  { %v3497_v16 = vadd.f32 %v3496_v61, %v3427_v15 }
 0x15e   :  { %v3498_v0 = vpop.f32.mrf.mxu0  ;;  %v3568_v1 = vpop.f32.mrf.mxu1 }
 0x15f   :  { %v3567_v20 = vadd.f32 %v3566_v62, %v3497_v16 }
 0x164   :  { %v3636_v4 = vpop.f32.mrf.mxu0  ;;  %v3706_v5 = vpop.f32.mrf.mxu1 }
 0x165   :  { %v3637_v23 = vadd.f32 %v3636_v4, %v3567_v20 }
 0x166   :  { %v3638_v7 = vpop.f32.mrf.mxu0  ;;  %v3708_v8 = vpop.f32.mrf.mxu1 }
 0x167   :  { %v3707_v24 = vadd.f32 %v3706_v5, %v3637_v23 }
 0x16c   :  { %v3776_v11 = vpop.f32.mrf.mxu0  ;;  %v3846_v12 = vpop.f32.mrf.mxu1 }
 0x16d   :  { %v3777_v27 = vadd.f32 %v3776_v11, %v3707_v24 }
 0x16e   :  { %v3778_v13 = vpop.f32.mrf.mxu0  ;;  %v3848_v14 = vpop.f32.mrf.mxu1 }
 0x16f   :  { %v3847_v29 = vadd.f32 %v3846_v12, %v3777_v27 }
 0x174   :  { %v3916_v17 = vpop.f32.mrf.mxu0  ;;  %v3986_v19 = vpop.f32.mrf.mxu1 }
 0x175   :  { %v3917_v30 = vadd.f32 %v3916_v17, %v3847_v29 }
 0x176   :  { %v3918_v21 = vpop.f32.mrf.mxu0  ;;  %v3988_v22 = vpop.f32.mrf.mxu1 }
 0x177   :  { %v3987_v35 = vadd.f32 %v3986_v19, %v3917_v30 }
 0x17c   :  { %v4056_v25 = vpop.f32.mrf.mxu0  ;;  %v4126_v26 = vpop.f32.mrf.mxu1 }
 0x17d   :  { %v4057_v36 = vadd.f32 %v4056_v25, %v3987_v35 }
 0x17e   :  { %v4058_v18 = vpop.f32.mrf.mxu0  ;;  %v4128_v28 = vpop.f32.mrf.mxu1 }
 0x17f   :  { %v4127_v39 = vadd.f32 %v4126_v26, %v4057_v36 }
 0x184   :  { %v4196_v31 = vpop.f32.mrf.mxu0  ;;  %v4266_v32 = vpop.f32.mrf.mxu1 }
 0x185   :  { %v4197_v42 = vadd.f32 %v4196_v31, %v4127_v39 }
 0x186   :  { %v4198_v33 = vpop.f32.mrf.mxu0  ;;  %v4268_v34 = vpop.f32.mrf.mxu1 }
 0x187   :  { %v4267_v43 = vadd.f32 %v4266_v32, %v4197_v42 }
 0x18c   :  { %v4336_v37 = vpop.f32.mrf.mxu0  ;;  %v4406_v38 = vpop.f32.mrf.mxu1 }
 0x18d   :  { %v4337_v46 = vadd.f32 %v4336_v37, %v4267_v43 }
 0x18e   :  { %v4338_v40 = vpop.f32.mrf.mxu0  ;;  %v4408_v41 = vpop.f32.mrf.mxu1 }
 0x18f   :  { %v4407_v49 = vadd.f32 %v4406_v38, %v4337_v46 }
 0x194   :  { %v4476_v44 = vpop.f32.mrf.mxu0  ;;  %v4546_v45 = vpop.f32.mrf.mxu1 }
 0x195   :  { %v4477_v50 = vadd.f32 %v4476_v44, %v4407_v49 }
 0x196   :  { %v4478_v47 = vpop.f32.mrf.mxu0  ;;  %v4548_v48 = vpop.f32.mrf.mxu1 }
 0x197   :  { %v4547_v55 = vadd.f32 %v4546_v45, %v4477_v50 }
 0x19c   :  { %v4616_v51 = vpop.f32.mrf.mxu0  ;;  %v4686_v52 = vpop.f32.mrf.mxu1 }
 0x19d   :  { %v4617_v56 = vadd.f32 %v4616_v51, %v4547_v55 }
 0x19e   :  { %v4618_v53 = vpop.f32.mrf.mxu0  ;;  %v4688_v54 = vpop.f32.mrf.mxu1 }
 0x19f   :  { %v4687_v59 = vadd.f32 %v4686_v52, %v4617_v56 }
 0x1a4   :  { %v4756_v57 = vpop.f32.mrf.mxu0  ;;  %v4826_v58 = vpop.f32.mrf.mxu1 }
 0x1a5   :  { %v4757_v62 = vadd.f32 %v4756_v57, %v4687_v59 }
 0x1a6   :  { %v4758_v60 = vpop.f32.mrf.mxu0  ;;  %v4828_v61 = vpop.f32.mrf.mxu1 }
 0x1a7   :  { %v4827_v63 = vadd.f32 %v4826_v58, %v4757_v62 }
 0x1ac   :  { %v4896_v0 = vpop.f32.mrf.mxu0 }
 0x1ad   :  { %v4897_v1 = vadd.f32 %v4896_v0, %v4827_v63 }
 0x1ae   :  { %v4930_v2 = vpop.f32.mrf.mxu0 }
 0x1af   :  { %4901 = vst.msk [vmem:[#allocation2] sm:$0x3] %vm4900_vm2, %v4897_v1 }
 0x1b0   :  { %4974 = shalt.err (!%p4971_p4)
}
 0x1b1   :  { %4911 = dma.vmem_to_hbm [thread:$0]  %s4909_s1, 32, %s5844_s3, [#allocation3]  }
 0x1b2   :  { %4983 = dma.done.wait [#allocation3], 32  }
 0x1b3   :  { %4984 = vsyncadd [#allocation3], 4294967264 }
 0x1b4   :  { %4915 = vsyncpa [#allocation3], 1 }

</bundles_post_ra>
